<compile_context>
chip_gen: v7x
topology: tpu7x:2x2x1
jax: 0.10.0
libtpu: 0.0.40
codegen_flags: <defaults>
</compile_context>

<pallas_src>
import numpy as np
import jax
import jax.numpy as jnp
from jax.experimental import pallas as pl
from jax.experimental.pallas import tpu as pltpu


# ----------------------------------------------------------------------------
# device-aware tiling knobs
# ----------------------------------------------------------------------------
def _max_lanes_for_device():
    """Target lane width for the gMLP slabs: 512 on 256x256-MXU chips, 256 else."""
    try:
        kind = jax.devices()[0].device_kind.lower()
    except Exception:
        return 256
    if any(t in kind for t in ("v2", "v3", "v4", "v5")):
        return 256
    return 512


def _pick_group(nb, c, max_lanes, min_steps=2):
    """Largest divisor G of nb with G*c <= max_lanes; prefer >= min_steps grid
    steps (keeps both v7x TensorCores busy) as long as lane density stays >=128."""
    divs = [g for g in range(1, nb + 1) if nb % g == 0 and g * c <= max_lanes]
    best = max(divs) if divs else 1
    cand = [g for g in divs if nb // g >= min_steps and g * c >= 128]
    if cand:
        best = max(cand)
    return best


# ----------------------------------------------------------------------------
# BlockGmlpLayer kernel: one grid step handles G blocks laid out as (P, G*C).
# ----------------------------------------------------------------------------
def _make_gmlp_kernel(with_resid, P, GC):
    def kernel(*refs):
        if with_resid:
            (x_ref, r_ref, mavg, g1, b1, wuv, buv,
             g2, b2, wn, bn, wo, bo, o_ref) = refs
        else:
            (x_ref, mavg, g1, b1, wuv, buv,
             g2, b2, wn, bn, wo, bo, o_ref) = refs
            r_ref = None

        x = x_ref[0]                                    # (P, GC)  f32
        m = mavg[...]                                   # (GC, GC) block-diag 1/C

        def layer_norm(t, g_ref, b_ref):
            # one matmul for both statistics: rows [t ; t*t] -> [E[t] ; E[t^2]]
            st = jnp.dot(jnp.concatenate([t, t * t], axis=0), m,
                         preferred_element_type=jnp.float32)
            mu, ex2 = st[:P], st[P:]
            var = ex2 - mu * mu
            return (t - mu) * jax.lax.rsqrt(var + 1e-5) * g_ref[...] + b_ref[...]

        xn = layer_norm(x, g1, b1)

        # fused in_project (u | v halves in one MXU pass), tanh-approx GELU (EUP)
        uv = jnp.dot(xn.astype(jnp.bfloat16), wuv[...],
                     preferred_element_type=jnp.float32) + buv[...]
        uv = jax.nn.gelu(uv)
        u, v = uv[:, :GC], uv[:, GC:]

        # BlockGatingUnit: LN(v) then token-mixing Linear over P (all groups at once)
        vn = layer_norm(v, g2, b2)
        vmix = jnp.dot(wn[...], vn.astype(jnp.bfloat16),
                       preferred_element_type=jnp.float32) + bn[...]
        gated = u * (vmix + 1.0)

        out = jnp.dot(gated.astype(jnp.bfloat16), wo[...],
                      preferred_element_type=jnp.float32) + bo[...]
        out = out + x                                   # gMLP shortcut (dropout = 0)
        if with_resid:
            out = out + r_ref[0]                        # fused outer residual
        o_ref[0] = out.astype(o_ref.dtype)

    return kernel


def _build_gmlp_kron(params, G, C, P):
    (ln_g, ln_b, w_in, b_in, ln2_g, ln2_b, w_n, b_n, w_out, b_out) = params
    eye = jnp.eye(G, dtype=jnp.float32)

    def tile(v):
        return jnp.tile(v.reshape(1, -1), (1, G))       # (1, G*C)

    mavg = jnp.kron(eye, jnp.full((C, C), 1.0 / C, jnp.float32))
    w_u = jnp.kron(eye, w_in[:, :C])
    w_v = jnp.kron(eye, w_in[:, C:])
    wuv = jnp.concatenate([w_u, w_v], axis=1).astype(jnp.bfloat16)     # (GC, 2GC)
    buv = jnp.concatenate([tile(b_in[:C]), tile(b_in[C:])], axis=1)    # (1, 2GC)
    return (
        mavg,
        tile(ln_g), tile(ln_b),
        wuv, buv,
        tile(ln2_g), tile(ln2_b),
        w_n.astype(jnp.bfloat16), b_n.reshape(P, 1),
        jnp.kron(eye, w_out).astype(jnp.bfloat16), tile(b_out),
    )


def _gmlp_grouped(xg, kron_params, resid_g=None):
    S, P, GC = xg.shape
    kernel = _make_gmlp_kernel(resid_g is not None, P, GC)
    data_spec = pl.BlockSpec((1, P, GC), lambda s: (s, 0, 0))
    w_specs = [pl.BlockSpec(p.shape, lambda s: (0, 0)) for p in kron_params]
    in_specs = [data_spec] + ([data_spec] if resid_g is not None else []) + w_specs
    args = (xg,) + ((resid_g,) if resid_g is not None else ()) + tuple(kron_params)
    return pl.pallas_call(
        kernel,
        out_shape=jax.ShapeDtypeStruct((S, P, GC), xg.dtype),
        grid=(S,),
        in_specs=in_specs,
        out_specs=data_spec,
        compiler_params=pltpu.CompilerParams(dimension_semantics=("parallel",)),
    )(*args)


def block_gmlp_layer(x, params, block_size, resid=None):
    """x: (N, H, W, D, C) -> same shape.  Optional fused residual of same shape."""
    fh, fw, fd = block_size
    N, H, W, D, C = x.shape
    P = fh * fw * fd
    ph, pw, pd = (-H) % fh, (-W) % fw, (-D) % fd
    pad_cfg = ((0, 0), (0, ph), (0, pw), (0, pd), (0, 0))
    xp = jnp.pad(x, pad_cfg)
    Hp, Wp, Dp = H + ph, W + pw, D + pd
    gh, gw, gd = Hp // fh, Wp // fw, Dp // fd
    NB = N * gh * gw * gd
    G = _pick_group(NB, C, _max_lanes_for_device())
    S = NB // G

    def block_group(a):
        b = a.reshape(N, gh, fh, gw, fw, gd, fd, C)
        b = b.transpose(0, 1, 3, 5, 2, 4, 6, 7).reshape(S, G, P, C)
        return b.transpose(0, 2, 1, 3).reshape(S, P, G * C)

    xg = block_group(xp)
    rg = block_group(jnp.pad(resid, pad_cfg)) if resid is not None else None

    kron_params = _build_gmlp_kron(params, G, C, P)
    yg = _gmlp_grouped(xg, kron_params, rg)

    y = yg.reshape(S, P, G, C).transpose(0, 2, 1, 3)
    y = y.reshape(N, gh, gw, gd, fh, fw, fd, C)
    y = y.transpose(0, 1, 4, 2, 5, 3, 6, 7).reshape(N, Hp, Wp, Dp, C)
    return y[:, :H, :W, :D, :]


def swin_mlp_layer(x, params, block_size, shift_size):
    p1, p2 = params
    y = block_gmlp_layer(x, p1, block_size)
    sh, sw, sd = shift_size
    yp = jnp.pad(y, ((0, 0), (sh, 0), (sw, 0), (sd, 0), (0, 0)))
    rp = jnp.pad(x, ((0, 0), (sh, 0), (sw, 0), (sd, 0), (0, 0)))
    # the outer residual (x) is fused into the second gmlp call; crop undoes the pad
    y2 = block_gmlp_layer(yp, p2, block_size, resid=rp)
    return y2[:, sh:, sw:, sd:, :]


# ----------------------------------------------------------------------------
# RCAB kernel: LN -> conv3x3x3 -> LeakyReLU -> conv3x3x3 -> SE -> residual,
# one batch element per grid step, lane-dense (C, H*W*D) layout.
# ----------------------------------------------------------------------------
def _conv_shift_tables(H, W, D):
    """Roll shifts (jnp.roll convention: rolled[p] == x[p + s]) and zero-padding
    edge masks for a 3x3x3 'same' conv on the (C, H*W*D) lane-flattened layout."""
    WD = W * D
    HWD = H * WD
    hh, ww, dd = np.meshgrid(np.arange(H), np.arange(W), np.arange(D), indexing="ij")
    shifts, masks = [], []
    for oh in (-1, 0, 1):
        for ow in (-1, 0, 1):
            for od in (-1, 0, 1):
                s = oh * WD + ow * D + od
                shifts.append(int((-s) % HWD))
                m = ((hh + oh >= 0) & (hh + oh < H) &
                     (ww + ow >= 0) & (ww + ow < W) &
                     (dd + od >= 0) & (dd + od < D))
                masks.append(m.reshape(HWD))
    return tuple(shifts), np.stack(masks).astype(np.float32)   # (27, HWD)


def _make_rcab_kernel(with_resid, neg_slope, shifts):
    def kernel(*refs):
        if with_resid:
            (x_ref, r_ref, mask_ref, ln_g, ln_b, w1, b1, w2, b2,
             ca_w0, ca_b0, ca_w1, ca_b1, o_ref) = refs
        else:
            (x_ref, mask_ref, ln_g, ln_b, w1, b1, w2, b2,
             ca_w0, ca_b0, ca_w1, ca_b1, o_ref) = refs
            r_ref = None

        x = x_ref[0]                                    # (C, HWD)
        edge_mask = mask_ref[...]                       # (27*C, HWD)

        # LayerNorm over channels (the sublane axis)
        mu = jnp.mean(x, axis=0, keepdims=True)
        xc = x - mu
        var = jnp.mean(xc * xc, axis=0, keepdims=True)
        xn = xc * jax.lax.rsqrt(var + 1e-5) * ln_g[...] + ln_b[...]

        def conv3x3x3(inp, w_ref, b_ref):
            # 'same' conv = 27 XLU lane rotations + edge mask + ONE MXU matmul
            cols = [pltpu.roll(inp, shift=sh, axis=1) if sh else inp
                    for sh in shifts]
            col = jnp.concatenate(cols, axis=0) * edge_mask        # (27*C, HWD)
            return jnp.dot(w_ref[...], col,
                           preferred_element_type=jnp.float32) + b_ref[...]

        y1 = conv3x3x3(xn, w1, b1)
        y1 = jnp.where(y1 >= 0.0, y1, neg_slope * y1)   # LeakyReLU(0.2)
        y2 = conv3x3x3(y1, w2, b2)

        # CALayer squeeze-excite: spatial mean -> 1x1 convs -> sigmoid channel scale
        mpool = jnp.mean(y2, axis=1, keepdims=True)     # (C, 1)
        z = jnp.maximum(
            jnp.dot(ca_w0[...], mpool, preferred_element_type=jnp.float32) + ca_b0[...],
            0.0)
        logits = jnp.dot(ca_w1[...], z, preferred_element_type=jnp.float32) + ca_b1[...]
        scale = 1.0 / (1.0 + jnp.exp(-logits))          # sigmoid, (C, 1)

        out = y2 * scale + x                            # RCAB shortcut
        if with_resid:
            out = out + r_ref[0]                        # fused outer residual
        o_ref[0] = out.astype(o_ref.dtype)

    return kernel


def rcab(x, params, resid=None, lrelu_slope=0.2):
    """x: (N, C, H, W, D) channel-major -> same shape.  Optional fused residual."""
    N, C, H, W, D = x.shape
    HWD = H * W * D
    (ln_g, ln_b, w1, b1, w2, b2, ca_w0, ca_b0, ca_w1, ca_b1) = params
    Cr = ca_w0.shape[0]

    shifts, masks27 = _conv_shift_tables(H, W, D)
    edge_mask = jnp.asarray(np.repeat(masks27, C, axis=0))        # (27*C, HWD)

    xf = x.reshape(N, C, HWD)
    rf = resid.reshape(N, C, HWD) if resid is not None else None

    kernel = _make_rcab_kernel(resid is not None, lrelu_slope, shifts)
    vol_spec = pl.BlockSpec((1, C, HWD), lambda i: (i, 0, 0))
    weight_args = (
        edge_mask,
        ln_g.reshape(C, 1), ln_b.reshape(C, 1),
        w1, b1.reshape(C, 1), w2, b2.reshape(C, 1),
        ca_w0, ca_b0.reshape(Cr, 1), ca_w1, ca_b1.reshape(C, 1),
    )
    weight_specs = [pl.BlockSpec(w.shape, lambda i: (0, 0)) for w in weight_args]
    in_specs = [vol_spec] + ([vol_spec] if resid is not None else []) + weight_specs
    args = (xf,) + ((rf,) if resid is not None else ()) + weight_args

    out = pl.pallas_call(
        kernel,
        out_shape=jax.ShapeDtypeStruct((N, C, HWD), x.dtype),
        grid=(N,),
        in_specs=in_specs,
        out_specs=vol_spec,
        compiler_params=pltpu.CompilerParams(dimension_semantics=("parallel",)),
    )(*args)
    return out.reshape(N, C, H, W, D)


# ----------------------------------------------------------------------------
# Full SwinMLP_Block forward
# ----------------------------------------------------------------------------
def swin_mlp_block(x_in, params, block_size, shift_size):
    """x_in: (N, C, H, W, D) -> (N, C, H, W, D)."""
    to_cl = lambda a: jnp.transpose(a, (0, 2, 3, 4, 1))   # channel-last for gMLP
    to_cf = lambda a: jnp.transpose(a, (0, 4, 1, 2, 3))   # channel-major for RCAB
    x = swin_mlp_layer(to_cl(x_in), params["mlp0"], block_size, shift_size)
    x = rcab(to_cf(x), params["rcab0"])
    x = swin_mlp_layer(to_cl(x), params["mlp1"], block_size, shift_size)
    # final SwinMLP_Block residual (+ x_in) fused into the last RCAB kernel;
    # output is already channel-major so no final transpose is needed.
    x = rcab(to_cf(x), params["rcab1"], resid=x_in)
    return x


# ----------------------------------------------------------------------------
# Deterministic parameter initialization (shapes follow the torch __init__;
# see the "weight conventions" note at the top for porting trained weights).
# ----------------------------------------------------------------------------
def init_gmlp_params(key, C, P):
    k0, k1, k2 = jax.random.split(key, 3)
    return (
        jnp.ones((C,), jnp.float32), jnp.zeros((C,), jnp.float32),   # LayerNorm
        0.1 * jax.random.normal(k0, (C, 2 * C), jnp.float32),        # in_project (in,out)
        jnp.zeros((2 * C,), jnp.float32),
        jnp.ones((C,), jnp.float32), jnp.zeros((C,), jnp.float32),   # gating LayerNorm
        0.1 * jax.random.normal(k1, (P, P), jnp.float32),            # Dense_0 token mix
        jnp.zeros((P,), jnp.float32),
        0.1 * jax.random.normal(k2, (C, C), jnp.float32),            # out_project (in,out)
        jnp.zeros((C,), jnp.float32),
    )


def init_rcab_params(key, C, reduction=4):
    k0, k1, k2, k3 = jax.random.split(key, 4)
    Cr = max(C // reduction, 1)
    return (
        jnp.ones((C,), jnp.float32), jnp.zeros((C,), jnp.float32),   # LayerNorm
        # conv weights stored flattened: (C_out, C_in, 3,3,3) -> (C_out, 27*C_in)
        0.1 * jax.random.normal(k0, (C, 27 * C), jnp.float32),
        jnp.zeros((C,), jnp.float32),
        0.1 * jax.random.normal(k1, (C, 27 * C), jnp.float32),
        jnp.zeros((C,), jnp.float32),
        0.1 * jax.random.normal(k2, (Cr, C), jnp.float32),           # CA Conv_0 (out,in)
        jnp.zeros((Cr,), jnp.float32),
        0.1 * jax.random.normal(k3, (C, Cr), jnp.float32),           # CA Conv_1 (out,in)
        jnp.zeros((C,), jnp.float32),
    )


if __name__ == "__main__":
    N, C, H, W, D = 2, 8, 8, 8, 8
    block_size = (4, 4, 4)
    shift_size = (2, 2, 2)
    P = block_size[0] * block_size[1] * block_size[2]

    key = jax.random.PRNGKey(0)
    keys = jax.random.split(key, 7)
    params = {
        "mlp0": (init_gmlp_params(keys[0], C, P), init_gmlp_params(keys[1], C, P)),
        "rcab0": init_rcab_params(keys[2], C),
        "mlp1": (init_gmlp_params(keys[3], C, P), init_gmlp_params(keys[4], C, P)),
        "rcab1": init_rcab_params(keys[5], C),
    }

    x_in = jax.random.normal(keys[6], (N, C, H, W, D), jnp.float32)

    fwd = jax.jit(swin_mlp_block, static_argnums=(2, 3))
    out = jax.block_until_ready(fwd(x_in, params, block_size, shift_size))

    assert out.shape == (N, C, H, W, D)
    assert bool(jnp.isfinite(out).all())
    print("KERNEL_OK")
</pallas_src>

<mosaic_0001>
module attributes {stable_mosaic.version = 11 : i64} {
  func.func @kernel(%arg0: i32, %arg1: memref<1x64x128xf32, #tpu.memory_space<vmem>>, %arg2: memref<128x128xf32, #tpu.memory_space<vmem>>, %arg3: memref<1x128xf32, #tpu.memory_space<vmem>>, %arg4: memref<1x128xf32, #tpu.memory_space<vmem>>, %arg5: memref<128x256xbf16, #tpu.memory_space<vmem>>, %arg6: memref<1x256xf32, #tpu.memory_space<vmem>>, %arg7: memref<1x128xf32, #tpu.memory_space<vmem>>, %arg8: memref<1x128xf32, #tpu.memory_space<vmem>>, %arg9: memref<64x64xbf16, #tpu.memory_space<vmem>>, %arg10: memref<64x1xf32, #tpu.memory_space<vmem>>, %arg11: memref<128x128xbf16, #tpu.memory_space<vmem>>, %arg12: memref<1x128xf32, #tpu.memory_space<vmem>>, %arg13: memref<1x64x128xf32, #tpu.memory_space<vmem>>) attributes {dimension_semantics = [#tpu.dimension_semantics<parallel>], iteration_bounds = array<i64: 1>, scalar_prefetch = 0 : i64, scratch_operands = 0 : i64, tpu.core_type = #tpu.core_type<tc>, window_params = [{transform_indices = @transform_0, window_bounds = array<i64: 1, 64, 128>}, {pipeline_mode = #tpu.pipeline_mode<synchronous>, transform_indices = @transform_1, window_bounds = array<i64: 128, 128>}, {pipeline_mode = #tpu.pipeline_mode<synchronous>, transform_indices = @transform_2, window_bounds = array<i64: 1, 128>}, {pipeline_mode = #tpu.pipeline_mode<synchronous>, transform_indices = @transform_3, window_bounds = array<i64: 1, 128>}, {pipeline_mode = #tpu.pipeline_mode<synchronous>, transform_indices = @transform_4, window_bounds = array<i64: 128, 256>}, {pipeline_mode = #tpu.pipeline_mode<synchronous>, transform_indices = @transform_5, window_bounds = array<i64: 1, 256>}, {pipeline_mode = #tpu.pipeline_mode<synchronous>, transform_indices = @transform_6, window_bounds = array<i64: 1, 128>}, {pipeline_mode = #tpu.pipeline_mode<synchronous>, transform_indices = @transform_7, window_bounds = array<i64: 1, 128>}, {pipeline_mode = #tpu.pipeline_mode<synchronous>, transform_indices = @transform_8, window_bounds = array<i64: 64, 64>}, {pipeline_mode = #tpu.pipeline_mode<synchronous>, transform_indices = @transform_9, window_bounds = array<i64: 64, 1>}, {pipeline_mode = #tpu.pipeline_mode<synchronous>, transform_indices = @transform_10, window_bounds = array<i64: 128, 128>}, {pipeline_mode = #tpu.pipeline_mode<synchronous>, transform_indices = @transform_11, window_bounds = array<i64: 1, 128>}, {transform_indices = @transform_12, window_bounds = array<i64: 1, 64, 128>}]} {
    %c0 = arith.constant 0 : index
    %c0_0 = arith.constant 0 : index
    %c0_1 = arith.constant 0 : index
    %0 = vector.load %arg1[%c0, %c0_0, %c0_1] : memref<1x64x128xf32, #tpu.memory_space<vmem>>, vector<1x64x128xf32>
    %1 = vector.shape_cast %0 : vector<1x64x128xf32> to vector<64x128xf32>
    %c0_2 = arith.constant 0 : index
    %c0_3 = arith.constant 0 : index
    %2 = vector.load %arg2[%c0_2, %c0_3] : memref<128x128xf32, #tpu.memory_space<vmem>>, vector<128x128xf32>
    %3 = arith.mulf %1, %1 : vector<64x128xf32>
    %4 = tpu.concatenate %1, %3 in 0 : vector<64x128xf32>, vector<64x128xf32> -> vector<128x128xf32>
    %cst = arith.constant dense<0.000000e+00> : vector<128x128xf32>
    %5 = tpu.matmul %4, %2, %cst {dimension_numbers = #tpu.dot_dimension_numbers<[1], [0], [0], [1], [0, 0, 1, 1], [], []>} : vector<128x128xf32>, vector<128x128xf32>, vector<128x128xf32> -> vector<128x128xf32>
    %6 = vector.extract_strided_slice %5 {offsets = [0, 0], sizes = [64, 128], strides = [1, 1]} : vector<128x128xf32> to vector<64x128xf32>
    %7 = vector.extract_strided_slice %5 {offsets = [64, 0], sizes = [64, 128], strides = [1, 1]} : vector<128x128xf32> to vector<64x128xf32>
    %8 = arith.mulf %6, %6 : vector<64x128xf32>
    %9 = arith.subf %7, %8 : vector<64x128xf32>
    %10 = arith.subf %1, %6 : vector<64x128xf32>
    %cst_4 = arith.constant 9.99999974E-6 : f32
    %11 = vector.broadcast %cst_4 : f32 to vector<64x128xf32>
    %12 = arith.addf %9, %11 : vector<64x128xf32>
    %13 = math.rsqrt %12 : vector<64x128xf32>
    %14 = arith.mulf %10, %13 : vector<64x128xf32>
    %c0_5 = arith.constant 0 : index
    %c0_6 = arith.constant 0 : index
    %15 = vector.load %arg3[%c0_5, %c0_6] : memref<1x128xf32, #tpu.memory_space<vmem>>, vector<1x128xf32>
    %16 = vector.broadcast %15 : vector<1x128xf32> to vector<64x128xf32>
    %17 = arith.mulf %14, %16 : vector<64x128xf32>
    %c0_7 = arith.constant 0 : index
    %c0_8 = arith.constant 0 : index
    %18 = vector.load %arg4[%c0_7, %c0_8] : memref<1x128xf32, #tpu.memory_space<vmem>>, vector<1x128xf32>
    %19 = vector.broadcast %18 : vector<1x128xf32> to vector<64x128xf32>
    %20 = arith.addf %17, %19 : vector<64x128xf32>
    %21 = arith.truncf %20 : vector<64x128xf32> to vector<64x128xbf16>
    %c0_9 = arith.constant 0 : index
    %c0_10 = arith.constant 0 : index
    %22 = vector.load %arg5[%c0_9, %c0_10] : memref<128x256xbf16, #tpu.memory_space<vmem>>, vector<128x256xbf16>
    %cst_11 = arith.constant dense<0.000000e+00> : vector<64x256xf32>
    %23 = tpu.matmul %21, %22, %cst_11 {dimension_numbers = #tpu.dot_dimension_numbers<[1], [0], [0], [1], [0, 0, 1, 1], [], []>} : vector<64x128xbf16>, vector<128x256xbf16>, vector<64x256xf32> -> vector<64x256xf32>
    %c0_12 = arith.constant 0 : index
    %c0_13 = arith.constant 0 : index
    %24 = vector.load %arg6[%c0_12, %c0_13] : memref<1x256xf32, #tpu.memory_space<vmem>>, vector<1x256xf32>
    %25 = vector.broadcast %24 : vector<1x256xf32> to vector<64x256xf32>
    %26 = arith.addf %23, %25 : vector<64x256xf32>
    %27 = arith.mulf %26, %26 : vector<64x256xf32>
    %28 = arith.mulf %26, %27 : vector<64x256xf32>
    %cst_14 = arith.constant 4.471500e-02 : f32
    %29 = vector.broadcast %cst_14 : f32 to vector<64x256xf32>
    %30 = arith.mulf %29, %28 : vector<64x256xf32>
    %31 = arith.addf %26, %30 : vector<64x256xf32>
    %cst_15 = arith.constant 0.797884583 : f32
    %32 = vector.broadcast %cst_15 : f32 to vector<64x256xf32>
    %33 = arith.mulf %32, %31 : vector<64x256xf32>
    %34 = math.tanh %33 : vector<64x256xf32>
    %cst_16 = arith.constant 1.000000e+00 : f32
    %35 = vector.broadcast %cst_16 : f32 to vector<64x256xf32>
    %36 = arith.addf %35, %34 : vector<64x256xf32>
    %cst_17 = arith.constant 5.000000e-01 : f32
    %37 = vector.broadcast %cst_17 : f32 to vector<64x256xf32>
    %38 = arith.mulf %37, %36 : vector<64x256xf32>
    %39 = arith.mulf %26, %38 : vector<64x256xf32>
    %40 = vector.extract_strided_slice %39 {offsets = [0, 0], sizes = [64, 128], strides = [1, 1]} : vector<64x256xf32> to vector<64x128xf32>
    %41 = vector.extract_strided_slice %39 {offsets = [0, 128], sizes = [64, 128], strides = [1, 1]} : vector<64x256xf32> to vector<64x128xf32>
    %42 = arith.mulf %41, %41 : vector<64x128xf32>
    %43 = tpu.concatenate %41, %42 in 0 : vector<64x128xf32>, vector<64x128xf32> -> vector<128x128xf32>
    %cst_18 = arith.constant dense<0.000000e+00> : vector<128x128xf32>
    %44 = tpu.matmul %43, %2, %cst_18 {dimension_numbers = #tpu.dot_dimension_numbers<[1], [0], [0], [1], [0, 0, 1, 1], [], []>} : vector<128x128xf32>, vector<128x128xf32>, vector<128x128xf32> -> vector<128x128xf32>
    %45 = vector.extract_strided_slice %44 {offsets = [0, 0], sizes = [64, 128], strides = [1, 1]} : vector<128x128xf32> to vector<64x128xf32>
    %46 = vector.extract_strided_slice %44 {offsets = [64, 0], sizes = [64, 128], strides = [1, 1]} : vector<128x128xf32> to vector<64x128xf32>
    %47 = arith.mulf %45, %45 : vector<64x128xf32>
    %48 = arith.subf %46, %47 : vector<64x128xf32>
    %49 = arith.subf %41, %45 : vector<64x128xf32>
    %cst_19 = arith.constant 9.99999974E-6 : f32
    %50 = vector.broadcast %cst_19 : f32 to vector<64x128xf32>
    %51 = arith.addf %48, %50 : vector<64x128xf32>
    %52 = math.rsqrt %51 : vector<64x128xf32>
    %53 = arith.mulf %49, %52 : vector<64x128xf32>
    %c0_20 = arith.constant 0 : index
    %c0_21 = arith.constant 0 : index
    %54 = vector.load %arg7[%c0_20, %c0_21] : memref<1x128xf32, #tpu.memory_space<vmem>>, vector<1x128xf32>
    %55 = vector.broadcast %54 : vector<1x128xf32> to vector<64x128xf32>
    %56 = arith.mulf %53, %55 : vector<64x128xf32>
    %c0_22 = arith.constant 0 : index
    %c0_23 = arith.constant 0 : index
    %57 = vector.load %arg8[%c0_22, %c0_23] : memref<1x128xf32, #tpu.memory_space<vmem>>, vector<1x128xf32>
    %58 = vector.broadcast %57 : vector<1x128xf32> to vector<64x128xf32>
    %59 = arith.addf %56, %58 : vector<64x128xf32>
    %c0_24 = arith.constant 0 : index
    %c0_25 = arith.constant 0 : index
    %60 = vector.load %arg9[%c0_24, %c0_25] : memref<64x64xbf16, #tpu.memory_space<vmem>>, vector<64x64xbf16>
    %61 = arith.truncf %59 : vector<64x128xf32> to vector<64x128xbf16>
    %cst_26 = arith.constant dense<0.000000e+00> : vector<64x128xf32>
    %62 = tpu.matmul %60, %61, %cst_26 {dimension_numbers = #tpu.dot_dimension_numbers<[1], [0], [0], [1], [0, 0, 1, 1], [], []>} : vector<64x64xbf16>, vector<64x128xbf16>, vector<64x128xf32> -> vector<64x128xf32>
    %c0_27 = arith.constant 0 : index
    %c0_28 = arith.constant 0 : index
    %63 = vector.load %arg10[%c0_27, %c0_28] : memref<64x1xf32, #tpu.memory_space<vmem>>, vector<64x1xf32>
    %64 = vector.broadcast %63 : vector<64x1xf32> to vector<64x128xf32>
    %65 = arith.addf %62, %64 : vector<64x128xf32>
    %cst_29 = arith.constant 1.000000e+00 : f32
    %66 = vector.broadcast %cst_29 : f32 to vector<64x128xf32>
    %67 = arith.addf %65, %66 : vector<64x128xf32>
    %68 = arith.mulf %40, %67 : vector<64x128xf32>
    %69 = arith.truncf %68 : vector<64x128xf32> to vector<64x128xbf16>
    %c0_30 = arith.constant 0 : index
    %c0_31 = arith.constant 0 : index
    %70 = vector.load %arg11[%c0_30, %c0_31] : memref<128x128xbf16, #tpu.memory_space<vmem>>, vector<128x128xbf16>
    %cst_32 = arith.constant dense<0.000000e+00> : vector<64x128xf32>
    %71 = tpu.matmul %69, %70, %cst_32 {dimension_numbers = #tpu.dot_dimension_numbers<[1], [0], [0], [1], [0, 0, 1, 1], [], []>} : vector<64x128xbf16>, vector<128x128xbf16>, vector<64x128xf32> -> vector<64x128xf32>
    %c0_33 = arith.constant 0 : index
    %c0_34 = arith.constant 0 : index
    %72 = vector.load %arg12[%c0_33, %c0_34] : memref<1x128xf32, #tpu.memory_space<vmem>>, vector<1x128xf32>
    %73 = vector.broadcast %72 : vector<1x128xf32> to vector<64x128xf32>
    %74 = arith.addf %71, %73 : vector<64x128xf32>
    %75 = arith.addf %74, %1 : vector<64x128xf32>
    %c0_35 = arith.constant 0 : index
    %c0_36 = arith.constant 0 : index
    %c0_37 = arith.constant 0 : index
    %76 = vector.load %arg13[%c0_35, %c0_36, %c0_37] : memref<1x64x128xf32, #tpu.memory_space<vmem>>, vector<1x64x128xf32>
    %77 = vector.shape_cast %76 : vector<1x64x128xf32> to vector<64x128xf32>
    %78 = vector.shape_cast %75 : vector<64x128xf32> to vector<1x64x128xf32>
    tpu.vector_store %arg13[%c0_35, %c0_36, %c0_37], %78 {strides = array<i32>} : memref<1x64x128xf32, #tpu.memory_space<vmem>>, vector<1x64x128xf32>,
    return
  }
  func.func @transform_0(%arg0: i32) -> (i32, i32, i32) {
    %c0_i32 = arith.constant 0 : i32
    %c0_i32_0 = arith.constant 0 : i32
    %c0_i32_1 = arith.constant 0 : i32
    return %arg0, %c0_i32, %c0_i32_0 : i32, i32, i32
  }
  func.func @transform_1(%arg0: i32) -> (i32, i32) {
    %c0_i32 = arith.constant 0 : i32
    %c0_i32_0 = arith.constant 0 : i32
    %c0_i32_1 = arith.constant 0 : i32
    return %c0_i32, %c0_i32_0 : i32, i32
  }
  func.func @transform_2(%arg0: i32) -> (i32, i32) {
    %c0_i32 = arith.constant 0 : i32
    %c0_i32_0 = arith.constant 0 : i32
    %c0_i32_1 = arith.constant 0 : i32
    return %c0_i32, %c0_i32_0 : i32, i32
  }
  func.func @transform_3(%arg0: i32) -> (i32, i32) {
    %c0_i32 = arith.constant 0 : i32
    %c0_i32_0 = arith.constant 0 : i32
    %c0_i32_1 = arith.constant 0 : i32
    return %c0_i32, %c0_i32_0 : i32, i32
  }
  func.func @transform_4(%arg0: i32) -> (i32, i32) {
    %c0_i32 = arith.constant 0 : i32
    %c0_i32_0 = arith.constant 0 : i32
    %c0_i32_1 = arith.constant 0 : i32
    return %c0_i32, %c0_i32_0 : i32, i32
  }
  func.func @transform_5(%arg0: i32) -> (i32, i32) {
    %c0_i32 = arith.constant 0 : i32
    %c0_i32_0 = arith.constant 0 : i32
    %c0_i32_1 = arith.constant 0 : i32
    return %c0_i32, %c0_i32_0 : i32, i32
  }
  func.func @transform_6(%arg0: i32) -> (i32, i32) {
    %c0_i32 = arith.constant 0 : i32
    %c0_i32_0 = arith.constant 0 : i32
    %c0_i32_1 = arith.constant 0 : i32
    return %c0_i32, %c0_i32_0 : i32, i32
  }
  func.func @transform_7(%arg0: i32) -> (i32, i32) {
    %c0_i32 = arith.constant 0 : i32
    %c0_i32_0 = arith.constant 0 : i32
    %c0_i32_1 = arith.constant 0 : i32
    return %c0_i32, %c0_i32_0 : i32, i32
  }
  func.func @transform_8(%arg0: i32) -> (i32, i32) {
    %c0_i32 = arith.constant 0 : i32
    %c0_i32_0 = arith.constant 0 : i32
    %c0_i32_1 = arith.constant 0 : i32
    return %c0_i32, %c0_i32_0 : i32, i32
  }
  func.func @transform_9(%arg0: i32) -> (i32, i32) {
    %c0_i32 = arith.constant 0 : i32
    %c0_i32_0 = arith.constant 0 : i32
    %c0_i32_1 = arith.constant 0 : i32
    return %c0_i32, %c0_i32_0 : i32, i32
  }
  func.func @transform_10(%arg0: i32) -> (i32, i32) {
    %c0_i32 = arith.constant 0 : i32
    %c0_i32_0 = arith.constant 0 : i32
    %c0_i32_1 = arith.constant 0 : i32
    return %c0_i32, %c0_i32_0 : i32, i32
  }
  func.func @transform_11(%arg0: i32) -> (i32, i32) {
    %c0_i32 = arith.constant 0 : i32
    %c0_i32_0 = arith.constant 0 : i32
    %c0_i32_1 = arith.constant 0 : i32
    return %c0_i32, %c0_i32_0 : i32, i32
  }
  func.func @transform_12(%arg0: i32) -> (i32, i32, i32) {
    %c0_i32 = arith.constant 0 : i32
    %c0_i32_0 = arith.constant 0 : i32
    %c0_i32_1 = arith.constant 0 : i32
    return %arg0, %c0_i32, %c0_i32_0 : i32, i32, i32
  }
}

module attributes {stable_mosaic.version = 11 : i64} {
  func.func @kernel(%arg0: i32, %arg1: memref<1x64x216xf32, #tpu.memory_space<vmem>>, %arg2: memref<1x64x216xf32, #tpu.memory_space<vmem>>, %arg3: memref<216x216xf32, #tpu.memory_space<vmem>>, %arg4: memref<1x216xf32, #tpu.memory_space<vmem>>, %arg5: memref<1x216xf32, #tpu.memory_space<vmem>>, %arg6: memref<216x432xbf16, #tpu.memory_space<vmem>>, %arg7: memref<1x432xf32, #tpu.memory_space<vmem>>, %arg8: memref<1x216xf32, #tpu.memory_space<vmem>>, %arg9: memref<1x216xf32, #tpu.memory_space<vmem>>, %arg10: memref<64x64xbf16, #tpu.memory_space<vmem>>, %arg11: memref<64x1xf32, #tpu.memory_space<vmem>>, %arg12: memref<216x216xbf16, #tpu.memory_space<vmem>>, %arg13: memref<1x216xf32, #tpu.memory_space<vmem>>, %arg14: memref<1x64x216xf32, #tpu.memory_space<vmem>>) attributes {dimension_semantics = [#tpu.dimension_semantics<parallel>], iteration_bounds = array<i64: 2>, scalar_prefetch = 0 : i64, scratch_operands = 0 : i64, tpu.core_type = #tpu.core_type<tc>, window_params = [{transform_indices = @transform_0, window_bounds = array<i64: 1, 64, 216>}, {transform_indices = @transform_1, window_bounds = array<i64: 1, 64, 216>}, {pipeline_mode = #tpu.pipeline_mode<synchronous>, transform_indices = @transform_2, window_bounds = array<i64: 216, 216>}, {pipeline_mode = #tpu.pipeline_mode<synchronous>, transform_indices = @transform_3, window_bounds = array<i64: 1, 216>}, {pipeline_mode = #tpu.pipeline_mode<synchronous>, transform_indices = @transform_4, window_bounds = array<i64: 1, 216>}, {pipeline_mode = #tpu.pipeline_mode<synchronous>, transform_indices = @transform_5, window_bounds = array<i64: 216, 432>}, {pipeline_mode = #tpu.pipeline_mode<synchronous>, transform_indices = @transform_6, window_bounds = array<i64: 1, 432>}, {pipeline_mode = #tpu.pipeline_mode<synchronous>, transform_indices = @transform_7, window_bounds = array<i64: 1, 216>}, {pipeline_mode = #tpu.pipeline_mode<synchronous>, transform_indices = @transform_8, window_bounds = array<i64: 1, 216>}, {pipeline_mode = #tpu.pipeline_mode<synchronous>, transform_indices = @transform_9, window_bounds = array<i64: 64, 64>}, {pipeline_mode = #tpu.pipeline_mode<synchronous>, transform_indices = @transform_10, window_bounds = array<i64: 64, 1>}, {pipeline_mode = #tpu.pipeline_mode<synchronous>, transform_indices = @transform_11, window_bounds = array<i64: 216, 216>}, {pipeline_mode = #tpu.pipeline_mode<synchronous>, transform_indices = @transform_12, window_bounds = array<i64: 1, 216>}, {transform_indices = @transform_13, window_bounds = array<i64: 1, 64, 216>}]} {
    %c0 = arith.constant 0 : index
    %c0_0 = arith.constant 0 : index
    %c0_1 = arith.constant 0 : index
    %0 = vector.load %arg1[%c0, %c0_0, %c0_1] : memref<1x64x216xf32, #tpu.memory_space<vmem>>, vector<1x64x216xf32>
    %1 = vector.shape_cast %0 : vector<1x64x216xf32> to vector<64x216xf32>
    %c0_2 = arith.constant 0 : index
    %c0_3 = arith.constant 0 : index
    %2 = vector.load %arg3[%c0_2, %c0_3] : memref<216x216xf32, #tpu.memory_space<vmem>>, vector<216x216xf32>
    %3 = arith.mulf %1, %1 : vector<64x216xf32>
    %4 = tpu.concatenate %1, %3 in 0 : vector<64x216xf32>, vector<64x216xf32> -> vector<128x216xf32>
    %cst = arith.constant dense<0.000000e+00> : vector<128x216xf32>
    %5 = tpu.matmul %4, %2, %cst {dimension_numbers = #tpu.dot_dimension_numbers<[1], [0], [0], [1], [0, 0, 1, 1], [], []>} : vector<128x216xf32>, vector<216x216xf32>, vector<128x216xf32> -> vector<128x216xf32>
    %6 = vector.extract_strided_slice %5 {offsets = [0, 0], sizes = [64, 216], strides = [1, 1]} : vector<128x216xf32> to vector<64x216xf32>
    %7 = vector.extract_strided_slice %5 {offsets = [64, 0], sizes = [64, 216], strides = [1, 1]} : vector<128x216xf32> to vector<64x216xf32>
    %8 = arith.mulf %6, %6 : vector<64x216xf32>
    %9 = arith.subf %7, %8 : vector<64x216xf32>
    %10 = arith.subf %1, %6 : vector<64x216xf32>
    %cst_4 = arith.constant 9.99999974E-6 : f32
    %11 = vector.broadcast %cst_4 : f32 to vector<64x216xf32>
    %12 = arith.addf %9, %11 : vector<64x216xf32>
    %13 = math.rsqrt %12 : vector<64x216xf32>
    %14 = arith.mulf %10, %13 : vector<64x216xf32>
    %c0_5 = arith.constant 0 : index
    %c0_6 = arith.constant 0 : index
    %15 = vector.load %arg4[%c0_5, %c0_6] : memref<1x216xf32, #tpu.memory_space<vmem>>, vector<1x216xf32>
    %16 = vector.broadcast %15 : vector<1x216xf32> to vector<64x216xf32>
    %17 = arith.mulf %14, %16 : vector<64x216xf32>
    %c0_7 = arith.constant 0 : index
    %c0_8 = arith.constant 0 : index
    %18 = vector.load %arg5[%c0_7, %c0_8] : memref<1x216xf32, #tpu.memory_space<vmem>>, vector<1x216xf32>
    %19 = vector.broadcast %18 : vector<1x216xf32> to vector<64x216xf32>
    %20 = arith.addf %17, %19 : vector<64x216xf32>
    %21 = arith.truncf %20 : vector<64x216xf32> to vector<64x216xbf16>
    %c0_9 = arith.constant 0 : index
    %c0_10 = arith.constant 0 : index
    %22 = vector.load %arg6[%c0_9, %c0_10] : memref<216x432xbf16, #tpu.memory_space<vmem>>, vector<216x432xbf16>
    %cst_11 = arith.constant dense<0.000000e+00> : vector<64x432xf32>
    %23 = tpu.matmul %21, %22, %cst_11 {dimension_numbers = #tpu.dot_dimension_numbers<[1], [0], [0], [1], [0, 0, 1, 1], [], []>} : vector<64x216xbf16>, vector<216x432xbf16>, vector<64x432xf32> -> vector<64x432xf32>
    %c0_12 = arith.constant 0 : index
    %c0_13 = arith.constant 0 : index
    %24 = vector.load %arg7[%c0_12, %c0_13] : memref<1x432xf32, #tpu.memory_space<vmem>>, vector<1x432xf32>
    %25 = vector.broadcast %24 : vector<1x432xf32> to vector<64x432xf32>
    %26 = arith.addf %23, %25 : vector<64x432xf32>
    %27 = arith.mulf %26, %26 : vector<64x432xf32>
    %28 = arith.mulf %26, %27 : vector<64x432xf32>
    %cst_14 = arith.constant 4.471500e-02 : f32
    %29 = vector.broadcast %cst_14 : f32 to vector<64x432xf32>
    %30 = arith.mulf %29, %28 : vector<64x432xf32>
    %31 = arith.addf %26, %30 : vector<64x432xf32>
    %cst_15 = arith.constant 0.797884583 : f32
    %32 = vector.broadcast %cst_15 : f32 to vector<64x432xf32>
    %33 = arith.mulf %32, %31 : vector<64x432xf32>
    %34 = math.tanh %33 : vector<64x432xf32>
    %cst_16 = arith.constant 1.000000e+00 : f32
    %35 = vector.broadcast %cst_16 : f32 to vector<64x432xf32>
    %36 = arith.addf %35, %34 : vector<64x432xf32>
    %cst_17 = arith.constant 5.000000e-01 : f32
    %37 = vector.broadcast %cst_17 : f32 to vector<64x432xf32>
    %38 = arith.mulf %37, %36 : vector<64x432xf32>
    %39 = arith.mulf %26, %38 : vector<64x432xf32>
    %40 = vector.extract_strided_slice %39 {offsets = [0, 0], sizes = [64, 216], strides = [1, 1]} : vector<64x432xf32> to vector<64x216xf32>
    %41 = vector.extract_strided_slice %39 {offsets = [0, 216], sizes = [64, 216], strides = [1, 1]} : vector<64x432xf32> to vector<64x216xf32>
    %42 = arith.mulf %41, %41 : vector<64x216xf32>
    %43 = tpu.concatenate %41, %42 in 0 : vector<64x216xf32>, vector<64x216xf32> -> vector<128x216xf32>
    %cst_18 = arith.constant dense<0.000000e+00> : vector<128x216xf32>
    %44 = tpu.matmul %43, %2, %cst_18 {dimension_numbers = #tpu.dot_dimension_numbers<[1], [0], [0], [1], [0, 0, 1, 1], [], []>} : vector<128x216xf32>, vector<216x216xf32>, vector<128x216xf32> -> vector<128x216xf32>
    %45 = vector.extract_strided_slice %44 {offsets = [0, 0], sizes = [64, 216], strides = [1, 1]} : vector<128x216xf32> to vector<64x216xf32>
    %46 = vector.extract_strided_slice %44 {offsets = [64, 0], sizes = [64, 216], strides = [1, 1]} : vector<128x216xf32> to vector<64x216xf32>
    %47 = arith.mulf %45, %45 : vector<64x216xf32>
    %48 = arith.subf %46, %47 : vector<64x216xf32>
    %49 = arith.subf %41, %45 : vector<64x216xf32>
    %cst_19 = arith.constant 9.99999974E-6 : f32
    %50 = vector.broadcast %cst_19 : f32 to vector<64x216xf32>
    %51 = arith.addf %48, %50 : vector<64x216xf32>
    %52 = math.rsqrt %51 : vector<64x216xf32>
    %53 = arith.mulf %49, %52 : vector<64x216xf32>
    %c0_20 = arith.constant 0 : index
    %c0_21 = arith.constant 0 : index
    %54 = vector.load %arg8[%c0_20, %c0_21] : memref<1x216xf32, #tpu.memory_space<vmem>>, vector<1x216xf32>
    %55 = vector.broadcast %54 : vector<1x216xf32> to vector<64x216xf32>
    %56 = arith.mulf %53, %55 : vector<64x216xf32>
    %c0_22 = arith.constant 0 : index
    %c0_23 = arith.constant 0 : index
    %57 = vector.load %arg9[%c0_22, %c0_23] : memref<1x216xf32, #tpu.memory_space<vmem>>, vector<1x216xf32>
    %58 = vector.broadcast %57 : vector<1x216xf32> to vector<64x216xf32>
    %59 = arith.addf %56, %58 : vector<64x216xf32>
    %c0_24 = arith.constant 0 : index
    %c0_25 = arith.constant 0 : index
    %60 = vector.load %arg10[%c0_24, %c0_25] : memref<64x64xbf16, #tpu.memory_space<vmem>>, vector<64x64xbf16>
    %61 = arith.truncf %59 : vector<64x216xf32> to vector<64x216xbf16>
    %cst_26 = arith.constant dense<0.000000e+00> : vector<64x216xf32>
    %62 = tpu.matmul %60, %61, %cst_26 {dimension_numbers = #tpu.dot_dimension_numbers<[1], [0], [0], [1], [0, 0, 1, 1], [], []>} : vector<64x64xbf16>, vector<64x216xbf16>, vector<64x216xf32> -> vector<64x216xf32>
    %c0_27 = arith.constant 0 : index
    %c0_28 = arith.constant 0 : index
    %63 = vector.load %arg11[%c0_27, %c0_28] : memref<64x1xf32, #tpu.memory_space<vmem>>, vector<64x1xf32>
    %64 = vector.broadcast %63 : vector<64x1xf32> to vector<64x216xf32>
    %65 = arith.addf %62, %64 : vector<64x216xf32>
    %cst_29 = arith.constant 1.000000e+00 : f32
    %66 = vector.broadcast %cst_29 : f32 to vector<64x216xf32>
    %67 = arith.addf %65, %66 : vector<64x216xf32>
    %68 = arith.mulf %40, %67 : vector<64x216xf32>
    %69 = arith.truncf %68 : vector<64x216xf32> to vector<64x216xbf16>
    %c0_30 = arith.constant 0 : index
    %c0_31 = arith.constant 0 : index
    %70 = vector.load %arg12[%c0_30, %c0_31] : memref<216x216xbf16, #tpu.memory_space<vmem>>, vector<216x216xbf16>
    %cst_32 = arith.constant dense<0.000000e+00> : vector<64x216xf32>
    %71 = tpu.matmul %69, %70, %cst_32 {dimension_numbers = #tpu.dot_dimension_numbers<[1], [0], [0], [1], [0, 0, 1, 1], [], []>} : vector<64x216xbf16>, vector<216x216xbf16>, vector<64x216xf32> -> vector<64x216xf32>
    %c0_33 = arith.constant 0 : index
    %c0_34 = arith.constant 0 : index
    %72 = vector.load %arg13[%c0_33, %c0_34] : memref<1x216xf32, #tpu.memory_space<vmem>>, vector<1x216xf32>
    %73 = vector.broadcast %72 : vector<1x216xf32> to vector<64x216xf32>
    %74 = arith.addf %71, %73 : vector<64x216xf32>
    %75 = arith.addf %74, %1 : vector<64x216xf32>
    %c0_35 = arith.constant 0 : index
    %c0_36 = arith.constant 0 : index
    %c0_37 = arith.constant 0 : index
    %76 = vector.load %arg2[%c0_35, %c0_36, %c0_37] : memref<1x64x216xf32, #tpu.memory_space<vmem>>, vector<1x64x216xf32>
    %77 = vector.shape_cast %76 : vector<1x64x216xf32> to vector<64x216xf32>
    %78 = arith.addf %75, %77 : vector<64x216xf32>
    %c0_38 = arith.constant 0 : index
    %c0_39 = arith.constant 0 : index
    %c0_40 = arith.constant 0 : index
    %79 = vector.load %arg14[%c0_38, %c0_39, %c0_40] : memref<1x64x216xf32, #tpu.memory_space<vmem>>, vector<1x64x216xf32>
    %80 = vector.shape_cast %79 : vector<1x64x216xf32> to vector<64x216xf32>
    %81 = vector.shape_cast %78 : vector<64x216xf32> to vector<1x64x216xf32>
    tpu.vector_store %arg14[%c0_38, %c0_39, %c0_40], %81 {strides = array<i32>} : memref<1x64x216xf32, #tpu.memory_space<vmem>>, vector<1x64x216xf32>,
    return
  }
  func.func @transform_0(%arg0: i32) -> (i32, i32, i32) {
    %c0_i32 = arith.constant 0 : i32
    %c0_i32_0 = arith.constant 0 : i32
    %c0_i32_1 = arith.constant 0 : i32
    return %arg0, %c0_i32, %c0_i32_0 : i32, i32, i32
  }
  func.func @transform_1(%arg0: i32) -> (i32, i32, i32) {
    %c0_i32 = arith.constant 0 : i32
    %c0_i32_0 = arith.constant 0 : i32
    %c0_i32_1 = arith.constant 0 : i32
    return %arg0, %c0_i32, %c0_i32_0 : i32, i32, i32
  }
  func.func @transform_2(%arg0: i32) -> (i32, i32) {
    %c0_i32 = arith.constant 0 : i32
    %c0_i32_0 = arith.constant 0 : i32
    %c0_i32_1 = arith.constant 0 : i32
    return %c0_i32, %c0_i32_0 : i32, i32
  }
  func.func @transform_3(%arg0: i32) -> (i32, i32) {
    %c0_i32 = arith.constant 0 : i32
    %c0_i32_0 = arith.constant 0 : i32
    %c0_i32_1 = arith.constant 0 : i32
    return %c0_i32, %c0_i32_0 : i32, i32
  }
  func.func @transform_4(%arg0: i32) -> (i32, i32) {
    %c0_i32 = arith.constant 0 : i32
    %c0_i32_0 = arith.constant 0 : i32
    %c0_i32_1 = arith.constant 0 : i32
    return %c0_i32, %c0_i32_0 : i32, i32
  }
  func.func @transform_5(%arg0: i32) -> (i32, i32) {
    %c0_i32 = arith.constant 0 : i32
    %c0_i32_0 = arith.constant 0 : i32
    %c0_i32_1 = arith.constant 0 : i32
    return %c0_i32, %c0_i32_0 : i32, i32
  }
  func.func @transform_6(%arg0: i32) -> (i32, i32) {
    %c0_i32 = arith.constant 0 : i32
    %c0_i32_0 = arith.constant 0 : i32
    %c0_i32_1 = arith.constant 0 : i32
    return %c0_i32, %c0_i32_0 : i32, i32
  }
  func.func @transform_7(%arg0: i32) -> (i32, i32) {
    %c0_i32 = arith.constant 0 : i32
    %c0_i32_0 = arith.constant 0 : i32
    %c0_i32_1 = arith.constant 0 : i32
    return %c0_i32, %c0_i32_0 : i32, i32
  }
  func.func @transform_8(%arg0: i32) -> (i32, i32) {
    %c0_i32 = arith.constant 0 : i32
    %c0_i32_0 = arith.constant 0 : i32
    %c0_i32_1 = arith.constant 0 : i32
    return %c0_i32, %c0_i32_0 : i32, i32
  }
  func.func @transform_9(%arg0: i32) -> (i32, i32) {
    %c0_i32 = arith.constant 0 : i32
    %c0_i32_0 = arith.constant 0 : i32
    %c0_i32_1 = arith.constant 0 : i32
    return %c0_i32, %c0_i32_0 : i32, i32
  }
  func.func @transform_10(%arg0: i32) -> (i32, i32) {
    %c0_i32 = arith.constant 0 : i32
    %c0_i32_0 = arith.constant 0 : i32
    %c0_i32_1 = arith.constant 0 : i32
    return %c0_i32, %c0_i32_0 : i32, i32
  }
  func.func @transform_11(%arg0: i32) -> (i32, i32) {
    %c0_i32 = arith.constant 0 : i32
    %c0_i32_0 = arith.constant 0 : i32
    %c0_i32_1 = arith.constant 0 : i32
    return %c0_i32, %c0_i32_0 : i32, i32
  }
  func.func @transform_12(%arg0: i32) -> (i32, i32) {
    %c0_i32 = arith.constant 0 : i32
    %c0_i32_0 = arith.constant 0 : i32
    %c0_i32_1 = arith.constant 0 : i32
    return %c0_i32, %c0_i32_0 : i32, i32
  }
  func.func @transform_13(%arg0: i32) -> (i32, i32, i32) {
    %c0_i32 = arith.constant 0 : i32
    %c0_i32_0 = arith.constant 0 : i32
    %c0_i32_1 = arith.constant 0 : i32
    return %arg0, %c0_i32, %c0_i32_0 : i32, i32, i32
  }
}

module attributes {stable_mosaic.version = 11 : i64} {
  func.func @kernel(%arg0: i32, %arg1: memref<1x8x512xf32, #tpu.memory_space<vmem>>, %arg2: memref<216x512xf32, #tpu.memory_space<vmem>>, %arg3: memref<8x1xf32, #tpu.memory_space<vmem>>, %arg4: memref<8x1xf32, #tpu.memory_space<vmem>>, %arg5: memref<8x216xf32, #tpu.memory_space<vmem>>, %arg6: memref<8x1xf32, #tpu.memory_space<vmem>>, %arg7: memref<8x216xf32, #tpu.memory_space<vmem>>, %arg8: memref<8x1xf32, #tpu.memory_space<vmem>>, %arg9: memref<2x8xf32, #tpu.memory_space<vmem>>, %arg10: memref<2x1xf32, #tpu.memory_space<vmem>>, %arg11: memref<8x2xf32, #tpu.memory_space<vmem>>, %arg12: memref<8x1xf32, #tpu.memory_space<vmem>>, %arg13: memref<1x8x512xf32, #tpu.memory_space<vmem>>) attributes {dimension_semantics = [#tpu.dimension_semantics<parallel>], iteration_bounds = array<i64: 2>, scalar_prefetch = 0 : i64, scratch_operands = 0 : i64, tpu.core_type = #tpu.core_type<tc>, window_params = [{transform_indices = @transform_0, window_bounds = array<i64: 1, 8, 512>}, {pipeline_mode = #tpu.pipeline_mode<synchronous>, transform_indices = @transform_1, window_bounds = array<i64: 216, 512>}, {pipeline_mode = #tpu.pipeline_mode<synchronous>, transform_indices = @transform_2, window_bounds = array<i64: 8, 1>}, {pipeline_mode = #tpu.pipeline_mode<synchronous>, transform_indices = @transform_3, window_bounds = array<i64: 8, 1>}, {pipeline_mode = #tpu.pipeline_mode<synchronous>, transform_indices = @transform_4, window_bounds = array<i64: 8, 216>}, {pipeline_mode = #tpu.pipeline_mode<synchronous>, transform_indices = @transform_5, window_bounds = array<i64: 8, 1>}, {pipeline_mode = #tpu.pipeline_mode<synchronous>, transform_indices = @transform_6, window_bounds = array<i64: 8, 216>}, {pipeline_mode = #tpu.pipeline_mode<synchronous>, transform_indices = @transform_7, window_bounds = array<i64: 8, 1>}, {pipeline_mode = #tpu.pipeline_mode<synchronous>, transform_indices = @transform_8, window_bounds = array<i64: 2, 8>}, {pipeline_mode = #tpu.pipeline_mode<synchronous>, transform_indices = @transform_9, window_bounds = array<i64: 2, 1>}, {pipeline_mode = #tpu.pipeline_mode<synchronous>, transform_indices = @transform_10, window_bounds = array<i64: 8, 2>}, {pipeline_mode = #tpu.pipeline_mode<synchronous>, transform_indices = @transform_11, window_bounds = array<i64: 8, 1>}, {transform_indices = @transform_12, window_bounds = array<i64: 1, 8, 512>}]} {
    %c0 = arith.constant 0 : index
    %c0_0 = arith.constant 0 : index
    %c0_1 = arith.constant 0 : index
    %0 = vector.load %arg1[%c0, %c0_0, %c0_1] : memref<1x8x512xf32, #tpu.memory_space<vmem>>, vector<1x8x512xf32>
    %1 = vector.shape_cast %0 : vector<1x8x512xf32> to vector<8x512xf32>
    %c0_2 = arith.constant 0 : index
    %c0_3 = arith.constant 0 : index
    %2 = vector.load %arg2[%c0_2, %c0_3] : memref<216x512xf32, #tpu.memory_space<vmem>>, vector<216x512xf32>
    %cst = arith.constant dense<0.000000e+00> : vector<512xf32>
    %3 = vector.multi_reduction <add>, %1, %cst [0] : vector<8x512xf32> to vector<512xf32>
    %4 = vector.shape_cast %3 : vector<512xf32> to vector<1x512xf32>
    %cst_4 = arith.constant 8.000000e+00 : f32
    %5 = vector.broadcast %cst_4 : f32 to vector<1x512xf32>
    %6 = arith.divf %4, %5 : vector<1x512xf32>
    %7 = vector.broadcast %6 : vector<1x512xf32> to vector<8x512xf32>
    %8 = arith.subf %1, %7 : vector<8x512xf32>
    %9 = arith.mulf %8, %8 : vector<8x512xf32>
    %cst_5 = arith.constant dense<0.000000e+00> : vector<512xf32>
    %10 = vector.multi_reduction <add>, %9, %cst_5 [0] : vector<8x512xf32> to vector<512xf32>
    %11 = vector.shape_cast %10 : vector<512xf32> to vector<1x512xf32>
    %cst_6 = arith.constant 8.000000e+00 : f32
    %12 = vector.broadcast %cst_6 : f32 to vector<1x512xf32>
    %13 = arith.divf %11, %12 : vector<1x512xf32>
    %cst_7 = arith.constant 9.99999974E-6 : f32
    %14 = vector.broadcast %cst_7 : f32 to vector<1x512xf32>
    %15 = arith.addf %13, %14 : vector<1x512xf32>
    %16 = math.rsqrt %15 : vector<1x512xf32>
    %17 = vector.broadcast %16 : vector<1x512xf32> to vector<8x512xf32>
    %18 = arith.mulf %8, %17 : vector<8x512xf32>
    %c0_8 = arith.constant 0 : index
    %c0_9 = arith.constant 0 : index
    %19 = vector.load %arg3[%c0_8, %c0_9] : memref<8x1xf32, #tpu.memory_space<vmem>>, vector<8x1xf32>
    %20 = vector.broadcast %19 : vector<8x1xf32> to vector<8x512xf32>
    %21 = arith.mulf %18, %20 : vector<8x512xf32>
    %c0_10 = arith.constant 0 : index
    %c0_11 = arith.constant 0 : index
    %22 = vector.load %arg4[%c0_10, %c0_11] : memref<8x1xf32, #tpu.memory_space<vmem>>, vector<8x1xf32>
    %23 = vector.broadcast %22 : vector<8x1xf32> to vector<8x512xf32>
    %24 = arith.addf %21, %23 : vector<8x512xf32>
    %c73_i32 = arith.constant 73 : i32
    %25 = tpu.dynamic_rotate %24 by %c73_i32 dim 1 : vector<8x512xf32>, i32 -> vector<8x512xf32>
    %c72_i32 = arith.constant 72 : i32
    %26 = tpu.dynamic_rotate %24 by %c72_i32 dim 1 : vector<8x512xf32>, i32 -> vector<8x512xf32>
    %c71_i32 = arith.constant 71 : i32
    %27 = tpu.dynamic_rotate %24 by %c71_i32 dim 1 : vector<8x512xf32>, i32 -> vector<8x512xf32>
    %c65_i32 = arith.constant 65 : i32
    %28 = tpu.dynamic_rotate %24 by %c65_i32 dim 1 : vector<8x512xf32>, i32 -> vector<8x512xf32>
    %c64_i32 = arith.constant 64 : i32
    %29 = tpu.dynamic_rotate %24 by %c64_i32 dim 1 : vector<8x512xf32>, i32 -> vector<8x512xf32>
    %c63_i32 = arith.constant 63 : i32
    %30 = tpu.dynamic_rotate %24 by %c63_i32 dim 1 : vector<8x512xf32>, i32 -> vector<8x512xf32>
    %c57_i32 = arith.constant 57 : i32
    %31 = tpu.dynamic_rotate %24 by %c57_i32 dim 1 : vector<8x512xf32>, i32 -> vector<8x512xf32>
    %c56_i32 = arith.constant 56 : i32
    %32 = tpu.dynamic_rotate %24 by %c56_i32 dim 1 : vector<8x512xf32>, i32 -> vector<8x512xf32>
    %c55_i32 = arith.constant 55 : i32
    %33 = tpu.dynamic_rotate %24 by %c55_i32 dim 1 : vector<8x512xf32>, i32 -> vector<8x512xf32>
    %c9_i32 = arith.constant 9 : i32
    %34 = tpu.dynamic_rotate %24 by %c9_i32 dim 1 : vector<8x512xf32>, i32 -> vector<8x512xf32>
    %c8_i32 = arith.constant 8 : i32
    %35 = tpu.dynamic_rotate %24 by %c8_i32 dim 1 : vector<8x512xf32>, i32 -> vector<8x512xf32>
    %c7_i32 = arith.constant 7 : i32
    %36 = tpu.dynamic_rotate %24 by %c7_i32 dim 1 : vector<8x512xf32>, i32 -> vector<8x512xf32>
    %c1_i32 = arith.constant 1 : i32
    %37 = tpu.dynamic_rotate %24 by %c1_i32 dim 1 : vector<8x512xf32>, i32 -> vector<8x512xf32>
    %c511_i32 = arith.constant 511 : i32
    %38 = tpu.dynamic_rotate %24 by %c511_i32 dim 1 : vector<8x512xf32>, i32 -> vector<8x512xf32>
    %c505_i32 = arith.constant 505 : i32
    %39 = tpu.dynamic_rotate %24 by %c505_i32 dim 1 : vector<8x512xf32>, i32 -> vector<8x512xf32>
    %c504_i32 = arith.constant 504 : i32
    %40 = tpu.dynamic_rotate %24 by %c504_i32 dim 1 : vector<8x512xf32>, i32 -> vector<8x512xf32>
    %c503_i32 = arith.constant 503 : i32
    %41 = tpu.dynamic_rotate %24 by %c503_i32 dim 1 : vector<8x512xf32>, i32 -> vector<8x512xf32>
    %c457_i32 = arith.constant 457 : i32
    %42 = tpu.dynamic_rotate %24 by %c457_i32 dim 1 : vector<8x512xf32>, i32 -> vector<8x512xf32>
    %c456_i32 = arith.constant 456 : i32
    %43 = tpu.dynamic_rotate %24 by %c456_i32 dim 1 : vector<8x512xf32>, i32 -> vector<8x512xf32>
    %c455_i32 = arith.constant 455 : i32
    %44 = tpu.dynamic_rotate %24 by %c455_i32 dim 1 : vector<8x512xf32>, i32 -> vector<8x512xf32>
    %c449_i32 = arith.constant 449 : i32
    %45 = tpu.dynamic_rotate %24 by %c449_i32 dim 1 : vector<8x512xf32>, i32 -> vector<8x512xf32>
    %c448_i32 = arith.constant 448 : i32
    %46 = tpu.dynamic_rotate %24 by %c448_i32 dim 1 : vector<8x512xf32>, i32 -> vector<8x512xf32>
    %c447_i32 = arith.constant 447 : i32
    %47 = tpu.dynamic_rotate %24 by %c447_i32 dim 1 : vector<8x512xf32>, i32 -> vector<8x512xf32>
    %c441_i32 = arith.constant 441 : i32
    %48 = tpu.dynamic_rotate %24 by %c441_i32 dim 1 : vector<8x512xf32>, i32 -> vector<8x512xf32>
    %c440_i32 = arith.constant 440 : i32
    %49 = tpu.dynamic_rotate %24 by %c440_i32 dim 1 : vector<8x512xf32>, i32 -> vector<8x512xf32>
    %c439_i32 = arith.constant 439 : i32
    %50 = tpu.dynamic_rotate %24 by %c439_i32 dim 1 : vector<8x512xf32>, i32 -> vector<8x512xf32>
    %51 = tpu.concatenate %25, %26, %27, %28, %29, %30, %31, %32, %33, %34, %35, %36, %37, %24, %38, %39 in 0 : vector<8x512xf32>, vector<8x512xf32>, vector<8x512xf32>, vector<8x512xf32>, vector<8x512xf32>, vector<8x512xf32>, vector<8x512xf32>, vector<8x512xf32>, vector<8x512xf32>, vector<8x512xf32>, vector<8x512xf32>, vector<8x512xf32>, vector<8x512xf32>, vector<8x512xf32>, vector<8x512xf32>, vector<8x512xf32> -> vector<128x512xf32>
    %52 = tpu.concatenate %40, %41, %42, %43, %44, %45, %46, %47, %48, %49, %50 in 0 : vector<8x512xf32>, vector<8x512xf32>, vector<8x512xf32>, vector<8x512xf32>, vector<8x512xf32>, vector<8x512xf32>, vector<8x512xf32>, vector<8x512xf32>, vector<8x512xf32>, vector<8x512xf32>, vector<8x512xf32> -> vector<88x512xf32>
    %53 = tpu.concatenate %51, %52 in 0 : vector<128x512xf32>, vector<88x512xf32> -> vector<216x512xf32>
    %54 = arith.mulf %53, %2 : vector<216x512xf32>
    %c0_12 = arith.constant 0 : index
    %c0_13 = arith.constant 0 : index
    %55 = vector.load %arg5[%c0_12, %c0_13] : memref<8x216xf32, #tpu.memory_space<vmem>>, vector<8x216xf32>
    %cst_14 = arith.constant dense<0.000000e+00> : vector<8x512xf32>
    %56 = tpu.matmul %55, %54, %cst_14 {dimension_numbers = #tpu.dot_dimension_numbers<[1], [0], [0], [1], [0, 0, 1, 1], [], []>} : vector<8x216xf32>, vector<216x512xf32>, vector<8x512xf32> -> vector<8x512xf32>
    %c0_15 = arith.constant 0 : index
    %c0_16 = arith.constant 0 : index
    %57 = vector.load %arg6[%c0_15, %c0_16] : memref<8x1xf32, #tpu.memory_space<vmem>>, vector<8x1xf32>
    %58 = vector.broadcast %57 : vector<8x1xf32> to vector<8x512xf32>
    %59 = arith.addf %56, %58 : vector<8x512xf32>
    %cst_17 = arith.constant 0.000000e+00 : f32
    %60 = vector.broadcast %cst_17 : f32 to vector<8x512xf32>
    %61 = arith.cmpf oge, %59, %60 : vector<8x512xf32>
    %cst_18 = arith.constant 2.000000e-01 : f32
    %62 = vector.broadcast %cst_18 : f32 to vector<8x512xf32>
    %63 = arith.mulf %62, %59 : vector<8x512xf32>
    %64 = arith.select %61, %59, %63 : vector<8x512xi1>, vector<8x512xf32>
    %c73_i32_19 = arith.constant 73 : i32
    %65 = tpu.dynamic_rotate %64 by %c73_i32_19 dim 1 : vector<8x512xf32>, i32 -> vector<8x512xf32>
    %c72_i32_20 = arith.constant 72 : i32
    %66 = tpu.dynamic_rotate %64 by %c72_i32_20 dim 1 : vector<8x512xf32>, i32 -> vector<8x512xf32>
    %c71_i32_21 = arith.constant 71 : i32
    %67 = tpu.dynamic_rotate %64 by %c71_i32_21 dim 1 : vector<8x512xf32>, i32 -> vector<8x512xf32>
    %c65_i32_22 = arith.constant 65 : i32
    %68 = tpu.dynamic_rotate %64 by %c65_i32_22 dim 1 : vector<8x512xf32>, i32 -> vector<8x512xf32>
    %c64_i32_23 = arith.constant 64 : i32
    %69 = tpu.dynamic_rotate %64 by %c64_i32_23 dim 1 : vector<8x512xf32>, i32 -> vector<8x512xf32>
    %c63_i32_24 = arith.constant 63 : i32
    %70 = tpu.dynamic_rotate %64 by %c63_i32_24 dim 1 : vector<8x512xf32>, i32 -> vector<8x512xf32>
    %c57_i32_25 = arith.constant 57 : i32
    %71 = tpu.dynamic_rotate %64 by %c57_i32_25 dim 1 : vector<8x512xf32>, i32 -> vector<8x512xf32>
    %c56_i32_26 = arith.constant 56 : i32
    %72 = tpu.dynamic_rotate %64 by %c56_i32_26 dim 1 : vector<8x512xf32>, i32 -> vector<8x512xf32>
    %c55_i32_27 = arith.constant 55 : i32
    %73 = tpu.dynamic_rotate %64 by %c55_i32_27 dim 1 : vector<8x512xf32>, i32 -> vector<8x512xf32>
    %c9_i32_28 = arith.constant 9 : i32
    %74 = tpu.dynamic_rotate %64 by %c9_i32_28 dim 1 : vector<8x512xf32>, i32 -> vector<8x512xf32>
    %c8_i32_29 = arith.constant 8 : i32
    %75 = tpu.dynamic_rotate %64 by %c8_i32_29 dim 1 : vector<8x512xf32>, i32 -> vector<8x512xf32>
    %c7_i32_30 = arith.constant 7 : i32
    %76 = tpu.dynamic_rotate %64 by %c7_i32_30 dim 1 : vector<8x512xf32>, i32 -> vector<8x512xf32>
    %c1_i32_31 = arith.constant 1 : i32
    %77 = tpu.dynamic_rotate %64 by %c1_i32_31 dim 1 : vector<8x512xf32>, i32 -> vector<8x512xf32>
    %c511_i32_32 = arith.constant 511 : i32
    %78 = tpu.dynamic_rotate %64 by %c511_i32_32 dim 1 : vector<8x512xf32>, i32 -> vector<8x512xf32>
    %c505_i32_33 = arith.constant 505 : i32
    %79 = tpu.dynamic_rotate %64 by %c505_i32_33 dim 1 : vector<8x512xf32>, i32 -> vector<8x512xf32>
    %c504_i32_34 = arith.constant 504 : i32
    %80 = tpu.dynamic_rotate %64 by %c504_i32_34 dim 1 : vector<8x512xf32>, i32 -> vector<8x512xf32>
    %c503_i32_35 = arith.constant 503 : i32
    %81 = tpu.dynamic_rotate %64 by %c503_i32_35 dim 1 : vector<8x512xf32>, i32 -> vector<8x512xf32>
    %c457_i32_36 = arith.constant 457 : i32
    %82 = tpu.dynamic_rotate %64 by %c457_i32_36 dim 1 : vector<8x512xf32>, i32 -> vector<8x512xf32>
    %c456_i32_37 = arith.constant 456 : i32
    %83 = tpu.dynamic_rotate %64 by %c456_i32_37 dim 1 : vector<8x512xf32>, i32 -> vector<8x512xf32>
    %c455_i32_38 = arith.constant 455 : i32
    %84 = tpu.dynamic_rotate %64 by %c455_i32_38 dim 1 : vector<8x512xf32>, i32 -> vector<8x512xf32>
    %c449_i32_39 = arith.constant 449 : i32
    %85 = tpu.dynamic_rotate %64 by %c449_i32_39 dim 1 : vector<8x512xf32>, i32 -> vector<8x512xf32>
    %c448_i32_40 = arith.constant 448 : i32
    %86 = tpu.dynamic_rotate %64 by %c448_i32_40 dim 1 : vector<8x512xf32>, i32 -> vector<8x512xf32>
    %c447_i32_41 = arith.constant 447 : i32
    %87 = tpu.dynamic_rotate %64 by %c447_i32_41 dim 1 : vector<8x512xf32>, i32 -> vector<8x512xf32>
    %c441_i32_42 = arith.constant 441 : i32
    %88 = tpu.dynamic_rotate %64 by %c441_i32_42 dim 1 : vector<8x512xf32>, i32 -> vector<8x512xf32>
    %c440_i32_43 = arith.constant 440 : i32
    %89 = tpu.dynamic_rotate %64 by %c440_i32_43 dim 1 : vector<8x512xf32>, i32 -> vector<8x512xf32>
    %c439_i32_44 = arith.constant 439 : i32
    %90 = tpu.dynamic_rotate %64 by %c439_i32_44 dim 1 : vector<8x512xf32>, i32 -> vector<8x512xf32>
    %91 = tpu.concatenate %65, %66, %67, %68, %69, %70, %71, %72, %73, %74, %75, %76, %77, %64, %78, %79 in 0 : vector<8x512xf32>, vector<8x512xf32>, vector<8x512xf32>, vector<8x512xf32>, vector<8x512xf32>, vector<8x512xf32>, vector<8x512xf32>, vector<8x512xf32>, vector<8x512xf32>, vector<8x512xf32>, vector<8x512xf32>, vector<8x512xf32>, vector<8x512xf32>, vector<8x512xf32>, vector<8x512xf32>, vector<8x512xf32> -> vector<128x512xf32>
    %92 = tpu.concatenate %80, %81, %82, %83, %84, %85, %86, %87, %88, %89, %90 in 0 : vector<8x512xf32>, vector<8x512xf32>, vector<8x512xf32>, vector<8x512xf32>, vector<8x512xf32>, vector<8x512xf32>, vector<8x512xf32>, vector<8x512xf32>, vector<8x512xf32>, vector<8x512xf32>, vector<8x512xf32> -> vector<88x512xf32>
    %93 = tpu.concatenate %91, %92 in 0 : vector<128x512xf32>, vector<88x512xf32> -> vector<216x512xf32>
    %94 = arith.mulf %93, %2 : vector<216x512xf32>
    %c0_45 = arith.constant 0 : index
    %c0_46 = arith.constant 0 : index
    %95 = vector.load %arg7[%c0_45, %c0_46] : memref<8x216xf32, #tpu.memory_space<vmem>>, vector<8x216xf32>
    %cst_47 = arith.constant dense<0.000000e+00> : vector<8x512xf32>
    %96 = tpu.matmul %95, %94, %cst_47 {dimension_numbers = #tpu.dot_dimension_numbers<[1], [0], [0], [1], [0, 0, 1, 1], [], []>} : vector<8x216xf32>, vector<216x512xf32>, vector<8x512xf32> -> vector<8x512xf32>
    %c0_48 = arith.constant 0 : index
    %c0_49 = arith.constant 0 : index
    %97 = vector.load %arg8[%c0_48, %c0_49] : memref<8x1xf32, #tpu.memory_space<vmem>>, vector<8x1xf32>
    %98 = vector.broadcast %97 : vector<8x1xf32> to vector<8x512xf32>
    %99 = arith.addf %96, %98 : vector<8x512xf32>
    %cst_50 = arith.constant dense<0.000000e+00> : vector<8xf32>
    %100 = vector.multi_reduction <add>, %99, %cst_50 [1] : vector<8x512xf32> to vector<8xf32>
    %101 = vector.shape_cast %100 : vector<8xf32> to vector<8x1xf32>
    %cst_51 = arith.constant 5.120000e+02 : f32
    %102 = vector.broadcast %cst_51 : f32 to vector<8x1xf32>
    %103 = arith.divf %101, %102 : vector<8x1xf32>
    %c0_52 = arith.constant 0 : index
    %c0_53 = arith.constant 0 : index
    %104 = vector.load %arg9[%c0_52, %c0_53] : memref<2x8xf32, #tpu.memory_space<vmem>>, vector<2x8xf32>
    %cst_54 = arith.constant dense<0.000000e+00> : vector<2x1xf32>
    %105 = tpu.matmul %104, %103, %cst_54 {dimension_numbers = #tpu.dot_dimension_numbers<[1], [0], [0], [1], [0, 0, 1, 1], [], []>} : vector<2x8xf32>, vector<8x1xf32>, vector<2x1xf32> -> vector<2x1xf32>
    %c0_55 = arith.constant 0 : index
    %c0_56 = arith.constant 0 : index
    %106 = vector.load %arg10[%c0_55, %c0_56] : memref<2x1xf32, #tpu.memory_space<vmem>>, vector<2x1xf32>
    %107 = arith.addf %105, %106 : vector<2x1xf32>
    %cst_57 = arith.constant 0.000000e+00 : f32
    %108 = vector.broadcast %cst_57 : f32 to vector<2x1xf32>
    %109 = arith.maximumf %107, %108 : vector<2x1xf32>
    %c0_58 = arith.constant 0 : index
    %c0_59 = arith.constant 0 : index
    %110 = vector.load %arg11[%c0_58, %c0_59] : memref<8x2xf32, #tpu.memory_space<vmem>>, vector<8x2xf32>
    %cst_60 = arith.constant dense<0.000000e+00> : vector<8x1xf32>
    %111 = tpu.matmul %110, %109, %cst_60 {dimension_numbers = #tpu.dot_dimension_numbers<[1], [0], [0], [1], [0, 0, 1, 1], [], []>} : vector<8x2xf32>, vector<2x1xf32>, vector<8x1xf32> -> vector<8x1xf32>
    %c0_61 = arith.constant 0 : index
    %c0_62 = arith.constant 0 : index
    %112 = vector.load %arg12[%c0_61, %c0_62] : memref<8x1xf32, #tpu.memory_space<vmem>>, vector<8x1xf32>
    %113 = arith.addf %111, %112 : vector<8x1xf32>
    %cst_63 = arith.constant 0.000000e+00 : f32
    %114 = vector.broadcast %cst_63 : f32 to vector<8x1xf32>
    %115 = arith.subf %114, %113 : vector<8x1xf32>
    %116 = math.exp %115 : vector<8x1xf32>
    %cst_64 = arith.constant 1.000000e+00 : f32
    %117 = vector.broadcast %cst_64 : f32 to vector<8x1xf32>
    %118 = arith.addf %117, %116 : vector<8x1xf32>
    %cst_65 = arith.constant 1.000000e+00 : f32
    %119 = vector.broadcast %cst_65 : f32 to vector<8x1xf32>
    %120 = arith.divf %119, %118 : vector<8x1xf32>
    %121 = vector.broadcast %120 : vector<8x1xf32> to vector<8x512xf32>
    %122 = arith.mulf %99, %121 : vector<8x512xf32>
    %123 = arith.addf %122, %1 : vector<8x512xf32>
    %c0_66 = arith.constant 0 : index
    %c0_67 = arith.constant 0 : index
    %c0_68 = arith.constant 0 : index
    %124 = vector.load %arg13[%c0_66, %c0_67, %c0_68] : memref<1x8x512xf32, #tpu.memory_space<vmem>>, vector<1x8x512xf32>
    %125 = vector.shape_cast %124 : vector<1x8x512xf32> to vector<8x512xf32>
    %126 = vector.shape_cast %123 : vector<8x512xf32> to vector<1x8x512xf32>
    tpu.vector_store %arg13[%c0_66, %c0_67, %c0_68], %126 {strides = array<i32>} : memref<1x8x512xf32, #tpu.memory_space<vmem>>, vector<1x8x512xf32>,
    return
  }
  func.func @transform_0(%arg0: i32) -> (i32, i32, i32) {
    %c0_i32 = arith.constant 0 : i32
    %c0_i32_0 = arith.constant 0 : i32
    %c0_i32_1 = arith.constant 0 : i32
    return %arg0, %c0_i32, %c0_i32_0 : i32, i32, i32
  }
  func.func @transform_1(%arg0: i32) -> (i32, i32) {
    %c0_i32 = arith.constant 0 : i32
    %c0_i32_0 = arith.constant 0 : i32
    %c0_i32_1 = arith.constant 0 : i32
    return %c0_i32, %c0_i32_0 : i32, i32
  }
  func.func @transform_2(%arg0: i32) -> (i32, i32) {
    %c0_i32 = arith.constant 0 : i32
    %c0_i32_0 = arith.constant 0 : i32
    %c0_i32_1 = arith.constant 0 : i32
    return %c0_i32, %c0_i32_0 : i32, i32
  }
  func.func @transform_3(%arg0: i32) -> (i32, i32) {
    %c0_i32 = arith.constant 0 : i32
    %c0_i32_0 = arith.constant 0 : i32
    %c0_i32_1 = arith.constant 0 : i32
    return %c0_i32, %c0_i32_0 : i32, i32
  }
  func.func @transform_4(%arg0: i32) -> (i32, i32) {
    %c0_i32 = arith.constant 0 : i32
    %c0_i32_0 = arith.constant 0 : i32
    %c0_i32_1 = arith.constant 0 : i32
    return %c0_i32, %c0_i32_0 : i32, i32
  }
  func.func @transform_5(%arg0: i32) -> (i32, i32) {
    %c0_i32 = arith.constant 0 : i32
    %c0_i32_0 = arith.constant 0 : i32
    %c0_i32_1 = arith.constant 0 : i32
    return %c0_i32, %c0_i32_0 : i32, i32
  }
  func.func @transform_6(%arg0: i32) -> (i32, i32) {
    %c0_i32 = arith.constant 0 : i32
    %c0_i32_0 = arith.constant 0 : i32
    %c0_i32_1 = arith.constant 0 : i32
    return %c0_i32, %c0_i32_0 : i32, i32
  }
  func.func @transform_7(%arg0: i32) -> (i32, i32) {
    %c0_i32 = arith.constant 0 : i32
    %c0_i32_0 = arith.constant 0 : i32
    %c0_i32_1 = arith.constant 0 : i32
    return %c0_i32, %c0_i32_0 : i32, i32
  }
  func.func @transform_8(%arg0: i32) -> (i32, i32) {
    %c0_i32 = arith.constant 0 : i32
    %c0_i32_0 = arith.constant 0 : i32
    %c0_i32_1 = arith.constant 0 : i32
    return %c0_i32, %c0_i32_0 : i32, i32
  }
  func.func @transform_9(%arg0: i32) -> (i32, i32) {
    %c0_i32 = arith.constant 0 : i32
    %c0_i32_0 = arith.constant 0 : i32
    %c0_i32_1 = arith.constant 0 : i32
    return %c0_i32, %c0_i32_0 : i32, i32
  }
  func.func @transform_10(%arg0: i32) -> (i32, i32) {
    %c0_i32 = arith.constant 0 : i32
    %c0_i32_0 = arith.constant 0 : i32
    %c0_i32_1 = arith.constant 0 : i32
    return %c0_i32, %c0_i32_0 : i32, i32
  }
  func.func @transform_11(%arg0: i32) -> (i32, i32) {
    %c0_i32 = arith.constant 0 : i32
    %c0_i32_0 = arith.constant 0 : i32
    %c0_i32_1 = arith.constant 0 : i32
    return %c0_i32, %c0_i32_0 : i32, i32
  }
  func.func @transform_12(%arg0: i32) -> (i32, i32, i32) {
    %c0_i32 = arith.constant 0 : i32
    %c0_i32_0 = arith.constant 0 : i32
    %c0_i32_1 = arith.constant 0 : i32
    return %arg0, %c0_i32, %c0_i32_0 : i32, i32, i32
  }
}

module attributes {stable_mosaic.version = 11 : i64} {
  func.func @kernel(%arg0: i32, %arg1: memref<1x8x512xf32, #tpu.memory_space<vmem>>, %arg2: memref<1x8x512xf32, #tpu.memory_space<vmem>>, %arg3: memref<216x512xf32, #tpu.memory_space<vmem>>, %arg4: memref<8x1xf32, #tpu.memory_space<vmem>>, %arg5: memref<8x1xf32, #tpu.memory_space<vmem>>, %arg6: memref<8x216xf32, #tpu.memory_space<vmem>>, %arg7: memref<8x1xf32, #tpu.memory_space<vmem>>, %arg8: memref<8x216xf32, #tpu.memory_space<vmem>>, %arg9: memref<8x1xf32, #tpu.memory_space<vmem>>, %arg10: memref<2x8xf32, #tpu.memory_space<vmem>>, %arg11: memref<2x1xf32, #tpu.memory_space<vmem>>, %arg12: memref<8x2xf32, #tpu.memory_space<vmem>>, %arg13: memref<8x1xf32, #tpu.memory_space<vmem>>, %arg14: memref<1x8x512xf32, #tpu.memory_space<vmem>>) attributes {dimension_semantics = [#tpu.dimension_semantics<parallel>], iteration_bounds = array<i64: 2>, scalar_prefetch = 0 : i64, scratch_operands = 0 : i64, tpu.core_type = #tpu.core_type<tc>, window_params = [{transform_indices = @transform_0, window_bounds = array<i64: 1, 8, 512>}, {transform_indices = @transform_1, window_bounds = array<i64: 1, 8, 512>}, {pipeline_mode = #tpu.pipeline_mode<synchronous>, transform_indices = @transform_2, window_bounds = array<i64: 216, 512>}, {pipeline_mode = #tpu.pipeline_mode<synchronous>, transform_indices = @transform_3, window_bounds = array<i64: 8, 1>}, {pipeline_mode = #tpu.pipeline_mode<synchronous>, transform_indices = @transform_4, window_bounds = array<i64: 8, 1>}, {pipeline_mode = #tpu.pipeline_mode<synchronous>, transform_indices = @transform_5, window_bounds = array<i64: 8, 216>}, {pipeline_mode = #tpu.pipeline_mode<synchronous>, transform_indices = @transform_6, window_bounds = array<i64: 8, 1>}, {pipeline_mode = #tpu.pipeline_mode<synchronous>, transform_indices = @transform_7, window_bounds = array<i64: 8, 216>}, {pipeline_mode = #tpu.pipeline_mode<synchronous>, transform_indices = @transform_8, window_bounds = array<i64: 8, 1>}, {pipeline_mode = #tpu.pipeline_mode<synchronous>, transform_indices = @transform_9, window_bounds = array<i64: 2, 8>}, {pipeline_mode = #tpu.pipeline_mode<synchronous>, transform_indices = @transform_10, window_bounds = array<i64: 2, 1>}, {pipeline_mode = #tpu.pipeline_mode<synchronous>, transform_indices = @transform_11, window_bounds = array<i64: 8, 2>}, {pipeline_mode = #tpu.pipeline_mode<synchronous>, transform_indices = @transform_12, window_bounds = array<i64: 8, 1>}, {transform_indices = @transform_13, window_bounds = array<i64: 1, 8, 512>}]} {
    %c0 = arith.constant 0 : index
    %c0_0 = arith.constant 0 : index
    %c0_1 = arith.constant 0 : index
    %0 = vector.load %arg1[%c0, %c0_0, %c0_1] : memref<1x8x512xf32, #tpu.memory_space<vmem>>, vector<1x8x512xf32>
    %1 = vector.shape_cast %0 : vector<1x8x512xf32> to vector<8x512xf32>
    %c0_2 = arith.constant 0 : index
    %c0_3 = arith.constant 0 : index
    %2 = vector.load %arg3[%c0_2, %c0_3] : memref<216x512xf32, #tpu.memory_space<vmem>>, vector<216x512xf32>
    %cst = arith.constant dense<0.000000e+00> : vector<512xf32>
    %3 = vector.multi_reduction <add>, %1, %cst [0] : vector<8x512xf32> to vector<512xf32>
    %4 = vector.shape_cast %3 : vector<512xf32> to vector<1x512xf32>
    %cst_4 = arith.constant 8.000000e+00 : f32
    %5 = vector.broadcast %cst_4 : f32 to vector<1x512xf32>
    %6 = arith.divf %4, %5 : vector<1x512xf32>
    %7 = vector.broadcast %6 : vector<1x512xf32> to vector<8x512xf32>
    %8 = arith.subf %1, %7 : vector<8x512xf32>
    %9 = arith.mulf %8, %8 : vector<8x512xf32>
    %cst_5 = arith.constant dense<0.000000e+00> : vector<512xf32>
    %10 = vector.multi_reduction <add>, %9, %cst_5 [0] : vector<8x512xf32> to vector<512xf32>
    %11 = vector.shape_cast %10 : vector<512xf32> to vector<1x512xf32>
    %cst_6 = arith.constant 8.000000e+00 : f32
    %12 = vector.broadcast %cst_6 : f32 to vector<1x512xf32>
    %13 = arith.divf %11, %12 : vector<1x512xf32>
    %cst_7 = arith.constant 9.99999974E-6 : f32
    %14 = vector.broadcast %cst_7 : f32 to vector<1x512xf32>
    %15 = arith.addf %13, %14 : vector<1x512xf32>
    %16 = math.rsqrt %15 : vector<1x512xf32>
    %17 = vector.broadcast %16 : vector<1x512xf32> to vector<8x512xf32>
    %18 = arith.mulf %8, %17 : vector<8x512xf32>
    %c0_8 = arith.constant 0 : index
    %c0_9 = arith.constant 0 : index
    %19 = vector.load %arg4[%c0_8, %c0_9] : memref<8x1xf32, #tpu.memory_space<vmem>>, vector<8x1xf32>
    %20 = vector.broadcast %19 : vector<8x1xf32> to vector<8x512xf32>
    %21 = arith.mulf %18, %20 : vector<8x512xf32>
    %c0_10 = arith.constant 0 : index
    %c0_11 = arith.constant 0 : index
    %22 = vector.load %arg5[%c0_10, %c0_11] : memref<8x1xf32, #tpu.memory_space<vmem>>, vector<8x1xf32>
    %23 = vector.broadcast %22 : vector<8x1xf32> to vector<8x512xf32>
    %24 = arith.addf %21, %23 : vector<8x512xf32>
    %c73_i32 = arith.constant 73 : i32
    %25 = tpu.dynamic_rotate %24 by %c73_i32 dim 1 : vector<8x512xf32>, i32 -> vector<8x512xf32>
    %c72_i32 = arith.constant 72 : i32
    %26 = tpu.dynamic_rotate %24 by %c72_i32 dim 1 : vector<8x512xf32>, i32 -> vector<8x512xf32>
    %c71_i32 = arith.constant 71 : i32
    %27 = tpu.dynamic_rotate %24 by %c71_i32 dim 1 : vector<8x512xf32>, i32 -> vector<8x512xf32>
    %c65_i32 = arith.constant 65 : i32
    %28 = tpu.dynamic_rotate %24 by %c65_i32 dim 1 : vector<8x512xf32>, i32 -> vector<8x512xf32>
    %c64_i32 = arith.constant 64 : i32
    %29 = tpu.dynamic_rotate %24 by %c64_i32 dim 1 : vector<8x512xf32>, i32 -> vector<8x512xf32>
    %c63_i32 = arith.constant 63 : i32
    %30 = tpu.dynamic_rotate %24 by %c63_i32 dim 1 : vector<8x512xf32>, i32 -> vector<8x512xf32>
    %c57_i32 = arith.constant 57 : i32
    %31 = tpu.dynamic_rotate %24 by %c57_i32 dim 1 : vector<8x512xf32>, i32 -> vector<8x512xf32>
    %c56_i32 = arith.constant 56 : i32
    %32 = tpu.dynamic_rotate %24 by %c56_i32 dim 1 : vector<8x512xf32>, i32 -> vector<8x512xf32>
    %c55_i32 = arith.constant 55 : i32
    %33 = tpu.dynamic_rotate %24 by %c55_i32 dim 1 : vector<8x512xf32>, i32 -> vector<8x512xf32>
    %c9_i32 = arith.constant 9 : i32
    %34 = tpu.dynamic_rotate %24 by %c9_i32 dim 1 : vector<8x512xf32>, i32 -> vector<8x512xf32>
    %c8_i32 = arith.constant 8 : i32
    %35 = tpu.dynamic_rotate %24 by %c8_i32 dim 1 : vector<8x512xf32>, i32 -> vector<8x512xf32>
    %c7_i32 = arith.constant 7 : i32
    %36 = tpu.dynamic_rotate %24 by %c7_i32 dim 1 : vector<8x512xf32>, i32 -> vector<8x512xf32>
    %c1_i32 = arith.constant 1 : i32
    %37 = tpu.dynamic_rotate %24 by %c1_i32 dim 1 : vector<8x512xf32>, i32 -> vector<8x512xf32>
    %c511_i32 = arith.constant 511 : i32
    %38 = tpu.dynamic_rotate %24 by %c511_i32 dim 1 : vector<8x512xf32>, i32 -> vector<8x512xf32>
    %c505_i32 = arith.constant 505 : i32
    %39 = tpu.dynamic_rotate %24 by %c505_i32 dim 1 : vector<8x512xf32>, i32 -> vector<8x512xf32>
    %c504_i32 = arith.constant 504 : i32
    %40 = tpu.dynamic_rotate %24 by %c504_i32 dim 1 : vector<8x512xf32>, i32 -> vector<8x512xf32>
    %c503_i32 = arith.constant 503 : i32
    %41 = tpu.dynamic_rotate %24 by %c503_i32 dim 1 : vector<8x512xf32>, i32 -> vector<8x512xf32>
    %c457_i32 = arith.constant 457 : i32
    %42 = tpu.dynamic_rotate %24 by %c457_i32 dim 1 : vector<8x512xf32>, i32 -> vector<8x512xf32>
    %c456_i32 = arith.constant 456 : i32
    %43 = tpu.dynamic_rotate %24 by %c456_i32 dim 1 : vector<8x512xf32>, i32 -> vector<8x512xf32>
    %c455_i32 = arith.constant 455 : i32
    %44 = tpu.dynamic_rotate %24 by %c455_i32 dim 1 : vector<8x512xf32>, i32 -> vector<8x512xf32>
    %c449_i32 = arith.constant 449 : i32
    %45 = tpu.dynamic_rotate %24 by %c449_i32 dim 1 : vector<8x512xf32>, i32 -> vector<8x512xf32>
    %c448_i32 = arith.constant 448 : i32
    %46 = tpu.dynamic_rotate %24 by %c448_i32 dim 1 : vector<8x512xf32>, i32 -> vector<8x512xf32>
    %c447_i32 = arith.constant 447 : i32
    %47 = tpu.dynamic_rotate %24 by %c447_i32 dim 1 : vector<8x512xf32>, i32 -> vector<8x512xf32>
    %c441_i32 = arith.constant 441 : i32
    %48 = tpu.dynamic_rotate %24 by %c441_i32 dim 1 : vector<8x512xf32>, i32 -> vector<8x512xf32>
    %c440_i32 = arith.constant 440 : i32
    %49 = tpu.dynamic_rotate %24 by %c440_i32 dim 1 : vector<8x512xf32>, i32 -> vector<8x512xf32>
    %c439_i32 = arith.constant 439 : i32
    %50 = tpu.dynamic_rotate %24 by %c439_i32 dim 1 : vector<8x512xf32>, i32 -> vector<8x512xf32>
    %51 = tpu.concatenate %25, %26, %27, %28, %29, %30, %31, %32, %33, %34, %35, %36, %37, %24, %38, %39 in 0 : vector<8x512xf32>, vector<8x512xf32>, vector<8x512xf32>, vector<8x512xf32>, vector<8x512xf32>, vector<8x512xf32>, vector<8x512xf32>, vector<8x512xf32>, vector<8x512xf32>, vector<8x512xf32>, vector<8x512xf32>, vector<8x512xf32>, vector<8x512xf32>, vector<8x512xf32>, vector<8x512xf32>, vector<8x512xf32> -> vector<128x512xf32>
    %52 = tpu.concatenate %40, %41, %42, %43, %44, %45, %46, %47, %48, %49, %50 in 0 : vector<8x512xf32>, vector<8x512xf32>, vector<8x512xf32>, vector<8x512xf32>, vector<8x512xf32>, vector<8x512xf32>, vector<8x512xf32>, vector<8x512xf32>, vector<8x512xf32>, vector<8x512xf32>, vector<8x512xf32> -> vector<88x512xf32>
    %53 = tpu.concatenate %51, %52 in 0 : vector<128x512xf32>, vector<88x512xf32> -> vector<216x512xf32>
    %54 = arith.mulf %53, %2 : vector<216x512xf32>
    %c0_12 = arith.constant 0 : index
    %c0_13 = arith.constant 0 : index
    %55 = vector.load %arg6[%c0_12, %c0_13] : memref<8x216xf32, #tpu.memory_space<vmem>>, vector<8x216xf32>
    %cst_14 = arith.constant dense<0.000000e+00> : vector<8x512xf32>
    %56 = tpu.matmul %55, %54, %cst_14 {dimension_numbers = #tpu.dot_dimension_numbers<[1], [0], [0], [1], [0, 0, 1, 1], [], []>} : vector<8x216xf32>, vector<216x512xf32>, vector<8x512xf32> -> vector<8x512xf32>
    %c0_15 = arith.constant 0 : index
    %c0_16 = arith.constant 0 : index
    %57 = vector.load %arg7[%c0_15, %c0_16] : memref<8x1xf32, #tpu.memory_space<vmem>>, vector<8x1xf32>
    %58 = vector.broadcast %57 : vector<8x1xf32> to vector<8x512xf32>
    %59 = arith.addf %56, %58 : vector<8x512xf32>
    %cst_17 = arith.constant 0.000000e+00 : f32
    %60 = vector.broadcast %cst_17 : f32 to vector<8x512xf32>
    %61 = arith.cmpf oge, %59, %60 : vector<8x512xf32>
    %cst_18 = arith.constant 2.000000e-01 : f32
    %62 = vector.broadcast %cst_18 : f32 to vector<8x512xf32>
    %63 = arith.mulf %62, %59 : vector<8x512xf32>
    %64 = arith.select %61, %59, %63 : vector<8x512xi1>, vector<8x512xf32>
    %c73_i32_19 = arith.constant 73 : i32
    %65 = tpu.dynamic_rotate %64 by %c73_i32_19 dim 1 : vector<8x512xf32>, i32 -> vector<8x512xf32>
    %c72_i32_20 = arith.constant 72 : i32
    %66 = tpu.dynamic_rotate %64 by %c72_i32_20 dim 1 : vector<8x512xf32>, i32 -> vector<8x512xf32>
    %c71_i32_21 = arith.constant 71 : i32
    %67 = tpu.dynamic_rotate %64 by %c71_i32_21 dim 1 : vector<8x512xf32>, i32 -> vector<8x512xf32>
    %c65_i32_22 = arith.constant 65 : i32
    %68 = tpu.dynamic_rotate %64 by %c65_i32_22 dim 1 : vector<8x512xf32>, i32 -> vector<8x512xf32>
    %c64_i32_23 = arith.constant 64 : i32
    %69 = tpu.dynamic_rotate %64 by %c64_i32_23 dim 1 : vector<8x512xf32>, i32 -> vector<8x512xf32>
    %c63_i32_24 = arith.constant 63 : i32
    %70 = tpu.dynamic_rotate %64 by %c63_i32_24 dim 1 : vector<8x512xf32>, i32 -> vector<8x512xf32>
    %c57_i32_25 = arith.constant 57 : i32
    %71 = tpu.dynamic_rotate %64 by %c57_i32_25 dim 1 : vector<8x512xf32>, i32 -> vector<8x512xf32>
    %c56_i32_26 = arith.constant 56 : i32
    %72 = tpu.dynamic_rotate %64 by %c56_i32_26 dim 1 : vector<8x512xf32>, i32 -> vector<8x512xf32>
    %c55_i32_27 = arith.constant 55 : i32
    %73 = tpu.dynamic_rotate %64 by %c55_i32_27 dim 1 : vector<8x512xf32>, i32 -> vector<8x512xf32>
    %c9_i32_28 = arith.constant 9 : i32
    %74 = tpu.dynamic_rotate %64 by %c9_i32_28 dim 1 : vector<8x512xf32>, i32 -> vector<8x512xf32>
    %c8_i32_29 = arith.constant 8 : i32
    %75 = tpu.dynamic_rotate %64 by %c8_i32_29 dim 1 : vector<8x512xf32>, i32 -> vector<8x512xf32>
    %c7_i32_30 = arith.constant 7 : i32
    %76 = tpu.dynamic_rotate %64 by %c7_i32_30 dim 1 : vector<8x512xf32>, i32 -> vector<8x512xf32>
    %c1_i32_31 = arith.constant 1 : i32
    %77 = tpu.dynamic_rotate %64 by %c1_i32_31 dim 1 : vector<8x512xf32>, i32 -> vector<8x512xf32>
    %c511_i32_32 = arith.constant 511 : i32
    %78 = tpu.dynamic_rotate %64 by %c511_i32_32 dim 1 : vector<8x512xf32>, i32 -> vector<8x512xf32>
    %c505_i32_33 = arith.constant 505 : i32
    %79 = tpu.dynamic_rotate %64 by %c505_i32_33 dim 1 : vector<8x512xf32>, i32 -> vector<8x512xf32>
    %c504_i32_34 = arith.constant 504 : i32
    %80 = tpu.dynamic_rotate %64 by %c504_i32_34 dim 1 : vector<8x512xf32>, i32 -> vector<8x512xf32>
    %c503_i32_35 = arith.constant 503 : i32
    %81 = tpu.dynamic_rotate %64 by %c503_i32_35 dim 1 : vector<8x512xf32>, i32 -> vector<8x512xf32>
    %c457_i32_36 = arith.constant 457 : i32
    %82 = tpu.dynamic_rotate %64 by %c457_i32_36 dim 1 : vector<8x512xf32>, i32 -> vector<8x512xf32>
    %c456_i32_37 = arith.constant 456 : i32
    %83 = tpu.dynamic_rotate %64 by %c456_i32_37 dim 1 : vector<8x512xf32>, i32 -> vector<8x512xf32>
    %c455_i32_38 = arith.constant 455 : i32
    %84 = tpu.dynamic_rotate %64 by %c455_i32_38 dim 1 : vector<8x512xf32>, i32 -> vector<8x512xf32>
    %c449_i32_39 = arith.constant 449 : i32
    %85 = tpu.dynamic_rotate %64 by %c449_i32_39 dim 1 : vector<8x512xf32>, i32 -> vector<8x512xf32>
    %c448_i32_40 = arith.constant 448 : i32
    %86 = tpu.dynamic_rotate %64 by %c448_i32_40 dim 1 : vector<8x512xf32>, i32 -> vector<8x512xf32>
    %c447_i32_41 = arith.constant 447 : i32
    %87 = tpu.dynamic_rotate %64 by %c447_i32_41 dim 1 : vector<8x512xf32>, i32 -> vector<8x512xf32>
    %c441_i32_42 = arith.constant 441 : i32
    %88 = tpu.dynamic_rotate %64 by %c441_i32_42 dim 1 : vector<8x512xf32>, i32 -> vector<8x512xf32>
    %c440_i32_43 = arith.constant 440 : i32
    %89 = tpu.dynamic_rotate %64 by %c440_i32_43 dim 1 : vector<8x512xf32>, i32 -> vector<8x512xf32>
    %c439_i32_44 = arith.constant 439 : i32
    %90 = tpu.dynamic_rotate %64 by %c439_i32_44 dim 1 : vector<8x512xf32>, i32 -> vector<8x512xf32>
    %91 = tpu.concatenate %65, %66, %67, %68, %69, %70, %71, %72, %73, %74, %75, %76, %77, %64, %78, %79 in 0 : vector<8x512xf32>, vector<8x512xf32>, vector<8x512xf32>, vector<8x512xf32>, vector<8x512xf32>, vector<8x512xf32>, vector<8x512xf32>, vector<8x512xf32>, vector<8x512xf32>, vector<8x512xf32>, vector<8x512xf32>, vector<8x512xf32>, vector<8x512xf32>, vector<8x512xf32>, vector<8x512xf32>, vector<8x512xf32> -> vector<128x512xf32>
    %92 = tpu.concatenate %80, %81, %82, %83, %84, %85, %86, %87, %88, %89, %90 in 0 : vector<8x512xf32>, vector<8x512xf32>, vector<8x512xf32>, vector<8x512xf32>, vector<8x512xf32>, vector<8x512xf32>, vector<8x512xf32>, vector<8x512xf32>, vector<8x512xf32>, vector<8x512xf32>, vector<8x512xf32> -> vector<88x512xf32>
    %93 = tpu.concatenate %91, %92 in 0 : vector<128x512xf32>, vector<88x512xf32> -> vector<216x512xf32>
    %94 = arith.mulf %93, %2 : vector<216x512xf32>
    %c0_45 = arith.constant 0 : index
    %c0_46 = arith.constant 0 : index
    %95 = vector.load %arg8[%c0_45, %c0_46] : memref<8x216xf32, #tpu.memory_space<vmem>>, vector<8x216xf32>
    %cst_47 = arith.constant dense<0.000000e+00> : vector<8x512xf32>
    %96 = tpu.matmul %95, %94, %cst_47 {dimension_numbers = #tpu.dot_dimension_numbers<[1], [0], [0], [1], [0, 0, 1, 1], [], []>} : vector<8x216xf32>, vector<216x512xf32>, vector<8x512xf32> -> vector<8x512xf32>
    %c0_48 = arith.constant 0 : index
    %c0_49 = arith.constant 0 : index
    %97 = vector.load %arg9[%c0_48, %c0_49] : memref<8x1xf32, #tpu.memory_space<vmem>>, vector<8x1xf32>
    %98 = vector.broadcast %97 : vector<8x1xf32> to vector<8x512xf32>
    %99 = arith.addf %96, %98 : vector<8x512xf32>
    %cst_50 = arith.constant dense<0.000000e+00> : vector<8xf32>
    %100 = vector.multi_reduction <add>, %99, %cst_50 [1] : vector<8x512xf32> to vector<8xf32>
    %101 = vector.shape_cast %100 : vector<8xf32> to vector<8x1xf32>
    %cst_51 = arith.constant 5.120000e+02 : f32
    %102 = vector.broadcast %cst_51 : f32 to vector<8x1xf32>
    %103 = arith.divf %101, %102 : vector<8x1xf32>
    %c0_52 = arith.constant 0 : index
    %c0_53 = arith.constant 0 : index
    %104 = vector.load %arg10[%c0_52, %c0_53] : memref<2x8xf32, #tpu.memory_space<vmem>>, vector<2x8xf32>
    %cst_54 = arith.constant dense<0.000000e+00> : vector<2x1xf32>
    %105 = tpu.matmul %104, %103, %cst_54 {dimension_numbers = #tpu.dot_dimension_numbers<[1], [0], [0], [1], [0, 0, 1, 1], [], []>} : vector<2x8xf32>, vector<8x1xf32>, vector<2x1xf32> -> vector<2x1xf32>
    %c0_55 = arith.constant 0 : index
    %c0_56 = arith.constant 0 : index
    %106 = vector.load %arg11[%c0_55, %c0_56] : memref<2x1xf32, #tpu.memory_space<vmem>>, vector<2x1xf32>
    %107 = arith.addf %105, %106 : vector<2x1xf32>
    %cst_57 = arith.constant 0.000000e+00 : f32
    %108 = vector.broadcast %cst_57 : f32 to vector<2x1xf32>
    %109 = arith.maximumf %107, %108 : vector<2x1xf32>
    %c0_58 = arith.constant 0 : index
    %c0_59 = arith.constant 0 : index
    %110 = vector.load %arg12[%c0_58, %c0_59] : memref<8x2xf32, #tpu.memory_space<vmem>>, vector<8x2xf32>
    %cst_60 = arith.constant dense<0.000000e+00> : vector<8x1xf32>
    %111 = tpu.matmul %110, %109, %cst_60 {dimension_numbers = #tpu.dot_dimension_numbers<[1], [0], [0], [1], [0, 0, 1, 1], [], []>} : vector<8x2xf32>, vector<2x1xf32>, vector<8x1xf32> -> vector<8x1xf32>
    %c0_61 = arith.constant 0 : index
    %c0_62 = arith.constant 0 : index
    %112 = vector.load %arg13[%c0_61, %c0_62] : memref<8x1xf32, #tpu.memory_space<vmem>>, vector<8x1xf32>
    %113 = arith.addf %111, %112 : vector<8x1xf32>
    %cst_63 = arith.constant 0.000000e+00 : f32
    %114 = vector.broadcast %cst_63 : f32 to vector<8x1xf32>
    %115 = arith.subf %114, %113 : vector<8x1xf32>
    %116 = math.exp %115 : vector<8x1xf32>
    %cst_64 = arith.constant 1.000000e+00 : f32
    %117 = vector.broadcast %cst_64 : f32 to vector<8x1xf32>
    %118 = arith.addf %117, %116 : vector<8x1xf32>
    %cst_65 = arith.constant 1.000000e+00 : f32
    %119 = vector.broadcast %cst_65 : f32 to vector<8x1xf32>
    %120 = arith.divf %119, %118 : vector<8x1xf32>
    %121 = vector.broadcast %120 : vector<8x1xf32> to vector<8x512xf32>
    %122 = arith.mulf %99, %121 : vector<8x512xf32>
    %123 = arith.addf %122, %1 : vector<8x512xf32>
    %c0_66 = arith.constant 0 : index
    %c0_67 = arith.constant 0 : index
    %c0_68 = arith.constant 0 : index
    %124 = vector.load %arg2[%c0_66, %c0_67, %c0_68] : memref<1x8x512xf32, #tpu.memory_space<vmem>>, vector<1x8x512xf32>
    %125 = vector.shape_cast %124 : vector<1x8x512xf32> to vector<8x512xf32>
    %126 = arith.addf %123, %125 : vector<8x512xf32>
    %c0_69 = arith.constant 0 : index
    %c0_70 = arith.constant 0 : index
    %c0_71 = arith.constant 0 : index
    %127 = vector.load %arg14[%c0_69, %c0_70, %c0_71] : memref<1x8x512xf32, #tpu.memory_space<vmem>>, vector<1x8x512xf32>
    %128 = vector.shape_cast %127 : vector<1x8x512xf32> to vector<8x512xf32>
    %129 = vector.shape_cast %126 : vector<8x512xf32> to vector<1x8x512xf32>
    tpu.vector_store %arg14[%c0_69, %c0_70, %c0_71], %129 {strides = array<i32>} : memref<1x8x512xf32, #tpu.memory_space<vmem>>, vector<1x8x512xf32>,
    return
  }
  func.func @transform_0(%arg0: i32) -> (i32, i32, i32) {
    %c0_i32 = arith.constant 0 : i32
    %c0_i32_0 = arith.constant 0 : i32
    %c0_i32_1 = arith.constant 0 : i32
    return %arg0, %c0_i32, %c0_i32_0 : i32, i32, i32
  }
  func.func @transform_1(%arg0: i32) -> (i32, i32, i32) {
    %c0_i32 = arith.constant 0 : i32
    %c0_i32_0 = arith.constant 0 : i32
    %c0_i32_1 = arith.constant 0 : i32
    return %arg0, %c0_i32, %c0_i32_0 : i32, i32, i32
  }
  func.func @transform_2(%arg0: i32) -> (i32, i32) {
    %c0_i32 = arith.constant 0 : i32
    %c0_i32_0 = arith.constant 0 : i32
    %c0_i32_1 = arith.constant 0 : i32
    return %c0_i32, %c0_i32_0 : i32, i32
  }
  func.func @transform_3(%arg0: i32) -> (i32, i32) {
    %c0_i32 = arith.constant 0 : i32
    %c0_i32_0 = arith.constant 0 : i32
    %c0_i32_1 = arith.constant 0 : i32
    return %c0_i32, %c0_i32_0 : i32, i32
  }
  func.func @transform_4(%arg0: i32) -> (i32, i32) {
    %c0_i32 = arith.constant 0 : i32
    %c0_i32_0 = arith.constant 0 : i32
    %c0_i32_1 = arith.constant 0 : i32
    return %c0_i32, %c0_i32_0 : i32, i32
  }
  func.func @transform_5(%arg0: i32) -> (i32, i32) {
    %c0_i32 = arith.constant 0 : i32
    %c0_i32_0 = arith.constant 0 : i32
    %c0_i32_1 = arith.constant 0 : i32
    return %c0_i32, %c0_i32_0 : i32, i32
  }
  func.func @transform_6(%arg0: i32) -> (i32, i32) {
    %c0_i32 = arith.constant 0 : i32
    %c0_i32_0 = arith.constant 0 : i32
    %c0_i32_1 = arith.constant 0 : i32
    return %c0_i32, %c0_i32_0 : i32, i32
  }
  func.func @transform_7(%arg0: i32) -> (i32, i32) {
    %c0_i32 = arith.constant 0 : i32
    %c0_i32_0 = arith.constant 0 : i32
    %c0_i32_1 = arith.constant 0 : i32
    return %c0_i32, %c0_i32_0 : i32, i32
  }
  func.func @transform_8(%arg0: i32) -> (i32, i32) {
    %c0_i32 = arith.constant 0 : i32
    %c0_i32_0 = arith.constant 0 : i32
    %c0_i32_1 = arith.constant 0 : i32
    return %c0_i32, %c0_i32_0 : i32, i32
  }
  func.func @transform_9(%arg0: i32) -> (i32, i32) {
    %c0_i32 = arith.constant 0 : i32
    %c0_i32_0 = arith.constant 0 : i32
    %c0_i32_1 = arith.constant 0 : i32
    return %c0_i32, %c0_i32_0 : i32, i32
  }
  func.func @transform_10(%arg0: i32) -> (i32, i32) {
    %c0_i32 = arith.constant 0 : i32
    %c0_i32_0 = arith.constant 0 : i32
    %c0_i32_1 = arith.constant 0 : i32
    return %c0_i32, %c0_i32_0 : i32, i32
  }
  func.func @transform_11(%arg0: i32) -> (i32, i32) {
    %c0_i32 = arith.constant 0 : i32
    %c0_i32_0 = arith.constant 0 : i32
    %c0_i32_1 = arith.constant 0 : i32
    return %c0_i32, %c0_i32_0 : i32, i32
  }
  func.func @transform_12(%arg0: i32) -> (i32, i32) {
    %c0_i32 = arith.constant 0 : i32
    %c0_i32_0 = arith.constant 0 : i32
    %c0_i32_1 = arith.constant 0 : i32
    return %c0_i32, %c0_i32_0 : i32, i32
  }
  func.func @transform_13(%arg0: i32) -> (i32, i32, i32) {
    %c0_i32 = arith.constant 0 : i32
    %c0_i32_0 = arith.constant 0 : i32
    %c0_i32_1 = arith.constant 0 : i32
    return %arg0, %c0_i32, %c0_i32_0 : i32, i32, i32
  }
}

</mosaic_0001>

<bundles_post_ra>
// kernel: swin_mlp_block.6
= control target key start
LH: loop header
LB: loop body
LE: loop exit
PB: predicated region body
PF: predicated region fallthrough
CT: control target
= control target key end

     0   :  { %v1655_v56 = vmov 0   ;;  %vm937_vm0 = vcmask 523264   ;;  %s2289_s1 = inlined_call_operand.vmem [shape: f32[128,128], index: 1, kind: input, shape index: {}]   ;;  %s2290_s0 = inlined_call_operand.vmem [shape: f32[1,64,128], index: 0, kind: input, shape index: {}]   ;;  %s2291_s4 = inlined_call_operand.vmem [shape: bf16[128,256], index: 4, kind: input, shape index: {}]   ;;  %s2292_s2 = inlined_call_operand.vmem [shape: f32[1,128], index: 2, kind: input, shape index: {}]   ;;  %s2293_s3 = inlined_call_operand.vmem [shape: f32[1,128], index: 3, kind: input, shape index: {}]   ;;  %s2294_s5 = inlined_call_operand.vmem [shape: f32[1,256], index: 5, kind: input, shape index: {}]   ;;  %s2295_s8 = inlined_call_operand.vmem [shape: bf16[64,64], index: 8, kind: input, shape index: {}]   ;;  %s2296_s9 = inlined_call_operand.vmem [shape: f32[64,1], index: 9, kind: input, shape index: {}]   ;;  %s2297_s10 = inlined_call_operand.vmem [shape: bf16[128,128], index: 10, kind: input, shape index: {}]   ;;  %s2298_s6 = inlined_call_operand.vmem [shape: f32[1,128], index: 6, kind: input, shape index: {}]   ;;  %s2299_s7 = inlined_call_operand.vmem [shape: f32[1,128], index: 7, kind: input, shape index: {}]   ;;  %s2300_s11 = inlined_call_operand.vmem [shape: f32[1,128], index: 11, kind: input, shape index: {}]   ;;  %s2301_s12 = inlined_call_operand.vmem [shape: f32[1,64,128], index: 12, kind: output, shape index: {}]  }
   0x1   :  { %v50_v0 = vld [vmem:[%s2289_s1] sm:$0xff]  ;;  %v51_v1 = vld [vmem:[%s2289_s1 + $0x8] sm:$0xff]  ;;  %v52_v2 = vld [vmem:[%s2289_s1 + $0x10] sm:$0xff]  ;;  %441 = vmatprep.mubr.bf16.mxu1 %v1655_v56  ;;  %1545 = vset.pattern.permute.xlu0 %v1655_v56 }
   0x2   :  { %v1464_v3 = vpack.c.bf16 %v51_v1, %v50_v0  ;;  %v53_v4 = vld [vmem:[%s2289_s1 + $0x18] sm:$0xff]  ;;  %v54_v6 = vld [vmem:[%s2289_s1 + $0x20] sm:$0xff]  ;;  %v55_v7 = vld [vmem:[%s2289_s1 + $0x28] sm:$0xff]  ;;  %1546 = vset.pattern.permute.xlu1 %v1655_v56 }
   0x3   :  { %v1468_v5 = vpack.c.bf16 %v53_v4, %v52_v2  ;;  %v1472_v8 = vpack.c.bf16 %v55_v7, %v54_v6  ;;  %v1742_v9 = vld [vmem:[%s2290_s0] sm:$0xff]  ;;  %v56_v10 = vld [vmem:[%s2289_s1 + $0x30] sm:$0xff]  ;;  %v57_v11 = vld [vmem:[%s2289_s1 + $0x38] sm:$0xff] }
   0x4   :  { %1465 = vmatprep.subr.bf16.mxu0 %v1464_v3  ;;  %1344 = vmatprep.mubr.f32.mxu0 %v1742_v9  ;;  %v1476_v12 = vpack.c.bf16 %v57_v11, %v56_v10  ;;  %v58_v13 = vld [vmem:[%s2289_s1 + $0x40] sm:$0xff]  ;;  %v59_v14 = vld [vmem:[%s2289_s1 + $0x48] sm:$0xff]  ;;  %v60_v16 = vld [vmem:[%s2289_s1 + $0x50] sm:$0xff]  ;;  %v66_v32 = vmul.f32 %v1742_v9, %v1742_v9 }
   0x5   :  { %1467 = vmatpush3.bf16.msra.mxu0 %v1464_v3  ;;  %v1480_v15 = vpack.c.bf16 %v59_v14, %v58_v13  ;;  %v61_v17 = vld [vmem:[%s2289_s1 + $0x58] sm:$0xff]  ;;  %v62_v19 = vld [vmem:[%s2289_s1 + $0x60] sm:$0xff]  ;;  %v63_v20 = vld [vmem:[%s2289_s1 + $0x68] sm:$0xff] }
   0x6   :  { %1469 = vmatprep.subr.bf16.mxu0 %v1468_v5  ;;  %v1484_v18 = vpack.c.bf16 %v61_v17, %v60_v16  ;;  %v1488_v21 = vpack.c.bf16 %v63_v20, %v62_v19  ;;  %v64_v22 = vld [vmem:[%s2289_s1 + $0x70] sm:$0xff]  ;;  %v65_v23 = vld [vmem:[%s2289_s1 + $0x78] sm:$0xff]  ;;  %v1778_v25 = vld [vmem:[%s2290_s0 + $0x8] sm:$0xff] }
   0x7   :  { %v1492_v24 = vpack.c.bf16 %v65_v23, %v64_v22  ;;  %v1783_v26 = vld [vmem:[%s2290_s0 + $0x10] sm:$0xff]  ;;  %v1790_v27 = vld [vmem:[%s2290_s0 + $0x18] sm:$0xff]  ;;  %v1795_v28 = vld [vmem:[%s2290_s0 + $0x20] sm:$0xff]  ;;  %v67_v33 = vmul.f32 %v1778_v25, %v1778_v25 }
   0x8   :  { %v1802_v29 = vld [vmem:[%s2290_s0 + $0x28] sm:$0xff]  ;;  %v1807_v30 = vld [vmem:[%s2290_s0 + $0x30] sm:$0xff]  ;;  %v1814_v31 = vld [vmem:[%s2290_s0 + $0x38] sm:$0xff]  ;;  %v68_v34 = vmul.f32 %v1783_v26, %v1783_v26  ;;  %v69_v35 = vmul.f32 %v1790_v27, %v1790_v27  ;;  %v70_v36 = vmul.f32 %v1795_v28, %v1795_v28 }
   0x9   :  { %1471 = vmatpush3.bf16.msra.mxu0 %v1468_v5  ;;  %v71_v37 = vmul.f32 %v1802_v29, %v1802_v29  ;;  %v72_v38 = vmul.f32 %v1807_v30, %v1807_v30  ;;  %v73_v39 = vmul.f32 %v1814_v31, %v1814_v31  ;;  %v1547_v40 = vld [vmem:[%s2291_s4 + $0x4] ss:$8 sps:$4 sm:$0xff]   ;;  %v1549_v41 = vld [vmem:[%s2291_s4] ss:$8 sps:$4 sm:$0xff]   ;;  %v1550_v42 = vld [vmem:[%s2291_s4 + $0x14] ss:$8 sps:$4 sm:$0xff]  }
   0xa   :  { %1473 = vmatprep.subr.bf16.mxu0 %v1472_v8  ;;  %409 = vmatprep.subr.bf16.mxu1 %v1547_v40  ;;  %v1552_v43 = vld [vmem:[%s2291_s4 + $0x10] ss:$8 sps:$4 sm:$0xff]   ;;  %v1553_v44 = vld [vmem:[%s2291_s4 + $0x24] ss:$8 sps:$4 sm:$0xff]   ;;  %v1555_v45 = vld [vmem:[%s2291_s4 + $0x20] ss:$8 sps:$4 sm:$0xff]  }
   0xb   :  { %410 = vmatpush1.bf16.msra.mxu1 %v1549_v41  ;;  %v1556_v46 = vld [vmem:[%s2291_s4 + $0x34] ss:$8 sps:$4 sm:$0xff]   ;;  %v1558_v47 = vld [vmem:[%s2291_s4 + $0x30] ss:$8 sps:$4 sm:$0xff]   ;;  %v1559_v48 = vld [vmem:[%s2291_s4 + $0x44] ss:$8 sps:$4 sm:$0xff]  }
   0xc   :  { %411 = vmatprep.subr.bf16.mxu1 %v1550_v42  ;;  %v1561_v49 = vld [vmem:[%s2291_s4 + $0x40] ss:$8 sps:$4 sm:$0xff]   ;;  %v1562_v50 = vld [vmem:[%s2291_s4 + $0x54] ss:$8 sps:$4 sm:$0xff]   ;;  %v1564_v51 = vld [vmem:[%s2291_s4 + $0x50] ss:$8 sps:$4 sm:$0xff]  }
   0xd   :  { %1475 = vmatpush3.bf16.msra.mxu0 %v1472_v8  ;;  %v1565_v52 = vld [vmem:[%s2291_s4 + $0x64] ss:$8 sps:$4 sm:$0xff]   ;;  %v1567_v53 = vld [vmem:[%s2291_s4 + $0x60] ss:$8 sps:$4 sm:$0xff]   ;;  %v1568_v54 = vld [vmem:[%s2291_s4 + $0x74] ss:$8 sps:$4 sm:$0xff]  }
   0xe   :  { %1477 = vmatprep.subr.bf16.mxu0 %v1476_v12  ;;  %v1570_v55 = vld [vmem:[%s2291_s4 + $0x70] ss:$8 sps:$4 sm:$0xff]  }
   0xf   :  { %412 = vmatpush1.bf16.msra.mxu1 %v1552_v43  ;;  %v1191_v43 = vld [vmem:[%s2292_s2] ss:$0 sm:$0xff] }
  0x10   :  { %413 = vmatprep.subr.bf16.mxu1 %v1553_v44 }
  0x11   :  { %1479 = vmatpush3.bf16.msra.mxu0 %v1476_v12 }
  0x12   :  { %1481 = vmatprep.subr.bf16.mxu0 %v1480_v15 }
  0x13   :  { %414 = vmatpush1.bf16.msra.mxu1 %v1555_v45 }
  0x14   :  { %415 = vmatprep.subr.bf16.mxu1 %v1556_v46 }
  0x15   :  { %1483 = vmatpush3.bf16.msra.mxu0 %v1480_v15 }
  0x16   :  { %1485 = vmatprep.subr.bf16.mxu0 %v1484_v18 }
  0x17   :  { %416 = vmatpush1.bf16.msra.mxu1 %v1558_v47 }
  0x18   :  { %417 = vmatprep.subr.bf16.mxu1 %v1559_v48  ;;  %v1192_v48 = vld [vmem:[%s2293_s3] ss:$0 sm:$0xff] }
  0x19   :  { %1487 = vmatpush3.bf16.msra.mxu0 %v1484_v18 }
  0x1a   :  { %1489 = vmatprep.subr.bf16.mxu0 %v1488_v21 }
  0x1b   :  { %418 = vmatpush1.bf16.msra.mxu1 %v1561_v49 }
  0x1c   :  { %419 = vmatprep.subr.bf16.mxu1 %v1562_v50 }
  0x1d   :  { %1491 = vmatpush3.bf16.msra.mxu0 %v1488_v21 }
  0x1e   :  { %1493 = vmatprep.subr.bf16.mxu0 %v1492_v24 }
  0x1f   :  { %420 = vmatpush1.bf16.msra.mxu1 %v1564_v51 }
  0x20   :  { %421 = vmatprep.subr.bf16.mxu1 %v1565_v52 }
  0x21   :  { %1495 = vmatpush3.bf16.msra.mxu0 %v1492_v24 }
  0x22   :  { %1497 = vmatprep.subr.bf16.mxu0 %v1464_v3 }
  0x23   :  { %422 = vmatpush1.bf16.msra.mxu1 %v1567_v53 }
  0x24   :  { %1345 = vmatmul.mubr.f32.vlgmr.msra.gmra.mrb[0].mxu0 %v1778_v25  ;;  %423 = vmatprep.subr.bf16.mxu1 %v1568_v54 }
  0x25   :  { %1347 = vmatprep.mubr.f32.mxu0 %v1783_v26  ;;  %1499 = vmatpush3.bf16.msra.mxu0 %v1464_v3 }
  0x26   :  { %1501 = vmatprep.subr.bf16.mxu0 %v1468_v5 }
  0x27   :  { %424 = vmatpush1.bf16.msra.mxu1 %v1570_v55 }
  0x28   :  { %1348 = vmatmul.mubr.f32.gmra.mrb[2].mxu0 %v1790_v27 }
  0x29   :  { %1350 = vmatprep.mubr.f32.mxu0 %v1795_v28  ;;  %1503 = vmatpush3.bf16.msra.mxu0 %v1468_v5 }
  0x2a   :  { %1505 = vmatprep.subr.bf16.mxu0 %v1472_v8 }
  0x2c   :  { %1351 = vmatmul.mubr.f32.gmra.mrb[4].mxu0 %v1802_v29 }
  0x2d   :  { %1353 = vmatprep.mubr.f32.mxu0 %v1807_v30  ;;  %1507 = vmatpush3.bf16.msra.mxu0 %v1472_v8 }
  0x2e   :  { %1509 = vmatprep.subr.bf16.mxu0 %v1476_v12 }
  0x30   :  { %1354 = vmatmul.mubr.f32.gmra.mrb[6].mxu0 %v1814_v31 }
  0x31   :  { %1356 = vmatprep.mubr.f32.mxu0 %v66_v32  ;;  %1511 = vmatpush3.bf16.msra.mxu0 %v1476_v12 }
  0x32   :  { %1513 = vmatprep.subr.bf16.mxu0 %v1480_v15 }
  0x34   :  { %1357 = vmatmul.mubr.f32.gmra.mrb[8].mxu0 %v67_v33 }
  0x35   :  { %1359 = vmatprep.mubr.f32.mxu0 %v68_v34  ;;  %1515 = vmatpush3.bf16.msra.mxu0 %v1480_v15 }
  0x36   :  { %1517 = vmatprep.subr.bf16.mxu0 %v1484_v18 }
  0x38   :  { %1360 = vmatmul.mubr.f32.gmra.mrb[10].mxu0 %v69_v35 }
  0x39   :  { %1362 = vmatprep.mubr.f32.mxu0 %v70_v36  ;;  %1519 = vmatpush3.bf16.msra.mxu0 %v1484_v18 }
  0x3a   :  { %1521 = vmatprep.subr.bf16.mxu0 %v1488_v21 }
  0x3c   :  { %1363 = vmatmul.mubr.f32.gmra.mrb[12].mxu0 %v71_v37 }
  0x3d   :  { %1365 = vmatprep.mubr.f32.mxu0 %v72_v38  ;;  %1523 = vmatpush3.bf16.msra.mxu0 %v1488_v21 }
  0x3e   :  { %1525 = vmatprep.subr.bf16.mxu0 %v1492_v24 }
  0x40   :  { %1366 = vmatmul.mubr.f32.gmra.mrb[14].mxu0 %v73_v39 }
  0x41   :  { %1527 = vmatpush3.bf16.msra.mxu0 %v1492_v24 }
  0xf7   :  { %v1346_v57 = vpop.f32.mrb[0].mxu0 }
  0xf8   :  { %v140_v58 = vpop.f32.mrb[1].mxu0  ;;  %v220_v1 = vmul.f32 %v1346_v57, %v1346_v57  ;;  %v236_v38 = vsub.f32 %v1778_v25, %v1346_v57 }
  0xf9   :  { %v219_v2 = vmul.f32 %v140_v58, %v140_v58  ;;  %v235_v41 = vsub.f32 %v1742_v9, %v140_v58 }
  0xfb   :  { %v1884_v59 = vpop.f32.mrb[2].mxu0 }
  0xfc   :  { %v1886_v60 = vpop.f32.mrb[3].mxu0  ;;  %v222_v7 = vmul.f32 %v1884_v59, %v1884_v59  ;;  %v238_v25 = vsub.f32 %v1790_v27, %v1884_v59 }
  0xfd   :  { %v221_v10 = vmul.f32 %v1886_v60, %v1886_v60  ;;  %v237_v50 = vsub.f32 %v1783_v26, %v1886_v60 }
  0xff   :  { %v1888_v61 = vpop.f32.mrb[4].mxu0 }
 0x100   :  { %v1890_v62 = vpop.f32.mrb[5].mxu0  ;;  %v224_v16 = vmul.f32 %v1888_v61, %v1888_v61  ;;  %v240_v58 = vsub.f32 %v1802_v29, %v1888_v61 }
 0x101   :  { %v223_v18 = vmul.f32 %v1890_v62, %v1890_v62  ;;  %v239_v27 = vsub.f32 %v1795_v28, %v1890_v62 }
 0x103   :  { %v1892_v63 = vpop.f32.mrb[6].mxu0 }
 0x104   :  { %v1894_v0 = vpop.f32.mrb[7].mxu0  ;;  %v226_v24 = vmul.f32 %v1892_v63, %v1892_v63 }
 0x105   :  { %v225_v33 = vmul.f32 %v1894_v0, %v1894_v0  ;;  %v241_v61 = vsub.f32 %v1807_v30, %v1894_v0  ;;  %v319_v30 = vlaneseq }
 0x107   :  { %v1358_v3 = vpop.f32.mrb[8].mxu0  ;;  %v1931_v0 = vshrl.u32 %v319_v30, 7 }
 0x108   :  { %v228_v4 = vsub.f32 %v1358_v3, %v220_v1  ;;  %v180_v5 = vpop.f32.mrb[9].mxu0 }
 0x109   :  { %v227_v6 = vsub.f32 %v180_v5, %v219_v2 }
 0x10a   :  { %v244_v8 = vadd.f32 1e-05, %v228_v4 }
 0x10b   :  { %v243_v11 = vadd.f32 1e-05, %v227_v6  ;;  %v1361_v12 = vpop.f32.mrb[10].mxu0 }
 0x10c   :  { %1583 = vrsqrt.f32 %v244_v8  ;;  %v230_v13 = vsub.f32 %v1361_v12, %v222_v7  ;;  %v190_v14 = vpop.f32.mrb[11].mxu0  ;;  %v242_v7 = vsub.f32 %v1814_v31, %v1892_v63 }
 0x10d   :  { %1585 = vrsqrt.f32 %v243_v11  ;;  %v229_v15 = vsub.f32 %v190_v14, %v221_v10 }
 0x10e   :  { %v246_v17 = vadd.f32 1e-05, %v230_v13 }
 0x10f   :  { %v245_v19 = vadd.f32 1e-05, %v229_v15  ;;  %v1364_v20 = vpop.f32.mrb[12].mxu0 }
 0x110   :  { %1587 = vrsqrt.f32 %v246_v17  ;;  %v232_v21 = vsub.f32 %v1364_v20, %v224_v16  ;;  %v200_v22 = vpop.f32.mrb[13].mxu0  ;;  %v1937_v20 = vld [vmem:[%s2294_s5] sm:$0x3] }
 0x111   :  { %1589 = vrsqrt.f32 %v245_v19  ;;  %v231_v23 = vsub.f32 %v200_v22, %v223_v18  ;;  %v325_v19 = vsub.s32 1, %v1931_v0 }
 0x112   :  { %v248_v32 = vadd.f32 1e-05, %v232_v21 }
 0x113   :  { %v247_v34 = vadd.f32 1e-05, %v231_v23  ;;  %v1367_v35 = vpop.f32.mrb[14].mxu0  ;;  %v1940_v21 = vrot.slane %v1937_v20, %v325_v19 }
 0x114   :  { %1591 = vrsqrt.f32 %v248_v32  ;;  %v234_v36 = vsub.f32 %v1367_v35, %v226_v24  ;;  %v210_v37 = vpop.f32.mrb[15].mxu0 }
 0x115   :  { %1593 = vrsqrt.f32 %v247_v34  ;;  %v233_v39 = vsub.f32 %v210_v37, %v225_v33 }
 0x116   :  { %v1584_v40 = vpop.eup %1583  ;;  %v250_v42 = vadd.f32 1e-05, %v234_v36 }
 0x117   :  { %v1586_v44 = vpop.eup %1585  ;;  %v249_v45 = vadd.f32 1e-05, %v233_v39  ;;  %v260_v46 = vmul.f32 %v1584_v40, %v236_v38 }
 0x118   :  { %1595 = vrsqrt.f32 %v250_v42  ;;  %v259_v47 = vmul.f32 %v1586_v44, %v235_v41 }
 0x119   :  { %1597 = vrsqrt.f32 %v249_v45  ;;  %v275_v49 = vmul.f32 %v1191_v43, %v260_v46 }
 0x11a   :  { %v1588_v9 = vpop.eup %1587  ;;  %v274_v51 = vmul.f32 %v1191_v43, %v259_v47 }
 0x11b   :  { %v1590_v52 = vpop.eup %1589  ;;  %v290_v53 = vadd.f32 %v1192_v48, %v275_v49  ;;  %v262_v54 = vmul.f32 %v1588_v9, %v238_v25 }
 0x11c   :  { %v289_v55 = vadd.f32 %v1192_v48, %v274_v51  ;;  %v261_v57 = vmul.f32 %v1590_v52, %v237_v50 }
 0x11d   :  { %v277_v1 = vmul.f32 %v1191_v43, %v262_v54 }
 0x11e   :  { %v1592_v2 = vpop.eup %1591  ;;  %v297_v59 = vpack.c.bf16 %v290_v53, %v289_v55  ;;  %v276_v3 = vmul.f32 %v1191_v43, %v261_v57 }
 0x11f   :  { %v1594_v4 = vpop.eup %1593  ;;  %v292_v5 = vadd.f32 %v1192_v48, %v277_v1  ;;  %v264_v6 = vmul.f32 %v1592_v2, %v240_v58 }
 0x120   :  { %442 = vmatmul.mubr.bf16.vlgmr.msra.gmra.mrb[0].mxu1 %v297_v59  ;;  %v291_v26 = vadd.f32 %v1192_v48, %v276_v3  ;;  %v263_v60 = vmul.f32 %v1594_v4, %v239_v27 }
 0x121   :  { %451 = vmatprep.mubr.bf16.mxu1 %v1655_v56  ;;  %v279_v8 = vmul.f32 %v1191_v43, %v264_v6 }
 0x122   :  { %v1596_v29 = vpop.eup %1595  ;;  %v298_v10 = vpack.c.bf16 %v292_v5, %v291_v26  ;;  %v278_v28 = vmul.f32 %v1191_v43, %v263_v60 }
 0x123   :  { %v1598_v62 = vpop.eup %1597  ;;  %v294_v11 = vadd.f32 %v1192_v48, %v279_v8  ;;  %v266_v12 = vmul.f32 %v1596_v29, %v242_v7 }
 0x124   :  { %v293_v13 = vadd.f32 %v1192_v48, %v278_v28  ;;  %v265_v14 = vmul.f32 %v1598_v62, %v241_v61 }
 0x125   :  { %v281_v15 = vmul.f32 %v1191_v43, %v266_v12 }
 0x126   :  { %v299_v16 = vpack.c.bf16 %v294_v11, %v293_v13  ;;  %v280_v17 = vmul.f32 %v1191_v43, %v265_v14 }
 0x127   :  { %v296_v18 = vadd.f32 %v1192_v48, %v281_v15 }
 0x128   :  { %452 = vmatmul.mubr.bf16.gmra.mrb[4].mxu1 %v298_v10  ;;  %v295_v31 = vadd.f32 %v1192_v48, %v280_v17 }
 0x129   :  { %461 = vmatprep.mubr.bf16.mxu1 %v1655_v56 }
 0x12a   :  { %v300_v63 = vpack.c.bf16 %v296_v18, %v295_v31 }
 0x130   :  { %462 = vmatmul.mubr.bf16.gmra.mrb[8].mxu1 %v299_v16 }
 0x131   :  { %471 = vmatprep.mubr.bf16.mxu1 %v1655_v56 }
 0x138   :  { %472 = vmatmul.mubr.bf16.gmra.mrb[12].mxu1 %v300_v63 }
 0x1f3   :  { %v1942_v22 = vpop.f32.mrb[0].mxu1 }
 0x1f4   :  { %v445_v23 = vpop.f32.mrb[1].mxu1 }
 0x1f5   :  { %v1945_v24 = vadd.f32 %v445_v23, %v1940_v21  ;;  %v1947_v56 = vpop.f32.mrb[2].mxu1 }
 0x1f6   :  { %v449_v32 = vpop.f32.mrb[3].mxu1 }
 0x1f7   :  { %v483_v33 = vmul.f32 %v1945_v24, %v1945_v24  ;;  %v450_v34 = vadd.f32 %v449_v32, %v1940_v21 }
 0x1f9   :  { %v499_v35 = vmul.f32 %v483_v33, %v1945_v24  ;;  %v485_v36 = vmul.f32 %v450_v34, %v450_v34 }
 0x1fb   :  { %v515_v37 = vmul.f32 0.044715, %v499_v35  ;;  %v501_v38 = vmul.f32 %v485_v36, %v450_v34  ;;  %v1953_v39 = vpop.f32.mrb[4].mxu1 }
 0x1fc   :  { %v455_v40 = vpop.f32.mrb[5].mxu1 }
 0x1fd   :  { %v531_v41 = vadd.f32 %v515_v37, %v1945_v24  ;;  %v517_v42 = vmul.f32 0.044715, %v501_v38  ;;  %v1957_v43 = vadd.f32 %v455_v40, %v1940_v21  ;;  %v1959_v44 = vpop.f32.mrb[6].mxu1 }
 0x1fe   :  { %v459_v45 = vpop.f32.mrb[7].mxu1 }
 0x1ff   :  { %v547_v46 = vmul.f32 0.7978846, %v531_v41  ;;  %v533_v47 = vadd.f32 %v517_v42, %v450_v34  ;;  %v487_v48 = vmul.f32 %v1957_v43, %v1957_v43  ;;  %v1964_v25 = vadd.f32 %v459_v45, %v1940_v21 }
 0x201   :  { %v549_v49 = vmul.f32 0.7978846, %v533_v47  ;;  %v503_v9 = vmul.f32 %v487_v48, %v1957_v43  ;;  %v489_v50 = vmul.f32 %v1964_v25, %v1964_v25  ;;  %1599 = vtanh.f32 %v547_v46 }
 0x203   :  { %1601 = vtanh.f32 %v549_v49  ;;  %v519_v51 = vmul.f32 0.044715, %v503_v9  ;;  %v505_v52 = vmul.f32 %v489_v50, %v1964_v25  ;;  %v1970_v53 = vpop.f32.mrb[8].mxu1 }
 0x204   :  { %v465_v54 = vpop.f32.mrb[9].mxu1 }
 0x205   :  { %v535_v55 = vadd.f32 %v519_v51, %v1957_v43  ;;  %v521_v57 = vmul.f32 0.044715, %v505_v52  ;;  %v1974_v58 = vadd.f32 %v465_v54, %v1940_v21  ;;  %v1976_v1 = vpop.f32.mrb[10].mxu1 }
 0x206   :  { %v469_v2 = vpop.f32.mrb[11].mxu1 }
 0x207   :  { %v551_v27 = vmul.f32 0.7978846, %v535_v55  ;;  %v537_v59 = vadd.f32 %v521_v57, %v1964_v25  ;;  %v491_v3 = vmul.f32 %v1974_v58, %v1974_v58  ;;  %v470_v4 = vadd.f32 %v469_v2, %v1940_v21 }
 0x209   :  { %v553_v5 = vmul.f32 0.7978846, %v537_v59  ;;  %v507_v6 = vmul.f32 %v491_v3, %v1974_v58  ;;  %v493_v26 = vmul.f32 %v470_v4, %v470_v4  ;;  %1603 = vtanh.f32 %v551_v27 }
 0x20b   :  { %v1600_v60 = vpop.eup %1599  ;;  %v523_v7 = vmul.f32 0.044715, %v507_v6  ;;  %v509_v8 = vmul.f32 %v493_v26, %v470_v4  ;;  %v1983_v29 = vpop.f32.mrb[12].mxu1  ;;  %1605 = vtanh.f32 %v553_v5 }
 0x20c   :  { %v475_v61 = vpop.f32.mrb[13].mxu1  ;;  %v579_v15 = vadd.f32 1.0, %v1600_v60 }
 0x20d   :  { %v1602_v10 = vpop.eup %1601  ;;  %v539_v28 = vadd.f32 %v523_v7, %v1974_v58  ;;  %v525_v62 = vmul.f32 0.044715, %v509_v8  ;;  %v476_v11 = vadd.f32 %v475_v61, %v1940_v21  ;;  %v1987_v12 = vpop.f32.mrb[14].mxu1 }
 0x20e   :  { %v581_v13 = vadd.f32 1.0, %v1602_v10  ;;  %v479_v14 = vpop.f32.mrb[15].mxu1  ;;  %v595_v23 = vmul.f32 0.5, %v579_v15  ;;  %v870_v15 = vld [vmem:[%s2296_s9 + $0x8] sm:$0xff] }
 0x20f   :  { %v555_v16 = vmul.f32 0.7978846, %v539_v28  ;;  %v541_v17 = vadd.f32 %v525_v62, %v470_v4  ;;  %v495_v18 = vmul.f32 %v476_v11, %v476_v11  ;;  %v480_v19 = vadd.f32 %v479_v14, %v1940_v21  ;;  %v873_v14 = vld [vmem:[%s2296_s9 + $0x20] sm:$0xff] }
 0x210   :  { %v597_v31 = vmul.f32 0.5, %v581_v13  ;;  %v1993_v37 = vmul.f32 %v595_v23, %v1945_v24  ;;  %v869_v13 = vld [vmem:[%s2296_s9] sm:$0xff]  ;;  %899 = vperm.xlu1 %1546, %v873_v14   ;;  %v876_v23 = vld [vmem:[%s2296_s9 + $0x38] sm:$0xff] }
 0x211   :  { %v557_v63 = vmul.f32 0.7978846, %v541_v17  ;;  %v511_v30 = vmul.f32 %v495_v18, %v476_v11  ;;  %v497_v36 = vmul.f32 %v480_v19, %v480_v19  ;;  %1607 = vtanh.f32 %v555_v16  ;;  %879 = vperm.xlu0 %1545, %v869_v13   ;;  %v874_v16 = vld [vmem:[%s2296_s9 + $0x28] sm:$0xff]  ;;  %v2053_v17 = vld [vmem:[%s2297_s10] sm:$0xff]  }
 0x212   :  { %v1990_v33 = vmul.f32 %v597_v31, %v450_v34  ;;  %1400 = vmatprep.mubr.f32.mxu0 %v1993_v37  ;;  %v2058_v18 = vld [vmem:[%s2297_s10 + $0x8] sm:$0xff]   ;;  %v871_v31 = vld [vmem:[%s2296_s9 + $0x10] sm:$0xff]  ;;  %1440 = vmatprep.subr.bf16.mxu0 %v2053_v17 }
 0x213   :  { %v1604_v32 = vpop.eup %1603  ;;  %v527_v35 = vmul.f32 0.044715, %v511_v30  ;;  %1609 = vtanh.f32 %v557_v63  ;;  %v513_v42 = vmul.f32 %v497_v36, %v480_v19  ;;  %v872_v63 = vld [vmem:[%s2296_s9 + $0x18] sm:$0xff]  ;;  %v2071_v30 = vld [vmem:[%s2297_s10 + $0x10] sm:$0xff]  }
 0x214   :  { %v583_v38 = vadd.f32 1.0, %v1604_v32  ;;  %1401 = vmatmul.mubr.f32.vlgmr.msra.gmra.mrb[16].mxu0 %v1990_v33  ;;  %904 = vperm.xlu1 %1546, %v874_v16   ;;  %v2085_v32 = vld [vmem:[%s2297_s10 + $0x18] sm:$0xff]  }
 0x215   :  { %v1606_v40 = vpop.eup %1605  ;;  %v543_v41 = vadd.f32 %v527_v35, %v476_v11  ;;  %v529_v47 = vmul.f32 0.044715, %v513_v42  ;;  %884 = vperm.xlu0 %1545, %v870_v15   ;;  %1441 = vmatpush3.bf16.msra.mxu0 %v2053_v17  ;;  %v2092_v35 = vld [vmem:[%s2297_s10 + $0x20] sm:$0xff]  }
 0x216   :  { %v599_v45 = vmul.f32 0.5, %v583_v38  ;;  %v585_v46 = vadd.f32 1.0, %v1606_v40  ;;  %1442 = vmatprep.subr.bf16.mxu0 %v2058_v18 }
 0x217   :  { %v559_v21 = vmul.f32 0.7978846, %v543_v41  ;;  %v545_v49 = vadd.f32 %v529_v47, %v480_v19 }
 0x218   :  { %v1998_v34 = vmul.f32 %v599_v45, %v1957_v43  ;;  %v601_v48 = vmul.f32 0.5, %v585_v46  ;;  %894 = vperm.xlu1 %1546, %v872_v63  }
 0x219   :  { %1611 = vtanh.f32 %v559_v21  ;;  %v561_v9 = vmul.f32 0.7978846, %v545_v49  ;;  %889 = vperm.xlu0 %1545, %v871_v31   ;;  %1443 = vmatpush3.bf16.msra.mxu0 %v2058_v18 }
 0x21a   :  { %1403 = vmatprep.mubr.f32.mxu0 %v1998_v34  ;;  %v2002_v24 = vmul.f32 %v601_v48, %v1964_v25  ;;  %v628_v7 = vmul.f32 %v1998_v34, %v1998_v34  ;;  %1444 = vmatprep.subr.bf16.mxu0 %v2071_v30 }
 0x21b   :  { %v1608_v50 = vpop.eup %1607  ;;  %1613 = vtanh.f32 %v561_v9 }
 0x21c   :  { %1404 = vmatmul.mubr.f32.gmra.mrb[18].mxu0 %v2002_v24  ;;  %v587_v52 = vadd.f32 1.0, %v1608_v50  ;;  %v629_v8 = vmul.f32 %v2002_v24, %v2002_v24  ;;  %914 = vperm.xlu1 %1546, %v876_v23  }
 0x21d   :  { %v1610_v51 = vpop.eup %1609  ;;  %1445 = vmatpush3.bf16.msra.mxu0 %v2071_v30 }
 0x21e   :  { %v589_v54 = vadd.f32 1.0, %v1610_v51  ;;  %v603_v55 = vmul.f32 0.5, %v587_v52  ;;  %1446 = vmatprep.subr.bf16.mxu0 %v2085_v32 }
 0x220   :  { %v605_v57 = vmul.f32 0.5, %v589_v54  ;;  %v2006_v43 = vmul.f32 %v603_v55, %v1974_v58  ;;  %v626_v58 = vmul.f32 %v1993_v37, %v1993_v37 }
 0x221   :  { %1447 = vmatpush3.bf16.msra.mxu0 %v2085_v32 }
 0x222   :  { %v2008_v27 = vmul.f32 %v605_v57, %v470_v4  ;;  %1406 = vmatprep.mubr.f32.mxu0 %v2006_v43  ;;  %v627_v4 = vmul.f32 %v1990_v33, %v1990_v33  ;;  %v630_v61 = vmul.f32 %v2006_v43, %v2006_v43  ;;  %1448 = vmatprep.subr.bf16.mxu0 %v2092_v35 }
 0x223   :  { %v1612_v2 = vpop.eup %1611 }
 0x224   :  { %v591_v25 = vadd.f32 1.0, %v1612_v2  ;;  %1407 = vmatmul.mubr.f32.gmra.mrb[20].mxu0 %v2008_v27  ;;  %v631_v10 = vmul.f32 %v2008_v27, %v2008_v27 }
 0x225   :  { %v1614_v3 = vpop.eup %1613  ;;  %1449 = vmatpush3.bf16.msra.mxu0 %v2092_v35 }
 0x226   :  { %v607_v59 = vmul.f32 0.5, %v591_v25  ;;  %v593_v6 = vadd.f32 1.0, %v1614_v3 }
 0x228   :  { %v2012_v5 = vmul.f32 %v607_v59, %v476_v11  ;;  %v609_v26 = vmul.f32 0.5, %v593_v6  ;;  %v1571_v11 = vld [vmem:[%s2295_s8] sm:$0xff]  }
 0x229   :  { %1432 = vmatprep.mubr.msk.bf16.mxu1 %vm937_vm0, %v1571_v11 }
 0x22a   :  { %1409 = vmatprep.mubr.f32.mxu0 %v2012_v5  ;;  %v2015_v60 = vmul.f32 %v609_v26, %v480_v19  ;;  %v632_v28 = vmul.f32 %v2012_v5, %v2012_v5  ;;  %v875_v19 = vld [vmem:[%s2296_s9 + $0x30] sm:$0xff] }
 0x22b   :  { %909 = vperm.xlu0 %1545, %v875_v19  }
 0x22c   :  { %1410 = vmatmul.mubr.f32.gmra.mrb[22].mxu0 %v2015_v60  ;;  %v633_v62 = vmul.f32 %v2015_v60, %v2015_v60 }
 0x22d   :  { %1412 = vmatprep.mubr.f32.mxu0 %v626_v58 }
 0x230   :  { %1413 = vmatmul.mubr.f32.gmra.mrb[24].mxu0 %v627_v4 }
 0x231   :  { %1415 = vmatprep.mubr.f32.mxu0 %v628_v7 }
 0x234   :  { %1416 = vmatmul.mubr.f32.gmra.mrb[26].mxu0 %v629_v8 }
 0x235   :  { %1418 = vmatprep.mubr.f32.mxu0 %v630_v61 }
 0x238   :  { %1419 = vmatmul.mubr.f32.gmra.mrb[28].mxu0 %v631_v10 }
 0x239   :  { %1421 = vmatprep.mubr.f32.mxu0 %v632_v28 }
 0x23c   :  { %1422 = vmatmul.mubr.f32.gmra.mrb[30].mxu0 %v633_v62 }
 0x2e7   :  { %v1402_v36 = vpop.f32.mrb[16].mxu0 }
 0x2e8   :  { %v700_v38 = vpop.f32.mrb[17].mxu0  ;;  %v780_v47 = vmul.f32 %v1402_v36, %v1402_v36  ;;  %v796_v31 = vsub.f32 %v1990_v33, %v1402_v36 }
 0x2e9   :  { %v779_v48 = vmul.f32 %v700_v38, %v700_v38  ;;  %v795_v23 = vsub.f32 %v1993_v37, %v700_v38 }
 0x2ef   :  { %v2097_v40 = vpop.f32.mrb[18].mxu0 }
 0x2f0   :  { %v2099_v41 = vpop.f32.mrb[19].mxu0  ;;  %v782_v52 = vmul.f32 %v2097_v40, %v2097_v40  ;;  %v798_v33 = vsub.f32 %v2002_v24, %v2097_v40 }
 0x2f1   :  { %v781_v55 = vmul.f32 %v2099_v41, %v2099_v41  ;;  %v797_v38 = vsub.f32 %v1998_v34, %v2099_v41 }
 0x2f7   :  { %v2101_v42 = vpop.f32.mrb[20].mxu0 }
 0x2f8   :  { %v2103_v45 = vpop.f32.mrb[21].mxu0  ;;  %v784_v6 = vmul.f32 %v2101_v42, %v2101_v42 }
 0x2f9   :  { %v783_v58 = vmul.f32 %v2103_v45, %v2103_v45  ;;  %v799_v24 = vsub.f32 %v2006_v43, %v2103_v45 }
 0x2ff   :  { %v2105_v46 = vpop.f32.mrb[22].mxu0 }
 0x300   :  { %v2107_v21 = vpop.f32.mrb[23].mxu0  ;;  %v786_v28 = vmul.f32 %v2105_v46, %v2105_v46 }
 0x301   :  { %v785_v11 = vmul.f32 %v2107_v21, %v2107_v21 }
 0x303   :  { %v1414_v49 = vpop.f32.mrb[24].mxu0 }
 0x304   :  { %v788_v9 = vsub.f32 %v1414_v49, %v780_v47  ;;  %v740_v50 = vpop.f32.mrb[25].mxu0 }
 0x305   :  { %v787_v51 = vsub.f32 %v740_v50, %v779_v48  ;;  %v1209_v48 = vld [vmem:[%s2298_s6] ss:$0 sm:$0xff] }
 0x306   :  { %v804_v54 = vadd.f32 1e-05, %v788_v9 }
 0x307   :  { %v803_v57 = vadd.f32 1e-05, %v787_v51  ;;  %v1417_v2 = vpop.f32.mrb[26].mxu0 }
 0x308   :  { %1615 = vrsqrt.f32 %v804_v54  ;;  %v790_v25 = vsub.f32 %v1417_v2, %v782_v52  ;;  %v750_v59 = vpop.f32.mrb[27].mxu0  ;;  %v1210_v52 = vld [vmem:[%s2299_s7] ss:$0 sm:$0xff] }
 0x309   :  { %1617 = vrsqrt.f32 %v803_v57  ;;  %v789_v3 = vsub.f32 %v750_v59, %v781_v55 }
 0x30a   :  { %v806_v26 = vadd.f32 1e-05, %v790_v25 }
 0x30b   :  { %v805_v4 = vadd.f32 1e-05, %v789_v3  ;;  %v1420_v7 = vpop.f32.mrb[28].mxu0  ;;  %v800_v3 = vsub.f32 %v2008_v27, %v2101_v42  ;;  %v801_v27 = vsub.f32 %v2012_v5, %v2107_v21  ;;  %v1572_v5 = vld [vmem:[%s2295_s8 + $0x8] sm:$0xff]   ;;  %v1573_v21 = vld [vmem:[%s2295_s8 + $0x10] sm:$0xff]  }
 0x30c   :  { %1619 = vrsqrt.f32 %v806_v26  ;;  %v792_v8 = vsub.f32 %v1420_v7, %v784_v6  ;;  %v760_v61 = vpop.f32.mrb[29].mxu0 }
 0x30d   :  { %1621 = vrsqrt.f32 %v805_v4  ;;  %v791_v10 = vsub.f32 %v760_v61, %v783_v58  ;;  %v802_v61 = vsub.f32 %v2015_v60, %v2105_v46 }
 0x30e   :  { %v808_v62 = vadd.f32 1e-05, %v792_v8 }
 0x30f   :  { %v807_v13 = vadd.f32 1e-05, %v791_v10  ;;  %v1423_v14 = vpop.f32.mrb[30].mxu0 }
 0x310   :  { %1623 = vrsqrt.f32 %v808_v62  ;;  %v794_v15 = vsub.f32 %v1423_v14, %v786_v28  ;;  %v770_v16 = vpop.f32.mrb[31].mxu0 }
 0x311   :  { %1625 = vrsqrt.f32 %v807_v13  ;;  %v793_v63 = vsub.f32 %v770_v16, %v785_v11 }
 0x312   :  { %v1616_v19 = vpop.eup %1615  ;;  %v810_v47 = vadd.f32 1e-05, %v794_v15 }
 0x313   :  { %v1618_v49 = vpop.eup %1617  ;;  %v809_v9 = vadd.f32 1e-05, %v793_v63  ;;  %v820_v50 = vmul.f32 %v1616_v19, %v796_v31  ;;  %v1574_v19 = vld [vmem:[%s2295_s8 + $0x18] sm:$0xff]  }
 0x314   :  { %1627 = vrsqrt.f32 %v810_v47  ;;  %v819_v51 = vmul.f32 %v1618_v49, %v795_v23 }
 0x315   :  { %1629 = vrsqrt.f32 %v809_v9  ;;  %v835_v36 = vmul.f32 %v1209_v48, %v820_v50 }
 0x316   :  { %v1620_v37 = vpop.eup %1619  ;;  %v834_v54 = vmul.f32 %v1209_v48, %v819_v51 }
 0x317   :  { %v1622_v55 = vpop.eup %1621  ;;  %v850_v57 = vadd.f32 %v1210_v52, %v835_v36  ;;  %v822_v2 = vmul.f32 %v1620_v37, %v798_v33 }
 0x318   :  { %v849_v25 = vadd.f32 %v1210_v52, %v834_v54  ;;  %v821_v59 = vmul.f32 %v1622_v55, %v797_v38 }
 0x319   :  { %v837_v6 = vmul.f32 %v1209_v48, %v822_v2 }
 0x31a   :  { %v1624_v26 = vpop.eup %1623  ;;  %v865_v40 = vpack.c.bf16 %v850_v57, %v849_v25  ;;  %v836_v58 = vmul.f32 %v1209_v48, %v821_v59 }
 0x31b   :  { %v1626_v4 = vpop.eup %1625  ;;  %v852_v7 = vadd.f32 %v1210_v52, %v837_v6  ;;  %v824_v8 = vmul.f32 %v1624_v26, %v800_v3 }
 0x31c   :  { %1424 = vmatprep.subr.bf16.mxu1 %v865_v40  ;;  %v851_v34 = vadd.f32 %v1210_v52, %v836_v58  ;;  %v823_v41 = vmul.f32 %v1626_v4, %v799_v24 }
 0x31d   :  { %1425 = vmatpush3.bf16.msra.mxu1 %v865_v40  ;;  %v839_v10 = vmul.f32 %v1209_v48, %v824_v8 }
 0x31e   :  { %v1628_v28 = vpop.eup %1627  ;;  %v866_v42 = vpack.c.bf16 %v852_v7, %v851_v34  ;;  %v838_v62 = vmul.f32 %v1209_v48, %v823_v41 }
 0x31f   :  { %v1630_v43 = vpop.eup %1629  ;;  %v854_v45 = vadd.f32 %v1210_v52, %v839_v10  ;;  %v826_v11 = vmul.f32 %v1628_v28, %v802_v61 }
 0x320   :  { %1426 = vmatprep.subr.bf16.mxu1 %v866_v42  ;;  %v853_v13 = vadd.f32 %v1210_v52, %v838_v62  ;;  %v825_v14 = vmul.f32 %v1630_v43, %v801_v27 }
 0x321   :  { %1427 = vmatpush3.bf16.msra.mxu1 %v866_v42  ;;  %v841_v15 = vmul.f32 %v1209_v48, %v826_v11  ;;  %v880_v11 = vpop.permute.xlu0 %879 }
 0x322   :  { %v867_v16 = vpack.c.bf16 %v854_v45, %v853_v13  ;;  %v840_v31 = vmul.f32 %v1209_v48, %v825_v14  ;;  %v900_v14 = vpop.permute.xlu1 %899 }
 0x323   :  { %v856_v63 = vadd.f32 %v1210_v52, %v841_v15 }
 0x324   :  { %1428 = vmatprep.subr.bf16.mxu1 %v867_v16  ;;  %v855_v60 = vadd.f32 %v1210_v52, %v840_v31 }
 0x325   :  { %1429 = vmatpush3.bf16.msra.mxu1 %v867_v16 }
 0x326   :  { %v868_v46 = vpack.c.bf16 %v856_v63, %v855_v60  ;;  %v885_v63 = vpop.permute.xlu0 %884 }
 0x328   :  { %1430 = vmatprep.subr.bf16.mxu1 %v868_v46 }
 0x329   :  { %1431 = vmatpush3.bf16.msra.mxu1 %v868_v46 }
 0x32a   :  { %1528 = vmatprep.subr.bf16.mxu1 %v2053_v17 }
 0x32c   :  { %1433 = vmatmul.mubr.msk.bf16.vlgmr.msra.gmra.mrb[16].mxu1 %vm937_vm0, %v1572_v5  ;;  %v905_v5 = vpop.permute.xlu1 %904 }
 0x32d   :  { %1436 = vmatprep.mubr.msk.bf16.mxu1 %vm937_vm0, %v1573_v21  ;;  %1536 = vmatpush3.bf16.msra.mxu1 %v2053_v17  ;;  %v1580_v17 = vld [vmem:[%s2297_s10 + $0x28] sm:$0xff]  }
 0x32e   :  { %1529 = vmatprep.subr.bf16.mxu1 %v2058_v18  ;;  %1450 = vmatprep.subr.bf16.mxu0 %v1580_v17 }
 0x32f   :  { %1451 = vmatpush3.bf16.msra.mxu0 %v1580_v17 }
 0x331   :  { %1537 = vmatpush3.bf16.msra.mxu1 %v2058_v18  ;;  %v1581_v18 = vld [vmem:[%s2297_s10 + $0x30] sm:$0xff]  }
 0x332   :  { %1530 = vmatprep.subr.bf16.mxu1 %v2071_v30  ;;  %1452 = vmatprep.subr.bf16.mxu0 %v1581_v18 }
 0x333   :  { %1453 = vmatpush3.bf16.msra.mxu0 %v1581_v18 }
 0x334   :  { %1437 = vmatmul.mubr.msk.bf16.gmra.mrb[20].mxu1 %vm937_vm0, %v1574_v19 }
 0x335   :  { %1538 = vmatpush3.bf16.msra.mxu1 %v2071_v30  ;;  %v1582_v30 = vld [vmem:[%s2297_s10 + $0x38] sm:$0xff]  }
 0x336   :  { %1531 = vmatprep.subr.bf16.mxu1 %v2085_v32  ;;  %1454 = vmatprep.subr.bf16.mxu0 %v1582_v30 }
 0x337   :  { %1455 = vmatpush3.bf16.msra.mxu0 %v1582_v30 }
 0x339   :  { %1539 = vmatpush3.bf16.msra.mxu1 %v2085_v32  ;;  %v321_v32 = vsub.s32 0, %v1931_v0 }
 0x33a   :  { %1532 = vmatprep.subr.bf16.mxu1 %v2092_v35 }
 0x33d   :  { %1540 = vmatpush3.bf16.msra.mxu1 %v2092_v35  ;;  %v322_v35 = vrot.slane %v1937_v20, %v321_v32  ;;  %v890_v32 = vpop.permute.xlu0 %889 }
 0x33e   :  { %1533 = vmatprep.subr.bf16.mxu1 %v1580_v17 }
 0x33f   :  { %v2175_v23 = vadd.f32 %v1953_v39, %v322_v35  ;;  %v2178_v47 = vadd.f32 %v1942_v22, %v322_v35  ;;  %v2181_v48 = vadd.f32 %v1959_v44, %v322_v35  ;;  %v2184_v49 = vadd.f32 %v1947_v56, %v322_v35 }
 0x340   :  { %v2196_v44 = vadd.f32 %v1983_v29, %v322_v35  ;;  %v2200_v50 = vadd.f32 %v1970_v53, %v322_v35  ;;  %v2204_v52 = vadd.f32 %v1987_v12, %v322_v35  ;;  %v2208_v36 = vadd.f32 %v1976_v1, %v322_v35 }
 0x341   :  { %1541 = vmatpush3.bf16.msra.mxu1 %v1580_v17  ;;  %v486_v9 = vmul.f32 %v2175_v23, %v2175_v23  ;;  %v482_v0 = vmul.f32 %v2178_v47, %v2178_v47  ;;  %v488_v20 = vmul.f32 %v2181_v48, %v2181_v48  ;;  %v484_v39 = vmul.f32 %v2184_v49, %v2184_v49 }
 0x342   :  { %1534 = vmatprep.subr.bf16.mxu1 %v1581_v18  ;;  %v494_v29 = vmul.f32 %v2196_v44, %v2196_v44  ;;  %v490_v54 = vmul.f32 %v2200_v50, %v2200_v50  ;;  %v496_v55 = vmul.f32 %v2204_v52, %v2204_v52  ;;  %v492_v12 = vmul.f32 %v2208_v36, %v2208_v36 }
 0x343   :  { %v502_v22 = vmul.f32 %v486_v9, %v2175_v23  ;;  %v498_v56 = vmul.f32 %v482_v0, %v2178_v47  ;;  %v504_v51 = vmul.f32 %v488_v20, %v2181_v48  ;;  %v500_v33 = vmul.f32 %v484_v39, %v2184_v49 }
 0x344   :  { %v510_v1 = vmul.f32 %v494_v29, %v2196_v44  ;;  %v506_v59 = vmul.f32 %v490_v54, %v2200_v50  ;;  %v512_v6 = vmul.f32 %v496_v55, %v2204_v52  ;;  %v508_v24 = vmul.f32 %v492_v12, %v2208_v36 }
 0x345   :  { %1542 = vmatpush3.bf16.msra.mxu1 %v1581_v18  ;;  %v518_v37 = vmul.f32 0.044715, %v502_v22  ;;  %v514_v38 = vmul.f32 0.044715, %v498_v56  ;;  %v520_v53 = vmul.f32 0.044715, %v504_v51 }
 0x346   :  { %1535 = vmatprep.subr.bf16.mxu1 %v1582_v30  ;;  %v516_v57 = vmul.f32 0.044715, %v500_v33  ;;  %v526_v58 = vmul.f32 0.044715, %v510_v1  ;;  %v522_v7 = vmul.f32 0.044715, %v506_v59  ;;  %v895_v33 = vpop.permute.xlu1 %894 }
 0x347   :  { %v534_v2 = vadd.f32 %v518_v37, %v2175_v23  ;;  %v530_v25 = vadd.f32 %v514_v38, %v2178_v47  ;;  %v536_v3 = vadd.f32 %v520_v53, %v2181_v48  ;;  %v528_v34 = vmul.f32 0.044715, %v512_v6 }
 0x348   :  { %v532_v26 = vadd.f32 %v516_v57, %v2184_v49  ;;  %v524_v61 = vmul.f32 0.044715, %v508_v24  ;;  %v542_v10 = vadd.f32 %v526_v58, %v2196_v44  ;;  %v538_v28 = vadd.f32 %v522_v7, %v2200_v50 }
 0x349   :  { %1543 = vmatpush3.bf16.msra.mxu1 %v1582_v30  ;;  %v550_v40 = vmul.f32 0.7978846, %v534_v2  ;;  %v546_v4 = vmul.f32 0.7978846, %v530_v25  ;;  %v552_v8 = vmul.f32 0.7978846, %v536_v3  ;;  %v544_v27 = vadd.f32 %v528_v34, %v2204_v52 }
 0x34a   :  { %v548_v41 = vmul.f32 0.7978846, %v532_v26  ;;  %v540_v42 = vadd.f32 %v524_v61, %v2208_v36  ;;  %v558_v62 = vmul.f32 0.7978846, %v542_v10  ;;  %v554_v43 = vmul.f32 0.7978846, %v538_v28 }
 0x34b   :  { %1631 = vtanh.f32 %v550_v40  ;;  %v560_v45 = vmul.f32 0.7978846, %v544_v27 }
 0x34c   :  { %1633 = vtanh.f32 %v546_v4  ;;  %v556_v13 = vmul.f32 0.7978846, %v540_v42 }
 0x34d   :  { %1635 = vtanh.f32 %v552_v8 }
 0x34e   :  { %1637 = vtanh.f32 %v548_v41  ;;  %v910_v41 = vpop.permute.xlu0 %909 }
 0x34f   :  { %1639 = vtanh.f32 %v558_v62 }
 0x350   :  { %1641 = vtanh.f32 %v554_v43  ;;  %v915_v43 = vpop.permute.xlu1 %914 }
 0x351   :  { %1643 = vtanh.f32 %v560_v45 }
 0x352   :  { %1645 = vtanh.f32 %v556_v13 }
 0x355   :  { %v1632_v15 = vpop.eup %1631 }
 0x356   :  { %v1634_v16 = vpop.eup %1633  ;;  %v582_v46 = vadd.f32 1.0, %v1632_v15 }
 0x357   :  { %v1636_v31 = vpop.eup %1635  ;;  %v578_v21 = vadd.f32 1.0, %v1634_v16 }
 0x358   :  { %v1638_v60 = vpop.eup %1637  ;;  %v584_v19 = vadd.f32 1.0, %v1636_v31  ;;  %v598_v18 = vmul.f32 0.5, %v582_v46 }
 0x359   :  { %v580_v17 = vadd.f32 1.0, %v1638_v60  ;;  %v1640_v30 = vpop.eup %1639  ;;  %v594_v9 = vmul.f32 0.5, %v578_v21 }
 0x35a   :  { %v1642_v0 = vpop.eup %1641  ;;  %v600_v22 = vmul.f32 0.5, %v584_v19  ;;  %v614_v54 = vmul.f32 %v598_v18, %v2175_v23  ;;  %v590_v12 = vadd.f32 1.0, %v1640_v30 }
 0x35b   :  { %v1644_v56 = vpop.eup %1643  ;;  %v596_v29 = vmul.f32 0.5, %v580_v17  ;;  %v610_v2 = vmul.f32 %v594_v9, %v2178_v47  ;;  %v586_v59 = vadd.f32 1.0, %v1642_v0 }
 0x35c   :  { %v1646_v38 = vpop.eup %1645  ;;  %v616_v6 = vmul.f32 %v600_v22, %v2181_v48  ;;  %v592_v24 = vadd.f32 1.0, %v1644_v56  ;;  %v606_v8 = vmul.f32 0.5, %v590_v12 }
 0x35d   :  { %v612_v58 = vmul.f32 %v596_v29, %v2184_v49  ;;  %v588_v7 = vadd.f32 1.0, %v1646_v38  ;;  %v602_v10 = vmul.f32 0.5, %v586_v59  ;;  %v1649_v29 = vld [vmem:[%s2290_s0 + $0x18] sm:$0xff] }
 0x35e   :  { %v608_v42 = vmul.f32 0.5, %v592_v24  ;;  %v622_v13 = vmul.f32 %v606_v8, %v2196_v44 }
 0x35f   :  { %v604_v45 = vmul.f32 0.5, %v588_v7  ;;  %v618_v31 = vmul.f32 %v602_v10, %v2200_v50  ;;  %v1219_v50 = vld [vmem:[%s2300_s11] ss:$0 sm:$0xff]  ;;  %v1654_v7 = vld [vmem:[%s2290_s0 + $0x28] sm:$0xff] }
 0x360   :  { %v624_v21 = vmul.f32 %v608_v42, %v2204_v52 }
 0x361   :  { %v620_v17 = vmul.f32 %v604_v45, %v2208_v36  ;;  %v1647_v36 = vld [vmem:[%s2290_s0 + $0x10] sm:$0xff] }
 0x3ff   :  { %v1434_v35 = vpop.f32.mrb[16].mxu1 }
 0x400   :  { %v993_v20 = vadd.f32 %v1434_v35, %v890_v32  ;;  %v984_v39 = vpop.f32.mrb[17].mxu1 }
 0x401   :  { %v985_v51 = vadd.f32 %v984_v39, %v880_v11  ;;  %v1435_v37 = vpop.f32.mrb[18].mxu1 }
 0x402   :  { %v1017_v53 = vadd.f32 1.0, %v993_v20  ;;  %v996_v55 = vadd.f32 %v1435_v37, %v895_v33  ;;  %v987_v57 = vpop.f32.mrb[19].mxu1 }
 0x403   :  { %v1015_v1 = vadd.f32 1.0, %v985_v51  ;;  %v988_v25 = vadd.f32 %v987_v57, %v885_v63  ;;  %v1648_v51 = vld [vmem:[%s2290_s0] sm:$0xff] }
 0x404   :  { %v1025_v3 = vmul.f32 %v1017_v53, %v614_v54  ;;  %v1018_v26 = vadd.f32 1.0, %v996_v55  ;;  %v1650_v54 = vld [vmem:[%s2290_s0 + $0x8] sm:$0xff] }
 0x405   :  { %v1023_v40 = vmul.f32 %v1015_v1, %v610_v2  ;;  %v1016_v4 = vadd.f32 1.0, %v988_v25  ;;  %v1651_v25 = vld [vmem:[%s2290_s0 + $0x30] sm:$0xff] }
 0x406   :  { %v1026_v23 = vmul.f32 %v1018_v26, %v616_v6  ;;  %v1652_v26 = vld [vmem:[%s2290_s0 + $0x20] sm:$0xff] }
 0x407   :  { %v1024_v34 = vmul.f32 %v1016_v4, %v612_v58  ;;  %v1438_v61 = vpop.f32.mrb[20].mxu1  ;;  %v1653_v58 = vld [vmem:[%s2290_s0 + $0x38] sm:$0xff] }
 0x408   :  { %v1032_v47 = vpack.c.bf16 %v1026_v23, %v1025_v3  ;;  %v1009_v28 = vadd.f32 %v1438_v61, %v910_v41  ;;  %v1000_v27 = vpop.f32.mrb[21].mxu1 }
 0x409   :  { %v1001_v62 = vadd.f32 %v1000_v27, %v900_v14  ;;  %v1439_v48 = vpop.f32.mrb[22].mxu1  ;;  %v1031_v11 = vpack.c.bf16 %v1024_v34, %v1023_v40 }
 0x40a   :  { %v1021_v49 = vadd.f32 1.0, %v1009_v28  ;;  %v1012_v15 = vadd.f32 %v1439_v48, %v915_v43  ;;  %v1003_v16 = vpop.f32.mrb[23].mxu1 }
 0x40b   :  { %v1019_v63 = vadd.f32 1.0, %v1001_v62  ;;  %v1004_v60 = vadd.f32 %v1003_v16, %v905_v5  ;;  %1456 = vmatprep.mubr.bf16.mxu0 %v1031_v11 }
 0x40c   :  { %v1029_v46 = vmul.f32 %v1021_v49, %v622_v13  ;;  %v1022_v19 = vadd.f32 1.0, %v1012_v15  ;;  %1457 = vmatmul.mubr.bf16.vlgmr.msra.gmra.mrb[32].mxu0 %v1032_v47 }
 0x40d   :  { %v1027_v14 = vmul.f32 %v1019_v63, %v618_v31  ;;  %v1020_v18 = vadd.f32 1.0, %v1004_v60 }
 0x40e   :  { %v1030_v30 = vmul.f32 %v1022_v19, %v624_v21 }
 0x40f   :  { %v1028_v32 = vmul.f32 %v1020_v18, %v620_v17 }
 0x410   :  { %v1034_v44 = vpack.c.bf16 %v1030_v30, %v1029_v46 }
 0x411   :  { %v1033_v35 = vpack.c.bf16 %v1028_v32, %v1027_v14 }
 0x413   :  { %1460 = vmatprep.mubr.bf16.mxu1 %v1033_v35 }
 0x414   :  { %1461 = vmatmul.mubr.bf16.vlgmr.msra.gmra.mrb[24].mxu1 %v1034_v44 }
 0x4df   :  { %v1458_v5 = vpop.f32.mrb[32].mxu0 }
 0x4e0   :  { %v1149_v9 = vadd.f32 %v1458_v5, %v1219_v50  ;;  %v1140_v0 = vpop.f32.mrb[33].mxu0 }
 0x4e1   :  { %v1141_v52 = vadd.f32 %v1219_v50, %v1140_v0  ;;  %v1459_v20 = vpop.f32.mrb[34].mxu0 }
 0x4e2   :  { %v1173_v39 = vadd.f32 %v1647_v36, %v1149_v9  ;;  %v1152_v22 = vadd.f32 %v1459_v20, %v1219_v50  ;;  %v1143_v56 = vpop.f32.mrb[35].mxu0 }
 0x4e3   :  { %v1171_v33 = vadd.f32 %v1648_v51, %v1141_v52  ;;  %v1144_v37 = vadd.f32 %v1219_v50, %v1143_v56 }
 0x4e4   :  { %1181 = vst [vmem:[%s2301_s12 + $0x10] sm:$0xff] %v1173_v39  ;;  %v1174_v38 = vadd.f32 %v1649_v29, %v1152_v22 }
 0x4e5   :  { %1179 = vst [vmem:[%s2301_s12] sm:$0xff] %v1171_v33  ;;  %v1172_v53 = vadd.f32 %v1650_v54, %v1144_v37 }
 0x4e6   :  { %1182 = vst [vmem:[%s2301_s12 + $0x18] sm:$0xff] %v1174_v38 }
 0x4e7   :  { %1180 = vst [vmem:[%s2301_s12 + $0x8] sm:$0xff] %v1172_v53  ;;  %v1462_v55 = vpop.f32.mrb[24].mxu1 }
 0x4e8   :  { %v1165_v57 = vadd.f32 %v1462_v55, %v1219_v50  ;;  %v1156_v12 = vpop.f32.mrb[25].mxu1 }
 0x4e9   :  { %v1157_v2 = vadd.f32 %v1219_v50, %v1156_v12  ;;  %v1463_v1 = vpop.f32.mrb[26].mxu1 }
 0x4ea   :  { %v1177_v59 = vadd.f32 %v1651_v25, %v1165_v57  ;;  %v1168_v3 = vadd.f32 %v1463_v1, %v1219_v50  ;;  %v1159_v6 = vpop.f32.mrb[27].mxu1 }
 0x4eb   :  { %v1175_v24 = vadd.f32 %v1652_v26, %v1157_v2  ;;  %v1160_v40 = vadd.f32 %v1219_v50, %v1159_v6 }
 0x4ec   :  { %1185 = vst [vmem:[%s2301_s12 + $0x30] sm:$0xff] %v1177_v59  ;;  %v1178_v4 = vadd.f32 %v1653_v58, %v1168_v3 }
 0x4ed   :  { %1183 = vst [vmem:[%s2301_s12 + $0x20] sm:$0xff] %v1175_v24  ;;  %v1176_v23 = vadd.f32 %v1654_v7, %v1160_v40 }
 0x4ee   :  { %1186 = vst [vmem:[%s2301_s12 + $0x38] sm:$0xff] %v1178_v4 }
 0x4ef   :  { %1184 = vst [vmem:[%s2301_s12 + $0x28] sm:$0xff] %v1176_v23 }

// kernel: swin_mlp_block.7
= control target key start
LH: loop header
LB: loop body
LE: loop exit
PB: predicated region body
PF: predicated region fallthrough
CT: control target
= control target key end

     0   :  { %s3812_s25 = smov 0   ;;  %s5526_s0 = inlined_call_operand.vmem [shape: f32[2,64,216], index: 0, kind: input, shape index: {}]   ;;  %s5527_s1 = inlined_call_operand.vmem [shape: f32[2,64,216], index: 1, kind: input, shape index: {}]   ;;  %s5528_s2 = inlined_call_operand.vmem [shape: f32[216,216], index: 2, kind: input, shape index: {}]   ;;  %s5529_s3 = inlined_call_operand.vmem [shape: f32[1,216], index: 3, kind: input, shape index: {}]   ;;  %s5530_s4 = inlined_call_operand.vmem [shape: f32[1,216], index: 4, kind: input, shape index: {}]   ;;  %s5531_s5 = inlined_call_operand.vmem [shape: bf16[216,432], index: 5, kind: input, shape index: {}]   ;;  %s5532_s6 = inlined_call_operand.vmem [shape: f32[1,432], index: 6, kind: input, shape index: {}]   ;;  %s5533_s7 = inlined_call_operand.vmem [shape: f32[1,216], index: 7, kind: input, shape index: {}]   ;;  %s5534_s8 = inlined_call_operand.vmem [shape: f32[1,216], index: 8, kind: input, shape index: {}]   ;;  %s5535_s9 = inlined_call_operand.vmem [shape: bf16[64,64], index: 9, kind: input, shape index: {}]   ;;  %s5536_s10 = inlined_call_operand.vmem [shape: f32[64,1], index: 10, kind: input, shape index: {}]   ;;  %s5537_s11 = inlined_call_operand.vmem [shape: bf16[216,216], index: 11, kind: input, shape index: {}]   ;;  %s5538_s12 = inlined_call_operand.vmem [shape: f32[1,216], index: 12, kind: input, shape index: {}]   ;;  %s5539_s13 = inlined_call_operand.vmem [shape: f32[2,64,216], index: 13, kind: output, shape index: {}]  }
   0x1 LB: > { %s3152_s26 = sadd.s32 4294967295, %s3737_s25   ;;  %p3156_p0 = scmp.ge.s32.totalorder %s3737_s25, 1  ;;  %s3737_s25 = sphi %s3812_s25, %s23_s25  }
   0x2   : > { %p397_p1 = scmp.lt.s32.totalorder %s3737_s25, 3 }
   0x4   : > { %p398_p2 = pnand %p3156_p0, %p397_p1 }
   0x6   : > { %401 = sbr.rel (%p398_p2) target bundleno = 1773 (0x6ed), region = 72 }
   0xd   : > { %v479_v0 = vld [vmem:[%s5528_s2 + $0x8] sm:$0xff]  ;;  %v481_v1 = vld [vmem:[%s5528_s2 + $0x18] sm:$0xff]  ;;  %v478_v2 = vld [vmem:[%s5528_s2] sm:$0xff]  ;;  %p446_p3 = scmp.lt.s32.totalorder %s3152_s26, 1  ;;  %vm548_vm0 = vcmask 719872   ;;  %vm1276_vm1 = vcmask 1043456  }
   0xe   : > { %v3829_v3 = vpack.c.bf16 %v481_v1, %v479_v0  ;;  %v480_v4 = vld [vmem:[%s5528_s2 + $0x10] sm:$0xff]  ;;  %v483_v5 = vld [vmem:[%s5528_s2 + $0x28] sm:$0xff]  ;;  %v485_v6 = vld [vmem:[%s5528_s2 + $0x38] sm:$0xff]  ;;  %s3739_s23 = smov 40   ;;  %s3740_s30 = smov 88   ;;  %vm1891_vm2 = vcmask 326656  }
   0xf   : > { %v3840_v7 = vpack.c.bf16 %v480_v4, %v478_v2  ;;  %v3842_v8 = vpack.c.bf16 %v485_v6, %v483_v5  ;;  %v482_v9 = vld [vmem:[%s5528_s2 + $0x20] sm:$0xff]  ;;  %v484_v10 = vld [vmem:[%s5528_s2 + $0x30] sm:$0xff]  ;;  %v487_v11 = vld [vmem:[%s5528_s2 + $0x48] sm:$0xff]  ;;  %s5556_s26 = smov (!%p446_p3, %s3152_s26), 1  ;;  %vm2630_vm3 = vcmask 523264  }
  0x10   : > { %3308 = vmatprep.subr.bf16.mxu0 %v3829_v3  ;;  %v489_v12 = vld [vmem:[%s5528_s2 + $0x58] sm:$0xff]  ;;  %v3858_v13 = vpack.c.bf16 %v484_v10, %v482_v9  ;;  %v486_v15 = vld [vmem:[%s5528_s2 + $0x40] sm:$0xff]  ;;  %v488_v16 = vld [vmem:[%s5528_s2 + $0x50] sm:$0xff]  ;;  %s3900_s16 = sshll.u32 %s5556_s26, 7 }
  0x11   : > { %3310 = vmatpush1.bf16.msra.mxu0 %v3840_v7  ;;  %v3863_v14 = vpack.c.bf16 %v489_v12, %v487_v11  ;;  %v491_v17 = vld [vmem:[%s5528_s2 + $0x68] sm:$0xff]  ;;  %v493_v18 = vld [vmem:[%s5528_s2 + $0x78] sm:$0xff]  ;;  %v3878_v19 = vpack.c.bf16 %v488_v16, %v486_v15  ;;  %v490_v21 = vld [vmem:[%s5528_s2 + $0x60] sm:$0xff]  ;;  %s3921_s28 = scalar_lea.vmem %s5526_s0, %s3900_s16  ;;  %s5443_s14 = scalar_lea.vmem %s5527_s1, %s3900_s16 }
  0x12   : > { %3312 = vmatprep.subr.bf16.mxu0 %v3842_v8  ;;  %v3883_v20 = vpack.c.bf16 %v493_v18, %v491_v17  ;;  %v492_v22 = vld [vmem:[%s5528_s2 + $0x70] sm:$0xff]  ;;  %v495_v23 = vld [vmem:[%s5528_s2 + $0x88] sm:$0xff]  ;;  %v497_v24 = vld [vmem:[%s5528_s2 + $0x98] sm:$0xff]  ;;  %s5455_s18 = scalar_lea.vmem %s5539_s13, %s3900_s16 }
  0x13   : > { %v3898_v25 = vpack.c.bf16 %v492_v22, %v490_v21  ;;  %v3903_v26 = vpack.c.bf16 %v497_v24, %v495_v23  ;;  %v494_v27 = vld [vmem:[%s5528_s2 + $0x80] sm:$0xff]  ;;  %v496_v28 = vld [vmem:[%s5528_s2 + $0x90] sm:$0xff]  ;;  %v499_v29 = vld [vmem:[%s5528_s2 + $0xa8] sm:$0xff] }
  0x14   : > { %v501_v30 = vld [vmem:[%s5528_s2 + $0xb8] sm:$0xff]  ;;  %v3924_v31 = vpack.c.bf16 %v496_v28, %v494_v27  ;;  %v498_v33 = vld [vmem:[%s5528_s2 + $0xa0] sm:$0xff]  ;;  %v500_v34 = vld [vmem:[%s5528_s2 + $0xb0] sm:$0xff] }
  0x15   : > { %3314 = vmatpush1.bf16.msra.mxu0 %v3858_v13  ;;  %v3927_v32 = vpack.c.bf16 %v501_v30, %v499_v29  ;;  %v503_v35 = vld [vmem:[%s5528_s2 + $0xc8] sm:$0xff]  ;;  %v505_v36 = vld [vmem:[%s5528_s2 + $0xd8] sm:$0xff]  ;;  %v3947_v38 = vpack.c.bf16 %v500_v34, %v498_v33  ;;  %v502_v40 = vld [vmem:[%s5528_s2 + $0xc0] sm:$0xff] }
  0x16   : > { %3316 = vmatprep.subr.bf16.mxu0 %v3863_v14  ;;  %v3942_v37 = vld [vmem:[%s3921_s28 + $0x8] sm:$0xff]  ;;  %v3950_v39 = vpack.c.bf16 %v505_v36, %v503_v35  ;;  %v504_v41 = vld [vmem:[%s5528_s2 + $0xd0] sm:$0xff]  ;;  %v509_v43 = vld [vmem:[%s5528_s2 + $0xf8] sm:$0xff] }
  0x17   : > { %3163 = vmatprep.mubr.msk.f32.mxu0 %vm548_vm0, %v3942_v37  ;;  %v507_v42 = vld [vmem:[%s5528_s2 + $0xe8] sm:$0xff]  ;;  %v506_v44 = vld [vmem:[%s5528_s2 + $0xe0] sm:$0xff]  ;;  %v508_v45 = vld [vmem:[%s5528_s2 + $0xf0] sm:$0xff]  ;;  %v3971_v46 = vpack.c.bf16 %v504_v41, %v502_v40 }
  0x18   : > { %v511_v47 = vld [vmem:[%s5528_s2 + $0x108] sm:$0xff]  ;;  %v513_v48 = vld [vmem:[%s5528_s2 + $0x118] sm:$0xff]  ;;  %v3980_v49 = vpack.c.bf16 %v509_v43, %v507_v42  ;;  %v510_v50 = vld [vmem:[%s5528_s2 + $0x100] sm:$0xff]  ;;  %v3989_v52 = vpack.c.bf16 %v508_v45, %v506_v44 }
  0x19   : > { %3318 = vmatpush1.bf16.msra.mxu0 %v3878_v19  ;;  %v512_v51 = vld [vmem:[%s5528_s2 + $0x110] sm:$0xff]  ;;  %v515_v53 = vld [vmem:[%s5528_s2 + $0x128] sm:$0xff]  ;;  %v517_v54 = vld [vmem:[%s5528_s2 + $0x138] sm:$0xff]  ;;  %v3998_v55 = vpack.c.bf16 %v513_v48, %v511_v47 }
  0x1a   : > { %3320 = vmatprep.subr.bf16.mxu0 %v3883_v20  ;;  %v514_v56 = vld [vmem:[%s5528_s2 + $0x120] sm:$0xff]  ;;  %v516_v57 = vld [vmem:[%s5528_s2 + $0x130] sm:$0xff]  ;;  %v4007_v58 = vpack.c.bf16 %v512_v51, %v510_v50  ;;  %v519_v59 = vld [vmem:[%s5528_s2 + $0x148] sm:$0xff]  ;;  %v4016_v61 = vpack.c.bf16 %v517_v54, %v515_v53 }
  0x1b   : > { %v521_v60 = vld [vmem:[%s5528_s2 + $0x158] sm:$0xff]  ;;  %v518_v62 = vld [vmem:[%s5528_s2 + $0x140] sm:$0xff]  ;;  %v520_v63 = vld [vmem:[%s5528_s2 + $0x150] sm:$0xff]  ;;  %v4025_v0 = vpack.c.bf16 %v516_v57, %v514_v56 }
  0x1c   : > { %v523_v1 = vld [vmem:[%s5528_s2 + $0x168] sm:$0xff]  ;;  %v525_v2 = vld [vmem:[%s5528_s2 + $0x178] sm:$0xff]  ;;  %v4034_v4 = vpack.c.bf16 %v521_v60, %v519_v59  ;;  %v522_v5 = vld [vmem:[%s5528_s2 + $0x160] sm:$0xff]  ;;  %v4043_v9 = vpack.c.bf16 %v520_v63, %v518_v62 }
  0x1d   : > { %3322 = vmatpush1.bf16.msra.mxu0 %v3898_v25  ;;  %v524_v6 = vld [vmem:[%s5528_s2 + $0x170] sm:$0xff]  ;;  %v527_v10 = vld [vmem:[%s5528_s2 + $0x188] sm:$0xff]  ;;  %v529_v11 = vld [vmem:[%s5528_s2 + $0x198] sm:$0xff]  ;;  %v4052_v12 = vpack.c.bf16 %v525_v2, %v523_v1 }
  0x1e   : > { %3324 = vmatprep.subr.bf16.mxu0 %v3903_v26  ;;  %v526_v15 = vld [vmem:[%s5528_s2 + $0x180] sm:$0xff]  ;;  %v528_v16 = vld [vmem:[%s5528_s2 + $0x190] sm:$0xff]  ;;  %v4061_v17 = vpack.c.bf16 %v524_v6, %v522_v5  ;;  %v4064_v18 = vpack.c.bf16 %v529_v11, %v527_v10  ;;  %v4072_v22 = vld [vmem:[%s5528_s2 + $0x1a8] sm:$0xff] }
  0x1f   : > { %v4067_v21 = vpack.c.bf16 %v528_v16, %v526_v15  ;;  %v4080_v23 = vld [vmem:[%s5528_s2 + $0x1a0] sm:$0xff]  ;;  %v4086_v27 = vld [vmem:[%s3921_s28 + $0x18] sm:$0xff]  ;;  %v4094_v28 = vld [vmem:[%s3921_s28 + $0x10] sm:$0xff] }
  0x20   : > { %v4083_v24 = vld [vmem:[%s3921_s28] sm:$0xff]  ;;  %v4098_v29 = vld [vmem:[%s3921_s28 + $0x28] sm:$0xff]  ;;  %v4109_v30 = vld [vmem:[%s3921_s28 + $0x38] sm:$0xff]  ;;  %v535_v34 = vmul.f32 %v4086_v27, %v4086_v27  ;;  %v534_v35 = vmul.f32 %v4094_v28, %v4094_v28 }
  0x21   : > { %3326 = vmatpush1.bf16.msra.mxu0 %v3924_v31  ;;  %v532_v33 = vmul.f32 %v4083_v24, %v4083_v24  ;;  %v537_v36 = vmul.f32 %v4098_v29, %v4098_v29  ;;  %v3461_v50 = vld [vmem:[%s5531_s5] ss:$16 sps:$4 sm:$0xff]   ;;  %v3462_v51 = vld [vmem:[%s5531_s5 + $0x24] ss:$16 sps:$4 sm:$0xff]  }
  0x22   : > { %3328 = vmatprep.subr.bf16.mxu0 %v3927_v32  ;;  %v3465_v53 = vld [vmem:[%s5531_s5 + $0x44] ss:$16 sps:$4 sm:$0xff]   ;;  %v3467_v54 = vld [vmem:[%s5531_s5 + $0x40] ss:$16 sps:$4 sm:$0xff]  }
  0x23   : > { %v3470_v56 = vld [vmem:[%s5531_s5 + $0x60] ss:$16 sps:$4 sm:$0xff]   ;;  %v3471_v57 = vld [vmem:[%s5531_s5 + $0x84] ss:$16 sps:$4 sm:$0xff]  }
  0x24   : > { %v3474_v59 = vld [vmem:[%s5531_s5 + $0xa4] ss:$16 sps:$4 sm:$0xff]   ;;  %v3476_v60 = vld [vmem:[%s5531_s5 + $0xa0] ss:$16 sps:$4 sm:$0xff]  }
  0x25   : > { %3330 = vmatpush1.bf16.msra.mxu0 %v3947_v38  ;;  %v3479_v62 = vld [vmem:[%s5531_s5 + $0xc0] ss:$16 sps:$4 sm:$0xff]   ;;  %v3480_v63 = vld [vmem:[%s5531_s5 + $0xe4] ss:$16 sps:$4 sm:$0xff]  }
  0x26   : > { %3332 = vmatprep.subr.bf16.mxu0 %v3950_v39  ;;  %v3483_v1 = vld [vmem:[%s5531_s5 + $0x104] ss:$16 sps:$4 sm:$0xff]   ;;  %v3485_v2 = vld [vmem:[%s5531_s5 + $0x100] ss:$16 sps:$4 sm:$0xff]  }
  0x27   : > { %v3488_v5 = vld [vmem:[%s5531_s5 + $0x120] ss:$16 sps:$4 sm:$0xff]   ;;  %v3489_v6 = vld [vmem:[%s5531_s5 + $0x144] ss:$16 sps:$4 sm:$0xff]  }
  0x28   : > { %v3492_v10 = vld [vmem:[%s5531_s5 + $0x164] ss:$16 sps:$4 sm:$0xff]   ;;  %v3494_v11 = vld [vmem:[%s5531_s5 + $0x160] ss:$16 sps:$4 sm:$0xff]  }
  0x29   : > { %3334 = vmatpush1.bf16.msra.mxu0 %v3971_v46  ;;  %v3497_v15 = vld [vmem:[%s5531_s5 + $0x180] ss:$16 sps:$4 sm:$0xff]  }
  0x2a   : > { %3336 = vmatprep.subr.bf16.mxu0 %v3980_v49  ;;  %v970_v16 = vld [vmem:[%s5531_s5 + $0x1a0] sm:$0xff] }
  0x2d   : > { %3338 = vmatpush1.bf16.msra.mxu0 %v3989_v52 }
  0x2e   : > { %3340 = vmatprep.subr.bf16.mxu0 %v3998_v55 }
  0x31   : > { %3342 = vmatpush1.bf16.msra.mxu0 %v4007_v58 }
  0x32   : > { %3344 = vmatprep.subr.bf16.mxu0 %v4016_v61 }
  0x35   : > { %3346 = vmatpush1.bf16.msra.mxu0 %v4025_v0 }
  0x36   : > { %3348 = vmatprep.subr.bf16.mxu0 %v4034_v4 }
  0x39   : > { %3350 = vmatpush1.bf16.msra.mxu0 %v4043_v9 }
  0x3a   : > { %3352 = vmatprep.subr.bf16.mxu0 %v4052_v12 }
  0x3d   : > { %3354 = vmatpush1.bf16.msra.mxu0 %v4061_v17 }
  0x3e   : > { %3356 = vmatprep.subr.bf16.mxu0 %v4064_v18 }
  0x41   : > { %3358 = vmatpush1.bf16.msra.mxu0 %v4067_v21 }
  0x42   : > { %649 = vmatprep.subr.mxu0 %v4072_v22 }
  0x45   : > { %650 = vmatpush1.msra.mxu0 %v4080_v23 }
  0x46   : > { %662 = vmatmul.mubr.f32.vlgmr.msra.gmra.mrb[0].mxu0 %v4083_v24  ;;  %3360 = vmatprep.subr.bf16.mxu0 %v3829_v3  ;;  %v4105_v3 = vld [vmem:[%s3921_s28 + $0x20] sm:$0xff] }
  0x47   : > { %3164 = vmatprep.mubr.msk.f32.mxu0 %vm548_vm0, %v4086_v27  ;;  %3362 = vmatpush1.bf16.msra.mxu0 %v3840_v7  ;;  %v4116_v7 = vld [vmem:[%s3921_s28 + $0x30] sm:$0xff] }
  0x48   : > { %3364 = vmatprep.subr.bf16.mxu0 %v3842_v8  ;;  %v4120_v8 = vld [vmem:[%s3921_s28 + $0x48] sm:$0xff]  ;;  %v538_v40 = vmul.f32 %v4116_v7, %v4116_v7 }
  0x49   : > { %v541_v41 = vmul.f32 %v4120_v8, %v4120_v8 }
  0x4a   : > { %668 = vmatmul.mubr.f32.gmra.mrb[2].mxu0 %v4094_v28 }
  0x4b   : > { %3165 = vmatprep.mubr.msk.f32.mxu0 %vm548_vm0, %v4098_v29  ;;  %3366 = vmatpush1.bf16.msra.mxu0 %v3858_v13  ;;  %v4127_v13 = vld [vmem:[%s3921_s28 + $0x40] sm:$0xff] }
  0x4c   : > { %3368 = vmatprep.subr.bf16.mxu0 %v3863_v14  ;;  %v4131_v14 = vld [vmem:[%s3921_s28 + $0x58] sm:$0xff]  ;;  %v540_v42 = vmul.f32 %v4127_v13, %v4127_v13 }
  0x4d   : > { %v543_v43 = vmul.f32 %v4131_v14, %v4131_v14 }
  0x4e   : > { %674 = vmatmul.mubr.f32.gmra.mrb[4].mxu0 %v4105_v3 }
  0x4f   : > { %3166 = vmatprep.mubr.msk.f32.mxu0 %vm548_vm0, %v4109_v30  ;;  %3370 = vmatpush1.bf16.msra.mxu0 %v3878_v19  ;;  %v4138_v19 = vld [vmem:[%s3921_s28 + $0x50] sm:$0xff] }
  0x50   : > { %3372 = vmatprep.subr.bf16.mxu0 %v3883_v20  ;;  %v4142_v20 = vld [vmem:[%s3921_s28 + $0x68] sm:$0xff]  ;;  %v542_v44 = vmul.f32 %v4138_v19, %v4138_v19 }
  0x51   : > { %v545_v45 = vmul.f32 %v4142_v20, %v4142_v20 }
  0x52   : > { %680 = vmatmul.mubr.f32.gmra.mrb[6].mxu0 %v4116_v7 }
  0x53   : > { %3167 = vmatprep.mubr.msk.f32.mxu0 %vm548_vm0, %v4120_v8  ;;  %3374 = vmatpush1.bf16.msra.mxu0 %v3898_v25  ;;  %v4149_v25 = vld [vmem:[%s3921_s28 + $0x60] sm:$0xff] }
  0x54   : > { %3376 = vmatprep.subr.bf16.mxu0 %v3903_v26  ;;  %v4153_v26 = vld [vmem:[%s3921_s28 + $0x78] sm:$0xff] }
  0x55   : > { %v547_v47 = vmul.f32 %v4153_v26, %v4153_v26 }
  0x56   : > { %686 = vmatmul.mubr.f32.gmra.mrb[8].mxu0 %v4127_v13 }
  0x57   : > { %3168 = vmatprep.mubr.msk.f32.mxu0 %vm548_vm0, %v4131_v14  ;;  %3378 = vmatpush1.bf16.msra.mxu0 %v3924_v31  ;;  %v4160_v31 = vld [vmem:[%s3921_s28 + $0x70] sm:$0xff] }
  0x58   : > { %3380 = vmatprep.subr.bf16.mxu0 %v3927_v32  ;;  %v533_v32 = vmul.f32 %v3942_v37, %v3942_v37  ;;  %v546_v48 = vmul.f32 %v4160_v31, %v4160_v31 }
  0x5a   : > { %692 = vmatmul.mubr.f32.gmra.mrb[10].mxu0 %v4138_v19 }
  0x5b   : > { %3169 = vmatprep.mubr.msk.f32.mxu0 %vm548_vm0, %v4142_v20  ;;  %3382 = vmatpush1.bf16.msra.mxu0 %v3947_v38  ;;  %v536_v38 = vmul.f32 %v4105_v3, %v4105_v3 }
  0x5c   : > { %3384 = vmatprep.subr.bf16.mxu0 %v3950_v39  ;;  %v539_v39 = vmul.f32 %v4109_v30, %v4109_v30 }
  0x5e   : > { %698 = vmatmul.mubr.f32.gmra.mrb[12].mxu0 %v4149_v25 }
  0x5f   : > { %3170 = vmatprep.mubr.msk.f32.mxu0 %vm548_vm0, %v4153_v26  ;;  %3386 = vmatpush1.bf16.msra.mxu0 %v3971_v46  ;;  %v544_v46 = vmul.f32 %v4149_v25, %v4149_v25 }
  0x60   : > { %3388 = vmatprep.subr.bf16.mxu0 %v3980_v49  ;;  %v3459_v49 = vld [vmem:[%s5531_s5 + $0x4] ss:$16 sps:$4 sm:$0xff]  }
  0x61   : > { %1289 = vmatprep.subr.bf16.mxu1 %v3459_v49 }
  0x62   : > { %704 = vmatmul.mubr.f32.gmra.mrb[14].mxu0 %v4160_v31  ;;  %1290 = vmatpush1.bf16.msra.mxu1 %v3461_v50 }
  0x63   : > { %3171 = vmatprep.mubr.msk.f32.mxu0 %vm548_vm0, %v533_v32  ;;  %3390 = vmatpush1.bf16.msra.mxu0 %v3989_v52  ;;  %v3464_v52 = vld [vmem:[%s5531_s5 + $0x20] ss:$16 sps:$4 sm:$0xff]  }
  0x64   : > { %3392 = vmatprep.subr.bf16.mxu0 %v3998_v55  ;;  %1291 = vmatprep.subr.bf16.mxu1 %v3462_v51  ;;  %v3468_v55 = vld [vmem:[%s5531_s5 + $0x64] ss:$16 sps:$4 sm:$0xff]  }
  0x66   : > { %710 = vmatmul.mubr.f32.gmra.mrb[16].mxu0 %v532_v33  ;;  %1292 = vmatpush1.bf16.msra.mxu1 %v3464_v52 }
  0x67   : > { %3172 = vmatprep.mubr.msk.f32.mxu0 %vm548_vm0, %v535_v34  ;;  %3394 = vmatpush1.bf16.msra.mxu0 %v4007_v58  ;;  %v3473_v58 = vld [vmem:[%s5531_s5 + $0x80] ss:$16 sps:$4 sm:$0xff]  }
  0x68   : > { %3396 = vmatprep.subr.bf16.mxu0 %v4016_v61  ;;  %1293 = vmatprep.subr.bf16.mxu1 %v3465_v53  ;;  %v3477_v61 = vld [vmem:[%s5531_s5 + $0xc4] ss:$16 sps:$4 sm:$0xff]  }
  0x6a   : > { %716 = vmatmul.mubr.f32.gmra.mrb[18].mxu0 %v534_v35  ;;  %1294 = vmatpush1.bf16.msra.mxu1 %v3467_v54  ;;  %v856_v54 = vlaneseq }
  0x6b   : > { %3173 = vmatprep.mubr.msk.f32.mxu0 %vm548_vm0, %v537_v36  ;;  %3398 = vmatpush1.bf16.msra.mxu0 %v4025_v0  ;;  %v3482_v0 = vld [vmem:[%s5531_s5 + $0xe0] ss:$16 sps:$4 sm:$0xff]  }
  0x6c   : > { %3400 = vmatprep.subr.bf16.mxu0 %v4034_v4  ;;  %1295 = vmatprep.subr.bf16.mxu1 %v3468_v55  ;;  %v3486_v4 = vld [vmem:[%s5531_s5 + $0x124] ss:$16 sps:$4 sm:$0xff]  }
  0x6e   : > { %722 = vmatmul.mubr.f32.gmra.mrb[20].mxu0 %v536_v38  ;;  %1296 = vmatpush1.bf16.msra.mxu1 %v3470_v56 }
  0x6f   : > { %3174 = vmatprep.mubr.msk.f32.mxu0 %vm548_vm0, %v539_v39  ;;  %3402 = vmatpush1.bf16.msra.mxu0 %v4043_v9  ;;  %v3491_v9 = vld [vmem:[%s5531_s5 + $0x140] ss:$16 sps:$4 sm:$0xff]  }
  0x70   : > { %3404 = vmatprep.subr.bf16.mxu0 %v4052_v12  ;;  %1297 = vmatprep.subr.bf16.mxu1 %v3471_v57  ;;  %v3495_v12 = vld [vmem:[%s5531_s5 + $0x184] ss:$16 sps:$4 sm:$0xff]  }
  0x72   : > { %728 = vmatmul.mubr.f32.gmra.mrb[22].mxu0 %v538_v40  ;;  %1298 = vmatpush1.bf16.msra.mxu1 %v3473_v58 }
  0x73   : > { %3175 = vmatprep.mubr.msk.f32.mxu0 %vm548_vm0, %v541_v41  ;;  %3406 = vmatpush1.bf16.msra.mxu0 %v4061_v17  ;;  %v3232_v17 = vcombine.high %v970_v16, %v970_v16 }
  0x74   : > { %3408 = vmatprep.subr.bf16.mxu0 %v4064_v18  ;;  %1299 = vmatprep.subr.bf16.mxu1 %v3474_v59  ;;  %v3231_v18 = vcombine.low %v970_v16, %v970_v16  ;;  %v854_v16 = vld [vmem:[%s5529_s3] sm:$0x3] }
  0x76   : > { %734 = vmatmul.mubr.f32.gmra.mrb[24].mxu0 %v540_v42  ;;  %1300 = vmatpush1.bf16.msra.mxu1 %v3476_v60 }
  0x77   : > { %3176 = vmatprep.mubr.msk.f32.mxu0 %vm548_vm0, %v543_v43  ;;  %3410 = vmatpush1.bf16.msra.mxu0 %v4067_v21  ;;  %v1278_v21 = vsel %vm1276_vm1, %v3231_v18, 0 }
  0x78   : > { %2024 = vmatprep.subr.mxu0 %v4072_v22  ;;  %1301 = vmatprep.subr.bf16.mxu1 %v3477_v61  ;;  %v3502_v22 = vld [vmem:[%s5531_s5 + $0xc] ss:$16 sps:$4 sm:$0xff]  }
  0x7a   : > { %740 = vmatmul.mubr.f32.gmra.mrb[26].mxu0 %v542_v44  ;;  %1302 = vmatpush1.bf16.msra.mxu1 %v3479_v62 }
  0x7b   : > { %3177 = vmatprep.mubr.msk.f32.mxu0 %vm548_vm0, %v545_v45  ;;  %2025 = vmatpush1.msra.mxu0 %v4080_v23 }
  0x7c   : > { %1303 = vmatprep.subr.bf16.mxu1 %v3480_v63  ;;  %v4344_v63 = vshrl.u32 %v856_v54, 7 }
  0x7e   : > { %746 = vmatmul.mubr.f32.gmra.mrb[28].mxu0 %v544_v46  ;;  %1304 = vmatpush1.bf16.msra.mxu1 %v3482_v0 }
  0x7f   : > { %3178 = vmatprep.mubr.msk.f32.mxu0 %vm548_vm0, %v547_v47  ;;  %1305 = vmatprep.subr.bf16.mxu1 %v3483_v1 }
  0x82   : > { %752 = vmatmul.mubr.f32.gmra.mrb[30].mxu0 %v546_v48  ;;  %1306 = vmatpush1.bf16.msra.mxu1 %v3485_v2 }
  0x83   : > { %1307 = vmatprep.subr.bf16.mxu1 %v3486_v4 }
  0x86   : > { %1308 = vmatpush1.bf16.msra.mxu1 %v3488_v5 }
  0x87   : > { %1309 = vmatprep.subr.bf16.mxu1 %v3489_v6 }
  0x8a   : > { %1310 = vmatpush1.bf16.msra.mxu1 %v3491_v9 }
  0x8b   : > { %1311 = vmatprep.subr.bf16.mxu1 %v3492_v10 }
  0x8e   : > { %1312 = vmatpush1.bf16.msra.mxu1 %v3494_v11  ;;  %v4351_v11 = vsub.s32 0, %v4344_v63 }
  0x8f   : > { %1313 = vmatprep.subr.bf16.mxu1 %v3495_v12 }
  0x92   : > { %1314 = vmatpush1.bf16.msra.mxu1 %v3497_v15 }
  0x93   : > { %3235 = vmatprep.subr.msk.bf16.mxu1 %vm1276_vm1, %v3232_v17  ;;  %v4359_v17 = vsub.s32 1, %v4344_v63 }
  0x95   : > { %5543 = vst [vmem:[#allocation2_spill] sm:$0xff] %v4359_v17 }
  0x96   : > { %1316 = vmatpush1.bf16.msra.mxu1 %v1278_v21 }
  0x97   : > { %1362 = vmatprep.subr.bf16.mxu1 %v3502_v22 }
 0x119   : > { %v4304_v23 = vpop.f32.mrb[0].mxu0 }
 0x11a   : > { %v4306_v32 = vpop.f32.mrb[1].mxu0  ;;  %v758_v48 = vmul.f32 %v4304_v23, %v4304_v23 }
 0x11b   : > { %v759_v49 = vmul.f32 %v4306_v32, %v4306_v32 }
 0x11d   : > { %v4308_v33 = vpop.f32.mrb[2].mxu0 }
 0x11e   : > { %v4310_v34 = vpop.f32.mrb[3].mxu0  ;;  %v760_v55 = vmul.f32 %v4308_v33, %v4308_v33 }
 0x11f   : > { %v761_v57 = vmul.f32 %v4310_v34, %v4310_v34 }
 0x121   : > { %v4312_v35 = vpop.f32.mrb[4].mxu0 }
 0x122   : > { %v4314_v36 = vpop.f32.mrb[5].mxu0  ;;  %v762_v0 = vmul.f32 %v4312_v35, %v4312_v35 }
 0x123   : > { %v763_v2 = vmul.f32 %v4314_v36, %v4314_v36 }
 0x125   : > { %v4316_v38 = vpop.f32.mrb[6].mxu0 }
 0x126   : > { %v4318_v39 = vpop.f32.mrb[7].mxu0  ;;  %v764_v12 = vmul.f32 %v4316_v38, %v4316_v38 }
 0x127   : > { %v765_v18 = vmul.f32 %v4318_v39, %v4318_v39 }
 0x129   : > { %v4320_v40 = vpop.f32.mrb[8].mxu0 }
 0x12a   : > { %v4322_v41 = vpop.f32.mrb[9].mxu0 }
 0x12d   : > { %v4324_v42 = vpop.f32.mrb[10].mxu0 }
 0x12e   : > { %v4326_v43 = vpop.f32.mrb[11].mxu0 }
 0x131   : > { %v4328_v44 = vpop.f32.mrb[12].mxu0 }
 0x132   : > { %v4330_v45 = vpop.f32.mrb[13].mxu0 }
 0x135   : > { %v4332_v46 = vpop.f32.mrb[14].mxu0 }
 0x136   : > { %v4334_v47 = vpop.f32.mrb[15].mxu0 }
 0x139   : > { %v711_v50 = vpop.f32.mrb[16].mxu0 }
 0x13a   : > { %v774_v51 = vsub.f32 %v711_v50, %v758_v48  ;;  %v713_v52 = vpop.f32.mrb[17].mxu0  ;;  %v882_v50 = vld [vmem:[%s5530_s4] sm:$0x3] }
 0x13b   : > { %v775_v53 = vsub.f32 %v713_v52, %v759_v49 }
 0x13c   : > { %v806_v56 = vadd.f32 1e-05, %v774_v51  ;;  %v790_v51 = vsub.f32 %v4083_v24, %v4304_v23  ;;  %v767_v24 = vmul.f32 %v4322_v41, %v4322_v41 }
 0x13d   : > { %v807_v58 = vadd.f32 1e-05, %v775_v53  ;;  %v717_v59 = vpop.f32.mrb[18].mxu0  ;;  %v4369_v53 = vrot.slane %v854_v16, %v4351_v11 }
 0x13e   : > { %3586 = vrsqrt.f32 %v806_v56  ;;  %v776_v60 = vsub.f32 %v717_v59, %v760_v55  ;;  %v719_v61 = vpop.f32.mrb[19].mxu0  ;;  %v791_v55 = vsub.f32 %v3942_v37, %v4306_v32  ;;  %v766_v56 = vmul.f32 %v4320_v40, %v4320_v40 }
 0x13f   : > { %3588 = vrsqrt.f32 %v807_v58  ;;  %v777_v62 = vsub.f32 %v719_v61, %v761_v57  ;;  %v4376_v58 = vrot.slane %v854_v16, %v4359_v17  ;;  %v4381_v61 = vrot.slane %v882_v50, %v4351_v11 }
 0x140   : > { %v808_v1 = vadd.f32 1e-05, %v776_v60 }
 0x141   : > { %v809_v4 = vadd.f32 1e-05, %v777_v62  ;;  %v723_v5 = vpop.f32.mrb[20].mxu0 }
 0x142   : > { %3590 = vrsqrt.f32 %v808_v1  ;;  %v778_v6 = vsub.f32 %v723_v5, %v762_v0  ;;  %v725_v9 = vpop.f32.mrb[21].mxu0  ;;  %v4384_v1 = vrot.slane %v882_v50, %v4359_v17 }
 0x143   : > { %3592 = vrsqrt.f32 %v809_v4  ;;  %v779_v10 = vsub.f32 %v725_v9, %v763_v2  ;;  %v792_v2 = vsub.f32 %v4094_v28, %v4308_v33  ;;  %v793_v4 = vsub.f32 %v4086_v27, %v4310_v34 }
 0x144   : > { %v810_v15 = vadd.f32 1e-05, %v778_v6  ;;  %v794_v9 = vsub.f32 %v4105_v3, %v4312_v35 }
 0x145   : > { %v811_v21 = vadd.f32 1e-05, %v779_v10  ;;  %v729_v22 = vpop.f32.mrb[22].mxu0  ;;  %v768_v10 = vmul.f32 %v4324_v42, %v4324_v42 }
 0x146   : > { %3594 = vrsqrt.f32 %v810_v15  ;;  %v780_v48 = vsub.f32 %v729_v22, %v764_v12  ;;  %v731_v49 = vpop.f32.mrb[23].mxu0 }
 0x147   : > { %3596 = vrsqrt.f32 %v811_v21  ;;  %v781_v52 = vsub.f32 %v731_v49, %v765_v18  ;;  %v769_v18 = vmul.f32 %v4326_v43, %v4326_v43  ;;  %v795_v21 = vsub.f32 %v4098_v29, %v4314_v36 }
 0x148   : > { %v3587_v54 = vpop.eup %3586  ;;  %v812_v57 = vadd.f32 1e-05, %v780_v48  ;;  %v770_v48 = vmul.f32 %v4328_v44, %v4328_v44 }
 0x149   : > { %v3589_v59 = vpop.eup %3588  ;;  %v813_v23 = vadd.f32 1e-05, %v781_v52  ;;  %v735_v60 = vpop.f32.mrb[24].mxu0  ;;  %v838_v62 = vmul.f32 %v3587_v54, %v790_v51  ;;  %v771_v52 = vmul.f32 %v4330_v45, %v4330_v45 }
 0x14a   : > { %3598 = vrsqrt.f32 %v812_v57  ;;  %v782_v0 = vsub.f32 %v735_v60, %v766_v56  ;;  %v737_v37 = vpop.f32.mrb[25].mxu0  ;;  %v839_v32 = vmul.f32 %v3589_v59, %v791_v55 }
 0x14b   : > { %3600 = vrsqrt.f32 %v813_v23  ;;  %v783_v5 = vsub.f32 %v737_v37, %v767_v24  ;;  %v866_v15 = vmul.f32 %v4369_v53, %v838_v62 }
 0x14c   : > { %v3591_v6 = vpop.eup %3590  ;;  %v814_v12 = vadd.f32 1e-05, %v782_v0  ;;  %v867_v27 = vmul.f32 %v4376_v58, %v839_v32  ;;  %v796_v32 = vsub.f32 %v4116_v7, %v4316_v38  ;;  %v773_v7 = vmul.f32 %v4334_v47, %v4334_v47 }
 0x14d   : > { %v3593_v16 = vpop.eup %3592  ;;  %v815_v28 = vadd.f32 1e-05, %v783_v5  ;;  %v741_v33 = vpop.f32.mrb[26].mxu0  ;;  %v840_v34 = vmul.f32 %v3591_v6, %v792_v2  ;;  %v894_v29 = vadd.f32 %v4381_v61, %v866_v15  ;;  %v797_v6 = vsub.f32 %v4109_v30, %v4318_v39  ;;  %v3500_v15 = vld [vmem:[%s5531_s5 + $0x8] ss:$16 sps:$4 sm:$0xff]  }
 0x14e   : > { %3602 = vrsqrt.f32 %v814_v12  ;;  %v784_v3 = vsub.f32 %v741_v33, %v768_v10  ;;  %v743_v35 = vpop.f32.mrb[27].mxu0  ;;  %v841_v22 = vmul.f32 %v3593_v16, %v793_v4  ;;  %v895_v59 = vadd.f32 %v4384_v1, %v867_v27  ;;  %v3505_v30 = vld [vmem:[%s5531_s5 + $0x2c] ss:$16 sps:$4 sm:$0xff]  }
 0x14f   : > { %3604 = vrsqrt.f32 %v815_v28  ;;  %v785_v49 = vsub.f32 %v743_v35, %v769_v18  ;;  %v868_v50 = vmul.f32 %v4369_v53, %v840_v34 }
 0x150   : > { %v3595_v51 = vpop.eup %3594  ;;  %v816_v54 = vadd.f32 1e-05, %v784_v3  ;;  %v869_v55 = vmul.f32 %v4376_v58, %v841_v22  ;;  %v798_v3 = vsub.f32 %v4127_v13, %v4320_v40  ;;  %v3508_v40 = vld [vmem:[%s5531_s5 + $0x4c] ss:$16 sps:$4 sm:$0xff]  }
 0x151   : > { %v3597_v36 = vpop.eup %3596  ;;  %v817_v56 = vadd.f32 1e-05, %v785_v49  ;;  %v747_v57 = vpop.f32.mrb[28].mxu0  ;;  %v896_v24 = vadd.f32 %v4381_v61, %v868_v50  ;;  %v842_v23 = vmul.f32 %v3595_v51, %v794_v9  ;;  %v772_v9 = vmul.f32 %v4332_v46, %v4332_v46  ;;  %v3503_v51 = vld [vmem:[%s5531_s5 + $0x28] ss:$16 sps:$4 sm:$0xff]  }
 0x152   : > { %v843_v60 = vmul.f32 %v3597_v36, %v795_v21  ;;  %3606 = vrsqrt.f32 %v816_v54  ;;  %v786_v62 = vsub.f32 %v747_v57, %v770_v48  ;;  %v749_v0 = vpop.f32.mrb[29].mxu0  ;;  %v897_v37 = vadd.f32 %v4384_v1, %v869_v55 }
 0x153   : > { %3608 = vrsqrt.f32 %v817_v56  ;;  %v787_v2 = vsub.f32 %v749_v0, %v771_v52  ;;  %v4412_v4 = vpack.c.bf16 %v896_v24, %v894_v29  ;;  %v870_v28 = vmul.f32 %v4369_v53, %v842_v23 }
 0x154   : > { %v3599_v5 = vpop.eup %3598  ;;  %v818_v10 = vadd.f32 1e-05, %v786_v62  ;;  %v4418_v12 = vpack.c.bf16 %v897_v37, %v895_v59  ;;  %v871_v21 = vmul.f32 %v4376_v58, %v843_v60  ;;  %v799_v49 = vsub.f32 %v4120_v8, %v4322_v41  ;;  %v3506_v62 = vld [vmem:[%s5531_s5 + $0x48] ss:$16 sps:$4 sm:$0xff]  }
 0x155   : > { %v3601_v16 = vpop.eup %3600  ;;  %v819_v38 = vadd.f32 1e-05, %v787_v2  ;;  %v753_v18 = vpop.f32.mrb[30].mxu0  ;;  %v844_v39 = vmul.f32 %v3599_v5, %v796_v32  ;;  %v898_v55 = vadd.f32 %v4381_v61, %v870_v28  ;;  %v800_v57 = vsub.f32 %v4138_v19, %v4324_v42  ;;  %v3511_v19 = vld [vmem:[%s5531_s5 + $0x6c] ss:$16 sps:$4 sm:$0xff]  }
 0x156   : > { %v845_v33 = vmul.f32 %v3601_v16, %v797_v6  ;;  %3610 = vrsqrt.f32 %v818_v10  ;;  %v788_v27 = vsub.f32 %v753_v18, %v772_v9  ;;  %v755_v34 = vpop.f32.mrb[31].mxu0  ;;  %3236 = vmatprep.mubr.msk.bf16.mxu1 %vm548_vm0, %v4418_v12  ;;  %v899_v36 = vadd.f32 %v4384_v1, %v871_v21  ;;  %v3509_v9 = vld [vmem:[%s5531_s5 + $0x68] ss:$16 sps:$4 sm:$0xff]   ;;  %v3517_v21 = vld [vmem:[%s5531_s5 + $0xac] ss:$16 sps:$4 sm:$0xff]  }
 0x157   : > { %3612 = vrsqrt.f32 %v819_v38  ;;  %v789_v35 = vsub.f32 %v755_v34, %v773_v7  ;;  %1322 = vmatmul.mubr.bf16.vlgmr.msra.gmra.mrb[0].mxu1 %v4412_v4  ;;  %v872_v22 = vmul.f32 %v4369_v53, %v844_v39  ;;  %v801_v23 = vsub.f32 %v4131_v14, %v4326_v43 }
 0x158   : > { %v3603_v48 = vpop.eup %3602  ;;  %v820_v50 = vadd.f32 1e-05, %v788_v27  ;;  %1363 = vmatpush1.bf16.msra.mxu1 %v3500_v15  ;;  %v873_v52 = vmul.f32 %v4376_v58, %v845_v33  ;;  %v802_v43 = vsub.f32 %v4149_v25, %v4328_v44  ;;  %v803_v6 = vsub.f32 %v4142_v20, %v4330_v45  ;;  %v3514_v25 = vld [vmem:[%s5531_s5 + $0x8c] ss:$16 sps:$4 sm:$0xff]   ;;  %v3512_v27 = vld [vmem:[%s5531_s5 + $0x88] ss:$16 sps:$4 sm:$0xff]  }
 0x159   : > { %v3605_v54 = vpop.eup %3604  ;;  %v821_v13 = vadd.f32 1e-05, %v789_v35  ;;  %1364 = vmatprep.subr.bf16.mxu1 %v3505_v30  ;;  %v900_v29 = vadd.f32 %v4381_v61, %v872_v22  ;;  %v846_v8 = vmul.f32 %v3603_v48, %v798_v3  ;;  %v804_v18 = vsub.f32 %v4160_v31, %v4332_v46  ;;  %v3515_v35 = vld [vmem:[%s5531_s5 + $0xa8] ss:$16 sps:$4 sm:$0xff]   ;;  %v3520_v48 = vld [vmem:[%s5531_s5 + $0xcc] ss:$16 sps:$4 sm:$0xff]  }
 0x15a   : > { %v847_v41 = vmul.f32 %v3605_v54, %v799_v49  ;;  %3614 = vrsqrt.f32 %v820_v50  ;;  %v901_v56 = vadd.f32 %v4384_v1, %v873_v52  ;;  %v805_v28 = vsub.f32 %v4153_v26, %v4334_v47 }
 0x15b   : > { %3616 = vrsqrt.f32 %v821_v13  ;;  %v4451_v59 = vpack.c.bf16 %v900_v29, %v898_v55  ;;  %v874_v37 = vmul.f32 %v4369_v53, %v846_v8  ;;  %v3523_v13 = vld [vmem:[%s5531_s5 + $0xec] ss:$16 sps:$4 sm:$0xff]   ;;  %v3530_v8 = vld [vmem:[%s5531_s5 + $0x148] ss:$16 sps:$4 sm:$0xff]  }
 0x15c   : > { %v3607_v24 = vpop.eup %3606  ;;  %1365 = vmatpush1.bf16.msra.mxu1 %v3503_v51  ;;  %v4455_v60 = vpack.c.bf16 %v901_v56, %v899_v36  ;;  %v875_v14 = vmul.f32 %v4376_v58, %v847_v41  ;;  %v3529_v55 = vld [vmem:[%s5531_s5 + $0x12c] ss:$16 sps:$4 sm:$0xff]   ;;  %v3533_v36 = vld [vmem:[%s5531_s5 + $0x168] ss:$16 sps:$4 sm:$0xff]  }
 0x15d   : > { %v3609_v0 = vpop.eup %3608  ;;  %1366 = vmatprep.subr.bf16.mxu1 %v3508_v40  ;;  %v848_v42 = vmul.f32 %v3607_v24, %v800_v57  ;;  %v902_v44 = vadd.f32 %v4381_v61, %v874_v37  ;;  %v3524_v40 = vld [vmem:[%s5531_s5 + $0x108] ss:$16 sps:$4 sm:$0xff]   ;;  %v3532_v29 = vld [vmem:[%s5531_s5 + $0x14c] ss:$16 sps:$4 sm:$0xff]  }
 0x15e   : > { %v849_v32 = vmul.f32 %v3609_v0, %v801_v23  ;;  %3237 = vmatprep.mubr.msk.bf16.mxu1 %vm548_vm0, %v4455_v60  ;;  %v903_v20 = vadd.f32 %v4384_v1, %v875_v14  ;;  %v3535_v41 = vld [vmem:[%s5531_s5 + $0x16c] ss:$16 sps:$4 sm:$0xff]   ;;  %v3536_v24 = vld [vmem:[%s5531_s5 + $0x188] ss:$16 sps:$4 sm:$0xff]  }
 0x15f   : > { %1332 = vmatmul.mubr.bf16.gmra.mrb[4].mxu1 %v4451_v59  ;;  %v876_v2 = vmul.f32 %v4369_v53, %v848_v42  ;;  %v3538_v56 = vld [vmem:[%s5531_s5 + $0x18c] ss:$16 sps:$4 sm:$0xff]  }
 0x160   : > { %v3611_v5 = vpop.eup %3610  ;;  %1367 = vmatpush1.bf16.msra.mxu1 %v3506_v62  ;;  %v877_v10 = vmul.f32 %v4376_v58, %v849_v32  ;;  %v971_v57 = vld [vmem:[%s5531_s5 + $0x1a8] sm:$0xff] }
 0x161   : > { %v3613_v15 = vpop.eup %3612  ;;  %1368 = vmatprep.subr.bf16.mxu1 %v3511_v19  ;;  %v904_v16 = vadd.f32 %v4381_v61, %v876_v2  ;;  %v850_v7 = vmul.f32 %v3611_v5, %v802_v43  ;;  %v3234_v23 = vcombine.high %v971_v57, %v971_v57  ;;  %v3233_v62 = vcombine.low %v971_v57, %v971_v57  ;;  %v4573_v19 = vld [vmem:[%s5532_s6] sm:$0xf] }
 0x162   : > { %v851_v38 = vmul.f32 %v3613_v15, %v803_v6  ;;  %v905_v45 = vadd.f32 %v4384_v1, %v877_v10 }
 0x163   : > { %v4486_v30 = vpack.c.bf16 %v904_v16, %v902_v44  ;;  %v878_v46 = vmul.f32 %v4369_v53, %v850_v7  ;;  %v1284_v0 = vsel %vm1276_vm1, %v3233_v62, 0 }
 0x164   : > { %v3615_v39 = vpop.eup %3614  ;;  %1369 = vmatpush1.bf16.msra.mxu1 %v3509_v9  ;;  %v4490_v33 = vpack.c.bf16 %v905_v45, %v903_v20  ;;  %v879_v26 = vmul.f32 %v4376_v58, %v851_v38 }
 0x165   : > { %v3617_v34 = vpop.eup %3616  ;;  %1370 = vmatprep.subr.bf16.mxu1 %v3514_v25  ;;  %v852_v31 = vmul.f32 %v3615_v39, %v804_v18  ;;  %v906_v49 = vadd.f32 %v4381_v61, %v878_v46 }
 0x166   : > { %v853_v3 = vmul.f32 %v3617_v34, %v805_v28  ;;  %3238 = vmatprep.mubr.msk.bf16.mxu1 %vm548_vm0, %v4490_v33  ;;  %v907_v51 = vadd.f32 %v4384_v1, %v879_v26 }
 0x167   : > { %1342 = vmatmul.mubr.bf16.gmra.mrb[8].mxu1 %v4486_v30  ;;  %v880_v47 = vmul.f32 %v4369_v53, %v852_v31 }
 0x168   : > { %1371 = vmatpush1.bf16.msra.mxu1 %v3512_v27  ;;  %v881_v22 = vmul.f32 %v4376_v58, %v853_v3  ;;  %v3518_v58 = vld [vmem:[%s5531_s5 + $0xc8] ss:$16 sps:$4 sm:$0xff]  }
 0x169   : > { %1372 = vmatprep.subr.bf16.mxu1 %v3517_v21  ;;  %v908_v50 = vadd.f32 %v4381_v61, %v880_v47  ;;  %v3521_v61 = vld [vmem:[%s5531_s5 + $0xe8] ss:$16 sps:$4 sm:$0xff]  }
 0x16a   : > { %v909_v53 = vadd.f32 %v4384_v1, %v881_v22  ;;  %v3526_v1 = vld [vmem:[%s5531_s5 + $0x10c] ss:$16 sps:$4 sm:$0xff]  }
 0x16b   : > { %v916_v52 = vpack.c.bf16 %v908_v50, %v906_v49 }
 0x16c   : > { %1373 = vmatpush1.bf16.msra.mxu1 %v3515_v35  ;;  %v917_v54 = vpack.c.bf16 %v909_v53, %v907_v51 }
 0x16d   : > { %1374 = vmatprep.subr.bf16.mxu1 %v3520_v48 }
 0x16e   : > { %3239 = vmatprep.mubr.msk.bf16.mxu1 %vm548_vm0, %v917_v54 }
 0x16f   : > { %1352 = vmatmul.mubr.bf16.gmra.mrb[12].mxu1 %v916_v52 }
 0x170   : > { %1375 = vmatpush1.bf16.msra.mxu1 %v3518_v58  ;;  %3241 = vmatprep.mubr.msk.bf16.mxu1 %vm548_vm0, %v4418_v12  ;;  %v3527_v12 = vld [vmem:[%s5531_s5 + $0x128] ss:$16 sps:$4 sm:$0xff]  }
 0x171   : > { %1376 = vmatprep.subr.bf16.mxu1 %v3523_v13 }
 0x174   : > { %1377 = vmatpush1.bf16.msra.mxu1 %v3521_v61 }
 0x175   : > { %1378 = vmatprep.subr.bf16.mxu1 %v3526_v1 }
 0x178   : > { %1379 = vmatpush1.bf16.msra.mxu1 %v3524_v40 }
 0x179   : > { %1380 = vmatprep.subr.bf16.mxu1 %v3529_v55 }
 0x17c   : > { %1381 = vmatpush1.bf16.msra.mxu1 %v3527_v12 }
 0x17d   : > { %1382 = vmatprep.subr.bf16.mxu1 %v3532_v29 }
 0x180   : > { %1383 = vmatpush1.bf16.msra.mxu1 %v3530_v8 }
 0x181   : > { %1384 = vmatprep.subr.bf16.mxu1 %v3535_v41 }
 0x184   : > { %1385 = vmatpush1.bf16.msra.mxu1 %v3533_v36 }
 0x185   : > { %1386 = vmatprep.subr.bf16.mxu1 %v3538_v56 }
 0x188   : > { %1387 = vmatpush1.bf16.msra.mxu1 %v3536_v24 }
 0x189   : > { %3240 = vmatprep.subr.msk.bf16.mxu1 %vm1276_vm1, %v3234_v23 }
 0x18c   : > { %1389 = vmatpush1.bf16.msra.mxu1 %v1284_v0 }
 0x18f   : > { %1395 = vmatmul.mubr.bf16.vlgmr.msra.gmra.mrb[16].mxu1 %v4412_v4  ;;  %v4577_v4 = vrot.slane %v4573_v19, %v4359_v17 }
 0x190   : > { %3242 = vmatprep.mubr.msk.bf16.mxu1 %vm548_vm0, %v4455_v60 }
 0x197   : > { %1405 = vmatmul.mubr.bf16.gmra.mrb[20].mxu1 %v4451_v59 }
 0x198   : > { %3243 = vmatprep.mubr.msk.bf16.mxu1 %vm548_vm0, %v4490_v33 }
 0x19f   : > { %1415 = vmatmul.mubr.bf16.gmra.mrb[24].mxu1 %v4486_v30 }
 0x1a0   : > { %3244 = vmatprep.mubr.msk.bf16.mxu1 %vm548_vm0, %v917_v54 }
 0x1a7   : > { %1425 = vmatmul.mubr.bf16.gmra.mrb[28].mxu1 %v916_v52 }
 0x22a   : > { %v4579_v60 = vpop.f32.mrb[0].mxu1 }
 0x22b   : > { %v1325_v59 = vpop.f32.mrb[1].mxu1 }
 0x22c   : > { %v1326_v42 = vadd.f32 %v1325_v59, %v4577_v4  ;;  %v4582_v37 = vpop.f32.mrb[2].mxu1 }
 0x22d   : > { %v1329_v32 = vpop.f32.mrb[3].mxu1 }
 0x22e   : > { %v1436_v14 = vmul.f32 %v1326_v42, %v1326_v42  ;;  %v1330_v43 = vadd.f32 %v1329_v32, %v4577_v4 }
 0x230   : > { %v1468_v2 = vmul.f32 %v1436_v14, %v1326_v42  ;;  %v1440_v5 = vmul.f32 %v1330_v43, %v1330_v43 }
 0x232   : > { %v1500_v6 = vmul.f32 0.044715, %v1468_v2  ;;  %v1472_v9 = vmul.f32 %v1440_v5, %v1330_v43  ;;  %v4585_v10 = vpop.f32.mrb[4].mxu1 }
 0x233   : > { %v1335_v15 = vpop.f32.mrb[5].mxu1 }
 0x234   : > { %v1532_v25 = vadd.f32 %v1500_v6, %v1326_v42  ;;  %v1504_v44 = vmul.f32 0.044715, %v1472_v9  ;;  %v4588_v16 = vadd.f32 %v1335_v15, %v4577_v4  ;;  %v4590_v7 = vpop.f32.mrb[6].mxu1 }
 0x235   : > { %v1339_v38 = vpop.f32.mrb[7].mxu1 }
 0x236   : > { %v1564_v20 = vmul.f32 0.7978846, %v1532_v25  ;;  %v1536_v45 = vadd.f32 %v1504_v44, %v1330_v43  ;;  %v1444_v18 = vmul.f32 %v4588_v16, %v4588_v16  ;;  %v4595_v30 = vadd.f32 %v1339_v38, %v4577_v4 }
 0x238   : > { %3618 = vtanh.f32 %v1564_v20  ;;  %v1568_v39 = vmul.f32 0.7978846, %v1536_v45  ;;  %v1476_v28 = vmul.f32 %v1444_v18, %v4588_v16  ;;  %v1448_v33 = vmul.f32 %v4595_v30, %v4595_v30 }
 0x23a   : > { %3620 = vtanh.f32 %v1568_v39  ;;  %v1508_v27 = vmul.f32 0.044715, %v1476_v28  ;;  %v1480_v34 = vmul.f32 %v1448_v33, %v4595_v30  ;;  %v4601_v21 = vpop.f32.mrb[8].mxu1 }
 0x23b   : > { %v1345_v31 = vpop.f32.mrb[9].mxu1 }
 0x23c   : > { %v1540_v46 = vadd.f32 %v1508_v27, %v4588_v16  ;;  %v1512_v3 = vmul.f32 0.044715, %v1480_v34  ;;  %v4605_v26 = vadd.f32 %v1345_v31, %v4577_v4  ;;  %v4607_v47 = vpop.f32.mrb[10].mxu1 }
 0x23d   : > { %5544 = vst [vmem:[#allocation3_spill] sm:$0xff] %v4607_v47  ;;  %v1349_v35 = vpop.f32.mrb[11].mxu1 }
 0x23e   : > { %v1572_v22 = vmul.f32 0.7978846, %v1540_v46  ;;  %v1544_v48 = vadd.f32 %v1512_v3, %v4595_v30  ;;  %v1452_v49 = vmul.f32 %v4605_v26, %v4605_v26  ;;  %v4613_v50 = vadd.f32 %v1349_v35, %v4577_v4 }
 0x240   : > { %3622 = vtanh.f32 %v1572_v22  ;;  %v1576_v51 = vmul.f32 0.7978846, %v1544_v48  ;;  %v1484_v53 = vmul.f32 %v1452_v49, %v4605_v26  ;;  %v1456_v52 = vmul.f32 %v4613_v50, %v4613_v50 }
 0x242   : > { %v3619_v54 = vpop.eup %3618  ;;  %3624 = vtanh.f32 %v1576_v51  ;;  %v1516_v58 = vmul.f32 0.044715, %v1484_v53  ;;  %v1488_v13 = vmul.f32 %v1456_v52, %v4613_v50  ;;  %v4619_v61 = vpop.f32.mrb[12].mxu1 }
 0x243   : > { %5545 = vst [vmem:[#allocation4_spill] sm:$0xff] %v4619_v61  ;;  %v1628_v1 = vadd.f32 1.0, %v3619_v54  ;;  %v1355_v40 = vpop.f32.mrb[13].mxu1 }
 0x244   : > { %v3621_v55 = vpop.eup %3620  ;;  %v1548_v12 = vadd.f32 %v1516_v58, %v4605_v26  ;;  %v1520_v29 = vmul.f32 0.044715, %v1488_v13  ;;  %v4623_v8 = vadd.f32 %v1355_v40, %v4577_v4  ;;  %v4625_v41 = vpop.f32.mrb[14].mxu1  ;;  %v984_v13 = vsub.s32 2, %v4344_v63 }
 0x245   : > { %5546 = vst [vmem:[#allocation5_spill] sm:$0xff] %v4625_v41  ;;  %v1660_v36 = vmul.f32 0.5, %v1628_v1  ;;  %v1632_v56 = vadd.f32 1.0, %v3621_v55  ;;  %v1359_v57 = vpop.f32.mrb[15].mxu1  ;;  %v988_v1 = vsub.s32 3, %v4344_v63 }
 0x246   : > { %v1580_v24 = vmul.f32 0.7978846, %v1548_v12  ;;  %v1552_v23 = vadd.f32 %v1520_v29, %v4613_v50  ;;  %v1460_v62 = vmul.f32 %v4623_v8, %v4623_v8  ;;  %v1360_v5 = vadd.f32 %v1359_v57, %v4577_v4 }
 0x247   : > { %v1664_v0 = vmul.f32 0.5, %v1632_v56  ;;  %v4630_v59 = vmul.f32 %v1660_v36, %v1326_v42  ;;  %v4666_v55 = vrot.slane %v4573_v19, %v984_v13 }
 0x248   : > { %3626 = vtanh.f32 %v1580_v24  ;;  %v1584_v32 = vmul.f32 0.7978846, %v1552_v23  ;;  %v1492_v14 = vmul.f32 %v1460_v62, %v4623_v8  ;;  %v1464_v25 = vmul.f32 %v1360_v5, %v1360_v5 }
 0x249   : > { %v4633_v2 = vmul.f32 %v1664_v0, %v1330_v43  ;;  %v1723_v20 = vmul.f32 %v4630_v59, %v4630_v59 }
 0x24a   : > { %v3623_v6 = vpop.eup %3622  ;;  %3628 = vtanh.f32 %v1584_v32  ;;  %v1524_v9 = vmul.f32 0.044715, %v1492_v14  ;;  %v1496_v4 = vmul.f32 %v1464_v25, %v1360_v5 }
 0x24b   : > { %5547 = vst [vmem:[#allocation6_spill] sm:$0xff] %v4633_v2  ;;  %v1636_v15 = vadd.f32 1.0, %v3623_v6  ;;  %v3422_v44 = vpack.i.bf16 %v4633_v2, %v4630_v59  ;;  %v1726_v43 = vmul.f32 %v4633_v2, %v4633_v2 }
 0x24c   : > { %v3625_v38 = vpop.eup %3624  ;;  %v1556_v42 = vadd.f32 %v1524_v9, %v4623_v8  ;;  %v1528_v27 = vmul.f32 0.044715, %v1496_v4 }
 0x24d   : > { %v1668_v45 = vmul.f32 0.5, %v1636_v15  ;;  %v1640_v18 = vadd.f32 1.0, %v3625_v38  ;;  %3423 = vrot.lane.b32.xlu1 %v3422_v44, %s3739_s23  ;;  %v3427_v28 = vpack.i.bf16 %v1726_v43, %v1723_v20 }
 0x24e   : > { %v1588_v39 = vmul.f32 0.7978846, %v1556_v42  ;;  %v1560_v46 = vadd.f32 %v1528_v27, %v1360_v5 }
 0x24f   : > { %v1672_v33 = vmul.f32 0.5, %v1640_v18  ;;  %3428 = vrot.lane.b32.xlu0 %v3427_v28, %s3739_s23  ;;  %v4646_v34 = vmul.f32 %v1668_v45, %v4588_v16 }
 0x250   : > { %3630 = vtanh.f32 %v1588_v39  ;;  %v1592_v22 = vmul.f32 0.7978846, %v1560_v46 }
 0x251   : > { %5548 = vst [vmem:[#allocation7_spill] sm:$0xff] %v4646_v34  ;;  %v4649_v31 = vmul.f32 %v1672_v33, %v4595_v30 }
 0x252   : > { %v3627_v3 = vpop.eup %3626  ;;  %3632 = vtanh.f32 %v1592_v22 }
 0x253   : > { %v1644_v35 = vadd.f32 1.0, %v3627_v3  ;;  %v3432_v48 = vpack.i.bf16 %v4649_v31, %v4646_v34 }
 0x254   : > { %v3629_v49 = vpop.eup %3628 }
 0x255   : > { %v1676_v51 = vmul.f32 0.5, %v1644_v35  ;;  %v1648_v53 = vadd.f32 1.0, %v3629_v49  ;;  %3433 = vrot.lane.b32.xlu1 %v3432_v48, %s3739_s23 }
 0x257   : > { %v1680_v52 = vmul.f32 0.5, %v1648_v53  ;;  %v4655_v16 = vmul.f32 %v1676_v51, %v4605_v26  ;;  %v4669_v26 = vrot.slane %v4573_v19, %v988_v1 }
 0x259   : > { %v4658_v30 = vmul.f32 %v1680_v52, %v4613_v50 }
 0x25a   : > { %v3631_v54 = vpop.eup %3630 }
 0x25b   : > { %v3437_v58 = vpack.i.bf16 %v4658_v30, %v4655_v16  ;;  %v1652_v40 = vadd.f32 1.0, %v3631_v54 }
 0x25c   : > { %v3633_v12 = vpop.eup %3632 }
 0x25d   : > { %3438 = vrot.lane.b32.xlu0 %v3437_v58, %s3739_s23  ;;  %v1684_v50 = vmul.f32 0.5, %v1652_v40  ;;  %v1656_v29 = vadd.f32 1.0, %v3633_v12 }
 0x25f   : > { %v1688_v56 = vmul.f32 0.5, %v1656_v29  ;;  %v4678_v62 = vmul.f32 %v1684_v50, %v4623_v8 }
 0x261   : > { %v4680_v0 = vmul.f32 %v1688_v56, %v1360_v5 }
 0x262   : > { %v1396_v36 = vpop.f32.mrb[16].mxu1 }
 0x263   : > { %v4672_v57 = vadd.f32 %v1396_v36, %v4666_v55  ;;  %v1398_v24 = vpop.f32.mrb[17].mxu1  ;;  %v3442_v5 = vpack.i.bf16 %v4680_v0, %v4678_v62 }
 0x264   : > { %v4675_v63 = vadd.f32 %v1398_v24, %v4669_v26  ;;  %v1400_v23 = vpop.f32.mrb[18].mxu1 }
 0x265   : > { %v1437_v19 = vmul.f32 %v4672_v57, %v4672_v57  ;;  %v4685_v32 = vadd.f32 %v1400_v23, %v4666_v55  ;;  %v1402_v14 = vpop.f32.mrb[19].mxu1  ;;  %3443 = vrot.lane.b32.xlu1 %v3442_v5, %s3739_s23 }
 0x266   : > { %v1438_v6 = vmul.f32 %v4675_v63, %v4675_v63  ;;  %v4690_v9 = vadd.f32 %v1402_v14, %v4669_v26 }
 0x267   : > { %v1469_v15 = vmul.f32 %v1437_v19, %v4672_v57  ;;  %v1441_v8 = vmul.f32 %v4685_v32, %v4685_v32 }
 0x268   : > { %v1470_v25 = vmul.f32 %v1438_v6, %v4675_v63  ;;  %v1442_v44 = vmul.f32 %v4690_v9, %v4690_v9 }
 0x269   : > { %v1501_v38 = vmul.f32 0.044715, %v1469_v15  ;;  %v1473_v42 = vmul.f32 %v1441_v8, %v4685_v32 }
 0x26a   : > { %v1502_v20 = vmul.f32 0.044715, %v1470_v25  ;;  %v1474_v43 = vmul.f32 %v1442_v44, %v4690_v9  ;;  %v1406_v45 = vpop.f32.mrb[20].mxu1 }
 0x26b   : > { %v1533_v18 = vadd.f32 %v1501_v38, %v4672_v57  ;;  %v1505_v4 = vmul.f32 0.044715, %v1473_v42  ;;  %v4705_v39 = vadd.f32 %v1406_v45, %v4666_v55  ;;  %v1408_v28 = vpop.f32.mrb[21].mxu1 }
 0x26c   : > { %v1534_v33 = vadd.f32 %v1502_v20, %v4675_v63  ;;  %v1506_v27 = vmul.f32 0.044715, %v1474_v43  ;;  %v4709_v46 = vadd.f32 %v1408_v28, %v4669_v26  ;;  %v1410_v3 = vpop.f32.mrb[22].mxu1 }
 0x26d   : > { %v1565_v35 = vmul.f32 0.7978846, %v1533_v18  ;;  %v1537_v22 = vadd.f32 %v1505_v4, %v4685_v32  ;;  %v1445_v48 = vmul.f32 %v4705_v39, %v4705_v39  ;;  %v4715_v49 = vadd.f32 %v1410_v3, %v4666_v55  ;;  %v1412_v51 = vpop.f32.mrb[23].mxu1 }
 0x26e   : > { %v1566_v53 = vmul.f32 0.7978846, %v1534_v33  ;;  %v1538_v52 = vadd.f32 %v1506_v27, %v4690_v9  ;;  %v1446_v54 = vmul.f32 %v4709_v46, %v4709_v46  ;;  %v4721_v58 = vadd.f32 %v1412_v51, %v4669_v26 }
 0x26f   : > { %v1569_v13 = vmul.f32 0.7978846, %v1537_v22  ;;  %v1477_v1 = vmul.f32 %v1445_v48, %v4705_v39  ;;  %v1449_v40 = vmul.f32 %v4715_v49, %v4715_v49  ;;  %3634 = vtanh.f32 %v1565_v35 }
 0x270   : > { %v1478_v12 = vmul.f32 %v1446_v54, %v4709_v46  ;;  %v1450_v50 = vmul.f32 %v4721_v58, %v4721_v58  ;;  %3636 = vtanh.f32 %v1566_v53  ;;  %v1570_v29 = vmul.f32 0.7978846, %v1538_v52 }
 0x271   : > { %v1509_v36 = vmul.f32 0.044715, %v1477_v1  ;;  %v1481_v56 = vmul.f32 %v1449_v40, %v4715_v49  ;;  %3638 = vtanh.f32 %v1569_v13 }
 0x272   : > { %v1510_v24 = vmul.f32 0.044715, %v1478_v12  ;;  %v1482_v23 = vmul.f32 %v1450_v50, %v4721_v58  ;;  %v1416_v19 = vpop.f32.mrb[24].mxu1  ;;  %3640 = vtanh.f32 %v1570_v29 }
 0x273   : > { %v1541_v14 = vadd.f32 %v1509_v36, %v4705_v39  ;;  %v1513_v6 = vmul.f32 0.044715, %v1481_v56  ;;  %v4733_v15 = vadd.f32 %v1416_v19, %v4666_v55  ;;  %v1418_v8 = vpop.f32.mrb[25].mxu1 }
 0x274   : > { %v1542_v5 = vadd.f32 %v1510_v24, %v4709_v46  ;;  %v1514_v25 = vmul.f32 0.044715, %v1482_v23  ;;  %v4737_v44 = vadd.f32 %v1418_v8, %v4669_v26  ;;  %v1420_v38 = vpop.f32.mrb[26].mxu1 }
 0x275   : > { %v1545_v42 = vadd.f32 %v1513_v6, %v4715_v49  ;;  %v1453_v20 = vmul.f32 %v4733_v15, %v4733_v15  ;;  %v4743_v43 = vadd.f32 %v1420_v38, %v4666_v55  ;;  %v1422_v45 = vpop.f32.mrb[27].mxu1  ;;  %v1573_v27 = vmul.f32 0.7978846, %v1541_v14 }
 0x276   : > { %v1574_v18 = vmul.f32 0.7978846, %v1542_v5  ;;  %v1546_v4 = vadd.f32 %v1514_v25, %v4721_v58  ;;  %v1454_v28 = vmul.f32 %v4737_v44, %v4737_v44  ;;  %v4749_v33 = vadd.f32 %v1422_v45, %v4669_v26 }
 0x277   : > { %v1485_v3 = vmul.f32 %v1453_v20, %v4733_v15  ;;  %v1457_v35 = vmul.f32 %v4743_v43, %v4743_v43  ;;  %v1577_v22 = vmul.f32 0.7978846, %v1545_v42 }
 0x278   : > { %v1486_v48 = vmul.f32 %v1454_v28, %v4737_v44  ;;  %v1458_v51 = vmul.f32 %v4749_v33, %v4749_v33  ;;  %v1578_v13 = vmul.f32 0.7978846, %v1546_v4  ;;  %3642 = vtanh.f32 %v1574_v18 }
 0x279   : > { %v3635_v53 = vpop.eup %3634  ;;  %v1489_v52 = vmul.f32 %v1457_v35, %v4743_v43  ;;  %v1517_v1 = vmul.f32 0.044715, %v1485_v3  ;;  %3644 = vtanh.f32 %v1573_v27 }
 0x27a   : > { %v3637_v54 = vpop.eup %3636  ;;  %v1426_v40 = vpop.f32.mrb[28].mxu1  ;;  %v1629_v12 = vadd.f32 1.0, %v3635_v53  ;;  %v1490_v50 = vmul.f32 %v1458_v51, %v4749_v33  ;;  %v1518_v56 = vmul.f32 0.044715, %v1486_v48  ;;  %3646 = vtanh.f32 %v1577_v22 }
 0x27b   : > { %v4760_v29 = vadd.f32 %v1426_v40, %v4666_v55  ;;  %v1428_v36 = vpop.f32.mrb[29].mxu1  ;;  %v3639_v14 = vpop.eup %3638  ;;  %v1521_v6 = vmul.f32 0.044715, %v1489_v52  ;;  %v1630_v38 = vadd.f32 1.0, %v3637_v54  ;;  %v1549_v42 = vadd.f32 %v1517_v1, %v4733_v15 }
 0x27c   : > { %v4763_v24 = vadd.f32 %v1428_v36, %v4669_v26  ;;  %v1430_v23 = vpop.f32.mrb[30].mxu1  ;;  %v1661_v19 = vmul.f32 0.5, %v1629_v12  ;;  %3648 = vtanh.f32 %v1578_v13  ;;  %v3641_v18 = vpop.eup %3640  ;;  %v1522_v4 = vmul.f32 0.044715, %v1490_v50 }
 0x27d   : > { %v1461_v8 = vmul.f32 %v4760_v29, %v4760_v29  ;;  %v4768_v5 = vadd.f32 %v1430_v23, %v4666_v55  ;;  %v1432_v25 = vpop.f32.mrb[31].mxu1  ;;  %v1550_v3 = vadd.f32 %v1518_v56, %v4737_v44  ;;  %v1553_v48 = vadd.f32 %v1521_v6, %v4743_v43 }
 0x27e   : > { %v1462_v20 = vmul.f32 %v4763_v24, %v4763_v24  ;;  %v4774_v45 = vadd.f32 %v1432_v25, %v4669_v26  ;;  %v4780_v55 = vmul.f32 %v1661_v19, %v4672_v57  ;;  %v1633_v26 = vadd.f32 1.0, %v3639_v14 }
 0x27f   : > { %v1493_v28 = vmul.f32 %v1461_v8, %v4760_v29  ;;  %v1465_v27 = vmul.f32 %v4768_v5, %v4768_v5  ;;  %v1662_v52 = vmul.f32 0.5, %v1630_v38  ;;  %v1634_v1 = vadd.f32 1.0, %v3641_v18 }
 0x280   : > { %v1494_v35 = vmul.f32 %v1462_v20, %v4763_v24  ;;  %v1466_v22 = vmul.f32 %v4774_v45, %v4774_v45  ;;  %1797 = vrot.lane.b32.xlu0 %v4780_v55, %s3739_s23  ;;  %v1665_v13 = vmul.f32 0.5, %v1633_v26  ;;  %v1554_v40 = vadd.f32 %v1522_v4, %v4749_v33 }
 0x281   : > { %v1525_v51 = vmul.f32 0.044715, %v1493_v28  ;;  %v1497_v53 = vmul.f32 %v1465_v27, %v4768_v5  ;;  %v4793_v50 = vmul.f32 %v1662_v52, %v4675_v63  ;;  %v1582_v56 = vmul.f32 0.7978846, %v1550_v3 }
 0x282   : > { %v1526_v54 = vmul.f32 0.044715, %v1494_v35  ;;  %v1498_v57 = vmul.f32 %v1466_v22, %v4774_v45  ;;  %v3643_v36 = vpop.eup %3642  ;;  %v4797_v14 = vmul.f32 %v1665_v13, %v4685_v32  ;;  %v1581_v8 = vmul.f32 0.7978846, %v1549_v42 }
 0x283   : > { %v1529_v12 = vmul.f32 0.044715, %v1497_v53  ;;  %v1557_v23 = vadd.f32 %v1525_v51, %v4760_v29  ;;  %v3645_v6 = vpop.eup %3644  ;;  %v1585_v20 = vmul.f32 0.7978846, %v1553_v48  ;;  %v1666_v18 = vmul.f32 0.5, %v1634_v1 }
 0x284   : > { %v1530_v19 = vmul.f32 0.044715, %v1498_v57  ;;  %v1558_v25 = vadd.f32 %v1526_v54, %v4763_v24  ;;  %1799 = vrot.lane.b32.xlu0 %v4793_v50, %s3739_s23  ;;  %v3647_v38 = vpop.eup %3646  ;;  %1803 = vrot.lane.b32.xlu1 %v4797_v14, %s3739_s23  ;;  %v1586_v4 = vmul.f32 0.7978846, %v1554_v40  ;;  %v1724_v32 = vmul.f32 %v4780_v55, %v4780_v55 }
 0x285   : > { %v1561_v28 = vadd.f32 %v1529_v12, %v4768_v5  ;;  %v1638_v42 = vadd.f32 1.0, %v3643_v36  ;;  %v1589_v3 = vmul.f32 0.7978846, %v1557_v23  ;;  %v1725_v35 = vmul.f32 %v4793_v50, %v4793_v50 }
 0x286   : > { %v1562_v63 = vadd.f32 %v1530_v19, %v4774_v45  ;;  %v3649_v27 = vpop.eup %3648  ;;  %v1637_v22 = vadd.f32 1.0, %v3645_v6  ;;  %3650 = vtanh.f32 %v1582_v56  ;;  %v1590_v26 = vmul.f32 0.7978846, %v1558_v25 }
 0x287   : > { %3652 = vtanh.f32 %v1581_v8  ;;  %v4813_v51 = vmul.f32 %v1666_v18, %v4690_v9  ;;  %v1593_v53 = vmul.f32 0.7978846, %v1561_v28  ;;  %v1670_v52 = vmul.f32 0.5, %v1638_v42 }
 0x288   : > { %1845 = vrot.lane.b32.xlu0 %v1724_v32, %s3739_s23  ;;  %v1594_v48 = vmul.f32 0.7978846, %v1562_v63  ;;  %1847 = vrot.lane.b32.xlu1 %v1725_v35, %s3739_s23  ;;  %3654 = vtanh.f32 %v1585_v20  ;;  %v1641_v54 = vadd.f32 1.0, %v3647_v38  ;;  %v1727_v57 = vmul.f32 %v4797_v14, %v4797_v14 }
 0x289   : > { %3656 = vtanh.f32 %v1586_v4  ;;  %v1669_v13 = vmul.f32 0.5, %v1637_v22  ;;  %v1642_v1 = vadd.f32 1.0, %v3649_v27  ;;  %v4821_v9 = vmul.f32 %v1670_v52, %v4709_v46 }
 0x28a   : > { %3658 = vtanh.f32 %v1589_v3  ;;  %v1673_v40 = vmul.f32 0.5, %v1641_v54 }
 0x28b   : > { %3660 = vtanh.f32 %v1590_v26  ;;  %v4824_v12 = vmul.f32 %v1669_v13, %v4705_v39  ;;  %v1674_v36 = vmul.f32 0.5, %v1642_v1 }
 0x28c   : > { %1805 = vrot.lane.b32.xlu0 %v4813_v51, %s3739_s23  ;;  %1851 = vrot.lane.b32.xlu1 %v1727_v57, %s3739_s23  ;;  %3662 = vtanh.f32 %v1594_v48  ;;  %v4831_v19 = vmul.f32 %v1673_v40, %v4715_v49  ;;  %v1732_v40 = vmul.f32 %v4649_v31, %v4649_v31 }
 0x28d   : > { %3664 = vtanh.f32 %v1593_v53  ;;  %v4834_v8 = vmul.f32 %v1674_v36, %v4721_v58  ;;  %v1731_v36 = vmul.f32 %v4821_v9, %v4821_v9 }
 0x290   : > { %1811 = vrot.lane.b32.xlu0 %v4821_v9, %s3739_s23  ;;  %v3651_v56 = vpop.eup %3650  ;;  %1809 = vrot.lane.b32.xlu1 %v4824_v12, %s3739_s23 }
 0x291   : > { %v3653_v23 = vpop.eup %3652  ;;  %v1646_v6 = vadd.f32 1.0, %v3651_v56  ;;  %v1734_v56 = vmul.f32 %v4834_v8, %v4834_v8 }
 0x292   : > { %v3655_v46 = vpop.eup %3654  ;;  %v1645_v25 = vadd.f32 1.0, %v3653_v23  ;;  %v1733_v23 = vmul.f32 %v4831_v19, %v4831_v19 }
 0x293   : > { %v3657_v39 = vpop.eup %3656  ;;  %v1678_v38 = vmul.f32 0.5, %v1646_v6  ;;  %v1649_v20 = vadd.f32 1.0, %v3655_v46 }
 0x294   : > { %1815 = vrot.lane.b32.xlu0 %v4831_v19, %s3739_s23  ;;  %v3659_v63 = vpop.eup %3658  ;;  %1817 = vrot.lane.b32.xlu1 %v4834_v8, %s3739_s23  ;;  %v1677_v18 = vmul.f32 0.5, %v1645_v25  ;;  %v1650_v4 = vadd.f32 1.0, %v3657_v39  ;;  %v1738_v25 = vmul.f32 %v4658_v30, %v4658_v30  ;;  %v1735_v39 = vmul.f32 %v4655_v16, %v4655_v16 }
 0x295   : > { %v3661_v49 = vpop.eup %3660  ;;  %v1681_v28 = vmul.f32 0.5, %v1649_v20  ;;  %v1653_v32 = vadd.f32 1.0, %v3659_v63  ;;  %v4841_v58 = vmul.f32 %v1678_v38, %v4737_v44 }
 0x296   : > { %v3663_v42 = vpop.eup %3662  ;;  %v4844_v27 = vmul.f32 %v1677_v18, %v4733_v15  ;;  %v1682_v3 = vmul.f32 0.5, %v1650_v4  ;;  %v1654_v35 = vadd.f32 1.0, %v3661_v49  ;;  %v3452_v20 = vpack.i.bf16 %v1738_v25, %v1735_v39 }
 0x297   : > { %v3665_v22 = vpop.eup %3664  ;;  %v4851_v26 = vmul.f32 %v1681_v28, %v4743_v43  ;;  %v1685_v48 = vmul.f32 0.5, %v1653_v32  ;;  %v1658_v52 = vadd.f32 1.0, %v3663_v42  ;;  %v1737_v6 = vmul.f32 %v4841_v58, %v4841_v58  ;;  %v2405_v28 = vld [vmem:[%s5533_s7] sm:$0x3] }
 0x298   : > { %1823 = vrot.lane.b32.xlu1 %v4841_v58, %s3739_s23  ;;  %1821 = vrot.lane.b32.xlu0 %v4844_v27, %s3739_s23  ;;  %v4854_v53 = vmul.f32 %v1682_v3, %v4749_v33  ;;  %v1686_v44 = vmul.f32 0.5, %v1654_v35  ;;  %v1657_v15 = vadd.f32 1.0, %v3665_v22  ;;  %v1736_v46 = vmul.f32 %v4844_v27, %v4844_v27  ;;  %v2447_v35 = vld [vmem:[%s5534_s8] sm:$0x3] }
 0x299   : > { %v4861_v54 = vmul.f32 %v1685_v48, %v4760_v29  ;;  %v1690_v43 = vmul.f32 0.5, %v1658_v52  ;;  %v1730_v29 = vmul.f32 %v4824_v12, %v4824_v12  ;;  %v1739_v38 = vmul.f32 %v4851_v26, %v4851_v26 }
 0x29a   : > { %v4864_v57 = vmul.f32 %v1686_v44, %v4763_v24  ;;  %v1689_v13 = vmul.f32 0.5, %v1657_v15  ;;  %v1728_v24 = vmul.f32 %v4813_v51, %v4813_v51  ;;  %v1740_v18 = vmul.f32 %v4854_v53, %v4854_v53 }
 0x29b   : > { %v4871_v33 = vmul.f32 %v1690_v43, %v4774_v45  ;;  %v1742_v63 = vmul.f32 %v4861_v54, %v4861_v54  ;;  %v1741_v4 = vmul.f32 %v4678_v62, %v4678_v62  ;;  %v2410_v3 = vrot.slane %v2405_v28, %v4351_v11 }
 0x29c   : > { %1827 = vrot.lane.b32.xlu1 %v4851_v26, %s3739_s23  ;;  %1829 = vrot.lane.b32.xlu0 %v4854_v53, %s3739_s23  ;;  %v4874_v1 = vmul.f32 %v1689_v13, %v4768_v5  ;;  %v1729_v5 = vmul.f32 %v4646_v34, %v4646_v34  ;;  %v1743_v49 = vmul.f32 %v4864_v57, %v4864_v57 }
 0x29d   : > { %v1746_v32 = vmul.f32 %v4871_v33, %v4871_v33  ;;  %v1744_v22 = vmul.f32 %v4680_v0, %v4680_v0  ;;  %v2414_v48 = vrot.slane %v2405_v28, %v4359_v17  ;;  %v2452_v44 = vrot.slane %v2447_v35, %v4351_v11 }
 0x29e   : > { %v3447_v45 = vpack.i.bf16 %v1732_v40, %v1729_v5  ;;  %v1745_v42 = vmul.f32 %v4874_v1, %v4874_v1  ;;  %v2456_v52 = vrot.slane %v2447_v35, %v4359_v17 }
 0x2a0   : > { %1833 = vrot.lane.b32.xlu1 %v4861_v54, %s3739_s23  ;;  %1835 = vrot.lane.b32.xlu0 %v4864_v57, %s3739_s23 }
 0x2a4   : > { %1841 = vrot.lane.b32.xlu1 %v4871_v33, %s3739_s23  ;;  %1839 = vrot.lane.b32.xlu0 %v4874_v1, %s3739_s23 }
 0x2a8   : > { %1857 = vrot.lane.b32.xlu1 %v1730_v29, %s3739_s23  ;;  %1853 = vrot.lane.b32.xlu0 %v1728_v24, %s3739_s23 }
 0x2ac   : > { %3448 = vrot.lane.b32.xlu1 %v3447_v45, %s3739_s23  ;;  %1859 = vrot.lane.b32.xlu0 %v1731_v36, %s3739_s23 }
 0x2b0   : > { %1865 = vrot.lane.b32.xlu1 %v1734_v56, %s3739_s23  ;;  %1863 = vrot.lane.b32.xlu0 %v1733_v23, %s3739_s23 }
 0x2b4   : > { %1871 = vrot.lane.b32.xlu1 %v1737_v6, %s3739_s23  ;;  %1869 = vrot.lane.b32.xlu0 %v1736_v46, %s3739_s23 }
 0x2b8   : > { %1875 = vrot.lane.b32.xlu1 %v1739_v38, %s3739_s23  ;;  %3453 = vrot.lane.b32.xlu0 %v3452_v20, %s3739_s23 }
 0x2bc   : > { %1881 = vrot.lane.b32.xlu1 %v1742_v63, %s3739_s23  ;;  %1877 = vrot.lane.b32.xlu0 %v1740_v18, %s3739_s23 }
 0x2bf   : > { %v3424_v43 = vpop.permute.xlu1 %3423 }
 0x2c0   : > { %1879 = vrot.lane.b32.xlu1 %v1741_v4, %s3739_s23  ;;  %1883 = vrot.lane.b32.xlu0 %v1743_v49, %s3739_s23  ;;  %v3425_v5 = vunpack.i.l.bf16 %v3424_v43  ;;  %v3426_v25 = vunpack.i.h.bf16 %v3424_v43 }
 0x2c1   : > { %v4949_v15 = vpop.permute.xlu0 %3428 }
 0x2c4   : > { %1889 = vrot.lane.b32.xlu1 %v1746_v32, %s3739_s23  ;;  %1887 = vrot.lane.b32.xlu0 %v1745_v42, %s3739_s23 }
 0x2c7   : > { %v3434_v29 = vpop.permute.xlu1 %3433 }
 0x2c8   : > { %1885 = vrot.lane.b32.xlu0 %v1744_v22, %s3739_s23  ;;  %2415 = vrot.lane.b32.xlu1 %v2410_v3, %s3740_s30  ;;  %v3435_v4 = vunpack.i.l.bf16 %v3434_v29  ;;  %v3436_v32 = vunpack.i.h.bf16 %v3434_v29 }
 0x2cc   : > { %2417 = vrot.lane.b32.xlu0 %v2414_v48, %s3740_s30  ;;  %2457 = vrot.lane.b32.xlu1 %v2452_v44, %s3740_s30 }
 0x2cf   : > { %v3439_v13 = vpop.permute.xlu0 %3438 }
 0x2d0   : > { %2459 = vrot.lane.b32.xlu0 %v2456_v52, %s3740_s30  ;;  %v3440_v44 = vunpack.i.l.bf16 %v3439_v13 }
 0x2d7   : > { %v3444_v40 = vpop.permute.xlu1 %3443 }
 0x2f2   : > { %v1798_v24 = vpop.permute.xlu0 %1797 }
 0x2f3   : > { %v1892_v23 = vsel %vm1891_vm2, %v3425_v5, %v1798_v24  ;;  %v3441_v5 = vunpack.i.h.bf16 %v3439_v13 }
 0x2f6   : > { %v1800_v45 = vpop.permute.xlu0 %1799  ;;  %v1804_v36 = vpop.permute.xlu1 %1803 }
 0x2f7   : > { %v1893_v56 = vsel %vm1891_vm2, %v1798_v24, %v1800_v45  ;;  %v1894_v63 = vsel %vm1891_vm2, %v3426_v25, %v1804_v36  ;;  %v3445_v25 = vunpack.i.l.bf16 %v3444_v40 }
 0x2f8   : > { %3245 = vmatprep.mubr.msk.f32.mxu0 %vm548_vm0, %v1893_v56 }
 0x2f9   : > { %2037 = vmatmul.mubr.f32.vlgmr.msra.gmra.mrb[32].mxu0 %v1892_v23 }
 0x2fa   : > { %v1846_v6 = vpop.permute.xlu0 %1845  ;;  %v1848_v46 = vpop.permute.xlu1 %1847 }
 0x2fe   : > { %v1806_v39 = vpop.permute.xlu0 %1805  ;;  %v1852_v38 = vpop.permute.xlu1 %1851 }
 0x2ff   : > { %v1895_v20 = vsel %vm1891_vm2, %v1804_v36, %v1806_v39 }
 0x300   : > { %3246 = vmatprep.mubr.msk.f32.mxu0 %vm548_vm0, %v1895_v20 }
 0x301   : > { %2043 = vmatmul.mubr.f32.gmra.mrb[34].mxu0 %v1894_v63 }
 0x302   : > { %v1812_v18 = vpop.permute.xlu0 %1811  ;;  %v1810_v49 = vpop.permute.xlu1 %1809 }
 0x303   : > { %v1897_v28 = vsel %vm1891_vm2, %v1810_v49, %v1812_v18  ;;  %v1896_v42 = vsel %vm1891_vm2, %v3435_v4, %v1810_v49  ;;  %v3446_v4 = vunpack.i.h.bf16 %v3444_v40 }
 0x304   : > { %3247 = vmatprep.mubr.msk.f32.mxu0 %vm548_vm0, %v1897_v28 }
 0x305   : > { %2049 = vmatmul.mubr.f32.gmra.mrb[36].mxu0 %v1896_v42  ;;  %v1909_v42 = vsel %vm1891_vm2, %v1846_v6, %v1848_v46 }
 0x306   : > { %v1816_v3 = vpop.permute.xlu0 %1815  ;;  %v1818_v35 = vpop.permute.xlu1 %1817 }
 0x307   : > { %v1898_v22 = vsel %vm1891_vm2, %v3436_v32, %v1816_v3  ;;  %v1899_v48 = vsel %vm1891_vm2, %v1816_v3, %v1818_v35  ;;  %v3430_v3 = vunpack.i.l.bf16 %v4949_v15 }
 0x308   : > { %3248 = vmatprep.mubr.msk.f32.mxu0 %vm548_vm0, %v1899_v48 }
 0x309   : > { %2055 = vmatmul.mubr.f32.gmra.mrb[38].mxu0 %v1898_v22  ;;  %v1908_v40 = vsel %vm1891_vm2, %v3430_v3, %v1846_v6 }
 0x30a   : > { %v1824_v52 = vpop.permute.xlu1 %1823  ;;  %v1822_v43 = vpop.permute.xlu0 %1821 }
 0x30b   : > { %v1901_v24 = vsel %vm1891_vm2, %v1822_v43, %v1824_v52  ;;  %v1900_v29 = vsel %vm1891_vm2, %v3440_v44, %v1822_v43  ;;  %v3431_v44 = vunpack.i.h.bf16 %v4949_v15 }
 0x30c   : > { %3249 = vmatprep.mubr.msk.f32.mxu0 %vm548_vm0, %v1901_v24 }
 0x30d   : > { %2061 = vmatmul.mubr.f32.gmra.mrb[40].mxu0 %v1900_v29  ;;  %v1910_v46 = vsel %vm1891_vm2, %v3431_v44, %v1852_v38 }
 0x30e   : > { %v1828_v45 = vpop.permute.xlu1 %1827  ;;  %v1830_v36 = vpop.permute.xlu0 %1829 }
 0x30f   : > { %v1903_v56 = vsel %vm1891_vm2, %v1828_v45, %v1830_v36  ;;  %v1902_v23 = vsel %vm1891_vm2, %v3441_v5, %v1828_v45 }
 0x310   : > { %3250 = vmatprep.mubr.msk.f32.mxu0 %vm548_vm0, %v1903_v56 }
 0x311   : > { %2067 = vmatmul.mubr.f32.gmra.mrb[42].mxu0 %v1902_v23 }
 0x312   : > { %v1834_v39 = vpop.permute.xlu1 %1833  ;;  %v1836_v20 = vpop.permute.xlu0 %1835 }
 0x313   : > { %v1905_v63 = vsel %vm1891_vm2, %v1834_v39, %v1836_v20  ;;  %v1904_v18 = vsel %vm1891_vm2, %v3445_v25, %v1834_v39 }
 0x314   : > { %3251 = vmatprep.mubr.msk.f32.mxu0 %vm548_vm0, %v1905_v63 }
 0x315   : > { %2073 = vmatmul.mubr.f32.gmra.mrb[44].mxu0 %v1904_v18 }
 0x316   : > { %v1842_v13 = vpop.permute.xlu1 %1841  ;;  %v1840_v49 = vpop.permute.xlu0 %1839 }
 0x317   : > { %v1907_v28 = vsel %vm1891_vm2, %v1840_v49, %v1842_v13  ;;  %v1906_v32 = vsel %vm1891_vm2, %v3446_v4, %v1840_v49 }
 0x318   : > { %3252 = vmatprep.mubr.msk.f32.mxu0 %vm548_vm0, %v1907_v28 }
 0x319   : > { %2079 = vmatmul.mubr.f32.gmra.mrb[46].mxu0 %v1906_v32 }
 0x31a   : > { %v1858_v35 = vpop.permute.xlu1 %1857  ;;  %v1854_v22 = vpop.permute.xlu0 %1853  ;;  %3253 = vmatprep.mubr.msk.f32.mxu0 %vm548_vm0, %v1909_v42 }
 0x31b   : > { %v1911_v48 = vsel %vm1891_vm2, %v1852_v38, %v1854_v22 }
 0x31d   : > { %2085 = vmatmul.mubr.f32.gmra.mrb[48].mxu0 %v1908_v40 }
 0x31e   : > { %v3449_v52 = vpop.permute.xlu1 %3448  ;;  %v1860_v43 = vpop.permute.xlu0 %1859  ;;  %3254 = vmatprep.mubr.msk.f32.mxu0 %vm548_vm0, %v1911_v48 }
 0x31f   : > { %v3450_v24 = vunpack.i.l.bf16 %v3449_v52  ;;  %v1913_v29 = vsel %vm1891_vm2, %v1858_v35, %v1860_v43  ;;  %v3451_v15 = vunpack.i.h.bf16 %v3449_v52 }
 0x321   : > { %2091 = vmatmul.mubr.f32.gmra.mrb[50].mxu0 %v1910_v46  ;;  %v1912_v6 = vsel %vm1891_vm2, %v3450_v24, %v1858_v35 }
 0x322   : > { %v1866_v5 = vpop.permute.xlu1 %1865  ;;  %v1864_v45 = vpop.permute.xlu0 %1863  ;;  %3255 = vmatprep.mubr.msk.f32.mxu0 %vm548_vm0, %v1913_v29 }
 0x323   : > { %v1915_v36 = vsel %vm1891_vm2, %v1864_v45, %v1866_v5  ;;  %v1914_v25 = vsel %vm1891_vm2, %v3451_v15, %v1864_v45 }
 0x325   : > { %2097 = vmatmul.mubr.f32.gmra.mrb[52].mxu0 %v1912_v6 }
 0x326   : > { %v1872_v56 = vpop.permute.xlu1 %1871  ;;  %v1870_v23 = vpop.permute.xlu0 %1869  ;;  %3256 = vmatprep.mubr.msk.f32.mxu0 %vm548_vm0, %v1915_v36 }
 0x327   : > { %v1917_v38 = vsel %vm1891_vm2, %v1870_v23, %v1872_v56 }
 0x329   : > { %2103 = vmatmul.mubr.f32.gmra.mrb[54].mxu0 %v1914_v25 }
 0x32a   : > { %v1876_v39 = vpop.permute.xlu1 %1875  ;;  %v3454_v20 = vpop.permute.xlu0 %3453  ;;  %3257 = vmatprep.mubr.msk.f32.mxu0 %vm548_vm0, %v1917_v38 }
 0x32b   : > { %v3455_v63 = vunpack.i.l.bf16 %v3454_v20  ;;  %v3456_v18 = vunpack.i.h.bf16 %v3454_v20 }
 0x32d   : > { %v1916_v4 = vsel %vm1891_vm2, %v3455_v63, %v1870_v23  ;;  %v1918_v32 = vsel %vm1891_vm2, %v3456_v18, %v1876_v39 }
 0x32e   : > { %v1882_v13 = vpop.permute.xlu1 %1881  ;;  %v1878_v49 = vpop.permute.xlu0 %1877  ;;  %2109 = vmatmul.mubr.f32.gmra.mrb[56].mxu0 %v1916_v4 }
 0x32f   : > { %v1919_v28 = vsel %vm1891_vm2, %v1876_v39, %v1878_v49 }
 0x330   : > { %3258 = vmatprep.mubr.msk.f32.mxu0 %vm548_vm0, %v1919_v28 }
 0x332   : > { %v1880_v42 = vpop.permute.xlu1 %1879  ;;  %v1884_v3 = vpop.permute.xlu0 %1883  ;;  %2115 = vmatmul.mubr.f32.gmra.mrb[58].mxu0 %v1918_v32 }
 0x333   : > { %v1921_v35 = vsel %vm1891_vm2, %v1882_v13, %v1884_v3  ;;  %v1920_v22 = vsel %vm1891_vm2, %v1880_v42, %v1882_v13 }
 0x334   : > { %3259 = vmatprep.mubr.msk.f32.mxu0 %vm548_vm0, %v1921_v35 }
 0x336   : > { %v1890_v40 = vpop.permute.xlu1 %1889  ;;  %v1888_v48 = vpop.permute.xlu0 %1887  ;;  %2121 = vmatmul.mubr.f32.gmra.mrb[60].mxu0 %v1920_v22 }
 0x337   : > { %v1923_v44 = vsel %vm1891_vm2, %v1888_v48, %v1890_v40 }
 0x338   : > { %3260 = vmatprep.mubr.msk.f32.mxu0 %vm548_vm0, %v1923_v44 }
 0x33a   : > { %v1886_v52 = vpop.permute.xlu0 %1885 }
 0x33b   : > { %v1922_v43 = vsel %vm1891_vm2, %v1886_v52, %v1888_v48 }
 0x33c   : > { %2127 = vmatmul.mubr.f32.gmra.mrb[62].mxu0 %v1922_v43 }
 0x3cc   : > { %v2038_v24 = vpop.f32.mrb[32].mxu0 }
 0x3cd   : > { %v2040_v46 = vpop.f32.mrb[33].mxu0  ;;  %2181 = vrot.lane.b32.xlu1 %v2038_v24, %s3740_s30  ;;  %v2133_v4 = vmul.f32 %v2038_v24, %v2038_v24 }
 0x3ce   : > { %2183 = vrot.lane.b32.xlu0 %v2040_v46, %s3740_s30  ;;  %v2134_v13 = vmul.f32 %v2040_v46, %v2040_v46 }
 0x3d4   : > { %v2044_v29 = vpop.f32.mrb[34].mxu0 }
 0x3d5   : > { %v2046_v5 = vpop.f32.mrb[35].mxu0  ;;  %2185 = vrot.lane.b32.xlu1 %v2044_v29, %s3740_s30  ;;  %v2135_v3 = vmul.f32 %v2044_v29, %v2044_v29 }
 0x3d6   : > { %2187 = vrot.lane.b32.xlu0 %v2046_v5, %s3740_s30  ;;  %v2136_v22 = vmul.f32 %v2046_v5, %v2046_v5 }
 0x3d8   : > { %v2050_v45 = vpop.f32.mrb[36].mxu0 }
 0x3d9   : > { %v2052_v6 = vpop.f32.mrb[37].mxu0  ;;  %2189 = vrot.lane.b32.xlu1 %v2050_v45, %s3740_s30  ;;  %v2137_v17 = vmul.f32 %v2050_v45, %v2050_v45 }
 0x3da   : > { %2191 = vrot.lane.b32.xlu0 %v2052_v6, %s3740_s30  ;;  %v2138_v61 = vmul.f32 %v2052_v6, %v2052_v6 }
 0x3dc   : > { %v2056_v36 = vpop.f32.mrb[38].mxu0 }
 0x3dd   : > { %v2058_v15 = vpop.f32.mrb[39].mxu0  ;;  %2193 = vrot.lane.b32.xlu1 %v2056_v36, %s3740_s30  ;;  %v2139_v29 = vmul.f32 %v2056_v36, %v2056_v36 }
 0x3de   : > { %2195 = vrot.lane.b32.xlu0 %v2058_v15, %s3740_s30  ;;  %v2140_v5 = vmul.f32 %v2058_v15, %v2058_v15 }
 0x3e0   : > { %v2062_v56 = vpop.f32.mrb[40].mxu0 }
 0x3e1   : > { %v2064_v23 = vpop.f32.mrb[41].mxu0  ;;  %2197 = vrot.lane.b32.xlu1 %v2062_v56, %s3740_s30 }
 0x3e2   : > { %2199 = vrot.lane.b32.xlu0 %v2064_v23, %s3740_s30 }
 0x3e4   : > { %v5011_v25 = vpop.f32.mrb[42].mxu0 }
 0x3e5   : > { %v5013_v38 = vpop.f32.mrb[43].mxu0  ;;  %2201 = vrot.lane.b32.xlu1 %v5011_v25, %s3740_s30 }
 0x3e6   : > { %2203 = vrot.lane.b32.xlu0 %v5013_v38, %s3740_s30 }
 0x3e8   : > { %v5019_v39 = vpop.f32.mrb[44].mxu0 }
 0x3e9   : > { %v5021_v20 = vpop.f32.mrb[45].mxu0  ;;  %2205 = vrot.lane.b32.xlu1 %v5019_v39, %s3740_s30 }
 0x3ea   : > { %2207 = vrot.lane.b32.xlu0 %v5021_v20, %s3740_s30 }
 0x3ec   : > { %v5027_v63 = vpop.f32.mrb[46].mxu0 }
 0x3ed   : > { %v5029_v18 = vpop.f32.mrb[47].mxu0  ;;  %2209 = vrot.lane.b32.xlu1 %v5027_v63, %s3740_s30 }
 0x3ee   : > { %2211 = vrot.lane.b32.xlu0 %v5029_v18, %s3740_s30 }
 0x3f0   : > { %v2086_v49 = vpop.f32.mrb[48].mxu0 }
 0x3f1   : > { %v2149_v28 = vsub.f32 %v2086_v49, %v2133_v4  ;;  %v2088_v32 = vpop.f32.mrb[49].mxu0 }
 0x3f2   : > { %v2150_v42 = vsub.f32 %v2088_v32, %v2134_v13 }
 0x3f3   : > { %v2269_v35 = vadd.f32 1e-05, %v2149_v28 }
 0x3f4   : > { %v2270_v40 = vadd.f32 1e-05, %v2150_v42  ;;  %v2092_v48 = vpop.f32.mrb[50].mxu0 }
 0x3f5   : > { %3666 = vrsqrt.f32 %v2269_v35  ;;  %v2151_v44 = vsub.f32 %v2092_v48, %v2135_v3  ;;  %v2094_v52 = vpop.f32.mrb[51].mxu0 }
 0x3f6   : > { %3668 = vrsqrt.f32 %v2270_v40  ;;  %v2152_v43 = vsub.f32 %v2094_v52, %v2136_v22  ;;  %v2141_v40 = vmul.f32 %v2062_v56, %v2062_v56  ;;  %v2143_v52 = vmul.f32 %v5011_v25, %v5011_v25 }
 0x3f7   : > { %v2271_v41 = vadd.f32 1e-05, %v2151_v44  ;;  %v2144_v56 = vmul.f32 %v5013_v38, %v5013_v38  ;;  %v2145_v25 = vmul.f32 %v5019_v39, %v5019_v39  ;;  %v2146_v38 = vmul.f32 %v5021_v20, %v5021_v20 }
 0x3f8   : > { %v2272_v47 = vadd.f32 1e-05, %v2152_v43  ;;  %v2098_v24 = vpop.f32.mrb[52].mxu0  ;;  %v2147_v20 = vmul.f32 %v5027_v63, %v5027_v63 }
 0x3f9   : > { %3670 = vrsqrt.f32 %v2271_v41  ;;  %v2153_v46 = vsub.f32 %v2098_v24, %v2137_v17  ;;  %v2100_v4 = vpop.f32.mrb[53].mxu0  ;;  %v2142_v17 = vmul.f32 %v2064_v23, %v2064_v23 }
 0x3fa   : > { %3672 = vrsqrt.f32 %v2272_v47  ;;  %v2154_v13 = vsub.f32 %v2100_v4, %v2138_v61 }
 0x3fb   : > { %v2273_v49 = vadd.f32 1e-05, %v2153_v46 }
 0x3fc   : > { %v2274_v28 = vadd.f32 1e-05, %v2154_v13  ;;  %v2104_v32 = vpop.f32.mrb[54].mxu0 }
 0x3fd   : > { %3674 = vrsqrt.f32 %v2273_v49  ;;  %v2155_v42 = vsub.f32 %v2104_v32, %v2139_v29  ;;  %v2106_v3 = vpop.f32.mrb[55].mxu0 }
 0x3fe   : > { %3676 = vrsqrt.f32 %v2274_v28  ;;  %v2156_v35 = vsub.f32 %v2106_v3, %v2140_v5 }
 0x3ff   : > { %v3667_v45 = vpop.eup %3666  ;;  %v2275_v22 = vadd.f32 1e-05, %v2155_v42 }
 0x400   : > { %v3669_v6 = vpop.eup %3668  ;;  %v2276_v48 = vadd.f32 1e-05, %v2156_v35  ;;  %2317 = vrot.lane.b32.xlu1 %v3667_v45, %s3740_s30 }
 0x401   : > { %3678 = vrsqrt.f32 %v2275_v22  ;;  %2319 = vrot.lane.b32.xlu0 %v3669_v6, %s3740_s30  ;;  %v2110_v47 = vpop.f32.mrb[56].mxu0 }
 0x402   : > { %3680 = vrsqrt.f32 %v2276_v48  ;;  %v2157_v61 = vsub.f32 %v2110_v47, %v2141_v40  ;;  %v2112_v41 = vpop.f32.mrb[57].mxu0  ;;  %v2148_v40 = vmul.f32 %v5029_v18, %v5029_v18 }
 0x403   : > { %v3671_v36 = vpop.eup %3670  ;;  %v2158_v15 = vsub.f32 %v2112_v41, %v2142_v17 }
 0x404   : > { %v3673_v44 = vpop.eup %3672  ;;  %v2277_v43 = vadd.f32 1e-05, %v2157_v61  ;;  %2321 = vrot.lane.b32.xlu1 %v3671_v36, %s3740_s30 }
 0x405   : > { %v2278_v23 = vadd.f32 1e-05, %v2158_v15  ;;  %2323 = vrot.lane.b32.xlu0 %v3673_v44, %s3740_s30  ;;  %v2116_v24 = vpop.f32.mrb[58].mxu0 }
 0x406   : > { %3682 = vrsqrt.f32 %v2277_v43  ;;  %v2159_v46 = vsub.f32 %v2116_v24, %v2143_v52  ;;  %v2118_v4 = vpop.f32.mrb[59].mxu0  ;;  %v5063_v24 = vpop.permute.xlu1 %2415 }
 0x407   : > { %v3675_v13 = vpop.eup %3674  ;;  %3684 = vrsqrt.f32 %v2278_v23  ;;  %v2160_v29 = vsub.f32 %v2118_v4, %v2144_v56 }
 0x408   : > { %v3677_v49 = vpop.eup %3676  ;;  %v2279_v5 = vadd.f32 1e-05, %v2159_v46  ;;  %2325 = vrot.lane.b32.xlu1 %v3675_v13, %s3740_s30  ;;  %v5065_v46 = vpop.permute.xlu0 %2417 }
 0x409   : > { %v2280_v28 = vadd.f32 1e-05, %v2160_v29  ;;  %2327 = vrot.lane.b32.xlu0 %v3677_v49, %s3740_s30  ;;  %v2122_v32 = vpop.f32.mrb[60].mxu0 }
 0x40a   : > { %3686 = vrsqrt.f32 %v2279_v5  ;;  %v2161_v42 = vsub.f32 %v2122_v32, %v2145_v25  ;;  %v2124_v3 = vpop.f32.mrb[61].mxu0  ;;  %v5067_v4 = vpop.permute.xlu1 %2457 }
 0x40b   : > { %v3679_v35 = vpop.eup %3678  ;;  %3688 = vrsqrt.f32 %v2280_v28  ;;  %v2162_v45 = vsub.f32 %v2124_v3, %v2146_v38 }
 0x40c   : > { %v3681_v22 = vpop.eup %3680  ;;  %v2281_v6 = vadd.f32 1e-05, %v2161_v42  ;;  %2329 = vrot.lane.b32.xlu1 %v3679_v35, %s3740_s30  ;;  %v5069_v13 = vpop.permute.xlu0 %2459 }
 0x40d   : > { %v2282_v39 = vadd.f32 1e-05, %v2162_v45  ;;  %2331 = vrot.lane.b32.xlu0 %v3681_v22, %s3740_s30 }
 0x40e   : > { %3690 = vrsqrt.f32 %v2281_v6 }
 0x40f   : > { %3692 = vrsqrt.f32 %v2282_v39  ;;  %v2128_v48 = vpop.f32.mrb[62].mxu0 }
 0x410   : > { %v3683_v17 = vpop.eup %3682  ;;  %v2163_v47 = vsub.f32 %v2128_v48, %v2147_v20  ;;  %v2130_v61 = vpop.f32.mrb[63].mxu0 }
 0x411   : > { %v3685_v41 = vpop.eup %3684  ;;  %v2164_v36 = vsub.f32 %v2130_v61, %v2148_v40  ;;  %2333 = vrot.lane.b32.xlu1 %v3683_v17, %s3740_s30 }
 0x412   : > { %v2283_v15 = vadd.f32 1e-05, %v2163_v47  ;;  %2335 = vrot.lane.b32.xlu0 %v3685_v41, %s3740_s30 }
 0x413   : > { %v2284_v44 = vadd.f32 1e-05, %v2164_v36 }
 0x414   : > { %v3687_v52 = vpop.eup %3686  ;;  %3694 = vrsqrt.f32 %v2283_v15 }
 0x415   : > { %v3689_v63 = vpop.eup %3688  ;;  %3696 = vrsqrt.f32 %v2284_v44  ;;  %2337 = vrot.lane.b32.xlu1 %v3687_v52, %s3740_s30 }
 0x416   : > { %2339 = vrot.lane.b32.xlu0 %v3689_v63, %s3740_s30 }
 0x418   : > { %v3691_v18 = vpop.eup %3690 }
 0x419   : > { %v3693_v43 = vpop.eup %3692  ;;  %2341 = vrot.lane.b32.xlu1 %v3691_v18, %s3740_s30 }
 0x41a   : > { %2343 = vrot.lane.b32.xlu0 %v3693_v43, %s3740_s30 }
 0x41e   : > { %v3695_v56 = vpop.eup %3694 }
 0x41f   : > { %v3697_v23 = vpop.eup %3696  ;;  %2345 = vrot.lane.b32.xlu1 %v3695_v56, %s3740_s30 }
 0x420   : > { %2347 = vrot.lane.b32.xlu0 %v3697_v23, %s3740_s30 }
 0x43f   : > { %v2182_v29 = vpop.permute.xlu1 %2181 }
 0x440   : > { %v2184_v49 = vpop.permute.xlu0 %2183  ;;  %v2245_v48 = vsub.f32 %v4630_v59, %v2182_v29 }
 0x441   : > { %v2213_v17 = vsel %vm548_vm0, %v2182_v29, %v2184_v49  ;;  %v2247_v47 = vsub.f32 %v4793_v50, %v2184_v49  ;;  %v5102_v49 = vsel %vm548_vm0, %v5063_v24, %v5065_v46 }
 0x442   : > { %v2246_v63 = vsub.f32 %v4780_v55, %v2213_v17 }
 0x447   : > { %v2186_v25 = vpop.permute.xlu1 %2185 }
 0x448   : > { %v2188_v5 = vpop.permute.xlu0 %2187  ;;  %v2248_v18 = vsub.f32 %v4633_v2, %v2186_v25 }
 0x449   : > { %v2214_v15 = vsel %vm548_vm0, %v2186_v25, %v2188_v5  ;;  %v2250_v43 = vsub.f32 %v4813_v51, %v2188_v5  ;;  %v5109_v51 = vsel %vm548_vm0, %v5067_v4, %v5069_v13 }
 0x44a   : > { %v2249_v29 = vsub.f32 %v4797_v14, %v2214_v15 }
 0x44b   : > { %v2190_v38 = vpop.permute.xlu1 %2189 }
 0x44c   : > { %v2192_v28 = vpop.permute.xlu0 %2191  ;;  %v2251_v14 = vsub.f32 %v4646_v34, %v2190_v38 }
 0x44d   : > { %v2215_v5 = vsel %vm548_vm0, %v2190_v38, %v2192_v28 }
 0x44f   : > { %v2194_v32 = vpop.permute.xlu1 %2193 }
 0x450   : > { %v5071_v42 = vpop.permute.xlu0 %2195 }
 0x451   : > { %v2216_v15 = vsel %vm548_vm0, %v2194_v32, %v5071_v42 }
 0x453   : > { %v5073_v3 = vpop.permute.xlu1 %2197 }
 0x454   : > { %v5075_v35 = vpop.permute.xlu0 %2199 }
 0x457   : > { %v5077_v45 = vpop.permute.xlu1 %2201 }
 0x458   : > { %v5079_v22 = vpop.permute.xlu0 %2203 }
 0x45b   : > { %v5081_v6 = vpop.permute.xlu1 %2205 }
 0x45c   : > { %v5083_v39 = vpop.permute.xlu0 %2207 }
 0x45f   : > { %v5085_v20 = vpop.permute.xlu1 %2209 }
 0x460   : > { %v5087_v40 = vpop.permute.xlu0 %2211 }
 0x472   : > { %v2318_v61 = vpop.permute.xlu1 %2317 }
 0x473   : > { %v2381_v41 = vmul.f32 %v2318_v61, %v2245_v48  ;;  %v2320_v36 = vpop.permute.xlu0 %2319 }
 0x474   : > { %v2349_v44 = vsel %vm548_vm0, %v2318_v61, %v2320_v36  ;;  %v2383_v52 = vmul.f32 %v2320_v36, %v2247_v47  ;;  %v2253_v36 = vsub.f32 %v4821_v9, %v2192_v28 }
 0x475   : > { %v2423_v56 = vmul.f32 %v5063_v24, %v2381_v41  ;;  %v2382_v50 = vmul.f32 %v2349_v44, %v2246_v63 }
 0x476   : > { %v2322_v23 = vpop.permute.xlu1 %2321  ;;  %v2425_v47 = vmul.f32 %v5065_v46, %v2383_v52 }
 0x477   : > { %v2384_v48 = vmul.f32 %v2322_v23, %v2248_v18  ;;  %v2324_v61 = vpop.permute.xlu0 %2323  ;;  %v2465_v44 = vadd.f32 %v5067_v4, %v2423_v56  ;;  %v2424_v18 = vmul.f32 %v5102_v49, %v2382_v50  ;;  %v2252_v56 = vsub.f32 %v4824_v12, %v2215_v5 }
 0x478   : > { %v2350_v55 = vsel %vm548_vm0, %v2322_v23, %v2324_v61  ;;  %v2386_v25 = vmul.f32 %v2324_v61, %v2250_v43 }
 0x479   : > { %v2426_v17 = vmul.f32 %v5063_v24, %v2384_v48  ;;  %v2385_v41 = vmul.f32 %v2350_v55, %v2249_v29  ;;  %v2467_v29 = vadd.f32 %v5069_v13, %v2425_v47  ;;  %v2254_v55 = vsub.f32 %v4649_v31, %v2194_v32 }
 0x47a   : > { %v2428_v52 = vmul.f32 %v5065_v46, %v2386_v25  ;;  %v2326_v63 = vpop.permute.xlu1 %2325  ;;  %v2466_v12 = vadd.f32 %v5109_v51, %v2424_v18  ;;  %v2259_v18 = vsub.f32 %v4841_v58, %v5075_v35 }
 0x47b   : > { %v2468_v43 = vadd.f32 %v5067_v4, %v2426_v17  ;;  %v2427_v23 = vmul.f32 %v5102_v49, %v2385_v41  ;;  %v2387_v38 = vmul.f32 %v2326_v63, %v2251_v14  ;;  %v2328_v61 = vpop.permute.xlu0 %2327  ;;  %v2255_v17 = vsub.f32 %v4831_v19, %v2216_v15 }
 0x47c   : > { %v2470_v9 = vadd.f32 %v5069_v13, %v2428_v52  ;;  %v2351_v28 = vsel %vm548_vm0, %v2326_v63, %v2328_v61  ;;  %v2389_v48 = vmul.f32 %v2328_v61, %v2253_v36  ;;  %v2256_v14 = vsub.f32 %v4834_v8, %v5071_v42 }
 0x47d   : > { %v2497_v25 = vpack.c.bf16 %v2468_v43, %v2465_v44  ;;  %v2469_v50 = vadd.f32 %v5109_v51, %v2427_v23  ;;  %v2429_v47 = vmul.f32 %v5063_v24, %v2387_v38  ;;  %v2388_v52 = vmul.f32 %v2351_v28, %v2252_v56 }
 0x47e   : > { %v2330_v41 = vpop.permute.xlu1 %2329  ;;  %v2499_v34 = vpack.c.bf16 %v2470_v9, %v2467_v29  ;;  %v2431_v32 = vmul.f32 %v5065_v46, %v2389_v48  ;;  %v2257_v15 = vsub.f32 %v4655_v16, %v5073_v3  ;;  %v2217_v44 = vsel %vm548_vm0, %v5073_v3, %v5075_v35 }
 0x47f   : > { %v2390_v2 = vmul.f32 %v2330_v41, %v2254_v55  ;;  %v2332_v63 = vpop.permute.xlu0 %2331  ;;  %2589 = vrot.lane.b32.xlu1 %v2497_v25, %s3739_s23  ;;  %v2498_v42 = vpack.c.bf16 %v2469_v50, %v2466_v12  ;;  %v2471_v23 = vadd.f32 %v5067_v4, %v2429_v47  ;;  %v2218_v3 = vsel %vm548_vm0, %v5077_v45, %v5079_v22 }
 0x480   : > { %v2352_v5 = vsel %vm548_vm0, %v2330_v41, %v2332_v63  ;;  %v2392_v36 = vmul.f32 %v2332_v63, %v2256_v14  ;;  %2593 = vrot.lane.b32.xlu0 %v2499_v34, %s3739_s23  ;;  %v2430_v34 = vmul.f32 %v5102_v49, %v2388_v52  ;;  %v2473_v29 = vadd.f32 %v5069_v13, %v2431_v32 }
 0x481   : > { %v2432_v19 = vmul.f32 %v5063_v24, %v2390_v2  ;;  %v2391_v8 = vmul.f32 %v2352_v5, %v2255_v17  ;;  %v2258_v25 = vsub.f32 %v4844_v27, %v2217_v44  ;;  %v2260_v50 = vsub.f32 %v4658_v30, %v5077_v45 }
 0x482   : > { %v2434_v43 = vmul.f32 %v5065_v46, %v2392_v36  ;;  %v2262_v14 = vsub.f32 %v4854_v53, %v5079_v22  ;;  %v2472_v47 = vadd.f32 %v5109_v51, %v2430_v34  ;;  %v2261_v52 = vsub.f32 %v4851_v26, %v2218_v3 }
 0x483   : > { %v2474_v2 = vadd.f32 %v5067_v4, %v2432_v19  ;;  %v2433_v38 = vmul.f32 %v5102_v49, %v2391_v8  ;;  %2591 = vrot.lane.b32.xlu1 %v2498_v42, %s3739_s23  ;;  %v2334_v61 = vpop.permute.xlu1 %2333  ;;  %v2219_v26 = vsel %vm548_vm0, %v5081_v6, %v5083_v39  ;;  %v2265_v34 = vsub.f32 %v4864_v57, %v5083_v39 }
 0x484   : > { %v2476_v58 = vadd.f32 %v5069_v13, %v2434_v43  ;;  %v2393_v35 = vmul.f32 %v2334_v61, %v2257_v15  ;;  %v2336_v9 = vpop.permute.xlu0 %2335  ;;  %v2264_v3 = vsub.f32 %v4861_v54, %v2219_v26  ;;  %v2266_v57 = vsub.f32 %v4680_v0, %v5085_v20  ;;  %v2513_v26 = vld [vmem:[%s5536_s10 + $0x20] sm:$0xff] }
 0x485   : > { %v2353_v28 = vsel %vm548_vm0, %v2334_v61, %v2336_v9  ;;  %v2395_v48 = vmul.f32 %v2336_v9, %v2259_v18  ;;  %v2500_v56 = vpack.c.bf16 %v2474_v2, %v2471_v23  ;;  %v2475_v55 = vadd.f32 %v5109_v51, %v2433_v38 }
 0x486   : > { %v2502_v17 = vpack.c.bf16 %v2476_v58, %v2473_v29  ;;  %v2435_v63 = vmul.f32 %v5063_v24, %v2393_v35  ;;  %v2394_v12 = vmul.f32 %v2353_v28, %v2258_v25  ;;  %v2220_v35 = vsel %vm548_vm0, %v5085_v20, %v5087_v40 }
 0x487   : > { %2595 = vrot.lane.b32.xlu0 %v2500_v56, %s3739_s23  ;;  %v2338_v41 = vpop.permute.xlu1 %2337  ;;  %v2437_v27 = vmul.f32 %v5065_v46, %v2395_v48  ;;  %v2501_v53 = vpack.c.bf16 %v2475_v55, %v2472_v47  ;;  %v2268_v54 = vsub.f32 %v4871_v33, %v5087_v40  ;;  %v2263_v55 = vsub.f32 %v4678_v62, %v5081_v6 }
 0x488   : > { %v2396_v32 = vmul.f32 %v2338_v41, %v2260_v50  ;;  %v2340_v5 = vpop.permute.xlu0 %2339  ;;  %2599 = vrot.lane.b32.xlu1 %v2502_v17, %s3739_s23  ;;  %v2477_v15 = vadd.f32 %v5067_v4, %v2435_v63  ;;  %v2436_v44 = vmul.f32 %v5102_v49, %v2394_v12  ;;  %v2267_v25 = vsub.f32 %v4874_v1, %v2220_v35  ;;  %v3560_v35 = vld [vmem:[%s5537_s11 + $0x50] ss:$8 sps:$4 sm:$0xff]  }
 0x489   : > { %v2354_v45 = vsel %vm548_vm0, %v2338_v41, %v2340_v5  ;;  %v2398_v36 = vmul.f32 %v2340_v5, %v2262_v14  ;;  %v2479_v2 = vadd.f32 %v5069_v13, %v2437_v27  ;;  %v3741_v12 = vmov 0  }
 0x48a   : > { %v2438_v22 = vmul.f32 %v5063_v24, %v2396_v32  ;;  %v2397_v19 = vmul.f32 %v2354_v45, %v2261_v52  ;;  %v2478_v48 = vadd.f32 %v5109_v51, %v2436_v44  ;;  %2675 = vmatprep.mubr.bf16.mxu1 %v3741_v12  ;;  %3457 = vset.pattern.permute.xlu1 %v3741_v12  ;;  %v3548_v44 = vld [vmem:[%s5537_s11 + $0x10] ss:$8 sps:$4 sm:$0xff]  }
 0x48b   : > { %v2440_v8 = vmul.f32 %v5065_v46, %v2398_v36  ;;  %2597 = vrot.lane.b32.xlu0 %v2501_v53, %s3739_s23  ;;  %v2342_v42 = vpop.permute.xlu1 %2341 }
 0x48c   : > { %v2480_v18 = vadd.f32 %v5067_v4, %v2438_v22  ;;  %v2439_v43 = vmul.f32 %v5102_v49, %v2397_v19  ;;  %v2344_v23 = vpop.permute.xlu0 %2343  ;;  %v2399_v52 = vmul.f32 %v2342_v42, %v2263_v55  ;;  %3458 = vset.pattern.permute.xlu0 %v3741_v12  ;;  %v3572_v55 = vld [vmem:[%s5537_s11 + $0x90] ss:$8 sps:$4 sm:$0xff]  }
 0x48d   : > { %v2482_v38 = vadd.f32 %v5069_v13, %v2440_v8  ;;  %v2355_v61 = vsel %vm548_vm0, %v2342_v42, %v2344_v23  ;;  %v2401_v9 = vmul.f32 %v2344_v23, %v2265_v34  ;;  %v3547_v8 = vld [vmem:[%s5537_s11 + $0x4] ss:$8 sps:$4 sm:$0xff]   ;;  %v3550_v42 = vld [vmem:[%s5537_s11 + $0x14] ss:$8 sps:$4 sm:$0xff]   ;;  %v3551_v34 = vld [vmem:[%s5537_s11 + $0x20] ss:$8 sps:$4 sm:$0xff]  }
 0x48e   : > { %v2503_v29 = vpack.c.bf16 %v2480_v18, %v2477_v15  ;;  %v2481_v58 = vadd.f32 %v5109_v51, %v2439_v43  ;;  %v2400_v39 = vmul.f32 %v2355_v61, %v2264_v3  ;;  %v2441_v27 = vmul.f32 %v5063_v24, %v2399_v52  ;;  %2948 = vmatprep.subr.bf16.mxu0 %v3547_v8  ;;  %v2512_v15 = vld [vmem:[%s5536_s10 + $0x18] sm:$0xff]  ;;  %v2515_v18 = vld [vmem:[%s5536_s10 + $0x30] sm:$0xff]  ;;  %v3553_v43 = vld [vmem:[%s5537_s11 + $0x24] ss:$8 sps:$4 sm:$0xff]  }
 0x48f   : > { %v2505_v28 = vpack.c.bf16 %v2482_v38, %v2479_v2  ;;  %v2443_v20 = vmul.f32 %v5065_v46, %v2401_v9  ;;  %v2514_v23 = vld [vmem:[%s5536_s10 + $0x28] sm:$0xff]  ;;  %v3556_v2 = vld [vmem:[%s5537_s11 + $0x34] ss:$8 sps:$4 sm:$0xff]   ;;  %v3554_v61 = vld [vmem:[%s5537_s11 + $0x30] ss:$8 sps:$4 sm:$0xff]  }
 0x490   : > { %2601 = vrot.lane.b32.xlu1 %v2503_v29, %s3739_s23  ;;  %v2504_v14 = vpack.c.bf16 %v2481_v58, %v2478_v48  ;;  %v2442_v63 = vmul.f32 %v5102_v49, %v2400_v39  ;;  %v2516_v38 = vld [vmem:[%s5536_s10 + $0x38] sm:$0xff]  ;;  %v3559_v3 = vld [vmem:[%s5537_s11 + $0x44] ss:$8 sps:$4 sm:$0xff]   ;;  %v3557_v29 = vld [vmem:[%s5537_s11 + $0x40] ss:$8 sps:$4 sm:$0xff]  }
 0x491   : > { %2605 = vrot.lane.b32.xlu0 %v2505_v28, %s3739_s23  ;;  %v2346_v56 = vpop.permute.xlu1 %2345  ;;  %v2485_v32 = vadd.f32 %v5069_v13, %v2443_v20  ;;  %v3562_v58 = vld [vmem:[%s5537_s11 + $0x54] ss:$8 sps:$4 sm:$0xff]   ;;  %v3565_v9 = vld [vmem:[%s5537_s11 + $0x64] ss:$8 sps:$4 sm:$0xff]   ;;  %v3563_v28 = vld [vmem:[%s5537_s11 + $0x60] ss:$8 sps:$4 sm:$0xff]  }
 0x492   : > { %v2402_v50 = vmul.f32 %v2346_v56, %v2266_v57  ;;  %v2348_v17 = vpop.permute.xlu0 %2347  ;;  %v2484_v45 = vadd.f32 %v5109_v51, %v2442_v63  ;;  %v3568_v57 = vld [vmem:[%s5537_s11 + $0x74] ss:$8 sps:$4 sm:$0xff]   ;;  %v3566_v39 = vld [vmem:[%s5537_s11 + $0x70] ss:$8 sps:$4 sm:$0xff]   ;;  %v3571_v48 = vld [vmem:[%s5537_s11 + $0x84] ss:$8 sps:$4 sm:$0xff]  }
 0x493   : > { %v2356_v41 = vsel %vm548_vm0, %v2346_v56, %v2348_v17  ;;  %v2404_v47 = vmul.f32 %v2348_v17, %v2268_v54  ;;  %v3569_v54 = vld [vmem:[%s5537_s11 + $0x80] ss:$8 sps:$4 sm:$0xff]   ;;  %v3574_v56 = vld [vmem:[%s5537_s11 + $0x94] ss:$8 sps:$4 sm:$0xff]  }
 0x494   : > { %v2403_v33 = vmul.f32 %v2356_v41, %v2267_v25  ;;  %2603 = vrot.lane.b32.xlu1 %v2504_v14, %s3739_s23  ;;  %v2444_v1 = vmul.f32 %v5063_v24, %v2402_v50  ;;  %v2509_v24 = vld [vmem:[%s5536_s10] sm:$0xff] }
 0x495   : > { %v2446_v40 = vmul.f32 %v5065_v46, %v2404_v47  ;;  %v3577_v25 = vld [vmem:[%s5537_s11 + $0xa4] ss:$8 sps:$4 sm:$0xff]   ;;  %v3575_v50 = vld [vmem:[%s5537_s11 + $0xa0] ss:$8 sps:$4 sm:$0xff]  }
 0x496   : > { %v2445_v6 = vmul.f32 %v5102_v49, %v2403_v33  ;;  %v2486_v53 = vadd.f32 %v5067_v4, %v2444_v1  ;;  %v2483_v49 = vadd.f32 %v5067_v4, %v2441_v27  ;;  %v3545_v4 = vld [vmem:[%s5537_s11] ss:$8 sps:$4 sm:$0xff]  }
 0x497   : > { %v2488_v5 = vadd.f32 %v5069_v13, %v2446_v40  ;;  %v2510_v13 = vld [vmem:[%s5536_s10 + $0x8] sm:$0xff]  ;;  %2949 = vmatpush1.bf16.msra.mxu0 %v3545_v4  ;;  %v3578_v4 = vld [vmem:[%s5537_s11 + $0xb0] ss:$8 sps:$4 sm:$0xff]  }
 0x498   : > { %v2487_v46 = vadd.f32 %v5109_v51, %v2445_v6  ;;  %v2506_v19 = vpack.c.bf16 %v2486_v53, %v2483_v49  ;;  %v2511_v51 = vld [vmem:[%s5536_s10 + $0x10] sm:$0xff]  ;;  %2950 = vmatprep.subr.bf16.mxu0 %v3550_v42  ;;  %v3581_v8 = vld [vmem:[%s5537_s11 + $0xc0] ss:$8 sps:$4 sm:$0xff]  }
 0x499   : > { %v2508_v36 = vpack.c.bf16 %v2488_v5, %v2485_v32  ;;  %v2782_v42 = vld [vmem:[%s5537_s11 + $0xd0] sm:$0xff] }
 0x49a   : > { %v2507_v22 = vpack.c.bf16 %v2487_v46, %v2484_v45 }
 0x49b   : > { %2611 = vrot.lane.b32.xlu1 %v2508_v36, %s3739_s23  ;;  %2951 = vmatpush1.bf16.msra.mxu0 %v3548_v44  ;;  %v3295_v44 = vcombine.low %v2782_v42, %v2782_v42 }
 0x49c   : > { %2609 = vrot.lane.b32.xlu0 %v2507_v22, %s3739_s23  ;;  %2952 = vmatprep.subr.bf16.mxu0 %v3553_v43  ;;  %v3714_v43 = vld [vmem:[%s5532_s6] sm:$0xf] }
 0x49f   : > { %2519 = vperm.xlu1 %3457, %v2509_v24   ;;  %2953 = vmatpush1.bf16.msra.mxu0 %v3551_v34  ;;  %v3542_v24 = vld [vmem:[%s5535_s9 + $0x8] sm:$0xff]  }
 0x4a0   : > { %2607 = vrot.lane.b32.xlu0 %v2506_v19, %s3739_s23  ;;  %2954 = vmatprep.subr.bf16.mxu0 %v3556_v2  ;;  %v3541_v19 = vld [vmem:[%s5535_s9] sm:$0xff]  }
 0x4a3   : > { %2529 = vperm.xlu1 %3457, %v2511_v51   ;;  %2955 = vmatpush1.bf16.msra.mxu0 %v3554_v61  ;;  %v3544_v51 = vld [vmem:[%s5535_s9 + $0x18] sm:$0xff]  }
 0x4a4   : > { %2524 = vperm.xlu0 %3458, %v2510_v13   ;;  %2956 = vmatprep.subr.bf16.mxu0 %v3559_v3  ;;  %v3543_v13 = vld [vmem:[%s5535_s9 + $0x10] sm:$0xff]  }
 0x4a7   : > { %2534 = vperm.xlu1 %3457, %v2512_v15   ;;  %2957 = vmatpush1.bf16.msra.mxu0 %v3557_v29  ;;  %v3296_v15 = vcombine.high %v2782_v42, %v2782_v42 }
 0x4a8   : > { %2539 = vperm.xlu0 %3458, %v2513_v26   ;;  %2958 = vmatprep.subr.bf16.mxu0 %v3562_v58  ;;  %v3580_v26 = vld [vmem:[%s5537_s11 + $0xb4] ss:$8 sps:$4 sm:$0xff]  }
 0x4ab   : > { %2544 = vperm.xlu1 %3457, %v2514_v23   ;;  %2959 = vmatpush1.bf16.msra.mxu0 %v3560_v35  ;;  %v977_v23 = vrot.slane %v3714_v43, %v4351_v11 }
 0x4ac   : > { %2549 = vperm.xlu0 %3458, %v2515_v18   ;;  %2960 = vmatprep.subr.bf16.mxu0 %v3565_v9  ;;  %v2943_v18 = vsel %vm1276_vm1, %v3295_v44, 0 }
 0x4ad   : > { %v5355_v34 = vadd.f32 %v4579_v60, %v977_v23  ;;  %v5358_v2 = vadd.f32 %v4582_v37, %v977_v23  ;;  %v5366_v29 = vadd.f32 %v4585_v10, %v977_v23  ;;  %v5370_v35 = vadd.f32 %v4590_v7, %v977_v23 }
 0x4ae   : > { %v5379_v10 = vadd.f32 %v4601_v21, %v977_v23 }
 0x4af   : > { %2554 = vperm.xlu1 %3457, %v2516_v38   ;;  %2961 = vmatpush1.bf16.msra.mxu0 %v3563_v28  ;;  %v1435_v38 = vmul.f32 %v5355_v34, %v5355_v34  ;;  %v1439_v61 = vmul.f32 %v5358_v2, %v5358_v2  ;;  %v1443_v37 = vmul.f32 %v5366_v29, %v5366_v29 }
 0x4b0   : > { %2962 = vmatprep.subr.bf16.mxu0 %v3568_v57  ;;  %v1447_v28 = vmul.f32 %v5370_v35, %v5370_v35 }
 0x4b1   : > { %v1467_v3 = vmul.f32 %v1435_v38, %v5355_v34  ;;  %v1471_v58 = vmul.f32 %v1439_v61, %v5358_v2 }
 0x4b2   : > { %v1479_v7 = vmul.f32 %v1447_v28, %v5370_v35 }
 0x4b3   : > { %2963 = vmatpush1.bf16.msra.mxu0 %v3566_v39  ;;  %v1499_v60 = vmul.f32 0.044715, %v1467_v3  ;;  %v1503_v9 = vmul.f32 0.044715, %v1471_v58  ;;  %v1475_v39 = vmul.f32 %v1443_v37, %v5366_v29 }
 0x4b4   : > { %2964 = vmatprep.subr.bf16.mxu0 %v3571_v48 }
 0x4b5   : > { %v1531_v57 = vadd.f32 %v1499_v60, %v5355_v34  ;;  %v1535_v48 = vadd.f32 %v1503_v9, %v5358_v2 }
 0x4b7   : > { %2965 = vmatpush1.bf16.msra.mxu0 %v3569_v54  ;;  %v5549_v54 = vld [vmem:[#allocation3_spill] sm:$0xff] }
 0x4b8   : > { %2966 = vmatprep.subr.bf16.mxu0 %v3574_v56  ;;  %v5384_v56 = vadd.f32 %v5549_v54, %v977_v23 }
 0x4bb   : > { %2967 = vmatpush1.bf16.msra.mxu0 %v3572_v55  ;;  %v1563_v55 = vmul.f32 0.7978846, %v1531_v57 }
 0x4bc   : > { %2968 = vmatprep.subr.bf16.mxu0 %v3577_v25  ;;  %v1507_v25 = vmul.f32 0.044715, %v1475_v39 }
 0x4bd   : > { %3698 = vtanh.f32 %v1563_v55 }
 0x4be   : > { %v1539_v21 = vadd.f32 %v1507_v25, %v5366_v29 }
 0x4bf   : > { %2969 = vmatpush1.bf16.msra.mxu0 %v3575_v50  ;;  %v1451_v50 = vmul.f32 %v5379_v10, %v5379_v10 }
 0x4c0   : > { %2970 = vmatprep.subr.bf16.mxu0 %v3580_v26 }
 0x4c3   : > { %2971 = vmatpush1.bf16.msra.mxu0 %v3578_v4 }
 0x4f1   : > { %v2590_v17 = vpop.permute.xlu1 %2589 }
 0x4f2   : > { %v2594_v14 = vpop.permute.xlu0 %2593 }
 0x4f5   : > { %v2592_v20 = vpop.permute.xlu1 %2591 }
 0x4f6   : > { %v2614_v41 = vsel %vm1891_vm2, %v2590_v17, %v2592_v20  ;;  %v2615_v47 = vsel %vm1891_vm2, %v2592_v20, %v2594_v14  ;;  %v1567_v17 = vmul.f32 0.7978846, %v1535_v48  ;;  %v1511_v14 = vmul.f32 0.044715, %v1479_v7 }
 0x4f7   : > { %2643 = vmatprep.subr.bf16.mxu1 %v2615_v47  ;;  %v1455_v20 = vmul.f32 %v5384_v56, %v5384_v56  ;;  %v5550_v47 = vld [vmem:[#allocation4_spill] sm:$0xff] }
 0x4f8   : > { %2644 = vmatpush1.bf16.msra.mxu1 %v2614_v41  ;;  %v1483_v41 = vmul.f32 %v1451_v50, %v5379_v10  ;;  %3700 = vtanh.f32 %v1567_v17 }
 0x4f9   : > { %v2596_v52 = vpop.permute.xlu0 %2595 }
 0x4fa   : > { %v2600_v63 = vpop.permute.xlu1 %2599 }
 0x4fd   : > { %v2598_v33 = vpop.permute.xlu0 %2597 }
 0x4fe   : > { %v2616_v40 = vsel %vm1891_vm2, %v2596_v52, %v2598_v33  ;;  %v2617_v1 = vsel %vm1891_vm2, %v2598_v33, %v2600_v63  ;;  %v5393_v52 = vadd.f32 %v5550_v47, %v977_v23  ;;  %v1543_v63 = vadd.f32 %v1511_v14, %v5370_v35 }
 0x4ff   : > { %2645 = vmatprep.subr.bf16.mxu1 %v2617_v1  ;;  %v1487_v33 = vmul.f32 %v1455_v20, %v5384_v56 }
 0x500   : > { %2646 = vmatpush1.bf16.msra.mxu1 %v2616_v40  ;;  %v5551_v40 = vld [vmem:[#allocation5_spill] sm:$0xff] }
 0x501   : > { %v5398_v1 = vadd.f32 %v5551_v40, %v977_v23 }
 0x502   : > { %v2602_v6 = vpop.permute.xlu1 %2601 }
 0x503   : > { %v2606_v32 = vpop.permute.xlu0 %2605 }
 0x506   : > { %v2604_v5 = vpop.permute.xlu1 %2603 }
 0x507   : > { %v2618_v27 = vsel %vm1891_vm2, %v2602_v6, %v2604_v5  ;;  %v2619_v45 = vsel %vm1891_vm2, %v2604_v5, %v2606_v32  ;;  %v1571_v6 = vmul.f32 0.7978846, %v1539_v21  ;;  %v1515_v32 = vmul.f32 0.044715, %v1483_v41 }
 0x508   : > { %2647 = vmatprep.subr.bf16.mxu1 %v2619_v45  ;;  %v1459_v5 = vmul.f32 %v5393_v52, %v5393_v52  ;;  %v1519_v45 = vmul.f32 0.044715, %v1487_v33 }
 0x509   : > { %2648 = vmatpush1.bf16.msra.mxu1 %v2618_v27  ;;  %v1575_v27 = vmul.f32 0.7978846, %v1543_v63  ;;  %3702 = vtanh.f32 %v1571_v6  ;;  %v5552_v6 = vld [vmem:[#allocation6_spill] sm:$0xff] }
 0x50b   : > { %3704 = vtanh.f32 %v1575_v27 }
 0x50d   : > { %v2612_v46 = vpop.permute.xlu1 %2611 }
 0x50e   : > { %v2610_v36 = vpop.permute.xlu0 %2609 }
 0x50f   : > { %v2621_v53 = vsel %vm1891_vm2, %v2610_v36, %v2612_v46  ;;  %v1463_v46 = vmul.f32 %v5398_v1, %v5398_v1 }
 0x510   : > { %2649 = vmatprep.subr.bf16.mxu1 %v2621_v53  ;;  %v1491_v53 = vmul.f32 %v1459_v5, %v5393_v52 }
 0x512   : > { %v2608_v22 = vpop.permute.xlu0 %2607 }
 0x513   : > { %v2620_v49 = vsel %vm1891_vm2, %v2608_v22, %v2610_v36  ;;  %v1547_v36 = vadd.f32 %v1515_v32, %v5379_v10  ;;  %v3699_v22 = vpop.eup %3698 }
 0x514   : > { %2650 = vmatpush1.bf16.msra.mxu1 %v2620_v49  ;;  %v1551_v49 = vadd.f32 %v1519_v45, %v5384_v56  ;;  %v1627_v4 = vadd.f32 1.0, %v3699_v22 }
 0x516   : > { %v1583_v26 = vmul.f32 0.7978846, %v1551_v49  ;;  %v1659_v44 = vmul.f32 0.5, %v1627_v4 }
 0x517   : > { %3265 = vmatmul.mubr.msk.bf16.vlgmr.msra.gmra.mrb[32].mxu1 %vm2630_vm3, %v3541_v19  ;;  %v1495_v19 = vmul.f32 %v1463_v46, %v5398_v1 }
 0x518   : > { %2685 = vmatprep.mubr.bf16.mxu1 %v3741_v12  ;;  %v1691_v57 = vmul.f32 %v1659_v44, %v5355_v34 }
 0x51f   : > { %3266 = vmatmul.mubr.msk.bf16.gmra.mrb[36].mxu1 %vm2630_vm3, %v3542_v24  ;;  %v3701_v24 = vpop.eup %3700 }
 0x520   : > { %2695 = vmatprep.mubr.bf16.mxu1 %v3741_v12 }
 0x523   : > { %v2525_v37 = vpop.permute.xlu0 %2524 }
 0x527   : > { %3267 = vmatmul.mubr.msk.bf16.gmra.mrb[40].mxu1 %vm2630_vm3, %v3543_v13  ;;  %v1579_v13 = vmul.f32 0.7978846, %v1547_v36 }
 0x528   : > { %2705 = vmatprep.mubr.bf16.mxu1 %v3741_v12  ;;  %v3583_v12 = vld [vmem:[%s5537_s11 + $0xc4] ss:$8 sps:$4 sm:$0xff]  }
 0x529   : > { %2972 = vmatprep.subr.bf16.mxu0 %v3583_v12  ;;  %v1631_v12 = vadd.f32 1.0, %v3701_v24  ;;  %3706 = vtanh.f32 %v1579_v13 }
 0x52a   : > { %2973 = vmatpush1.bf16.msra.mxu0 %v3581_v8  ;;  %v1527_v8 = vmul.f32 0.044715, %v1495_v19  ;;  %3708 = vtanh.f32 %v1583_v26 }
 0x52b   : > { %3297 = vmatprep.subr.msk.bf16.mxu0 %vm1276_vm1, %v3296_v15  ;;  %v2520_v15 = vpop.permute.xlu1 %2519  ;;  %v1663_v3 = vmul.f32 0.5, %v1631_v12 }
 0x52c   : > { %v1559_v43 = vadd.f32 %v1527_v8, %v5398_v1 }
 0x52d   : > { %v1695_v20 = vmul.f32 %v1663_v3, %v5358_v2 }
 0x52e   : > { %2975 = vmatpush1.bf16.msra.mxu0 %v2943_v18  ;;  %v3703_v18 = vpop.eup %3702  ;;  %v1591_v55 = vmul.f32 0.7978846, %v1559_v43 }
 0x52f   : > { %3268 = vmatmul.mubr.msk.bf16.gmra.mrb[44].mxu1 %vm2630_vm3, %v3544_v51  ;;  %v1523_v51 = vmul.f32 0.044715, %v1491_v53  ;;  %v3705_v58 = vpop.eup %3704  ;;  %v1635_v54 = vadd.f32 1.0, %v3703_v18  ;;  %v2530_v25 = vpop.permute.xlu1 %2529 }
 0x530   : > { %v1639_v41 = vadd.f32 1.0, %v3705_v58 }
 0x531   : > { %v1555_v42 = vadd.f32 %v1523_v51, %v5393_v52  ;;  %v1667_v33 = vmul.f32 0.5, %v1635_v54 }
 0x532   : > { %v1671_v36 = vmul.f32 0.5, %v1639_v41 }
 0x533   : > { %v1587_v60 = vmul.f32 0.7978846, %v1555_v42  ;;  %v3707_v40 = vpop.eup %3706  ;;  %v2535_v22 = vpop.permute.xlu1 %2534  ;;  %v1699_v24 = vmul.f32 %v1667_v33, %v5366_v29  ;;  %v5553_v29 = vld [vmem:[#allocation7_spill] sm:$0xff] }
 0x534   : > { %v3709_v53 = vpop.eup %3708  ;;  %v1643_v26 = vadd.f32 1.0, %v3707_v40  ;;  %v1703_v42 = vmul.f32 %v1671_v36, %v5370_v35 }
 0x535   : > { %3710 = vtanh.f32 %v1587_v60  ;;  %v1647_v44 = vadd.f32 1.0, %v3709_v53 }
 0x536   : > { %3712 = vtanh.f32 %v1591_v55 }
 0x5ea   : > { %v2677_v23 = vpop.f32.mrb[32].mxu1 }
 0x5eb   : > { %v2678_v38 = vadd.f32 %v2677_v23, %v2520_v15  ;;  %v2679_v61 = vpop.f32.mrb[33].mxu1  ;;  %v1675_v23 = vmul.f32 0.5, %v1643_v26 }
 0x5ec   : > { %v2680_v9 = vadd.f32 %v2679_v61, %v2520_v15  ;;  %v2681_v28 = vpop.f32.mrb[34].mxu1  ;;  %v2540_v61 = vpop.permute.xlu0 %2539 }
 0x5ed   : > { %v2716_v39 = vadd.f32 1.0, %v2678_v38  ;;  %v2682_v48 = vadd.f32 %v2681_v28, %v2525_v37  ;;  %v2683_v7 = vpop.f32.mrb[35].mxu1  ;;  %v3711_v38 = vpop.eup %3710  ;;  %v1679_v28 = vmul.f32 0.5, %v1647_v44  ;;  %v1707_v55 = vmul.f32 %v1675_v23, %v5379_v10  ;;  %v2783_v44 = vld [vmem:[%s5538_s12] sm:$0x3] }
 0x5ee   : > { %v2717_v50 = vadd.f32 1.0, %v2680_v9  ;;  %v2684_v17 = vadd.f32 %v2683_v7, %v2525_v37 }
 0x5ef   : > { %v2732_v14 = vmul.f32 %v2716_v39, %v1691_v57  ;;  %v2718_v21 = vadd.f32 1.0, %v2682_v48  ;;  %v3713_v39 = vpop.eup %3712  ;;  %v2545_v48 = vpop.permute.xlu1 %2544  ;;  %v1711_v41 = vmul.f32 %v1679_v28, %v5384_v56 }
 0x5f0   : > { %v2719_v47 = vadd.f32 1.0, %v2684_v17  ;;  %v2733_v34 = vmul.f32 %v2717_v50, %v4630_v59 }
 0x5f1   : > { %v2734_v63 = vmul.f32 %v2718_v21, %v1695_v20 }
 0x5f2   : > { %v2735_v32 = vmul.f32 %v2719_v47, %v5552_v6  ;;  %v2687_v5 = vpop.f32.mrb[36].mxu1  ;;  %v2550_v6 = vpop.permute.xlu0 %2549 }
 0x5f3   : > { %v2748_v27 = vpack.c.bf16 %v2734_v63, %v2732_v14  ;;  %v2688_v45 = vadd.f32 %v2687_v5, %v2530_v25  ;;  %v2689_v46 = vpop.f32.mrb[37].mxu1  ;;  %v1651_v14 = vadd.f32 1.0, %v3711_v38  ;;  %v1655_v63 = vadd.f32 1.0, %v3713_v39  ;;  %v2555_v53 = vpop.permute.xlu1 %2554  ;;  %v3037_v38 = vld [vmem:[%s5443_s14] sm:$0xff] }
 0x5f4   : > { %v2749_v2 = vpack.c.bf16 %v2735_v32, %v2733_v34  ;;  %v2690_v49 = vadd.f32 %v2689_v46, %v2530_v25  ;;  %v2691_v19 = vpop.f32.mrb[38].mxu1 }
 0x5f5   : > { %v2720_v13 = vadd.f32 1.0, %v2688_v45  ;;  %v2692_v51 = vadd.f32 %v2691_v19, %v2535_v22  ;;  %v2693_v4 = vpop.f32.mrb[39].mxu1  ;;  %v1683_v34 = vmul.f32 0.5, %v1651_v14  ;;  %v1687_v46 = vmul.f32 0.5, %v1655_v63 }
 0x5f6   : > { %v2721_v8 = vadd.f32 1.0, %v2690_v49  ;;  %v2694_v59 = vadd.f32 %v2693_v4, %v2535_v22  ;;  %3298 = vmatprep.mubr.msk.bf16.mxu0 %vm548_vm0, %v2749_v2 }
 0x5f7   : > { %v2736_v12 = vmul.f32 %v2720_v13, %v1699_v24  ;;  %v2722_v15 = vadd.f32 1.0, %v2692_v51  ;;  %2981 = vmatmul.mubr.bf16.vlgmr.msra.gmra.mrb[64].mxu0 %v2748_v27  ;;  %v1715_v49 = vmul.f32 %v1683_v34, %v5393_v52  ;;  %v3042_v34 = vld [vmem:[%s5443_s14 + $0x28] sm:$0xff] }
 0x5f8   : > { %v2723_v18 = vadd.f32 1.0, %v2694_v59  ;;  %v2737_v3 = vmul.f32 %v2721_v8, %v5553_v29  ;;  %v3715_v29 = vld [vmem:[%s3921_s28] sm:$0xff] }
 0x5f9   : > { %v2738_v43 = vmul.f32 %v2722_v15, %v1703_v42 }
 0x5fa   : > { %v2739_v58 = vmul.f32 %v2723_v18, %v4649_v31  ;;  %v2697_v60 = vpop.f32.mrb[40].mxu1  ;;  %v5554_v18 = vld [vmem:[#allocation2_spill] sm:$0xff] }
 0x5fb   : > { %v2698_v37 = vadd.f32 %v2697_v60, %v2540_v61  ;;  %v2699_v9 = vpop.f32.mrb[41].mxu1  ;;  %v2750_v57 = vpack.c.bf16 %v2738_v43, %v2736_v12  ;;  %v5437_v43 = vrot.slane %v2783_v44, %v5554_v18  ;;  %v3047_v18 = vld [vmem:[%s5443_s14 + $0x50] sm:$0xff] }
 0x5fc   : > { %v2751_v35 = vpack.c.bf16 %v2739_v58, %v2737_v3  ;;  %v2700_v7 = vadd.f32 %v2699_v9, %v2540_v61  ;;  %v2701_v54 = vpop.f32.mrb[42].mxu1  ;;  %v3038_v58 = vld [vmem:[%s5443_s14 + $0x8] sm:$0xff] }
 0x5fd   : > { %v2724_v25 = vadd.f32 1.0, %v2698_v37  ;;  %v2702_v50 = vadd.f32 %v2701_v54, %v2545_v48  ;;  %v2703_v17 = vpop.f32.mrb[43].mxu1  ;;  %v3716_v9 = vld [vmem:[%s3921_s28 + $0x8] sm:$0xff]  ;;  %v3040_v54 = vld [vmem:[%s5443_s14 + $0x18] sm:$0xff] }
 0x5fe   : > { %v2725_v20 = vadd.f32 1.0, %v2700_v7  ;;  %v2704_v21 = vadd.f32 %v2703_v17, %v2545_v48  ;;  %3299 = vmatprep.mubr.msk.bf16.mxu0 %vm548_vm0, %v2751_v35  ;;  %v3717_v35 = vld [vmem:[%s3921_s28 + $0x10] sm:$0xff] }
 0x5ff   : > { %v2740_v31 = vmul.f32 %v2724_v25, %v1707_v55  ;;  %v2726_v47 = vadd.f32 1.0, %v2702_v50  ;;  %2991 = vmatmul.mubr.bf16.gmra.mrb[68].mxu0 %v2750_v57  ;;  %v3039_v57 = vld [vmem:[%s5443_s14 + $0x10] sm:$0xff]  ;;  %v3718_v25 = vld [vmem:[%s3921_s28 + $0x18] sm:$0xff] }
 0x600   : > { %v2727_v33 = vadd.f32 1.0, %v2704_v21  ;;  %v2741_v10 = vmul.f32 %v2725_v20, %v4655_v16 }
 0x601   : > { %v2742_v40 = vmul.f32 %v2726_v47, %v1711_v41  ;;  %v3041_v41 = vld [vmem:[%s5443_s14 + $0x20] sm:$0xff] }
 0x602   : > { %v2743_v32 = vmul.f32 %v2727_v33, %v4658_v30  ;;  %v2707_v5 = vpop.f32.mrb[44].mxu1  ;;  %v1719_v30 = vmul.f32 %v1687_v46, %v5398_v1  ;;  %v5434_v1 = vrot.slane %v2783_v44, %v4351_v11  ;;  %v3719_v33 = vld [vmem:[%s3921_s28 + $0x20] sm:$0xff] }
 0x603   : > { %v2708_v27 = vadd.f32 %v2707_v5, %v2550_v6  ;;  %v2709_v45 = vpop.f32.mrb[45].mxu1  ;;  %v2752_v36 = vpack.c.bf16 %v2742_v40, %v2740_v31 }
 0x604   : > { %v2753_v22 = vpack.c.bf16 %v2743_v32, %v2741_v10  ;;  %v2710_v2 = vadd.f32 %v2709_v45, %v2550_v6  ;;  %v2711_v56 = vpop.f32.mrb[46].mxu1  ;;  %v3720_v32 = vld [vmem:[%s3921_s28 + $0x28] sm:$0xff] }
 0x605   : > { %v2728_v19 = vadd.f32 1.0, %v2708_v27  ;;  %v2712_v24 = vadd.f32 %v2711_v56, %v2555_v53  ;;  %v2713_v13 = vpop.f32.mrb[47].mxu1  ;;  %v3043_v27 = vld [vmem:[%s5443_s14 + $0x30] sm:$0xff]  ;;  %v3722_v56 = vld [vmem:[%s3921_s28 + $0x38] sm:$0xff] }
 0x606   : > { %v2729_v51 = vadd.f32 1.0, %v2710_v2  ;;  %v2714_v4 = vadd.f32 %v2713_v13, %v2555_v53  ;;  %3300 = vmatprep.mubr.msk.bf16.mxu0 %vm548_vm0, %v2753_v22  ;;  %v3044_v22 = vld [vmem:[%s5443_s14 + $0x38] sm:$0xff] }
 0x607   : > { %v2744_v16 = vmul.f32 %v2728_v19, %v1715_v49  ;;  %v2730_v26 = vadd.f32 1.0, %v2712_v24  ;;  %3001 = vmatmul.mubr.bf16.gmra.mrb[72].mxu0 %v2752_v36  ;;  %v3721_v36 = vld [vmem:[%s3921_s28 + $0x30] sm:$0xff] }
 0x608   : > { %v2731_v8 = vadd.f32 1.0, %v2714_v4  ;;  %v2745_v12 = vmul.f32 %v2729_v51, %v4678_v62 }
 0x609   : > { %v2746_v59 = vmul.f32 %v2730_v26, %v1719_v30 }
 0x60a   : > { %v2747_v52 = vmul.f32 %v2731_v8, %v4680_v0  ;;  %v3723_v8 = vld [vmem:[%s3921_s28 + $0x40] sm:$0xff] }
 0x60b   : > { %v2754_v42 = vpack.c.bf16 %v2746_v59, %v2744_v16  ;;  %v3045_v16 = vld [vmem:[%s5443_s14 + $0x40] sm:$0xff] }
 0x60c   : > { %v2755_v15 = vpack.c.bf16 %v2747_v52, %v2745_v12  ;;  %v3046_v12 = vld [vmem:[%s5443_s14 + $0x48] sm:$0xff] }
 0x60e   : > { %3301 = vmatprep.mubr.msk.bf16.mxu0 %vm548_vm0, %v2755_v15  ;;  %v3724_v15 = vld [vmem:[%s3921_s28 + $0x48] sm:$0xff] }
 0x60f   : > { %3011 = vmatmul.mubr.bf16.gmra.mrb[76].mxu0 %v2754_v42 }
 0x6ca   : > { %v2982_v62 = vpop.f32.mrb[64].mxu0 }
 0x6cb   : > { %v2983_v0 = vadd.f32 %v2982_v62, %v5434_v1  ;;  %v2984_v23 = vpop.f32.mrb[65].mxu0 }
 0x6cc   : > { %v2985_v11 = vadd.f32 %v2984_v23, %v5437_v43  ;;  %v2986_v61 = vpop.f32.mrb[66].mxu0  ;;  %v3725_v23 = vld [vmem:[%s3921_s28 + $0x50] sm:$0xff] }
 0x6cd   : > { %v3021_v3 = vadd.f32 %v3715_v29, %v2983_v0  ;;  %v2987_v60 = vadd.f32 %v2986_v61, %v5434_v1  ;;  %v2988_v37 = vpop.f32.mrb[67].mxu0  ;;  %v3726_v29 = vld [vmem:[%s3921_s28 + $0x58] sm:$0xff] }
 0x6ce   : > { %v3022_v28 = vadd.f32 %v3716_v9, %v2985_v11  ;;  %v2989_v39 = vadd.f32 %v2988_v37, %v5437_v43  ;;  %v3048_v11 = vld [vmem:[%s5443_s14 + $0x58] sm:$0xff] }
 0x6cf   : > { %v3053_v48 = vadd.f32 %v3037_v38, %v3021_v3  ;;  %v3023_v7 = vadd.f32 %v3717_v35, %v2987_v60  ;;  %v3727_v35 = vld [vmem:[%s3921_s28 + $0x60] sm:$0xff] }
 0x6d0   : > { %v3054_v55 = vadd.f32 %v3038_v58, %v3022_v28  ;;  %v3024_v50 = vadd.f32 %v3718_v25, %v2989_v39 }
 0x6d1   : > { %3069 = vst [vmem:[%s5455_s18] sm:$0xff] %v3053_v48  ;;  %v3055_v17 = vadd.f32 %v3039_v57, %v3023_v7  ;;  %v3049_v57 = vld [vmem:[%s5443_s14 + $0x60] sm:$0xff] }
 0x6d2   : > { %3070 = vst.msk [vmem:[%s5455_s18 + $0x8] sm:$0xff] %vm548_vm0, %v3054_v55  ;;  %v3056_v14 = vadd.f32 %v3040_v54, %v3024_v50  ;;  %v2992_v20 = vpop.f32.mrb[68].mxu0  ;;  %v3050_v54 = vld [vmem:[%s5443_s14 + $0x68] sm:$0xff] }
 0x6d3   : > { %3071 = vst [vmem:[%s5455_s18 + $0x10] sm:$0xff] %v3055_v17  ;;  %v2993_v21 = vadd.f32 %v2992_v20, %v5434_v1  ;;  %v2994_v31 = vpop.f32.mrb[69].mxu0  ;;  %v3728_v50 = vld [vmem:[%s3921_s28 + $0x68] sm:$0xff] }
 0x6d4   : > { %3072 = vst.msk [vmem:[%s5455_s18 + $0x18] sm:$0xff] %vm548_vm0, %v3056_v14  ;;  %v2995_v47 = vadd.f32 %v2994_v31, %v5437_v43  ;;  %v2996_v63 = vpop.f32.mrb[70].mxu0  ;;  %v3051_v14 = vld [vmem:[%s5443_s14 + $0x70] sm:$0xff] }
 0x6d5   : > { %v3025_v40 = vadd.f32 %v3719_v33, %v2993_v21  ;;  %v2997_v6 = vadd.f32 %v2996_v63, %v5434_v1  ;;  %v2998_v10 = vpop.f32.mrb[71].mxu0  ;;  %v3729_v31 = vld [vmem:[%s3921_s28 + $0x70] sm:$0xff]  ;;  %v3730_v33 = vld [vmem:[%s3921_s28 + $0x78] sm:$0xff] }
 0x6d6   : > { %v3026_v5 = vadd.f32 %v3720_v32, %v2995_v47  ;;  %v2999_v45 = vadd.f32 %v2998_v10, %v5437_v43  ;;  %v3052_v47 = vld [vmem:[%s5443_s14 + $0x78] sm:$0xff] }
 0x6d7   : > { %v3057_v46 = vadd.f32 %v3041_v41, %v3025_v40  ;;  %v3027_v53 = vadd.f32 %v3721_v36, %v2997_v6 }
 0x6d8   : > { %v3058_v2 = vadd.f32 %v3042_v34, %v3026_v5  ;;  %v3028_v49 = vadd.f32 %v3722_v56, %v2999_v45 }
 0x6d9   : > { %3073 = vst [vmem:[%s5455_s18 + $0x20] sm:$0xff] %v3057_v46  ;;  %v3059_v19 = vadd.f32 %v3043_v27, %v3027_v53 }
 0x6da   : > { %3074 = vst.msk [vmem:[%s5455_s18 + $0x28] sm:$0xff] %vm548_vm0, %v3058_v2  ;;  %v3060_v24 = vadd.f32 %v3044_v22, %v3028_v49  ;;  %v3002_v13 = vpop.f32.mrb[72].mxu0 }
 0x6db   : > { %3075 = vst [vmem:[%s5455_s18 + $0x30] sm:$0xff] %v3059_v19  ;;  %v3003_v51 = vadd.f32 %v3002_v13, %v5434_v1  ;;  %v3004_v4 = vpop.f32.mrb[73].mxu0 }
 0x6dc   : > { %3076 = vst.msk [vmem:[%s5455_s18 + $0x38] sm:$0xff] %vm548_vm0, %v3060_v24  ;;  %v3005_v30 = vadd.f32 %v3004_v4, %v5437_v43  ;;  %v3006_v26 = vpop.f32.mrb[74].mxu0 }
 0x6dd   : > { %v3029_v59 = vadd.f32 %v3723_v8, %v3003_v51  ;;  %v3007_v52 = vadd.f32 %v3006_v26, %v5434_v1  ;;  %v3008_v42 = vpop.f32.mrb[75].mxu0 }
 0x6de   : > { %v3030_v44 = vadd.f32 %v3724_v15, %v3005_v30  ;;  %v3009_v62 = vadd.f32 %v3008_v42, %v5437_v43 }
 0x6df   : > { %v3061_v0 = vadd.f32 %v3045_v16, %v3029_v59  ;;  %v3031_v38 = vadd.f32 %v3725_v23, %v3007_v52 }
 0x6e0   : > { %v3062_v61 = vadd.f32 %v3046_v12, %v3030_v44  ;;  %v3032_v3 = vadd.f32 %v3726_v29, %v3009_v62 }
 0x6e1   : > { %3077 = vst [vmem:[%s5455_s18 + $0x40] sm:$0xff] %v3061_v0  ;;  %v3063_v58 = vadd.f32 %v3047_v18, %v3031_v38 }
 0x6e2   : > { %3078 = vst.msk [vmem:[%s5455_s18 + $0x48] sm:$0xff] %vm548_vm0, %v3062_v61  ;;  %v3064_v60 = vadd.f32 %v3048_v11, %v3032_v3  ;;  %v3012_v37 = vpop.f32.mrb[76].mxu0 }
 0x6e3   : > { %3079 = vst [vmem:[%s5455_s18 + $0x50] sm:$0xff] %v3063_v58  ;;  %v3013_v9 = vadd.f32 %v3012_v37, %v5434_v1  ;;  %v3014_v28 = vpop.f32.mrb[77].mxu0 }
 0x6e4   : > { %3080 = vst.msk [vmem:[%s5455_s18 + $0x58] sm:$0xff] %vm548_vm0, %v3064_v60  ;;  %v3015_v39 = vadd.f32 %v3014_v28, %v5437_v43  ;;  %v3016_v48 = vpop.f32.mrb[78].mxu0 }
 0x6e5   : > { %v3033_v7 = vadd.f32 %v3727_v35, %v3013_v9  ;;  %v3017_v55 = vadd.f32 %v3016_v48, %v5434_v1  ;;  %v3018_v25 = vpop.f32.mrb[79].mxu0 }
 0x6e6   : > { %v3034_v17 = vadd.f32 %v3728_v50, %v3015_v39  ;;  %v3019_v20 = vadd.f32 %v3018_v25, %v5437_v43 }
 0x6e7   : > { %v3065_v21 = vadd.f32 %v3049_v57, %v3033_v7  ;;  %v3035_v41 = vadd.f32 %v3729_v31, %v3017_v55 }
 0x6e8   : > { %v3066_v63 = vadd.f32 %v3050_v54, %v3034_v17  ;;  %v3036_v40 = vadd.f32 %v3730_v33, %v3019_v20 }
 0x6e9   : > { %3081 = vst [vmem:[%s5455_s18 + $0x60] sm:$0xff] %v3065_v21  ;;  %v3067_v34 = vadd.f32 %v3051_v14, %v3035_v41 }
 0x6ea   : > { %3082 = vst.msk [vmem:[%s5455_s18 + $0x68] sm:$0xff] %vm548_vm0, %v3066_v63  ;;  %v3068_v1 = vadd.f32 %v3052_v47, %v3036_v40 }
 0x6eb   : > { %3083 = vst [vmem:[%s5455_s18 + $0x70] sm:$0xff] %v3067_v34 }
 0x6ec   : > { %3084 = vst.msk [vmem:[%s5455_s18 + $0x78] sm:$0xff] %vm548_vm0, %v3068_v1 }
 0x6ed PF: > { %s23_s25 = sadd.s32 1, %s3737_s25  }
 0x6ee   : > { %p20_p4 = scmp.ge.s32.totalorder %s23_s25, 4  }
 0x6f0   :  { %22 = sbr.rel (!%p20_p4) target bundleno = 1 (0x1), region = 105 }

// kernel: swin_mlp_block.8
= control target key start
LH: loop header
LB: loop body
LE: loop exit
PB: predicated region body
PF: predicated region fallthrough
CT: control target
= control target key end

     0   :  { %s2264_s21 = smov 0   ;;  %s4098_s0 = inlined_call_operand.vmem [shape: f32[2,8,512], index: 0, kind: input, shape index: {}]   ;;  %s4099_s1 = inlined_call_operand.vmem [shape: f32[216,512], index: 1, kind: input, shape index: {}]   ;;  %s4100_s2 = inlined_call_operand.vmem [shape: f32[8,1], index: 2, kind: input, shape index: {}]   ;;  %s4101_s3 = inlined_call_operand.vmem [shape: f32[8,1], index: 3, kind: input, shape index: {}]   ;;  %s4102_s4 = inlined_call_operand.vmem [shape: f32[8,216], index: 4, kind: input, shape index: {}]   ;;  %s4103_s5 = inlined_call_operand.vmem [shape: f32[8,1], index: 5, kind: input, shape index: {}]   ;;  %s4104_s6 = inlined_call_operand.vmem [shape: f32[8,216], index: 6, kind: input, shape index: {}]   ;;  %s4105_s7 = inlined_call_operand.vmem [shape: f32[8,1], index: 7, kind: input, shape index: {}]   ;;  %s4106_s8 = inlined_call_operand.vmem [shape: f32[2,8], index: 8, kind: input, shape index: {}]   ;;  %s4107_s9 = inlined_call_operand.vmem [shape: f32[2,1], index: 9, kind: input, shape index: {}]   ;;  %s4108_s10 = inlined_call_operand.vmem [shape: f32[8,2], index: 10, kind: input, shape index: {}]   ;;  %s4109_s11 = inlined_call_operand.vmem [shape: f32[8,1], index: 11, kind: input, shape index: {}]   ;;  %s4110_s12 = inlined_call_operand.vmem [shape: f32[2,8,512], index: 12, kind: output, shape index: {}]  }
   0x1   :  { %4214 = sst [smem:[#allocation65_spill]] %s4098_s0 }
   0x2 LB: > { %s1827_s22 = sadd.s32 4294967295, %s2177_s21   ;;  %p1831_p0 = scmp.ge.s32.totalorder %s2177_s21, 1  ;;  %s2177_s21 = sphi %s2264_s21, %s22_s21  }
   0x3   : > { %p362_p1 = scmp.lt.s32.totalorder %s2177_s21, 3 }
   0x5   : > { %p363_p2 = pnand %p1831_p0, %p362_p1 }
   0x7   : > { %366 = sbr.rel (%p363_p2) target bundleno = 1875 (0x753), region = 68 }
   0xe   : > { %v603_v0 = vld [vmem:[%s4100_s2] sm:$0xff]  ;;  %v2179_v1 = vmov 0   ;;  %p404_p3 = scmp.lt.s32.totalorder %s1827_s22, 1  ;;  %s4215_s0 = sld [smem:[#allocation65_spill]]  ;;  %vm962_vm4 = vcmask 719872  }
   0xf   : > { %2097 = vset.pattern.permute.xlu0 %v2179_v1  ;;  %2098 = vset.pattern.permute.xlu1 %v2179_v1  ;;  %v613_v2 = vld [vmem:[%s4101_s3] sm:$0xff]  ;;  %s2180_s13 = smov 72   ;;  %s4180_s14 = smov 73  }
  0x10   : > { %606 = vperm.xlu0 %2097, %v603_v0   ;;  %s4401_s22 = smov (!%p404_p3, %s1827_s22), 1  ;;  %s4134_s15 = smov 71  }
  0x11   : > { %s4111_s27 = sshll.u32 %s4401_s22, 5  ;;  %s4176_s16 = smov 65  }
  0x12   : > { %s4124_s17 = smov 64   ;;  %s4130_s18 = smov 63  }
  0x13   : > { %s4116_s19 = smov 57   ;;  %s4128_s20 = smov 56  }
  0x14   : > { %616 = vperm.xlu0 %2097, %v613_v2   ;;  %s2286_s30 = scalar_lea.vmem %s4215_s0, %s4111_s27  ;;  %s4114_s23 = smov 55  }
  0x15   : > { %v414_v3 = vld [vmem:[%s2286_s30] sm:$0xff]  ;;  %v415_v4 = vld [vmem:[%s2286_s30 + $0x8] sm:$0xff]  ;;  %v416_v6 = vld [vmem:[%s2286_s30 + $0x10] sm:$0xff]  ;;  %s4126_s24 = smov 9   ;;  %s4112_s25 = smov 8  }
  0x16   : > { %v526_v5 = vrot.slane %v414_v3, 4  ;;  %v532_v7 = vrot.slane %v415_v4, 4  ;;  %v538_v9 = vrot.slane %v416_v6, 4  ;;  %v417_v13 = vld [vmem:[%s2286_s30 + $0x18] sm:$0xff]  ;;  %s4122_s26 = smov 7   ;;  %s4118_s28 = smov 1  }
  0x17   : > { %v544_v17 = vrot.slane %v417_v13, 4  ;;  %s4120_s29 = smov 127   ;;  %s4132_s27 = smov 121  }
  0x18   : > { %v527_v8 = vadd.f32 %v526_v5, %v414_v3  ;;  %v533_v10 = vadd.f32 %v532_v7, %v415_v4  ;;  %v539_v12 = vadd.f32 %v538_v9, %v416_v6  ;;  %s4292_s0 = smov 73  }
  0x19   : > { %v545_v21 = vadd.f32 %v544_v17, %v417_v13 }
  0x1a   : > { %v528_v11 = vrot.slane %v527_v8, 2  ;;  %v534_v14 = vrot.slane %v533_v10, 2  ;;  %v540_v16 = vrot.slane %v539_v12, 2 }
  0x1b   : > { %v546_v25 = vrot.slane %v545_v21, 2 }
  0x1c   : > { %v529_v15 = vadd.f32 %v528_v11, %v527_v8  ;;  %v535_v18 = vadd.f32 %v534_v14, %v533_v10  ;;  %v541_v20 = vadd.f32 %v540_v16, %v539_v12 }
  0x1d   : > { %v547_v28 = vadd.f32 %v546_v25, %v545_v21 }
  0x1e   : > { %v530_v19 = vrot.slane %v529_v15, 1  ;;  %v536_v22 = vrot.slane %v535_v18, 1  ;;  %v542_v24 = vrot.slane %v541_v20, 1 }
  0x1f   : > { %v548_v31 = vrot.slane %v547_v28, 1 }
  0x20   : > { %v531_v23 = vadd.f32 %v530_v19, %v529_v15  ;;  %v537_v26 = vadd.f32 %v536_v22, %v535_v18  ;;  %v543_v27 = vadd.f32 %v542_v24, %v541_v20 }
  0x21   : > { %v549_v35 = vadd.f32 %v548_v31, %v547_v28 }
  0x22   : > { %v551_v29 = vmul.f32 0.125, %v531_v23  ;;  %v552_v30 = vmul.f32 0.125, %v537_v26  ;;  %v553_v32 = vmul.f32 0.125, %v543_v27 }
  0x23   : > { %v554_v39 = vmul.f32 0.125, %v549_v35  ;;  %v491_v35 = vld [vmem:[%s4099_s1 + $0x248] sm:$0xff] }
  0x24   : > { %v555_v33 = vsub.f32 %v414_v3, %v551_v29  ;;  %v556_v34 = vsub.f32 %v415_v4, %v552_v30  ;;  %v557_v36 = vsub.f32 %v416_v6, %v553_v32  ;;  %v631_v29 = vlaneseq }
  0x25   : > { %v558_v43 = vsub.f32 %v417_v13, %v554_v39 }
  0x26   : > { %v559_v37 = vmul.f32 %v555_v33, %v555_v33  ;;  %v560_v38 = vmul.f32 %v556_v34, %v556_v34  ;;  %v561_v40 = vmul.f32 %v557_v36, %v557_v36  ;;  %v2416_v30 = vand.u32 127, %v631_v29 }
  0x27   : > { %v562_v47 = vmul.f32 %v558_v43, %v558_v43 }
  0x28   : > { %v563_v41 = vrot.slane %v559_v37, 4  ;;  %v569_v42 = vrot.slane %v560_v38, 4  ;;  %v575_v45 = vrot.slane %v561_v40, 4  ;;  %vm633_vm0 = vcmp.lt.s32.totalorder %v2416_v30, 73 }
  0x29   : > { %v581_v53 = vrot.slane %v562_v47, 4  ;;  %vm646_vm1 = vcmp.lt.s32.totalorder %v2416_v30, 72  ;;  %vm659_vm2 = vcmp.lt.s32.totalorder %v2416_v30, 71  ;;  %vm672_vm3 = vcmp.lt.s32.totalorder %v2416_v30, 65 }
  0x2a   : > { %v564_v44 = vadd.f32 %v563_v41, %v559_v37  ;;  %v570_v46 = vadd.f32 %v569_v42, %v560_v38  ;;  %v576_v49 = vadd.f32 %v575_v45, %v561_v40  ;;  %v419_v37 = vld [vmem:[%s4099_s1 + $0x8] sm:$0xff]  ;;  %v490_v38 = vld [vmem:[%s4099_s1 + $0x240] sm:$0xff]  ;;  %vm685_vm5 = vcmp.lt.s32.totalorder %v2416_v30, 64 }
  0x2b   : > { %v582_v57 = vadd.f32 %v581_v53, %v562_v47  ;;  %v495_v40 = vld [vmem:[%s4099_s1 + $0x268] sm:$0xff]  ;;  %v494_v42 = vld [vmem:[%s4099_s1 + $0x260] sm:$0xff]  ;;  %vm698_vm6 = vcmp.lt.s32.totalorder %v2416_v30, 63  ;;  %vm711_vm7 = vcmp.lt.s32.totalorder %v2416_v30, 57  ;;  %vm724_vm8 = vcmp.lt.s32.totalorder %v2416_v30, 56 }
  0x2c   : > { %v565_v48 = vrot.slane %v564_v44, 2  ;;  %v571_v50 = vrot.slane %v570_v46, 2  ;;  %v577_v52 = vrot.slane %v576_v49, 2  ;;  %v423_v41 = vld [vmem:[%s4099_s1 + $0x28] sm:$0xff]  ;;  %vm737_vm9 = vcmp.lt.s32.totalorder %v2416_v30, 55 }
  0x2d   : > { %v583_v61 = vrot.slane %v582_v57, 2  ;;  %vm750_vm10 = vcmp.lt.s32.totalorder %v2416_v30, 9  ;;  %vm763_vm11 = vcmp.lt.s32.totalorder %v2416_v30, 8  ;;  %vm776_vm12 = vcmp.lt.s32.totalorder %v2416_v30, 7 }
  0x2e   : > { %v566_v51 = vadd.f32 %v565_v48, %v564_v44  ;;  %v572_v54 = vadd.f32 %v571_v50, %v570_v46  ;;  %v578_v56 = vadd.f32 %v577_v52, %v576_v49  ;;  %vm789_vm13 = vcmp.lt.s32.totalorder %v2416_v30, 1 }
  0x2f   : > { %v584_v0 = vadd.f32 %v583_v61, %v582_v57  ;;  %v424_v61 = vld [vmem:[%s4099_s1 + $0x30] sm:$0xff]  ;;  %vm4165_vm14 = vcmp.lt.s32.totalorder %v2416_v30, 127  ;;  %vm4169_vm15 = vcmp.lt.s32.totalorder %v2416_v30, 121 }
  0x30   : > { %v567_v55 = vrot.slane %v566_v51, 1  ;;  %v573_v58 = vrot.slane %v572_v54, 1  ;;  %v579_v60 = vrot.slane %v578_v56, 1 }
  0x31   : > { %v585_v3 = vrot.slane %v584_v0, 1 }
  0x32   : > { %v568_v59 = vadd.f32 %v567_v55, %v566_v51  ;;  %v574_v62 = vadd.f32 %v573_v58, %v572_v54  ;;  %v580_v63 = vadd.f32 %v579_v60, %v578_v56  ;;  %v493_v58 = vld [vmem:[%s4099_s1 + $0x258] sm:$0xff]  ;;  %v418_v60 = vld [vmem:[%s4099_s1] sm:$0xff] }
  0x33   : > { %v586_v7 = vadd.f32 %v585_v3, %v584_v0  ;;  %v425_v3 = vld [vmem:[%s4099_s1 + $0x38] sm:$0xff] }
  0x34   : > { %v587_v1 = vmul.f32 0.125, %v568_v59  ;;  %v588_v2 = vmul.f32 0.125, %v574_v62  ;;  %v589_v4 = vmul.f32 0.125, %v580_v63  ;;  %v497_v62 = vld [vmem:[%s4099_s1 + $0x278] sm:$0xff] }
  0x35   : > { %v590_v9 = vmul.f32 0.125, %v586_v7  ;;  %v421_v63 = vld [vmem:[%s4099_s1 + $0x18] sm:$0xff]  ;;  %v492_v7 = vld [vmem:[%s4099_s1 + $0x250] sm:$0xff] }
  0x36   : > { %v591_v5 = vadd.f32 1e-05, %v587_v1  ;;  %v592_v6 = vadd.f32 1e-05, %v588_v2  ;;  %v593_v8 = vadd.f32 1e-05, %v589_v4 }
  0x37   : > { %v594_v10 = vadd.f32 1e-05, %v590_v9  ;;  %v956_v1 = vld [vmem:[%s4103_s5] sm:$0xff] }
  0x38   : > { %2099 = vrsqrt.f32 %v591_v5  ;;  %v422_v2 = vld [vmem:[%s4099_s1 + $0x20] sm:$0xff] }
  0x39   : > { %2101 = vrsqrt.f32 %v592_v6 }
  0x3a   : > { %2103 = vrsqrt.f32 %v593_v8  ;;  %v496_v8 = vld [vmem:[%s4099_s1 + $0x270] sm:$0xff] }
  0x3b   : > { %2105 = vrsqrt.f32 %v594_v10 }
  0x42   : > { %v2100_v11 = vpop.eup %2099 }
  0x43   : > { %v2102_v12 = vpop.eup %2101  ;;  %v599_v13 = vmul.f32 %v2100_v11, %v555_v33 }
  0x44   : > { %v2104_v14 = vpop.eup %2103  ;;  %v600_v16 = vmul.f32 %v2102_v12, %v556_v34 }
  0x45   : > { %v601_v17 = vmul.f32 %v2104_v14, %v557_v36  ;;  %v2106_v23 = vpop.eup %2105  ;;  %v420_v14 = vld [vmem:[%s4099_s1 + $0x10] sm:$0xff] }
  0x46   : > { %v602_v26 = vmul.f32 %v2106_v23, %v558_v43 }
  0x8f   : > { %v607_v15 = vpop.permute.xlu0 %606 }
  0x90   : > { %v609_v18 = vmul.f32 %v607_v15, %v599_v13  ;;  %v610_v21 = vmul.f32 %v607_v15, %v600_v16  ;;  %v611_v22 = vmul.f32 %v607_v15, %v601_v17  ;;  %v612_v27 = vmul.f32 %v607_v15, %v602_v26 }
  0x93   : > { %v617_v19 = vpop.permute.xlu0 %616 }
  0x94   : > { %v2292_v20 = vadd.f32 %v617_v19, %v609_v18  ;;  %v2298_v24 = vadd.f32 %v617_v19, %v610_v21  ;;  %v2300_v25 = vadd.f32 %v617_v19, %v611_v22  ;;  %v2310_v28 = vadd.f32 %v617_v19, %v612_v27 }
  0x96   : > { %638 = vrot.lane.b32.xlu0 %v2292_v20, %s2180_s13  ;;  %623 = vrot.lane.b32.xlu1 %v2292_v20, %s4180_s14 }
  0x9a   : > { %627 = vrot.lane.b32.xlu0 %v2300_v25, %s4180_s14  ;;  %625 = vrot.lane.b32.xlu1 %v2298_v24, %s4180_s14 }
  0x9e   : > { %642 = vrot.lane.b32.xlu0 %v2300_v25, %s2180_s13  ;;  %640 = vrot.lane.b32.xlu1 %v2298_v24, %s2180_s13 }
  0xa2   : > { %651 = vrot.lane.b32.xlu0 %v2292_v20, %s4134_s15  ;;  %629 = vrot.lane.b32.xlu1 %v2310_v28, %s4180_s14 }
  0xa6   : > { %664 = vrot.lane.b32.xlu0 %v2292_v20, %s4176_s16  ;;  %644 = vrot.lane.b32.xlu1 %v2310_v28, %s2180_s13 }
  0xaa   : > { %655 = vrot.lane.b32.xlu0 %v2300_v25, %s4134_s15  ;;  %653 = vrot.lane.b32.xlu1 %v2298_v24, %s4134_s15 }
  0xae   : > { %668 = vrot.lane.b32.xlu0 %v2300_v25, %s4176_s16  ;;  %666 = vrot.lane.b32.xlu1 %v2298_v24, %s4176_s16 }
  0xb2   : > { %677 = vrot.lane.b32.xlu0 %v2292_v20, %s4124_s17  ;;  %657 = vrot.lane.b32.xlu1 %v2310_v28, %s4134_s15  ;;  %s4284_s15 = smov 127  }
  0xb6   : > { %690 = vrot.lane.b32.xlu0 %v2292_v20, %s4130_s18  ;;  %670 = vrot.lane.b32.xlu1 %v2310_v28, %s4176_s16 }
  0xba   : > { %681 = vrot.lane.b32.xlu0 %v2300_v25, %s4124_s17  ;;  %679 = vrot.lane.b32.xlu1 %v2298_v24, %s4124_s17 }
  0xbe   : > { %694 = vrot.lane.b32.xlu0 %v2300_v25, %s4130_s18  ;;  %692 = vrot.lane.b32.xlu1 %v2298_v24, %s4130_s18 }
  0xc2   : > { %703 = vrot.lane.b32.xlu0 %v2292_v20, %s4116_s19  ;;  %683 = vrot.lane.b32.xlu1 %v2310_v28, %s4124_s17  ;;  %s4285_s17 = smov 57  }
  0xc6   : > { %716 = vrot.lane.b32.xlu0 %v2292_v20, %s4128_s20  ;;  %696 = vrot.lane.b32.xlu1 %v2310_v28, %s4130_s18  ;;  %s4286_s18 = smov 121  }
  0xca   : > { %707 = vrot.lane.b32.xlu0 %v2300_v25, %s4116_s19  ;;  %705 = vrot.lane.b32.xlu1 %v2298_v24, %s4116_s19 }
  0xce   : > { %720 = vrot.lane.b32.xlu0 %v2300_v25, %s4128_s20  ;;  %718 = vrot.lane.b32.xlu1 %v2298_v24, %s4128_s20 }
  0xd2   : > { %729 = vrot.lane.b32.xlu0 %v2292_v20, %s4114_s23  ;;  %709 = vrot.lane.b32.xlu1 %v2310_v28, %s4116_s19  ;;  %s4281_s19 = smov 64  }
  0xd6   : > { %742 = vrot.lane.b32.xlu0 %v2292_v20, %s4126_s24  ;;  %722 = vrot.lane.b32.xlu1 %v2310_v28, %s4128_s20  ;;  %s4287_s20 = smov 55  }
  0xda   : > { %733 = vrot.lane.b32.xlu0 %v2300_v25, %s4114_s23  ;;  %731 = vrot.lane.b32.xlu1 %v2298_v24, %s4114_s23 }
  0xde   : > { %746 = vrot.lane.b32.xlu0 %v2300_v25, %s4126_s24  ;;  %744 = vrot.lane.b32.xlu1 %v2298_v24, %s4126_s24 }
  0xe2   : > { %755 = vrot.lane.b32.xlu0 %v2292_v20, %s4112_s25  ;;  %735 = vrot.lane.b32.xlu1 %v2310_v28, %s4114_s23  ;;  %s4282_s23 = smov 7  }
  0xe6   : > { %768 = vrot.lane.b32.xlu0 %v2292_v20, %s4122_s26  ;;  %748 = vrot.lane.b32.xlu1 %v2310_v28, %s4126_s24  ;;  %s4278_s24 = smov 63  }
  0xea   : > { %759 = vrot.lane.b32.xlu0 %v2300_v25, %s4112_s25  ;;  %757 = vrot.lane.b32.xlu1 %v2298_v24, %s4112_s25 }
  0xee   : > { %772 = vrot.lane.b32.xlu0 %v2300_v25, %s4122_s26  ;;  %770 = vrot.lane.b32.xlu1 %v2298_v24, %s4122_s26 }
  0xf2   : > { %781 = vrot.lane.b32.xlu0 %v2292_v20, %s4118_s28  ;;  %761 = vrot.lane.b32.xlu1 %v2310_v28, %s4112_s25  ;;  %s4178_s25 = smov 120  }
  0xf6   : > { %785 = vrot.lane.b32.xlu0 %v2300_v25, %s4118_s28  ;;  %774 = vrot.lane.b32.xlu1 %v2310_v28, %s4122_s26  ;;  %s4279_s26 = smov 56  }
  0xfa   : > { %796 = vrot.lane.b32.xlu0 %v2298_v24, %s4120_s29  ;;  %783 = vrot.lane.b32.xlu1 %v2298_v24, %s4118_s28 }
  0xfe   : > { %809 = vrot.lane.b32.xlu0 %v2298_v24, %s4132_s27  ;;  %787 = vrot.lane.b32.xlu1 %v2310_v28, %s4118_s28  ;;  %s4136_s28 = smov 119  }
 0x102   : > { %794 = vrot.lane.b32.xlu0 %v2292_v20, %s4120_s29  ;;  %798 = vrot.lane.b32.xlu1 %v2300_v25, %s4120_s29 }
 0x106   : > { %807 = vrot.lane.b32.xlu0 %v2292_v20, %s4132_s27  ;;  %811 = vrot.lane.b32.xlu1 %v2300_v25, %s4132_s27 }
 0x108   : > { %v639_v31 = vpop.permute.xlu0 %638  ;;  %v624_v32 = vpop.permute.xlu1 %623 }
 0x10a   : > { %822 = vrot.lane.b32.xlu0 %v2298_v24, %s4178_s25  ;;  %800 = vrot.lane.b32.xlu1 %v2310_v28, %s4120_s29  ;;  %s4280_s29 = smov 9  }
 0x10c   : > { %v628_v33 = vpop.permute.xlu0 %627  ;;  %v626_v34 = vpop.permute.xlu1 %625 }
 0x10d   : > { %v2428_v36 = vsel %vm633_vm0, %v626_v34, %v628_v33  ;;  %v636_v39 = vsel %vm633_vm0, %v624_v32, %v626_v34  ;;  %v499_v34 = vld [vmem:[%s4099_s1 + $0x288] sm:$0xff] }
 0x10e   : > { %835 = vrot.lane.b32.xlu0 %v2298_v24, %s4136_s28  ;;  %813 = vrot.lane.b32.xlu1 %v2310_v28, %s4132_s27  ;;  %v2453_v43 = vmul.f32 %v2428_v36, %v491_v35  ;;  %v847_v48 = vmul.f32 %v636_v39, %v419_v37  ;;  %v2459_v49 = vmul.f32 %v636_v39, %v490_v38  ;;  %v431_v38 = vld [vmem:[%s4099_s1 + $0x68] sm:$0xff]  ;;  %v502_v39 = vld [vmem:[%s4099_s1 + $0x2a0] sm:$0xff]  ;;  %s4283_s27 = smov 1  }
 0x10f   : > { %v848_v27 = vmul.f32 %v2428_v36, %v420_v14 }
 0x110   : > { %v643_v44 = vpop.permute.xlu0 %642  ;;  %v641_v45 = vpop.permute.xlu1 %640 }
 0x111   : > { %v648_v46 = vsel %vm646_vm1, %v641_v45, %v643_v44  ;;  %v649_v47 = vsel %vm646_vm1, %v639_v31, %v641_v45 }
 0x112   : > { %v2461_v50 = vmul.f32 %v648_v46, %v495_v40  ;;  %820 = vrot.lane.b32.xlu0 %v2292_v20, %s4178_s25  ;;  %824 = vrot.lane.b32.xlu1 %v2300_v25, %s4178_s25  ;;  %v851_v51 = vmul.f32 %v649_v47, %v423_v41  ;;  %v2467_v52 = vmul.f32 %v649_v47, %v494_v42  ;;  %v503_v40 = vld [vmem:[%s4099_s1 + $0x2a8] sm:$0xff] }
 0x113   : > { %v852_v9 = vmul.f32 %v648_v46, %v424_v61 }
 0x114   : > { %v2469_v53 = vpop.permute.xlu0 %651  ;;  %v630_v54 = vpop.permute.xlu1 %629  ;;  %v1861_v55 = vpack.c.bf16 %v851_v51, %v847_v48 }
 0x115   : > { %v637_v59 = vsel %vm633_vm0, %v630_v54, %v624_v32  ;;  %v634_v0 = vsel %vm633_vm0, %v628_v33, %v630_v54  ;;  %v427_v32 = vld [vmem:[%s4099_s1 + $0x48] sm:$0xff]  ;;  %v498_v33 = vld [vmem:[%s4099_s1 + $0x280] sm:$0xff]  ;;  %v1915_v36 = vpack.c.bf16 %v852_v9, %v848_v27 }
 0x116   : > { %833 = vrot.lane.b32.xlu0 %v2292_v20, %s4136_s28  ;;  %837 = vrot.lane.b32.xlu1 %v2300_v25, %s4136_s28  ;;  %v2507_v4 = vmul.f32 %v637_v59, %v493_v58  ;;  %v846_v11 = vmul.f32 %v637_v59, %v418_v60  ;;  %v849_v13 = vmul.f32 %v634_v0, %v421_v63  ;;  %v955_v58 = vld [vmem:[%s4102_s4 + $0x8] sm:$0xff]  ;;  %v430_v9 = vld [vmem:[%s4099_s1 + $0x60] sm:$0xff] }
 0x117   : > { %1862 = vmatprep.subr.bf16.mxu0 %v1861_v55  ;;  %v2529_v18 = vmul.f32 %v634_v0, %v492_v7  ;;  %1836 = vmatprep.mubr.msk.f32.mxu0 %vm962_vm4, %v955_v58  ;;  %v432_v0 = vld [vmem:[%s4099_s1 + $0x70] sm:$0xff] }
 0x118   : > { %v2509_v5 = vpop.permute.xlu0 %664  ;;  %v645_v6 = vpop.permute.xlu1 %644  ;;  %1837 = vmatprep.mubr.msk.f32.mxu1 %vm962_vm4, %v955_v58  ;;  %v500_v7 = vld [vmem:[%s4099_s1 + $0x290] sm:$0xff] }
 0x119   : > { %v650_v10 = vsel %vm646_vm1, %v645_v6, %v639_v31  ;;  %v647_v12 = vsel %vm646_vm1, %v643_v44, %v645_v6 }
 0x11a   : > { %v2524_v15 = vmul.f32 %v650_v10, %v497_v62  ;;  %959 = vperm.xlu0 %2097, %v956_v1   ;;  %826 = vrot.lane.b32.xlu1 %v2310_v28, %s4178_s25  ;;  %v850_v16 = vmul.f32 %v650_v10, %v422_v2  ;;  %v853_v17 = vmul.f32 %v647_v12, %v425_v3  ;;  %v426_v1 = vld [vmem:[%s4099_s1 + $0x40] sm:$0xff]  ;;  %v429_v2 = vld [vmem:[%s4099_s1 + $0x58] sm:$0xff] }
 0x11b   : > { %v2531_v19 = vmul.f32 %v647_v12, %v496_v8  ;;  %v501_v8 = vld [vmem:[%s4099_s1 + $0x298] sm:$0xff]  ;;  %v428_v12 = vld [vmem:[%s4099_s1 + $0x50] sm:$0xff] }
 0x11c   : > { %v656_v21 = vpop.permute.xlu0 %655  ;;  %v654_v22 = vpop.permute.xlu1 %653  ;;  %v1863_v23 = vpack.c.bf16 %v850_v16, %v846_v11  ;;  %v1913_v26 = vpack.c.bf16 %v853_v17, %v849_v13  ;;  %v433_v10 = vld [vmem:[%s4099_s1 + $0x78] sm:$0xff] }
 0x11d   : > { %v662_v35 = vsel %vm659_vm2, %v2469_v53, %v654_v22  ;;  %v661_v37 = vsel %vm659_vm2, %v654_v22, %v656_v21  ;;  %v505_v11 = vld [vmem:[%s4099_s1 + $0x2b8] sm:$0xff] }
 0x11e   : > { %839 = vrot.lane.b32.xlu1 %v2310_v28, %s4136_s28  ;;  %1864 = vmatpush1.bf16.msra.mxu0 %v1863_v23  ;;  %v855_v44 = vmul.f32 %v662_v35, %v427_v32  ;;  %v2564_v45 = vmul.f32 %v662_v35, %v498_v33  ;;  %v2571_v48 = vmul.f32 %v661_v37, %v499_v34  ;;  %s4277_s28 = smov 71  }
 0x11f   : > { %1914 = vmatprep.subr.bf16.mxu1 %v1913_v26 }
 0x120   : > { %1916 = vmatpush1.bf16.msra.mxu1 %v1915_v36  ;;  %v669_v41 = vpop.permute.xlu0 %668  ;;  %v667_v42 = vpop.permute.xlu1 %666  ;;  %v856_v36 = vmul.f32 %v661_v37, %v428_v12  ;;  %v506_v37 = vld [vmem:[%s4099_s1 + $0x2c0] sm:$0xff] }
 0x121   : > { %v674_v46 = vsel %vm672_vm3, %v667_v42, %v669_v41  ;;  %v675_v47 = vsel %vm672_vm3, %v2509_v5, %v667_v42 }
 0x122   : > { %v859_v51 = vmul.f32 %v675_v47, %v431_v38  ;;  %v2573_v54 = vmul.f32 %v675_v47, %v502_v39  ;;  %v2575_v55 = vmul.f32 %v674_v46, %v503_v40  ;;  %v860_v13 = vmul.f32 %v674_v46, %v432_v0  ;;  %v507_v46 = vld [vmem:[%s4099_s1 + $0x2c8] sm:$0xff] }
 0x123   : > { %v511_v0 = vld [vmem:[%s4099_s1 + $0x2e8] sm:$0xff] }
 0x124   : > { %v2580_v59 = vpop.permute.xlu0 %677  ;;  %v658_v60 = vpop.permute.xlu1 %657  ;;  %v1865_v61 = vpack.c.bf16 %v859_v51, %v855_v44  ;;  %v1919_v51 = vpack.c.bf16 %v860_v13, %v856_v36 }
 0x125   : > { %v660_v3 = vsel %vm659_vm2, %v656_v21, %v658_v60  ;;  %v663_v6 = vsel %vm659_vm2, %v658_v60, %v2469_v53  ;;  %v504_v53 = vld [vmem:[%s4099_s1 + $0x2b0] sm:$0xff]  ;;  %v439_v60 = vld [vmem:[%s4099_s1 + $0xa8] sm:$0xff] }
 0x126   : > { %1866 = vmatprep.subr.bf16.mxu0 %v1865_v61  ;;  %v854_v14 = vmul.f32 %v663_v6, %v426_v1  ;;  %v857_v16 = vmul.f32 %v660_v3, %v429_v2  ;;  %v2625_v22 = vmul.f32 %v660_v3, %v500_v7  ;;  %v2627_v23 = vmul.f32 %v663_v6, %v501_v8  ;;  %v510_v61 = vld [vmem:[%s4099_s1 + $0x2e0] sm:$0xff] }
 0x128   : > { %v2623_v17 = vpop.permute.xlu0 %690  ;;  %v671_v21 = vpop.permute.xlu1 %670 }
 0x129   : > { %v673_v26 = vsel %vm672_vm3, %v669_v41, %v671_v21  ;;  %v676_v27 = vsel %vm672_vm3, %v671_v21, %v2509_v5  ;;  %v435_v5 = vld [vmem:[%s4099_s1 + $0x88] sm:$0xff] }
 0x12a   : > { %v858_v32 = vmul.f32 %v676_v27, %v430_v9  ;;  %v861_v33 = vmul.f32 %v673_v26, %v433_v10  ;;  %v2634_v34 = vmul.f32 %v673_v26, %v504_v53  ;;  %v2636_v35 = vmul.f32 %v676_v27, %v505_v11  ;;  %v440_v26 = vld [vmem:[%s4099_s1 + $0xb0] sm:$0xff]  ;;  %v434_v27 = vld [vmem:[%s4099_s1 + $0x80] sm:$0xff] }
 0x12c   : > { %v682_v38 = vpop.permute.xlu0 %681  ;;  %v680_v39 = vpop.permute.xlu1 %679  ;;  %v1867_v40 = vpack.c.bf16 %v858_v32, %v854_v14  ;;  %v1917_v42 = vpack.c.bf16 %v861_v33, %v857_v16  ;;  %v437_v32 = vld [vmem:[%s4099_s1 + $0x98] sm:$0xff] }
 0x12d   : > { %v688_v47 = vsel %vm685_vm5, %v2580_v59, %v680_v39  ;;  %v687_v58 = vsel %vm685_vm5, %v680_v39, %v682_v38  ;;  %v508_v39 = vld [vmem:[%s4099_s1 + $0x2d0] sm:$0xff] }
 0x12e   : > { %1868 = vmatpush1.bf16.msra.mxu0 %v1867_v40  ;;  %1918 = vmatprep.subr.bf16.mxu1 %v1917_v42  ;;  %v863_v3 = vmul.f32 %v688_v47, %v435_v5  ;;  %v2667_v6 = vmul.f32 %v688_v47, %v506_v37  ;;  %v2674_v9 = vmul.f32 %v687_v58, %v507_v46  ;;  %v509_v40 = vld [vmem:[%s4099_s1 + $0x2d8] sm:$0xff]  ;;  %v438_v42 = vld [vmem:[%s4099_s1 + $0xa0] sm:$0xff]  ;;  %v436_v37 = vld [vmem:[%s4099_s1 + $0x90] sm:$0xff] }
 0x12f   : > { %1920 = vmatpush1.bf16.msra.mxu1 %v1919_v51  ;;  %v513_v5 = vld [vmem:[%s4099_s1 + $0x2f8] sm:$0xff] }
 0x130   : > { %v695_v1 = vpop.permute.xlu0 %694  ;;  %v693_v2 = vpop.permute.xlu1 %692 }
 0x131   : > { %v700_v7 = vsel %vm698_vm6, %v693_v2, %v695_v1  ;;  %v701_v8 = vsel %vm698_vm6, %v2623_v17, %v693_v2 }
 0x132   : > { %v867_v10 = vmul.f32 %v701_v8, %v439_v60  ;;  %v2676_v53 = vmul.f32 %v701_v8, %v510_v61  ;;  %v2678_v11 = vmul.f32 %v700_v7, %v511_v0  ;;  %v868_v46 = vmul.f32 %v700_v7, %v440_v26 }
 0x133   : > { %v864_v26 = vmul.f32 %v687_v58, %v436_v37  ;;  %v514_v58 = vld [vmem:[%s4099_s1 + $0x300] sm:$0xff] }
 0x134   : > { %v2680_v12 = vpop.permute.xlu0 %703  ;;  %v684_v13 = vpop.permute.xlu1 %683  ;;  %v1869_v14 = vpack.c.bf16 %v867_v10, %v863_v3  ;;  %v518_v37 = vld [vmem:[%s4099_s1 + $0x320] sm:$0xff] }
 0x135   : > { %v686_v33 = vsel %vm685_vm5, %v682_v38, %v684_v13  ;;  %v689_v36 = vsel %vm685_vm5, %v684_v13, %v2580_v59  ;;  %v441_v38 = vld [vmem:[%s4099_s1 + $0xb8] sm:$0xff]  ;;  %v512_v59 = vld [vmem:[%s4099_s1 + $0x2f0] sm:$0xff] }
 0x136   : > { %1870 = vmatprep.subr.bf16.mxu0 %v1869_v14  ;;  %v862_v47 = vmul.f32 %v689_v36, %v434_v27  ;;  %v865_v51 = vmul.f32 %v686_v33, %v437_v32  ;;  %v2723_v0 = vmul.f32 %v686_v33, %v508_v39  ;;  %v2725_v2 = vmul.f32 %v689_v36, %v509_v40  ;;  %v515_v40 = vld [vmem:[%s4099_s1 + $0x308] sm:$0xff] }
 0x138   : > { %v2721_v60 = vpop.permute.xlu0 %716  ;;  %v697_v61 = vpop.permute.xlu1 %696 }
 0x139   : > { %v699_v3 = vsel %vm698_vm6, %v695_v1, %v697_v61  ;;  %v702_v8 = vsel %vm698_vm6, %v697_v61, %v2623_v17  ;;  %v2744_v17 = vld [vmem:[%s4099_s1 + $0xc8] sm:$0xff]  ;;  %v2817_v1 = vld [vmem:[%s4099_s1 + $0xe0] sm:$0xff] }
 0x13a   : > { %v866_v10 = vmul.f32 %v702_v8, %v438_v42  ;;  %v869_v13 = vmul.f32 %v699_v3, %v441_v38  ;;  %v2732_v14 = vmul.f32 %v699_v3, %v512_v59  ;;  %v2734_v7 = vmul.f32 %v702_v8, %v513_v5  ;;  %4216 = vst [vmem:[#allocation2_spill] sm:$0xff] %v2744_v17  ;;  %v2761_v5 = vld [vmem:[%s4099_s1 + $0xe8] sm:$0xff] }
 0x13b   : > { %v1923_v38 = vpack.c.bf16 %v868_v46, %v864_v26  ;;  %4217 = vst [vmem:[#allocation3_spill] sm:$0xff] %v2761_v5  ;;  %4221 = vst [vmem:[#allocation7_spill] sm:$0xff] %v2817_v1 }
 0x13c   : > { %v708_v27 = vpop.permute.xlu0 %707  ;;  %v706_v32 = vpop.permute.xlu1 %705  ;;  %v1871_v33 = vpack.c.bf16 %v866_v10, %v862_v47  ;;  %v1921_v36 = vpack.c.bf16 %v869_v13, %v865_v51  ;;  %v519_v47 = vld [vmem:[%s4099_s1 + $0x328] sm:$0xff] }
 0x13d   : > { %v714_v42 = vsel %vm711_vm7, %v2680_v12, %v706_v32  ;;  %v713_v59 = vsel %vm711_vm7, %v706_v32, %v708_v27 }
 0x13e   : > { %1872 = vmatpush1.bf16.msra.mxu0 %v1871_v33  ;;  %1922 = vmatprep.subr.bf16.mxu1 %v1921_v36  ;;  %v871_v61 = vmul.f32 %v714_v42, %v2744_v17  ;;  %v2770_v3 = vmul.f32 %v714_v42, %v514_v58  ;;  %v2777_v13 = vmul.f32 %v713_v59, %v515_v40  ;;  %v2791_v40 = vld [vmem:[%s4099_s1 + $0xf0] sm:$0xff] }
 0x13f   : > { %1924 = vmatpush1.bf16.msra.mxu1 %v1923_v38  ;;  %4218 = vst [vmem:[#allocation4_spill] sm:$0xff] %v2791_v40 }
 0x140   : > { %v721_v46 = vpop.permute.xlu0 %720  ;;  %v719_v51 = vpop.permute.xlu1 %718 }
 0x141   : > { %v726_v8 = vsel %vm724_vm8, %v719_v51, %v721_v46  ;;  %v727_v10 = vsel %vm724_vm8, %v2721_v60, %v719_v51 }
 0x142   : > { %v875_v26 = vmul.f32 %v727_v10, %v2761_v5  ;;  %v2780_v32 = vmul.f32 %v727_v10, %v518_v37  ;;  %v2782_v33 = vmul.f32 %v726_v8, %v519_v47  ;;  %v2796_v37 = vld [vmem:[%s4099_s1 + $0xc0] sm:$0xff]  ;;  %v2801_v47 = vld [vmem:[%s4099_s1 + $0xd8] sm:$0xff]  ;;  %v516_v10 = vld [vmem:[%s4099_s1 + $0x310] sm:$0xff]  ;;  %v876_v44 = vmul.f32 %v726_v8, %v2791_v40 }
 0x143   : > { %4219 = vst [vmem:[#allocation5_spill] sm:$0xff] %v2796_v37  ;;  %4220 = vst [vmem:[#allocation6_spill] sm:$0xff] %v2801_v47 }
 0x144   : > { %v730_v36 = vpop.permute.xlu0 %729  ;;  %v710_v38 = vpop.permute.xlu1 %709  ;;  %v1873_v39 = vpack.c.bf16 %v875_v26, %v871_v61  ;;  %v517_v26 = vld [vmem:[%s4099_s1 + $0x318] sm:$0xff] }
 0x145   : > { %v712_v51 = vsel %vm711_vm7, %v708_v27, %v710_v38  ;;  %v715_v61 = vsel %vm711_vm7, %v710_v38, %v2680_v12  ;;  %v2822_v27 = vld [vmem:[%s4099_s1 + $0xf8] sm:$0xff]  ;;  %v520_v12 = vld [vmem:[%s4099_s1 + $0x330] sm:$0xff] }
 0x146   : > { %1874 = vmatprep.subr.bf16.mxu0 %v1873_v39  ;;  %4222 = vst [vmem:[#allocation8_spill] sm:$0xff] %v2822_v27  ;;  %v521_v38 = vld [vmem:[%s4099_s1 + $0x338] sm:$0xff]  ;;  %v2833_v39 = vld [vmem:[%s4099_s1 + $0xd0] sm:$0xff]  ;;  %v870_v42 = vmul.f32 %v715_v61, %v2796_v37  ;;  %v873_v41 = vmul.f32 %v712_v51, %v2801_v47  ;;  %v2838_v21 = vmul.f32 %v712_v51, %v516_v10 }
 0x147   : > { %4223 = vst [vmem:[#allocation9_spill] sm:$0xff] %v2833_v39  ;;  %v2840_v29 = vmul.f32 %v715_v61, %v517_v26  ;;  %v872_v51 = vmul.f32 %v713_v59, %v2833_v39 }
 0x148   : > { %v743_v58 = vpop.permute.xlu0 %742  ;;  %v723_v31 = vpop.permute.xlu1 %722 }
 0x149   : > { %v725_v16 = vsel %vm724_vm8, %v721_v46, %v723_v31  ;;  %v728_v63 = vsel %vm724_vm8, %v723_v31, %v2721_v60  ;;  %v1927_v60 = vpack.c.bf16 %v876_v44, %v872_v51  ;;  %v2917_v31 = vld [vmem:[%s4099_s1 + $0x110] sm:$0xff] }
 0x14a   : > { %v874_v62 = vmul.f32 %v728_v63, %v2817_v1  ;;  %v877_v8 = vmul.f32 %v725_v16, %v2822_v27  ;;  %v2849_v57 = vmul.f32 %v725_v16, %v520_v12  ;;  %v2851_v56 = vmul.f32 %v728_v63, %v521_v38  ;;  %v2863_v63 = vld [vmem:[%s4099_s1 + $0x108] sm:$0xff]  ;;  %4231 = vst [vmem:[#allocation17_spill] sm:$0xff] %v2917_v31 }
 0x14b   : > { %4224 = vst [vmem:[#allocation10_spill] sm:$0xff] %v2863_v63 }
 0x14c   : > { %v734_v61 = vpop.permute.xlu0 %733  ;;  %v732_v10 = vpop.permute.xlu1 %731  ;;  %v1875_v26 = vpack.c.bf16 %v874_v62, %v870_v42  ;;  %v1925_v46 = vpack.c.bf16 %v877_v8, %v873_v41  ;;  %v2872_v41 = vld [vmem:[%s4099_s1 + $0x128] sm:$0xff] }
 0x14d   : > { %v2867_v62 = vsel %vm737_vm9, %v730_v36, %v732_v10  ;;  %4225 = vst [vmem:[#allocation11_spill] sm:$0xff] %v2872_v41  ;;  %v2921_v47 = vsel %vm737_vm9, %v732_v10, %v734_v61 }
 0x14e   : > { %1876 = vmatpush1.bf16.msra.mxu0 %v1875_v26  ;;  %1926 = vmatprep.subr.bf16.mxu1 %v1925_v46  ;;  %v879_v42 = vmul.f32 %v2867_v62, %v2863_v63  ;;  %v2882_v26 = vld [vmem:[%s4099_s1 + $0x130] sm:$0xff]  ;;  %v880_v10 = vmul.f32 %v2921_v47, %v2917_v31 }
 0x14f   : > { %1928 = vmatpush1.bf16.msra.mxu1 %v1927_v60  ;;  %4226 = vst [vmem:[#allocation12_spill] sm:$0xff] %v2882_v26  ;;  %v2889_v60 = vld [vmem:[%s4099_s1 + $0x100] sm:$0xff] }
 0x150   : > { %v747_v44 = vpop.permute.xlu0 %746  ;;  %v745_v16 = vpop.permute.xlu1 %744  ;;  %4227 = vst [vmem:[#allocation13_spill] sm:$0xff] %v2889_v60 }
 0x151   : > { %v753_v59 = vsel %vm750_vm10, %v743_v58, %v745_v16  ;;  %v752_v46 = vsel %vm750_vm10, %v745_v16, %v747_v44  ;;  %v2907_v16 = vld [vmem:[%s4099_s1 + $0x120] sm:$0xff] }
 0x152   : > { %v883_v12 = vmul.f32 %v753_v59, %v2872_v41  ;;  %v2894_v59 = vld [vmem:[%s4099_s1 + $0x118] sm:$0xff]  ;;  %4229 = vst [vmem:[#allocation15_spill] sm:$0xff] %v2907_v16  ;;  %v884_v41 = vmul.f32 %v752_v46, %v2882_v26 }
 0x153   : > { %4228 = vst [vmem:[#allocation14_spill] sm:$0xff] %v2894_v59 }
 0x154   : > { %v756_v38 = vpop.permute.xlu0 %755  ;;  %v736_v8 = vpop.permute.xlu1 %735  ;;  %v1877_v51 = vpack.c.bf16 %v883_v12, %v879_v42 }
 0x155   : > { %v2898_v42 = vsel %vm737_vm9, %v734_v61, %v736_v8  ;;  %v2902_v12 = vsel %vm737_vm9, %v736_v8, %v730_v36 }
 0x156   : > { %1878 = vmatprep.subr.bf16.mxu0 %v1877_v51  ;;  %v2912_v51 = vld [vmem:[%s4099_s1 + $0x138] sm:$0xff]  ;;  %v878_v40 = vmul.f32 %v2902_v12, %v2889_v60  ;;  %v881_v27 = vmul.f32 %v2898_v42, %v2894_v59 }
 0x157   : > { %4230 = vst [vmem:[#allocation16_spill] sm:$0xff] %v2912_v51 }
 0x158   : > { %v769_v36 = vpop.permute.xlu0 %768  ;;  %v749_v8 = vpop.permute.xlu1 %748 }
 0x159   : > { %v751_v63 = vsel %vm750_vm10, %v747_v44, %v749_v8  ;;  %v754_v39 = vsel %vm750_vm10, %v749_v8, %v743_v58  ;;  %v1931_v58 = vpack.c.bf16 %v884_v41, %v880_v10  ;;  %v2948_v8 = vld [vmem:[%s4099_s1 + $0x168] sm:$0xff] }
 0x15a   : > { %v882_v1 = vmul.f32 %v754_v39, %v2907_v16  ;;  %v885_v61 = vmul.f32 %v751_v63, %v2912_v51  ;;  %v2941_v39 = vld [vmem:[%s4099_s1 + $0x148] sm:$0xff]  ;;  %4233 = vst [vmem:[#allocation19_spill] sm:$0xff] %v2948_v8  ;;  %v2964_v51 = vld [vmem:[%s4099_s1 + $0x140] sm:$0xff] }
 0x15b   : > { %4232 = vst [vmem:[#allocation18_spill] sm:$0xff] %v2941_v39  ;;  %4234 = vst [vmem:[#allocation20_spill] sm:$0xff] %v2964_v51 }
 0x15c   : > { %v760_v46 = vpop.permute.xlu0 %759  ;;  %v758_v44 = vpop.permute.xlu1 %757  ;;  %v1879_v26 = vpack.c.bf16 %v882_v1, %v878_v40  ;;  %v1929_v37 = vpack.c.bf16 %v885_v61, %v881_v27 }
 0x15d   : > { %v766_v63 = vsel %vm763_vm11, %v756_v38, %v758_v44 }
 0x15e   : > { %1880 = vmatpush1.bf16.msra.mxu0 %v1879_v26  ;;  %1930 = vmatprep.subr.bf16.mxu1 %v1929_v37  ;;  %v887_v27 = vmul.f32 %v766_v63, %v2941_v39  ;;  %v2969_v63 = vld [vmem:[%s4099_s1 + $0x158] sm:$0xff] }
 0x15f   : > { %1932 = vmatpush1.bf16.msra.mxu1 %v1931_v58  ;;  %v2957_v58 = vld [vmem:[%s4099_s1 + $0x170] sm:$0xff]  ;;  %4235 = vst [vmem:[#allocation21_spill] sm:$0xff] %v2969_v63 }
 0x160   : > { %v773_v1 = vpop.permute.xlu0 %772  ;;  %v771_v40 = vpop.permute.xlu1 %770 }
 0x161   : > { %v779_v37 = vsel %vm776_vm12, %v769_v36, %v771_v40  ;;  %v778_v31 = vsel %vm776_vm12, %v771_v40, %v773_v1  ;;  %v2978_v40 = vld [vmem:[%s4099_s1 + $0x160] sm:$0xff] }
 0x162   : > { %v891_v41 = vmul.f32 %v779_v37, %v2948_v8  ;;  %4236 = vst [vmem:[#allocation22_spill] sm:$0xff] %v2978_v40  ;;  %v765_v8 = vsel %vm763_vm11, %v758_v44, %v760_v46 }
 0x164   : > { %v782_v26 = vpop.permute.xlu0 %781  ;;  %v762_v61 = vpop.permute.xlu1 %761  ;;  %v1881_v10 = vpack.c.bf16 %v891_v41, %v887_v27  ;;  %v2983_v41 = vld [vmem:[%s4099_s1 + $0x178] sm:$0xff] }
 0x165   : > { %v764_v37 = vsel %vm763_vm11, %v760_v46, %v762_v61  ;;  %v767_v27 = vsel %vm763_vm11, %v762_v61, %v756_v38  ;;  %4237 = vst [vmem:[#allocation23_spill] sm:$0xff] %v2983_v41  ;;  %v892_v61 = vmul.f32 %v778_v31, %v2957_v58  ;;  %v3006_v31 = vld [vmem:[%s4099_s1 + $0x188] sm:$0xff] }
 0x166   : > { %1882 = vmatprep.subr.bf16.mxu0 %v1881_v10  ;;  %v2988_v10 = vld [vmem:[%s4099_s1 + $0x150] sm:$0xff]  ;;  %v886_v59 = vmul.f32 %v767_v27, %v2964_v51  ;;  %v889_v17 = vmul.f32 %v764_v37, %v2969_v63  ;;  %4239 = vst [vmem:[#allocation25_spill] sm:$0xff] %v3006_v31 }
 0x167   : > { %4238 = vst [vmem:[#allocation24_spill] sm:$0xff] %v2988_v10  ;;  %v888_v44 = vmul.f32 %v765_v8, %v2988_v10  ;;  %v3018_v8 = vld [vmem:[%s4099_s1 + $0x190] sm:$0xff] }
 0x168   : > { %v786_v39 = vpop.permute.xlu0 %785  ;;  %v775_v38 = vpop.permute.xlu1 %774  ;;  %4240 = vst [vmem:[#allocation26_spill] sm:$0xff] %v3018_v8  ;;  %v3100_v51 = vld [vmem:[%s4099_s1 + $0x1d0] sm:$0xff] }
 0x169   : > { %v777_v16 = vsel %vm776_vm12, %v773_v1, %v775_v38  ;;  %v780_v60 = vsel %vm776_vm12, %v775_v38, %v769_v36  ;;  %v3011_v36 = vld [vmem:[%s4099_s1 + $0x1a8] sm:$0xff]  ;;  %4246 = vst [vmem:[#allocation32_spill] sm:$0xff] %v3100_v51 }
 0x16a   : > { %v890_v5 = vmul.f32 %v780_v60, %v2978_v40  ;;  %v893_v46 = vmul.f32 %v777_v16, %v2983_v41  ;;  %v1935_v16 = vpack.c.bf16 %v892_v61, %v888_v44  ;;  %v3038_v61 = vld [vmem:[%s4099_s1 + $0x198] sm:$0xff] }
 0x16c   : > { %v797_v1 = vpop.permute.xlu0 %796  ;;  %v784_v27 = vpop.permute.xlu1 %783  ;;  %v1883_v38 = vpack.c.bf16 %v890_v5, %v886_v59  ;;  %v1933_v37 = vpack.c.bf16 %v893_v46, %v889_v17  ;;  %v899_v5 = vmul.f32 %v2298_v24, %v3011_v36  ;;  %v3028_v17 = vld [vmem:[%s4099_s1 + $0x1a0] sm:$0xff]  ;;  %v3043_v24 = vld [vmem:[%s4099_s1 + $0x1b8] sm:$0xff] }
 0x16d   : > { %v792_v60 = vsel %vm789_vm13, %v782_v26, %v784_v27  ;;  %v791_v10 = vsel %vm789_vm13, %v784_v27, %v786_v39  ;;  %4241 = vst [vmem:[#allocation27_spill] sm:$0xff] %v3028_v17  ;;  %v3033_v59 = vld [vmem:[%s4099_s1 + $0x180] sm:$0xff] }
 0x16e   : > { %v895_v41 = vmul.f32 %v792_v60, %v3006_v31  ;;  %1884 = vmatpush1.bf16.msra.mxu0 %v1883_v38  ;;  %1934 = vmatprep.subr.bf16.mxu1 %v1933_v37  ;;  %4242 = vst [vmem:[#allocation28_spill] sm:$0xff] %v3033_v59  ;;  %v3048_v38 = vld [vmem:[%s4099_s1 + $0x1b0] sm:$0xff]  ;;  %v896_v37 = vmul.f32 %v791_v10, %v3018_v8 }
 0x16f   : > { %1936 = vmatpush1.bf16.msra.mxu1 %v1935_v16  ;;  %v900_v10 = vmul.f32 %v2300_v25, %v3048_v38  ;;  %v3075_v25 = vld [vmem:[%s4099_s1 + $0x1c8] sm:$0xff] }
 0x170   : > { %v810_v46 = vpop.permute.xlu0 %809  ;;  %v788_v44 = vpop.permute.xlu1 %787  ;;  %v1885_v27 = vpack.c.bf16 %v899_v5, %v895_v41  ;;  %v898_v41 = vmul.f32 %v2292_v20, %v3028_v17  ;;  %v901_v5 = vmul.f32 %v2310_v28, %v3043_v24  ;;  %4244 = vst [vmem:[#allocation30_spill] sm:$0xff] %v3075_v25 }
 0x171   : > { %v790_v60 = vsel %vm789_vm13, %v786_v39, %v788_v44  ;;  %v793_v16 = vsel %vm789_vm13, %v788_v44, %v782_v26  ;;  %v1939_v44 = vpack.c.bf16 %v900_v10, %v896_v37 }
 0x172   : > { %v894_v31 = vmul.f32 %v793_v16, %v3033_v59  ;;  %v897_v40 = vmul.f32 %v790_v60, %v3038_v61  ;;  %1886 = vmatprep.subr.bf16.mxu0 %v1885_v27  ;;  %v3067_v27 = vld [vmem:[%s4099_s1 + $0x1c0] sm:$0xff] }
 0x173   : > { %4243 = vst [vmem:[#allocation29_spill] sm:$0xff] %v3067_v27 }
 0x174   : > { %v795_v39 = vpop.permute.xlu0 %794  ;;  %v799_v8 = vpop.permute.xlu1 %798  ;;  %v1887_v63 = vpack.c.bf16 %v898_v41, %v894_v31  ;;  %v1937_v26 = vpack.c.bf16 %v901_v5, %v897_v40  ;;  %v3082_v40 = vld [vmem:[%s4099_s1 + $0x1e0] sm:$0xff] }
 0x175   : > { %v805_v20 = vsel %vm4165_vm14, %v795_v39, %v797_v1  ;;  %v804_v28 = vsel %vm4165_vm14, %v797_v1, %v799_v8  ;;  %4245 = vst [vmem:[#allocation31_spill] sm:$0xff] %v3082_v40 }
 0x176   : > { %1888 = vmatpush1.bf16.msra.mxu0 %v1887_v63  ;;  %1938 = vmatprep.subr.bf16.mxu1 %v1937_v26  ;;  %v3087_v63 = vld [vmem:[%s4099_s1 + $0x1e8] sm:$0xff]  ;;  %v902_v1 = vmul.f32 %v805_v20, %v3067_v27  ;;  %v903_v41 = vmul.f32 %v804_v28, %v3075_v25 }
 0x177   : > { %1940 = vmatpush1.bf16.msra.mxu1 %v1939_v44 }
 0x178   : > { %v808_v31 = vpop.permute.xlu0 %807  ;;  %v812_v37 = vpop.permute.xlu1 %811 }
 0x179   : > { %v818_v60 = vsel %vm4169_vm15, %v808_v31, %v810_v46  ;;  %v817_v16 = vsel %vm4169_vm15, %v810_v46, %v812_v37  ;;  %v3105_v46 = vld [vmem:[%s4099_s1 + $0x1d8] sm:$0xff] }
 0x17a   : > { %v906_v5 = vmul.f32 %v818_v60, %v3082_v40  ;;  %v907_v10 = vmul.f32 %v817_v16, %v3087_v63  ;;  %4247 = vst [vmem:[#allocation33_spill] sm:$0xff] %v3105_v46  ;;  %v3114_v60 = vld [vmem:[%s4099_s1 + $0x1f0] sm:$0xff] }
 0x17b   : > { %4248 = vst [vmem:[#allocation34_spill] sm:$0xff] %v3114_v60 }
 0x17c   : > { %v823_v26 = vpop.permute.xlu0 %822  ;;  %v801_v44 = vpop.permute.xlu1 %800  ;;  %v1889_v17 = vpack.c.bf16 %v907_v10, %v903_v41  ;;  %v1891_v59 = vpack.c.bf16 %v906_v5, %v902_v1 }
 0x17d   : > { %v803_v20 = vsel %vm4165_vm14, %v799_v8, %v801_v44  ;;  %v806_v28 = vsel %vm4165_vm14, %v801_v44, %v795_v39  ;;  %vm4174_vm14 = vcmp.lt.s32.totalorder %v2416_v30, 120 }
 0x17e   : > { %1890 = vmatprep.subr.bf16.mxu0 %v1889_v17  ;;  %v3119_v17 = vld [vmem:[%s4099_s1 + $0x1f8] sm:$0xff]  ;;  %v905_v39 = vmul.f32 %v806_v28, %v3105_v46 }
 0x17f   : > { %1892 = vmatpush1.bf16.msra.mxu0 %v1891_v59  ;;  %4249 = vst [vmem:[#allocation35_spill] sm:$0xff] %v3119_v17  ;;  %v904_v59 = vmul.f32 %v803_v20, %v3100_v51  ;;  %v3141_v20 = vld [vmem:[%s4099_s1 + $0x208] sm:$0xff]  ;;  %v3166_v51 = vld [vmem:[%s4099_s1 + $0x210] sm:$0xff] }
 0x180   : > { %v836_v16 = vpop.permute.xlu0 %835  ;;  %v814_v1 = vpop.permute.xlu1 %813  ;;  %4251 = vst [vmem:[#allocation37_spill] sm:$0xff] %v3141_v20  ;;  %4253 = vst [vmem:[#allocation39_spill] sm:$0xff] %v3166_v51 }
 0x181   : > { %v816_v41 = vsel %vm4169_vm15, %v812_v37, %v814_v1  ;;  %v819_v8 = vsel %vm4169_vm15, %v814_v1, %v808_v31  ;;  %v3133_v37 = vld [vmem:[%s4099_s1 + $0x200] sm:$0xff]  ;;  %vm4175_vm15 = vcmp.lt.s32.totalorder %v2416_v30, 119 }
 0x182   : > { %v908_v5 = vmul.f32 %v816_v41, %v3114_v60  ;;  %v909_v10 = vmul.f32 %v819_v8, %v3119_v17  ;;  %4250 = vst [vmem:[#allocation36_spill] sm:$0xff] %v3133_v37  ;;  %v3148_v1 = vld [vmem:[%s4099_s1 + $0x220] sm:$0xff] }
 0x183   : > { %4252 = vst [vmem:[#allocation38_spill] sm:$0xff] %v3148_v1 }
 0x184   : > { %v821_v44 = vpop.permute.xlu0 %820  ;;  %v825_v27 = vpop.permute.xlu1 %824  ;;  %v1941_v40 = vpack.c.bf16 %v909_v10, %v905_v39  ;;  %v1943_v25 = vpack.c.bf16 %v908_v5, %v904_v59 }
 0x185   : > { %v831_v31 = vsel %vm4174_vm14, %v821_v44, %v823_v26  ;;  %v830_v28 = vsel %vm4174_vm14, %v823_v26, %v825_v27 }
 0x186   : > { %1942 = vmatprep.subr.bf16.mxu1 %v1941_v40  ;;  %v3153_v40 = vld [vmem:[%s4099_s1 + $0x228] sm:$0xff]  ;;  %v911_v26 = vmul.f32 %v830_v28, %v3141_v20 }
 0x187   : > { %1944 = vmatpush1.bf16.msra.mxu1 %v1943_v25  ;;  %v910_v25 = vmul.f32 %v831_v31, %v3133_v37 }
 0x188   : > { %v834_v41 = vpop.permute.xlu0 %833  ;;  %v838_v8 = vpop.permute.xlu1 %837 }
 0x189   : > { %v844_v59 = vsel %vm4175_vm15, %v834_v41, %v836_v16  ;;  %v843_v39 = vsel %vm4175_vm15, %v836_v16, %v838_v8  ;;  %v3171_v16 = vld [vmem:[%s4099_s1 + $0x218] sm:$0xff] }
 0x18a   : > { %v914_v5 = vmul.f32 %v844_v59, %v3148_v1  ;;  %v915_v10 = vmul.f32 %v843_v39, %v3153_v40  ;;  %4254 = vst [vmem:[#allocation40_spill] sm:$0xff] %v3171_v16  ;;  %v3180_v59 = vld [vmem:[%s4099_s1 + $0x230] sm:$0xff] }
 0x18b   : > { %4255 = vst [vmem:[#allocation41_spill] sm:$0xff] %v3180_v59 }
 0x18c   : > { %v827_v17 = vpop.permute.xlu1 %826  ;;  %v1893_v60 = vpack.c.bf16 %v915_v10, %v911_v26  ;;  %v1895_v46 = vpack.c.bf16 %v914_v5, %v910_v25  ;;  %v4257_v25 = vpack.c.bf16 %v2461_v50, %v2453_v43  ;;  %v4258_v10 = vpack.c.bf16 %v2467_v52, %v2459_v49 }
 0x18d   : > { %v829_v31 = vsel %vm4174_vm14, %v825_v27, %v827_v17  ;;  %v832_v28 = vsel %vm4174_vm14, %v827_v17, %v821_v44  ;;  %v4259_v43 = vpack.c.bf16 %v2575_v55, %v2571_v48  ;;  %v4262_v49 = vpack.c.bf16 %v2524_v15, %v2507_v4 }
 0x18e   : > { %1894 = vmatprep.subr.bf16.mxu0 %v1893_v60  ;;  %v3185_v60 = vld [vmem:[%s4099_s1 + $0x238] sm:$0xff]  ;;  %v912_v17 = vmul.f32 %v829_v31, %v3166_v51  ;;  %v913_v44 = vmul.f32 %v832_v28, %v3171_v16  ;;  %v4261_v31 = vpack.c.bf16 %v2678_v11, %v2674_v9  ;;  %v4263_v52 = vpack.c.bf16 %v2676_v53, %v2667_v6  ;;  %v954_v6 = vld [vmem:[%s4102_s4] sm:$0xff]  ;;  %v3267_v11 = vld [vmem:[%s4099_s1 + $0x350] sm:$0xff] }
 0x18f   : > { %1896 = vmatpush1.bf16.msra.mxu0 %v1895_v46  ;;  %4256 = vst [vmem:[#allocation42_spill] sm:$0xff] %v3185_v60  ;;  %v4264_v48 = vpack.c.bf16 %v2531_v19, %v2529_v18  ;;  %v4267_v4 = vpack.c.bf16 %v2636_v35, %v2627_v23  ;;  %v3235_v18 = vld [vmem:[%s4099_s1 + $0x340] sm:$0xff]  ;;  %v4269_v19 = vpack.c.bf16 %v2780_v32, %v2770_v3  ;;  %4275 = vst [vmem:[#allocation46_spill] sm:$0xff] %v3267_v11 }
 0x190   : > { %v840_v39 = vpop.permute.xlu1 %839  ;;  %1898 = vmatprep.subr.bf16.mxu0 %v4257_v25  ;;  %4268 = vst [vmem:[#allocation44_spill] sm:$0xff] %v3235_v18  ;;  %v4270_v55 = vpack.c.bf16 %v2634_v34, %v2625_v22  ;;  %v4271_v23 = vpack.c.bf16 %v2734_v7, %v2725_v2  ;;  %v950_v35 = vmul.f32 %v2867_v62, %v3235_v18  ;;  %v3257_v22 = vld [vmem:[%s4099_s1 + $0x358] sm:$0xff] }
 0x191   : > { %v842_v27 = vsel %vm4175_vm15, %v838_v8, %v840_v39  ;;  %v845_v46 = vsel %vm4175_vm15, %v840_v39, %v834_v41  ;;  %v4260_v41 = vpack.c.bf16 %v2573_v54, %v2564_v45  ;;  %v3222_v45 = vld [vmem:[%s4099_s1 + $0x348] sm:$0xff]  ;;  %v4266_v54 = vpack.c.bf16 %v2782_v33, %v2777_v13  ;;  %4273 = vst [vmem:[#allocation45_spill] sm:$0xff] %v3257_v22 }
 0x192   : > { %v916_v26 = vmul.f32 %v842_v27, %v3180_v59  ;;  %v917_v5 = vmul.f32 %v845_v46, %v3185_v60  ;;  %4265 = vst [vmem:[#allocation43_spill] sm:$0xff] %v3222_v45  ;;  %v951_v15 = vmul.f32 %v2921_v47, %v3222_v45  ;;  %v4272_v9 = vpack.c.bf16 %v2732_v14, %v2723_v0 }
 0x193   : > { %1900 = vmatpush1.bf16.msra.mxu0 %v4258_v10  ;;  %v4274_v34 = vpack.c.bf16 %v2851_v56, %v2840_v29  ;;  %v953_v53 = vmul.f32 %v2902_v12, %v3257_v22  ;;  %v4276_v0 = vpack.c.bf16 %v2849_v57, %v2838_v21  ;;  %v952_v2 = vmul.f32 %v2898_v42, %v3267_v11 }
 0x194   : > { %1902 = vmatprep.subr.bf16.mxu0 %v4259_v43  ;;  %v1945_v50 = vpack.c.bf16 %v917_v5, %v913_v44  ;;  %v1947_v8 = vpack.c.bf16 %v916_v26, %v912_v17 }
 0x196   : > { %1946 = vmatprep.subr.bf16.mxu1 %v1945_v50 }
 0x197   : > { %1904 = vmatpush1.bf16.msra.mxu0 %v4260_v41  ;;  %1948 = vmatpush1.bf16.msra.mxu1 %v1947_v8 }
 0x198   : > { %1906 = vmatprep.subr.bf16.mxu0 %v4261_v31  ;;  %1950 = vmatprep.subr.bf16.mxu1 %v4262_v49 }
 0x199   : > { %v960_v56 = vpop.permute.xlu0 %959 }
 0x19b   : > { %1908 = vmatpush1.bf16.msra.mxu0 %v4263_v52  ;;  %1952 = vmatpush1.bf16.msra.mxu1 %v4264_v48 }
 0x19c   : > { %1910 = vmatprep.subr.bf16.mxu0 %v4266_v54  ;;  %1954 = vmatprep.subr.bf16.mxu1 %v4267_v4  ;;  %v1433_v4 = vld [vmem:[%s4104_s6 + $0x8] sm:$0xff] }
 0x19f   : > { %1912 = vmatpush1.bf16.msra.mxu0 %v4269_v19  ;;  %1956 = vmatpush1.bf16.msra.mxu1 %v4270_v55 }
 0x1a0   : > { %1018 = vmatprep.subr.mxu0 %v951_v15  ;;  %1958 = vmatprep.subr.bf16.mxu1 %v4271_v23 }
 0x1a3   : > { %1019 = vmatpush1.msra.mxu0 %v950_v35  ;;  %1960 = vmatpush1.bf16.msra.mxu1 %v4272_v9  ;;  %v1434_v35 = vld [vmem:[%s4105_s7] sm:$0xff] }
 0x1a4   : > { %1031 = vmatmul.mubr.f32.vlgmr.msra.gmra.mrb[0].mxu0 %v954_v6  ;;  %1962 = vmatprep.subr.bf16.mxu1 %v4274_v34 }
 0x1a5   : > { %1838 = vmatprep.mubr.msk.f32.mxu0 %vm962_vm4, %v1433_v4 }
 0x1a7   : > { %1964 = vmatpush1.bf16.msra.mxu1 %v4276_v0 }
 0x1a8   : > { %1089 = vmatprep.subr.mxu1 %v953_v53 }
 0x1ab   : > { %1090 = vmatpush1.msra.mxu1 %v952_v2 }
 0x1ac   : > { %1102 = vmatmul.mubr.f32.vlgmr.msra.gmra.mrb[0].mxu1 %v954_v6 }
 0x1ad   : > { %1839 = vmatprep.mubr.msk.f32.mxu1 %vm962_vm4, %v1433_v4  ;;  %vm4346_vm4 = vcmp.lt.s32.totalorder %v2416_v30, 119 }
 0x277   : > { %v1032_v29 = vpop.f32.mrb[0].mxu0 }
 0x278   : > { %v1033_v14 = vadd.f32 %v1032_v29, %v960_v56  ;;  %v1034_v7 = vpop.f32.mrb[1].mxu0 }
 0x279   : > { %v1035_v62 = vadd.f32 %v1034_v7, %v960_v56 }
 0x27a   : > { %vm1108_vm14 = vcmp.ge.f32.partialorder %v1033_v14, 0.0  ;;  %v1112_v3 = vmul.f32 0.2, %v1033_v14 }
 0x27b   : > { %v1113_v42 = vmul.f32 0.2, %v1035_v62 }
 0x27c   : > { %v3274_v13 = vsel %vm1108_vm14, %v1033_v14, %v1112_v3  ;;  %vm1109_vm14 = vcmp.ge.f32.partialorder %v1035_v62, 0.0 }
 0x27d   : > { %1120 = vrot.lane.b32.xlu1 %v3274_v13, %s4180_s14  ;;  %v3330_v12 = vsel %vm1109_vm14, %v1035_v62, %v1113_v42  ;;  %v2113_v42 = vld [vmem:[%s4099_s1 + $0x28] sm:$0xff]  ;;  %vm4368_vm14 = vmmov %vm4346_vm4 }
 0x27f   : > { %v1103_v32 = vpop.f32.mrb[0].mxu1 }
 0x280   : > { %v1104_v57 = vadd.f32 %v1103_v32, %v960_v56  ;;  %v1105_v21 = vpop.f32.mrb[1].mxu1 }
 0x281   : > { %1132 = vrot.lane.b32.xlu1 %v3274_v13, %s2180_s13  ;;  %v1106_v28 = vadd.f32 %v1105_v21, %v960_v56 }
 0x282   : > { %vm1110_vm15 = vcmp.ge.f32.partialorder %v1104_v57, 0.0  ;;  %v1114_v33 = vmul.f32 0.2, %v1104_v57 }
 0x283   : > { %v1115_v39 = vmul.f32 0.2, %v1106_v28 }
 0x284   : > { %v3280_v47 = vsel %vm1110_vm15, %v1104_v57, %v1114_v33  ;;  %vm1111_vm15 = vcmp.ge.f32.partialorder %v1106_v28, 0.0  ;;  %v2111_v57 = vld [vmem:[%s4099_s1 + $0x8] sm:$0xff]  ;;  %v2112_v33 = vld [vmem:[%s4099_s1 + $0x240] sm:$0xff] }
 0x285   : > { %1136 = vrot.lane.b32.xlu0 %v3280_v47, %s2180_s13  ;;  %1124 = vrot.lane.b32.xlu1 %v3280_v47, %s4180_s14  ;;  %v3340_v25 = vsel %vm1111_vm15, %v1106_v28, %v1115_v39  ;;  %v2114_v39 = vld [vmem:[%s4099_s1 + $0x260] sm:$0xff]  ;;  %vm4369_vm15 = vmmov %vm4346_vm4 }
 0x289   : > { %1160 = vrot.lane.b32.xlu0 %v3280_v47, %s4176_s16  ;;  %1144 = vrot.lane.b32.xlu1 %v3274_v13, %s4277_s28 }
 0x28d   : > { %1184 = vrot.lane.b32.xlu0 %v3280_v47, %s4278_s24  ;;  %1156 = vrot.lane.b32.xlu1 %v3274_v13, %s4176_s16  ;;  %s4288_s16 = smov 119  }
 0x291   : > { %1208 = vrot.lane.b32.xlu0 %v3280_v47, %s4279_s26  ;;  %1148 = vrot.lane.b32.xlu1 %v3280_v47, %s4277_s28 }
 0x295   : > { %1232 = vrot.lane.b32.xlu0 %v3280_v47, %s4280_s29  ;;  %1168 = vrot.lane.b32.xlu1 %v3274_v13, %s4281_s19 }
 0x299   : > { %1256 = vrot.lane.b32.xlu0 %v3280_v47, %s4282_s23  ;;  %1180 = vrot.lane.b32.xlu1 %v3274_v13, %s4278_s24 }
 0x29d   : > { %1268 = vrot.lane.b32.xlu0 %v3280_v47, %s4283_s27  ;;  %1172 = vrot.lane.b32.xlu1 %v3280_v47, %s4281_s19 }
 0x2a1   : > { %1280 = vrot.lane.b32.xlu0 %v3280_v47, %s4284_s15  ;;  %1192 = vrot.lane.b32.xlu1 %v3274_v13, %s4285_s17 }
 0x2a5   : > { %1292 = vrot.lane.b32.xlu0 %v3280_v47, %s4286_s18  ;;  %1204 = vrot.lane.b32.xlu1 %v3274_v13, %s4279_s26 }
 0x2a9   : > { %1288 = vrot.lane.b32.xlu0 %v3274_v13, %s4286_s18  ;;  %1196 = vrot.lane.b32.xlu1 %v3280_v47, %s4285_s17 }
 0x2ad   : > { %1304 = vrot.lane.b32.xlu0 %v3280_v47, %s4178_s25  ;;  %1216 = vrot.lane.b32.xlu1 %v3274_v13, %s4287_s20  ;;  %s4289_s25 = smov 8  }
 0x2b1   : > { %1316 = vrot.lane.b32.xlu0 %v3280_v47, %s4288_s16  ;;  %1228 = vrot.lane.b32.xlu1 %v3274_v13, %s4280_s29 }
 0x2b5   : > { %1122 = vrot.lane.b32.xlu0 %v3330_v12, %s4180_s14  ;;  %1220 = vrot.lane.b32.xlu1 %v3280_v47, %s4287_s20  ;;  %s4290_s14 = smov 65  }
 0x2b9   : > { %1134 = vrot.lane.b32.xlu0 %v3330_v12, %s2180_s13  ;;  %1240 = vrot.lane.b32.xlu1 %v3274_v13, %s4289_s25 }
 0x2bd   : > { %1138 = vrot.lane.b32.xlu0 %v3340_v25, %s2180_s13  ;;  %1252 = vrot.lane.b32.xlu1 %v3274_v13, %s4282_s23  ;;  %s4291_s13 = smov 120  }
 0x2c1   : > { %1146 = vrot.lane.b32.xlu0 %v3330_v12, %s4277_s28  ;;  %1244 = vrot.lane.b32.xlu1 %v3280_v47, %s4289_s25 }
 0x2c5   : > { %1158 = vrot.lane.b32.xlu0 %v3330_v12, %s4290_s14  ;;  %1264 = vrot.lane.b32.xlu1 %v3274_v13, %s4283_s27 }
 0x2c9   : > { %1162 = vrot.lane.b32.xlu0 %v3340_v25, %s4290_s14  ;;  %1276 = vrot.lane.b32.xlu1 %v3274_v13, %s4284_s15 }
 0x2cd   : > { %1170 = vrot.lane.b32.xlu0 %v3330_v12, %s4281_s19  ;;  %1300 = vrot.lane.b32.xlu1 %v3274_v13, %s4291_s13 }
 0x2d1   : > { %1182 = vrot.lane.b32.xlu0 %v3330_v12, %s4278_s24  ;;  %1126 = vrot.lane.b32.xlu1 %v3340_v25, %s4292_s0 }
 0x2d5   : > { %1186 = vrot.lane.b32.xlu0 %v3340_v25, %s4278_s24  ;;  %1150 = vrot.lane.b32.xlu1 %v3340_v25, %s4277_s28 }
 0x2d9   : > { %1194 = vrot.lane.b32.xlu0 %v3330_v12, %s4285_s17  ;;  %1174 = vrot.lane.b32.xlu1 %v3340_v25, %s4281_s19 }
 0x2dd   : > { %1206 = vrot.lane.b32.xlu0 %v3330_v12, %s4279_s26  ;;  %1198 = vrot.lane.b32.xlu1 %v3340_v25, %s4285_s17 }
 0x2e1   : > { %1210 = vrot.lane.b32.xlu0 %v3340_v25, %s4279_s26  ;;  %1222 = vrot.lane.b32.xlu1 %v3340_v25, %s4287_s20 }
 0x2e5   : > { %1218 = vrot.lane.b32.xlu0 %v3330_v12, %s4287_s20  ;;  %1246 = vrot.lane.b32.xlu1 %v3340_v25, %s4289_s25  ;;  %s4399_s20 = sshll.u32 %s4401_s22, 5 }
 0x2e6   : > { %s413_s14 = scalar_lea.vmem %s4110_s12, %s4399_s20 }
 0x2e9   : > { %1230 = vrot.lane.b32.xlu0 %v3330_v12, %s4280_s29  ;;  %1270 = vrot.lane.b32.xlu1 %v3340_v25, %s4283_s27 }
 0x2ed   : > { %1234 = vrot.lane.b32.xlu0 %v3340_v25, %s4280_s29  ;;  %1278 = vrot.lane.b32.xlu1 %v3330_v12, %s4284_s15 }
 0x2ef   : > { %v3394_v27 = vpop.permute.xlu1 %1120 }
 0x2f1   : > { %1242 = vrot.lane.b32.xlu0 %v3330_v12, %s4289_s25  ;;  %1290 = vrot.lane.b32.xlu1 %v3330_v12, %s4286_s18 }
 0x2f3   : > { %v3400_v46 = vpop.permute.xlu1 %1132 }
 0x2f5   : > { %1254 = vrot.lane.b32.xlu0 %v3330_v12, %s4282_s23  ;;  %1282 = vrot.lane.b32.xlu1 %v3340_v25, %s4284_s15 }
 0x2f7   : > { %v3406_v17 = vpop.permute.xlu0 %1136  ;;  %v3408_v44 = vpop.permute.xlu1 %1124 }
 0x2f9   : > { %1258 = vrot.lane.b32.xlu0 %v3340_v25, %s4282_s23  ;;  %1302 = vrot.lane.b32.xlu1 %v3330_v12, %s4291_s13 }
 0x2fb   : > { %v3414_v26 = vpop.permute.xlu0 %1160  ;;  %v3416_v5 = vpop.permute.xlu1 %1144 }
 0x2fd   : > { %1266 = vrot.lane.b32.xlu0 %v3330_v12, %s4283_s27  ;;  %1314 = vrot.lane.b32.xlu1 %v3330_v12, %s4288_s16 }
 0x2ff   : > { %v3422_v10 = vpop.permute.xlu0 %1184  ;;  %v3424_v43 = vpop.permute.xlu1 %1156 }
 0x301   : > { %1312 = vrot.lane.b32.xlu0 %v3274_v13, %s4288_s16  ;;  %1306 = vrot.lane.b32.xlu1 %v3340_v25, %s4291_s13 }
 0x303   : > { %v3430_v50 = vpop.permute.xlu0 %1208  ;;  %v3432_v8 = vpop.permute.xlu1 %1148 }
 0x305   : > { %1294 = vrot.lane.b32.xlu0 %v3340_v25, %s4286_s18  ;;  %1437 = vperm.xlu1 %2098, %v1434_v35  }
 0x307   : > { %v3436_v41 = vpop.permute.xlu0 %1232  ;;  %v3438_v31 = vpop.permute.xlu1 %1168 }
 0x309   : > { %1318 = vrot.lane.b32.xlu0 %v3340_v25, %s4288_s16 }
 0x30b   : > { %v3442_v49 = vpop.permute.xlu0 %1256  ;;  %v3444_v52 = vpop.permute.xlu1 %1180 }
 0x30f   : > { %v3446_v48 = vpop.permute.xlu0 %1268  ;;  %v3448_v54 = vpop.permute.xlu1 %1172 }
 0x313   : > { %v3453_v15 = vpop.permute.xlu0 %1280  ;;  %v3455_v19 = vpop.permute.xlu1 %1192 }
 0x317   : > { %v3459_v55 = vpop.permute.xlu0 %1292  ;;  %v3461_v23 = vpop.permute.xlu1 %1204 }
 0x31b   : > { %v3466_v6 = vpop.permute.xlu0 %1288  ;;  %v3468_v9 = vpop.permute.xlu1 %1196 }
 0x31f   : > { %v3470_v34 = vpop.permute.xlu0 %1304  ;;  %v3472_v53 = vpop.permute.xlu1 %1216 }
 0x323   : > { %v3474_v0 = vpop.permute.xlu0 %1316  ;;  %v3476_v2 = vpop.permute.xlu1 %1228 }
 0x327   : > { %v1123_v56 = vpop.permute.xlu0 %1122  ;;  %v3478_v29 = vpop.permute.xlu1 %1220 }
 0x328   : > { %v1130_v14 = vsel %vm633_vm0, %v3394_v27, %v1123_v56 }
 0x329   : > { %v1325_v21 = vmul.f32 %v2111_v57, %v1130_v14  ;;  %v3494_v62 = vmul.f32 %v2112_v33, %v1130_v14 }
 0x32b   : > { %v1135_v7 = vpop.permute.xlu0 %1134  ;;  %v3483_v3 = vpop.permute.xlu1 %1240  ;;  %4293 = vst [vmem:[#allocation47_spill] sm:$0xff] %v3494_v62 }
 0x32c   : > { %v1142_v32 = vsel %vm646_vm1, %v3400_v46, %v1135_v7 }
 0x32d   : > { %v1329_v28 = vmul.f32 %v2113_v42, %v1142_v32  ;;  %v3502_v4 = vmul.f32 %v2114_v39, %v1142_v32  ;;  %v3521_v39 = vsel %vm646_vm1, %v1135_v7, %v3406_v17 }
 0x32f   : > { %4294 = vst [vmem:[#allocation48_spill] sm:$0xff] %v3502_v4  ;;  %v1139_v57 = vpop.permute.xlu0 %1138  ;;  %v3506_v11 = vpop.permute.xlu1 %1252  ;;  %v1965_v22 = vpack.c.bf16 %v1329_v28, %v1325_v21  ;;  %v2115_v28 = vld [vmem:[%s4099_s1 + $0x30] sm:$0xff] }
 0x330   : > { %v1330_v35 = vmul.f32 %v2115_v28, %v3521_v39  ;;  %v3540_v7 = vsel %vm646_vm1, %v1139_v57, %v3400_v46  ;;  %v2116_v46 = vld [vmem:[%s4099_s1 + $0x10] sm:$0xff]  ;;  %v3564_v37 = vsel %vm646_vm1, %v3406_v17, %v1139_v57  ;;  %v2119_v17 = vld [vmem:[%s4099_s1] sm:$0xff]  ;;  %vm4340_vm1 = vcmp.lt.s32.totalorder %v2416_v30, 127 }
 0x331   : > { %1966 = vmatprep.subr.bf16.mxu0 %v1965_v22  ;;  %v3526_v22 = vsel %vm633_vm0, %v1123_v56, %v3408_v44  ;;  %4297 = vst [vmem:[#allocation51_spill] sm:$0xff] %v3540_v7 }
 0x332   : > { %v1326_v51 = vmul.f32 %v2116_v46, %v3526_v22 }
 0x333   : > { %v1147_v14 = vpop.permute.xlu0 %1146  ;;  %v3508_v33 = vpop.permute.xlu1 %1244 }
 0x334   : > { %v3545_v56 = vsel %vm659_vm2, %v3416_v5, %v1147_v14  ;;  %v2019_v20 = vpack.c.bf16 %v1330_v35, %v1326_v51  ;;  %v3603_v51 = vsel %vm659_vm2, %v1147_v14, %v3432_v8 }
 0x335   : > { %4298 = vst [vmem:[#allocation52_spill] sm:$0xff] %v3545_v56 }
 0x337   : > { %v1159_v18 = vpop.permute.xlu0 %1158  ;;  %v3510_v45 = vpop.permute.xlu1 %1264 }
 0x338   : > { %v3531_v21 = vsel %vm672_vm3, %v3424_v43, %v1159_v18  ;;  %v3577_v46 = vsel %vm672_vm3, %v1159_v18, %v3414_v26 }
 0x339   : > { %4296 = vst [vmem:[#allocation50_spill] sm:$0xff] %v3531_v21 }
 0x33b   : > { %v1163_v42 = vpop.permute.xlu0 %1162  ;;  %v3512_v60 = vpop.permute.xlu1 %1276 }
 0x33c   : > { %v3608_v35 = vsel %vm672_vm3, %v1163_v42, %v3424_v43 }
 0x33d   : > { %4302 = vst [vmem:[#allocation56_spill] sm:$0xff] %v3608_v35 }
 0x33f   : > { %v3514_v59 = vpop.permute.xlu0 %1170  ;;  %v3516_v32 = vpop.permute.xlu1 %1300 }
 0x340   : > { %4295 = vst [vmem:[#allocation49_spill] sm:$0xff] %v3516_v32  ;;  %v3623_v14 = vsel %vm685_vm5, %v3438_v31, %v3514_v59 }
 0x341   : > { %4303 = vst [vmem:[#allocation57_spill] sm:$0xff] %v3623_v14 }
 0x343   : > { %v1183_v62 = vpop.permute.xlu0 %1182  ;;  %v1127_v4 = vpop.permute.xlu1 %1126 }
 0x344   : > { %v3550_v16 = vsel %vm633_vm0, %v3408_v44, %v1127_v4  ;;  %v3555_v28 = vsel %vm633_vm0, %v1127_v4, %v3394_v27  ;;  %v2117_v44 = vld [vmem:[%s4099_s1 + $0x68] sm:$0xff]  ;;  %v2118_v27 = vld [vmem:[%s4099_s1 + $0x20] sm:$0xff]  ;;  %vm4339_vm0 = vcmp.lt.s32.totalorder %v2416_v30, 121 }
 0x345   : > { %4299 = vst [vmem:[#allocation53_spill] sm:$0xff] %v3550_v16  ;;  %4300 = vst [vmem:[#allocation54_spill] sm:$0xff] %v3555_v28  ;;  %v1337_v1 = vmul.f32 %v2117_v44, %v3531_v21  ;;  %v1328_v4 = vmul.f32 %v2118_v27, %v3540_v7  ;;  %v1324_v57 = vmul.f32 %v2119_v17, %v3555_v28  ;;  %v2120_v44 = vld [vmem:[%s4099_s1 + $0x18] sm:$0xff]  ;;  %v2121_v27 = vld [vmem:[%s4099_s1 + $0x48] sm:$0xff] }
 0x346   : > { %v1327_v21 = vmul.f32 %v2120_v44, %v3550_v16  ;;  %v1333_v18 = vmul.f32 %v2121_v27, %v3545_v56  ;;  %v3594_v7 = vsel %vm698_vm6, %v3444_v52, %v1183_v62  ;;  %v2122_v28 = vld [vmem:[%s4099_s1 + $0x38] sm:$0xff]  ;;  %v2123_v56 = vld [vmem:[%s4099_s1 + $0x70] sm:$0xff] }
 0x347   : > { %4301 = vst [vmem:[#allocation55_spill] sm:$0xff] %v3594_v7  ;;  %v1187_v32 = vpop.permute.xlu0 %1186  ;;  %v1151_v17 = vpop.permute.xlu1 %1150  ;;  %v1331_v44 = vmul.f32 %v2122_v28, %v3564_v37  ;;  %v1967_v27 = vpack.c.bf16 %v1328_v4, %v1324_v57  ;;  %v1338_v16 = vmul.f32 %v2123_v56, %v3577_v46  ;;  %v3617_v28 = vsel %vm672_vm3, %v3414_v26, %v1163_v42  ;;  %v2124_v4 = vld [vmem:[%s4099_s1 + $0xa8] sm:$0xff]  ;;  %vm4342_vm3 = vmmov %vm4339_vm0 }
 0x348   : > { %v1969_v43 = vpack.c.bf16 %v1337_v1, %v1333_v18  ;;  %v1345_v57 = vmul.f32 %v2124_v4, %v3594_v7  ;;  %v3632_v56 = vsel %vm659_vm2, %v3432_v8, %v1151_v17  ;;  %v3637_v26 = vsel %vm659_vm2, %v1151_v17, %v3416_v5  ;;  %v2125_v1 = vld [vmem:[%s4099_s1 + $0x60] sm:$0xff]  ;;  %v2129_v7 = vld [vmem:[%s4099_s1 + $0x50] sm:$0xff]  ;;  %vm4341_vm2 = vmmov %vm4340_vm1 }
 0x349   : > { %4304 = vst [vmem:[#allocation58_spill] sm:$0xff] %v3632_v56  ;;  %1968 = vmatpush1.bf16.msra.mxu0 %v1967_v27  ;;  %v2017_v42 = vpack.c.bf16 %v1331_v44, %v1327_v21  ;;  %v1336_v18 = vmul.f32 %v2125_v1, %v3608_v35  ;;  %v3646_v4 = vsel %vm698_vm6, %v1187_v32, %v3444_v52  ;;  %v2126_v8 = vld [vmem:[%s4099_s1 + $0x40] sm:$0xff]  ;;  %v2127_v21 = vld [vmem:[%s4099_s1 + $0x58] sm:$0xff]  ;;  %v2128_v52 = vld [vmem:[%s4099_s1 + $0x88] sm:$0xff] }
 0x34a   : > { %4305 = vst [vmem:[#allocation59_spill] sm:$0xff] %v3646_v4  ;;  %v1332_v5 = vmul.f32 %v2126_v8, %v3637_v26  ;;  %v1335_v17 = vmul.f32 %v2127_v21, %v3632_v56  ;;  %1970 = vmatprep.subr.bf16.mxu0 %v1969_v43  ;;  %v1341_v1 = vmul.f32 %v2128_v52, %v3623_v14  ;;  %v2130_v21 = vld [vmem:[%s4099_s1 + $0x78] sm:$0xff] }
 0x34b   : > { %v1195_v44 = vpop.permute.xlu0 %1194  ;;  %v1175_v27 = vpop.permute.xlu1 %1174  ;;  %2018 = vmatprep.subr.bf16.mxu1 %v2017_v42  ;;  %v1334_v43 = vmul.f32 %v2129_v7, %v3603_v51  ;;  %v1339_v56 = vmul.f32 %v2130_v21, %v3617_v28  ;;  %v2131_v7 = vld [vmem:[%s4099_s1 + $0xa0] sm:$0xff]  ;;  %v3700_v21 = vsel %vm698_vm6, %v3422_v10, %v1187_v32  ;;  %v2134_v32 = vld [vmem:[%s4099_s1 + $0xb0] sm:$0xff] }
 0x34c   : > { %v3663_v8 = vsel %vm685_vm5, %v1175_v27, %v3438_v31  ;;  %v1971_v35 = vpack.c.bf16 %v1336_v18, %v1332_v5  ;;  %2020 = vmatpush1.bf16.msra.mxu1 %v2019_v20  ;;  %v3676_v42 = vsel %vm685_vm5, %v3448_v54, %v1175_v27  ;;  %v3681_v31 = vsel %vm698_vm6, %v1183_v62, %v3422_v10  ;;  %v2132_v20 = vld [vmem:[%s4099_s1 + $0x80] sm:$0xff]  ;;  %vm4351_vm6 = vmmov %vm4340_vm1 }
 0x34d   : > { %v1344_v52 = vmul.f32 %v2131_v7, %v3646_v4  ;;  %v1340_v18 = vmul.f32 %v2132_v20, %v3663_v8  ;;  %v1973_v5 = vpack.c.bf16 %v1345_v57, %v1341_v1  ;;  %v2023_v27 = vpack.c.bf16 %v1338_v16, %v1334_v43  ;;  %4306 = vst [vmem:[#allocation60_spill] sm:$0xff] %v3700_v21  ;;  %v2133_v16 = vld [vmem:[%s4099_s1 + $0x98] sm:$0xff]  ;;  %v4309_v1 = vld [vmem:[#allocation3_spill] sm:$0xff]  ;;  %v2136_v20 = vld [vmem:[%s4099_s1 + $0x90] sm:$0xff] }
 0x34e   : > { %v3695_v62 = vsel %vm685_vm5, %v3514_v59, %v3448_v54  ;;  %1972 = vmatpush1.bf16.msra.mxu0 %v1971_v35  ;;  %v2021_v7 = vpack.c.bf16 %v1339_v56, %v1335_v17  ;;  %v3705_v57 = vsel %vm711_vm7, %v3455_v19, %v1195_v44  ;;  %v1343_v59 = vmul.f32 %v2133_v16, %v3676_v42  ;;  %v2135_v56 = vld [vmem:[%s4099_s1 + $0xb8] sm:$0xff] }
 0x34f   : > { %v1207_v4 = vpop.permute.xlu0 %1206  ;;  %v1199_v14 = vpop.permute.xlu1 %1198  ;;  %4307 = vst [vmem:[#allocation61_spill] sm:$0xff] %v3705_v57  ;;  %v1975_v54 = vpack.c.bf16 %v1344_v52, %v1340_v18  ;;  %1974 = vmatprep.subr.bf16.mxu0 %v1973_v5  ;;  %v1346_v35 = vmul.f32 %v2134_v32, %v3681_v31  ;;  %v1347_v17 = vmul.f32 %v2135_v56, %v3700_v21  ;;  %v4311_v5 = vld [vmem:[#allocation2_spill] sm:$0xff]  ;;  %vm4350_vm5 = vcmp.lt.s32.totalorder %v2416_v30, 120  ;;  %v2142_v30 = vld [vmem:[%s4099_s1 + $0x288] sm:$0xff] }
 0x350   : > { %v3714_v10 = vsel %vm724_vm8, %v3461_v23, %v1207_v4  ;;  %2022 = vmatprep.subr.bf16.mxu1 %v2021_v7  ;;  %v3729_v52 = vsel %vm711_vm7, %v1199_v14, %v3455_v19  ;;  %v1342_v18 = vmul.f32 %v2136_v20, %v3695_v62  ;;  %v1349_v7 = vmul.f32 %v3705_v57, %v4311_v5  ;;  %v4315_v5 = vld [vmem:[#allocation5_spill] sm:$0xff] }
 0x351   : > { %4308 = vst [vmem:[#allocation62_spill] sm:$0xff] %v3714_v10  ;;  %2024 = vmatpush1.bf16.msra.mxu1 %v2023_v27  ;;  %v1353_v43 = vmul.f32 %v3714_v10, %v4309_v1  ;;  %4310 = vst [vmem:[#allocation3_spill] sm:$0xff] %v3729_v52  ;;  %v3740_v32 = vsel %vm724_vm8, %v1207_v4, %v3430_v50  ;;  %v2025_v56 = vpack.c.bf16 %v1347_v17, %v1343_v59  ;;  %v4316_v59 = vld [vmem:[#allocation7_spill] sm:$0xff] }
 0x352   : > { %1976 = vmatpush1.bf16.msra.mxu0 %v1975_v54  ;;  %v2027_v20 = vpack.c.bf16 %v1346_v35, %v1342_v18  ;;  %v3755_v54 = vsel %vm711_vm7, %v3468_v9, %v1199_v14  ;;  %v1348_v4 = vmul.f32 %v3729_v52, %v4315_v5  ;;  %v4319_v52 = vld [vmem:[#allocation6_spill] sm:$0xff] }
 0x353   : > { %v1211_v16 = vpop.permute.xlu0 %1210  ;;  %v1223_v27 = vpop.permute.xlu1 %1222  ;;  %4314 = vst [vmem:[#allocation64_spill] sm:$0xff] %v3755_v54  ;;  %2026 = vmatprep.subr.bf16.mxu1 %v2025_v56  ;;  %v1977_v18 = vpack.c.bf16 %v1353_v43, %v1349_v7 }
 0x354   : > { %v3745_v19 = vsel %vm724_vm8, %v3430_v50, %v1211_v16  ;;  %v3750_v1 = vsel %vm724_vm8, %v1211_v16, %v3461_v23  ;;  %v3764_v50 = vsel %vm711_vm7, %v1195_v44, %v3468_v9  ;;  %v4317_v23 = vld [vmem:[#allocation8_spill] sm:$0xff]  ;;  %vm4352_vm7 = vmmov %vm4346_vm4 }
 0x355   : > { %4312 = vst [vmem:[#allocation2_spill] sm:$0xff] %v3745_v19  ;;  %4313 = vst [vmem:[#allocation63_spill] sm:$0xff] %v3750_v1  ;;  %v1352_v17 = vmul.f32 %v3750_v1, %v4316_v59  ;;  %v1355_v35 = vmul.f32 %v3745_v19, %v4317_v23  ;;  %v4318_v16 = vld [vmem:[#allocation4_spill] sm:$0xff]  ;;  %2028 = vmatpush1.bf16.msra.mxu1 %v2027_v20  ;;  %v1351_v59 = vmul.f32 %v3755_v54, %v4319_v52  ;;  %v4320_v1 = vld [vmem:[#allocation9_spill] sm:$0xff] }
 0x356   : > { %v1354_v14 = vmul.f32 %v3740_v32, %v4318_v16  ;;  %1978 = vmatprep.subr.bf16.mxu0 %v1977_v18  ;;  %v1350_v9 = vmul.f32 %v3764_v50, %v4320_v1  ;;  %v3785_v52 = vsel %vm737_vm9, %v3478_v29, %v1223_v27  ;;  %vm4353_vm8 = vmmov %vm4340_vm1 }
 0x357   : > { %v1979_v57 = vpack.c.bf16 %v1352_v17, %v1348_v4  ;;  %v1219_v21 = vpop.permute.xlu0 %1218  ;;  %v1247_v5 = vpop.permute.xlu1 %1246  ;;  %v2029_v43 = vpack.c.bf16 %v1355_v35, %v1351_v59  ;;  %4322 = vst [vmem:[#allocation7_spill] sm:$0xff] %v3785_v52  ;;  %v4324_v17 = vld [vmem:[#allocation11_spill] sm:$0xff]  ;;  %v3793_v35 = vsel %vm737_vm9, %v1223_v27, %v3472_v53 }
 0x358   : > { %v3777_v44 = vsel %vm737_vm9, %v3472_v53, %v1219_v21  ;;  %v2031_v7 = vpack.c.bf16 %v1354_v14, %v1350_v9  ;;  %v4325_v9 = vld [vmem:[#allocation14_spill] sm:$0xff] }
 0x359   : > { %1980 = vmatpush1.bf16.msra.mxu0 %v1979_v57  ;;  %4321 = vst [vmem:[#allocation5_spill] sm:$0xff] %v3777_v44  ;;  %2030 = vmatprep.subr.bf16.mxu1 %v2029_v43  ;;  %v4323_v57 = vld [vmem:[#allocation10_spill] sm:$0xff]  ;;  %v1359_v43 = vmul.f32 %v3785_v52, %v4325_v9  ;;  %v4329_v9 = vld [vmem:[#allocation16_spill] sm:$0xff] }
 0x35a   : > { %v1357_v1 = vmul.f32 %v3777_v44, %v4323_v57  ;;  %2032 = vmatpush1.bf16.msra.mxu1 %v2031_v7  ;;  %v3803_v7 = vsel %vm737_vm9, %v1219_v21, %v3478_v29  ;;  %v4327_v57 = vld [vmem:[#allocation12_spill] sm:$0xff]  ;;  %v4330_v29 = vld [vmem:[#allocation17_spill] sm:$0xff]  ;;  %vm4355_vm9 = vmmov %vm4350_vm5 }
 0x35b   : > { %v1231_v56 = vpop.permute.xlu0 %1230  ;;  %v1271_v20 = vpop.permute.xlu1 %1270  ;;  %v1358_v21 = vmul.f32 %v3803_v7, %v4330_v29 }
 0x35c   : > { %v1238_v4 = vsel %vm750_vm10, %v3476_v2, %v1231_v56  ;;  %v1237_v18 = vsel %vm750_vm10, %v1231_v56, %v3436_v41  ;;  %v4326_v56 = vld [vmem:[#allocation13_spill] sm:$0xff] }
 0x35d   : > { %v1361_v23 = vmul.f32 %v1238_v4, %v4324_v17  ;;  %v1356_v4 = vmul.f32 %v3793_v35, %v4326_v56  ;;  %v4328_v17 = vld [vmem:[#allocation15_spill] sm:$0xff]  ;;  %v1248_v56 = vsel %vm763_vm11, %v3508_v33, %v1247_v5 }
 0x35f   : > { %v1235_v16 = vpop.permute.xlu0 %1234  ;;  %v1279_v14 = vpop.permute.xlu1 %1278  ;;  %v1981_v59 = vpack.c.bf16 %v1361_v23, %v1357_v1  ;;  %v1362_v1 = vmul.f32 %v1237_v18, %v4327_v57  ;;  %v1272_v18 = vsel %vm789_vm13, %v3446_v48, %v1271_v20  ;;  %v1377_v57 = vmul.f32 %v3330_v12, %v3011_v36 }
 0x360   : > { %v1236_v53 = vsel %vm750_vm10, %v3436_v41, %v1235_v16  ;;  %v1239_v27 = vsel %vm750_vm10, %v1235_v16, %v3476_v2  ;;  %v1379_v12 = vmul.f32 %v3340_v25, %v3043_v24  ;;  %v1285_v24 = vsel %vm4340_vm1, %v1279_v14, %v3453_v15  ;;  %vm4359_vm10 = vmmov %vm4339_vm0 }
 0x361   : > { %v1360_v23 = vmul.f32 %v1239_v27, %v4328_v17  ;;  %v1363_v52 = vmul.f32 %v1236_v53, %v4329_v9  ;;  %1982 = vmatprep.subr.bf16.mxu0 %v1981_v59  ;;  %v2035_v10 = vpack.c.bf16 %v1362_v1, %v1358_v21  ;;  %v4332_v27 = vld [vmem:[#allocation19_spill] sm:$0xff]  ;;  %v1275_v1 = vsel %vm789_vm13, %v1271_v20, %v3510_v45 }
 0x362   : > { %v1378_v21 = vmul.f32 %v3280_v47, %v3048_v38  ;;  %v4336_v38 = vld [vmem:[#allocation23_spill] sm:$0xff]  ;;  %v1286_v25 = vsel %vm4341_vm2, %v3512_v60, %v1279_v14  ;;  %v4343_v14 = vld [vmem:[#allocation25_spill] sm:$0xff]  ;;  %vm1594_vm1 = vcmask 64512   ;;  %vm1675_vm2 = vcmask 1041408  }
 0x363   : > { %v1983_v44 = vpack.c.bf16 %v1360_v23, %v1356_v4  ;;  %v1243_v54 = vpop.permute.xlu0 %1242  ;;  %v1291_v41 = vpop.permute.xlu1 %1290  ;;  %v2033_v19 = vpack.c.bf16 %v1363_v52, %v1359_v43  ;;  %v4331_v52 = vld [vmem:[#allocation18_spill] sm:$0xff]  ;;  %v1375_v4 = vmul.f32 %v1272_v18, %v3038_v61 }
 0x364   : > { %v1250_v2 = vsel %vm763_vm11, %v3483_v3, %v1243_v54  ;;  %v1249_v17 = vsel %vm763_vm11, %v1243_v54, %v3508_v33  ;;  %v4333_v33 = vld [vmem:[#allocation20_spill] sm:$0xff] }
 0x365   : > { %1984 = vmatpush1.bf16.msra.mxu0 %v1983_v44  ;;  %2034 = vmatprep.subr.bf16.mxu1 %v2033_v19  ;;  %v1365_v43 = vmul.f32 %v1250_v2, %v4331_v52  ;;  %v4335_v2 = vld [vmem:[#allocation22_spill] sm:$0xff]  ;;  %v2041_v52 = vpack.c.bf16 %v1379_v12, %v1375_v4 }
 0x366   : > { %2036 = vmatpush1.bf16.msra.mxu1 %v2035_v10  ;;  %v1251_v10 = vsel %vm763_vm11, %v1247_v5, %v3483_v3  ;;  %v4334_v5 = vld [vmem:[#allocation21_spill] sm:$0xff]  ;;  %vm4360_vm11 = vmmov %vm4339_vm0 }
 0x367   : > { %v1255_v16 = vpop.permute.xlu0 %1254  ;;  %v3824_v59 = vpop.permute.xlu1 %1282  ;;  %v1364_v54 = vmul.f32 %v1251_v10, %v4333_v33  ;;  %v1367_v20 = vmul.f32 %v1248_v56, %v4334_v5  ;;  %v1298_v56 = vsel %vm4342_vm3, %v3466_v6, %v1291_v41  ;;  %v4348_v33 = vld [vmem:[#allocation31_spill] sm:$0xff]  ;;  %vm1671_vm3 = vcmask 15360  }
 0x368   : > { %v1262_v53 = vsel %vm776_vm12, %v3506_v11, %v1255_v16  ;;  %v1261_v44 = vsel %vm776_vm12, %v1255_v16, %v3442_v49 }
 0x369   : > { %v1369_v19 = vmul.f32 %v1262_v53, %v4332_v27  ;;  %v1370_v3 = vmul.f32 %v1261_v44, %v2957_v58  ;;  %v4337_v58 = vld [vmem:[#allocation28_spill] sm:$0xff] }
 0x36a   : > { %v1372_v16 = vmul.f32 %v1275_v1, %v4337_v58  ;;  %v4338_v53 = vld [vmem:[#allocation24_spill] sm:$0xff] }
 0x36b   : > { %v1259_v23 = vpop.permute.xlu0 %1258  ;;  %v1303_v9 = vpop.permute.xlu1 %1302  ;;  %v1985_v29 = vpack.c.bf16 %v1369_v19, %v1365_v43 }
 0x36c   : > { %v1260_v36 = vsel %vm776_vm12, %v3442_v49, %v1259_v23  ;;  %v1263_v61 = vsel %vm776_vm12, %v1259_v23, %v3506_v11  ;;  %v1366_v49 = vmul.f32 %v1249_v17, %v4338_v53  ;;  %v1297_v11 = vsel %vm4339_vm0, %v1291_v41, %v3459_v55  ;;  %vm4365_vm12 = vmmov %vm4350_vm5 }
 0x36d   : > { %v1368_v18 = vmul.f32 %v1263_v61, %v4335_v2  ;;  %v1371_v47 = vmul.f32 %v1260_v36, %v4336_v38  ;;  %1986 = vmatprep.subr.bf16.mxu0 %v1985_v29  ;;  %v1385_v17 = vmul.f32 %v1297_v11, %v3087_v63  ;;  %v4344_v29 = vld [vmem:[#allocation26_spill] sm:$0xff]  ;;  %v4345_v61 = vld [vmem:[#allocation27_spill] sm:$0xff]  ;;  %v4349_v2 = vld [vmem:[#allocation29_spill] sm:$0xff]  ;;  %v1284_v38 = vsel %vm4351_vm6, %v3453_v15, %v3824_v59 }
 0x36e   : > { %v2039_v10 = vpack.c.bf16 %v1370_v3, %v1366_v49  ;;  %v1376_v41 = vmul.f32 %v3274_v13, %v4345_v61  ;;  %v1309_v13 = vsel %vm4350_vm5, %v1303_v9, %v3470_v34  ;;  %v1287_v53 = vsel %vm4353_vm8, %v3824_v59, %v3512_v60  ;;  %v4354_v11 = vld [vmem:[#allocation49_spill] sm:$0xff]  ;;  %v4358_v59 = vld [vmem:[#allocation38_spill] sm:$0xff] }
 0x36f   : > { %v1987_v43 = vpack.c.bf16 %v1368_v18, %v1364_v54  ;;  %v1267_v44 = vpop.permute.xlu0 %1266  ;;  %v1315_v27 = vpop.permute.xlu1 %1314  ;;  %v2037_v19 = vpack.c.bf16 %v1371_v47, %v1367_v20  ;;  %v1380_v18 = vmul.f32 %v1286_v25, %v4349_v2  ;;  %vm2198_vm0 = vmmov 0  }
 0x370   : > { %v1273_v4 = vsel %vm789_vm13, %v1267_v44, %v3446_v48  ;;  %v1274_v1 = vsel %vm789_vm13, %v3510_v45, %v1267_v44  ;;  %v1321_v3 = vsel %vm4346_vm4, %v1315_v27, %v3474_v0  ;;  %v4347_v48 = vld [vmem:[#allocation30_spill] sm:$0xff]  ;;  %v1384_v45 = vmul.f32 %v1298_v56, %v4348_v33  ;;  %v4357_v44 = vld [vmem:[#allocation32_spill] sm:$0xff]  ;;  %v4361_v56 = vld [vmem:[#allocation33_spill] sm:$0xff] }
 0x371   : > { %v1373_v23 = vmul.f32 %v1274_v1, %v4343_v14  ;;  %v1374_v36 = vmul.f32 %v1273_v4, %v4344_v29  ;;  %1988 = vmatpush1.bf16.msra.mxu0 %v1987_v43  ;;  %2038 = vmatprep.subr.bf16.mxu1 %v2037_v19  ;;  %v1381_v12 = vmul.f32 %v1285_v24, %v4347_v48  ;;  %v4356_v24 = vld [vmem:[#allocation37_spill] sm:$0xff]  ;;  %v4363_v1 = vld [vmem:[#allocation35_spill] sm:$0xff]  ;;  %vm4366_vm13 = vmmov %vm4350_vm5 }
 0x372   : > { %2040 = vmatpush1.bf16.msra.mxu1 %v2039_v10  ;;  %v1991_v20 = vpack.c.bf16 %v1376_v41, %v1372_v16  ;;  %v1393_v47 = vmul.f32 %v1321_v3, %v3153_v40  ;;  %v2138_v40 = vld [vmem:[%s4099_s1 + $0x268] sm:$0xff]  ;;  %v1995_v49 = vpack.c.bf16 %v1384_v45, %v1380_v18  ;;  %v1382_v60 = vmul.f32 %v1284_v38, %v4357_v44  ;;  %v4367_v33 = vld [vmem:[#allocation54_spill] sm:$0xff]  ;;  %v4371_v18 = vld [vmem:[#allocation40_spill] sm:$0xff] }
 0x373   : > { %v2043_v54 = vpack.c.bf16 %v1378_v21, %v1374_v36  ;;  %v1313_v63 = vpop.permute.xlu0 %1312  ;;  %2042 = vmatprep.subr.bf16.mxu1 %v2041_v52  ;;  %v1989_v5 = vpack.c.bf16 %v1377_v57, %v1373_v23  ;;  %v1993_v58 = vpack.c.bf16 %v1385_v17, %v1381_v12  ;;  %v2137_v57 = vld [vmem:[%s4099_s1 + $0x248] sm:$0xff]  ;;  %v1401_v15 = vmul.f32 %v2138_v40, %v3521_v39  ;;  %v1307_v25 = vpop.permute.xlu1 %1306  ;;  %v4364_v23 = vld [vmem:[#allocation36_spill] sm:$0xff]  ;;  %v4372_v38 = vld [vmem:[#allocation41_spill] sm:$0xff] }
 0x374   : > { %v1322_v21 = vsel %vm4352_vm7, %v1313_v63, %v1315_v27  ;;  %v1397_v16 = vmul.f32 %v2137_v57, %v3526_v22  ;;  %v1310_v52 = vsel %vm4355_vm9, %v4354_v11, %v1303_v9  ;;  %v1389_v22 = vmul.f32 %v1309_v13, %v4356_v24  ;;  %v4362_v9 = vld [vmem:[#allocation34_spill] sm:$0xff]  ;;  %v2141_v57 = vld [vmem:[%s4099_s1 + $0x278] sm:$0xff] }
 0x375   : > { %1990 = vmatprep.subr.bf16.mxu0 %v1989_v5  ;;  %v1392_v27 = vmul.f32 %v1322_v21, %v4358_v59  ;;  %v1383_v10 = vmul.f32 %v1287_v53, %v4361_v56  ;;  %v1388_v29 = vmul.f32 %v1310_v52, %v4364_v23  ;;  %v1308_v36 = vsel %vm4365_vm12, %v3470_v34, %v1307_v25  ;;  %v2140_v34 = vld [vmem:[%s4099_s1 + $0x258] sm:$0xff]  ;;  %v4373_v21 = vld [vmem:[#allocation42_spill] sm:$0xff]  ;;  %v2144_v52 = vld [vmem:[%s4099_s1 + $0x250] sm:$0xff] }
 0x376   : > { %1992 = vmatpush1.bf16.msra.mxu0 %v1991_v20  ;;  %2044 = vmatpush1.bf16.msra.mxu1 %v2043_v54  ;;  %v1997_v14 = vpack.c.bf16 %v1393_v47, %v1389_v22  ;;  %v2001_v12 = vpack.c.bf16 %v1401_v15, %v1397_v16  ;;  %v1399_v45 = vmul.f32 %v2140_v34, %v4367_v33  ;;  %v4374_v16 = vld [vmem:[#allocation51_spill] sm:$0xff]  ;;  %v2143_v15 = vld [vmem:[%s4099_s1 + $0x2a0] sm:$0xff]  ;;  %v4376_v24 = vld [vmem:[#allocation53_spill] sm:$0xff] }
 0x377   : > { %v1295_v43 = vpop.permute.xlu0 %1294  ;;  %1994 = vmatprep.subr.bf16.mxu0 %v1993_v58  ;;  %v1999_v54 = vpack.c.bf16 %v1392_v27, %v1388_v29  ;;  %v1398_v22 = vmul.f32 %v2144_v52, %v4376_v24  ;;  %v2147_v27 = vld [vmem:[%s4099_s1 + $0x270] sm:$0xff]  ;;  %v2151_v29 = vld [vmem:[%s4099_s1 + $0x2e0] sm:$0xff]  ;;  %v4389_v52 = vld [vmem:[#allocation61_spill] sm:$0xff] }
 0x378   : > { %v1296_v19 = vsel %vm4359_vm10, %v3459_v55, %v1295_v43  ;;  %v1299_v39 = vsel %vm4360_vm11, %v1295_v43, %v3466_v6  ;;  %v1311_v55 = vsel %vm4366_vm13, %v1307_v25, %v4354_v11  ;;  %v2139_v6 = vld [vmem:[%s4099_s1 + $0x2a8] sm:$0xff]  ;;  %v2146_v43 = vld [vmem:[%s4099_s1 + $0x298] sm:$0xff] }
 0x379   : > { %v1386_v4 = vmul.f32 %v1296_v19, %v4362_v9  ;;  %v1387_v17 = vmul.f32 %v1299_v39, %v4363_v1  ;;  %v1409_v61 = vmul.f32 %v2139_v6, %v3577_v46  ;;  %v4370_v46 = vld [vmem:[#allocation39_spill] sm:$0xff]  ;;  %v1391_v13 = vmul.f32 %v1311_v55, %v4371_v18  ;;  %v2148_v39 = vld [vmem:[%s4099_s1 + $0x280] sm:$0xff]  ;;  %v4381_v1 = vld [vmem:[#allocation56_spill] sm:$0xff] }
 0x37a   : > { %1996 = vmatpush1.bf16.msra.mxu0 %v1995_v49  ;;  %v1390_v2 = vmul.f32 %v1308_v36, %v4370_v46  ;;  %v4375_v49 = vld [vmem:[#allocation50_spill] sm:$0xff]  ;;  %v2145_v25 = vld [vmem:[%s4099_s1 + $0x2e8] sm:$0xff]  ;;  %v1407_v44 = vmul.f32 %v2146_v43, %v3637_v26  ;;  %v1402_v19 = vmul.f32 %v2147_v27, %v3564_v37  ;;  %v2149_v26 = vld [vmem:[%s4099_s1 + $0x2b8] sm:$0xff] }
 0x37b   : > { %v2047_v41 = vpack.c.bf16 %v1386_v4, %v1382_v60  ;;  %v1319_v3 = vpop.permute.xlu0 %1318  ;;  %1998 = vmatprep.subr.bf16.mxu0 %v1997_v14  ;;  %v2045_v48 = vpack.c.bf16 %v1387_v17, %v1383_v10  ;;  %v1408_v11 = vmul.f32 %v2143_v15, %v4375_v49  ;;  %v4378_v10 = vld [vmem:[#allocation48_spill] sm:$0xff]  ;;  %v4379_v9 = vld [vmem:[#allocation47_spill] sm:$0xff]  ;;  %v1411_v17 = vmul.f32 %v2149_v26, %v4381_v1  ;;  %v4384_v46 = vld [vmem:[#allocation57_spill] sm:$0xff] }
 0x37c   : > { %v1320_v5 = vsel %vm4368_vm14, %v3474_v0, %v1319_v3  ;;  %v1323_v20 = vsel %vm4369_vm15, %v1319_v3, %v1313_v63  ;;  %v1403_v0 = vmul.f32 %v2141_v57, %v4374_v16  ;;  %v1405_v63 = vmul.f32 %v2142_v30, %v3603_v51  ;;  %v2150_v37 = vld [vmem:[%s4099_s1 + $0x2c8] sm:$0xff]  ;;  %v2160_v57 = vld [vmem:[%s4099_s1 + $0x320] sm:$0xff]  ;;  %v2162_v15 = vld [vmem:[%s4099_s1 + $0x2f0] sm:$0xff] }
 0x37d   : > { %v1394_v47 = vmul.f32 %v1320_v5, %v4372_v38  ;;  %v1395_v58 = vmul.f32 %v1323_v20, %v4373_v21  ;;  %2046 = vmatprep.subr.bf16.mxu1 %v2045_v48  ;;  %v1417_v51 = vmul.f32 %v2145_v25, %v3681_v31  ;;  %v4377_v31 = vld [vmem:[#allocation52_spill] sm:$0xff]  ;;  %v4380_v4 = vpack.c.bf16 %v4378_v10, %v4379_v9  ;;  %v4382_v36 = vld [vmem:[#allocation55_spill] sm:$0xff]  ;;  %v2156_v20 = vld [vmem:[%s4099_s1 + $0x2c0] sm:$0xff] }
 0x37e   : > { %2000 = vmatpush1.bf16.msra.mxu0 %v1999_v54  ;;  %2048 = vmatpush1.bf16.msra.mxu1 %v2047_v41  ;;  %v2005_v60 = vpack.c.bf16 %v1409_v61, %v1405_v63  ;;  %v2053_v59 = vpack.c.bf16 %v1403_v0, %v1399_v45  ;;  %v1404_v56 = vmul.f32 %v2148_v39, %v4377_v31  ;;  %v2152_v61 = vld [vmem:[%s4099_s1 + $0x290] sm:$0xff]  ;;  %v4383_v41 = vld [vmem:[#allocation58_spill] sm:$0xff]  ;;  %v4387_v30 = vld [vmem:[#allocation63_spill] sm:$0xff] }
 0x37f   : > { %v2051_v53 = vpack.c.bf16 %v1394_v47, %v1390_v2  ;;  %2002 = vmatprep.subr.bf16.mxu0 %v2001_v12  ;;  %v2049_v40 = vpack.c.bf16 %v1395_v58, %v1391_v13  ;;  %v1413_v14 = vmul.f32 %v2150_v37, %v3695_v62  ;;  %v1416_v55 = vmul.f32 %v2151_v29, %v4382_v36  ;;  %v2153_v62 = vld [vmem:[%s4099_s1 + $0x2d8] sm:$0xff]  ;;  %v2154_v12 = vld [vmem:[%s4099_s1 + $0x328] sm:$0xff]  ;;  %v2155_v54 = vld [vmem:[%s4099_s1 + $0x2b0] sm:$0xff] }
 0x380   : > { %v2007_v23 = vpack.c.bf16 %v1408_v11, %v1404_v56  ;;  %v2055_v6 = vpack.c.bf16 %v1402_v19, %v1398_v22  ;;  %v1406_v3 = vmul.f32 %v2152_v61, %v4383_v41  ;;  %v1415_v48 = vmul.f32 %v2153_v62, %v3663_v8  ;;  %v4385_v2 = vld [vmem:[#allocation59_spill] sm:$0xff]  ;;  %v2159_v21 = vld [vmem:[%s4099_s1 + $0x2d0] sm:$0xff]  ;;  %v4386_v16 = vld [vmem:[#allocation62_spill] sm:$0xff] }
 0x381   : > { %2050 = vmatprep.subr.bf16.mxu1 %v2049_v40  ;;  %v1425_v34 = vmul.f32 %v2154_v12, %v3740_v32  ;;  %v2009_v33 = vpack.c.bf16 %v1417_v51, %v1413_v14  ;;  %v2057_v45 = vpack.c.bf16 %v1411_v17, %v1407_v44  ;;  %v1410_v5 = vmul.f32 %v2155_v54, %v3617_v28  ;;  %v2157_v32 = vld [vmem:[%s4099_s1 + $0x2f8] sm:$0xff]  ;;  %v2158_v13 = vld [vmem:[%s4099_s1 + $0x308] sm:$0xff]  ;;  %v4388_v49 = vld [vmem:[#allocation60_spill] sm:$0xff] }
 0x382   : > { %2004 = vmatpush1.bf16.msra.mxu0 %v4380_v4  ;;  %2052 = vmatpush1.bf16.msra.mxu1 %v2051_v53  ;;  %v1412_v8 = vmul.f32 %v2156_v20, %v4384_v46  ;;  %v1419_v18 = vmul.f32 %v2157_v32, %v4385_v2  ;;  %v1421_v28 = vmul.f32 %v2158_v13, %v3764_v50  ;;  %v2161_v50 = vld [vmem:[%s4099_s1 + $0x338] sm:$0xff]  ;;  %v2163_v11 = vld [vmem:[%s4099_s1 + $0x300] sm:$0xff]  ;;  %v4390_v25 = vld [vmem:[#allocation3_spill] sm:$0xff]  ;;  %v2197_v54 = vmov 0.0  }
 0x383   : > { %2006 = vmatprep.subr.bf16.mxu0 %v2005_v60  ;;  %2054 = vmatprep.subr.bf16.mxu1 %v2053_v59  ;;  %v2059_v47 = vpack.c.bf16 %v1410_v5, %v1406_v3  ;;  %v1414_v58 = vmul.f32 %v2159_v21, %v3676_v42  ;;  %v1424_v0 = vmul.f32 %v2160_v57, %v4386_v16  ;;  %v2164_v22 = vld [vmem:[%s4099_s1 + $0x318] sm:$0xff]  ;;  %v2165_v60 = vld [vmem:[%s4099_s1 + $0x330] sm:$0xff]  ;;  %v4391_v59 = vld [vmem:[#allocation2_spill] sm:$0xff] }
 0x384   : > { %v2011_v38 = vpack.c.bf16 %v1416_v55, %v1412_v8  ;;  %v1427_v63 = vmul.f32 %v2161_v50, %v4387_v30  ;;  %v2013_v53 = vpack.c.bf16 %v1425_v34, %v1421_v28  ;;  %v2061_v40 = vpack.c.bf16 %v1419_v18, %v1415_v48  ;;  %v4392_v19 = vld [vmem:[#allocation43_spill] sm:$0xff]  ;;  %v2166_v56 = vld [vmem:[%s4099_s1 + $0x310] sm:$0xff]  ;;  %v4395_v1 = vld [vmem:[#allocation5_spill] sm:$0xff]  ;;  %v1438_v55 = vpop.permute.xlu1 %1437 }
 0x385   : > { %v1418_v42 = vmul.f32 %v2162_v15, %v4388_v49  ;;  %v1420_v24 = vmul.f32 %v2163_v11, %v4389_v52  ;;  %v1423_v51 = vmul.f32 %v2164_v22, %v4390_v25  ;;  %v1426_v27 = vmul.f32 %v2165_v60, %v4391_v59  ;;  %v4393_v10 = vld [vmem:[#allocation64_spill] sm:$0xff]  ;;  %v1432_v37 = vld [vmem:[%s4104_s6] sm:$0xff]  ;;  %v4398_v29 = vld [vmem:[#allocation7_spill] sm:$0xff] }
 0x386   : > { %2008 = vmatpush1.bf16.msra.mxu0 %v2007_v23  ;;  %2056 = vmatpush1.bf16.msra.mxu1 %v2055_v6  ;;  %v1429_v39 = vmul.f32 %v3803_v7, %v4392_v19  ;;  %v1422_v9 = vmul.f32 %v2166_v56, %v4393_v10  ;;  %v4394_v26 = vld [vmem:[#allocation44_spill] sm:$0xff]  ;;  %v4396_v7 = vld [vmem:[#allocation45_spill] sm:$0xff]  ;;  %v4397_v23 = vld [vmem:[#allocation46_spill] sm:$0xff] }
 0x387   : > { %2010 = vmatprep.subr.bf16.mxu0 %v2009_v33  ;;  %2058 = vmatprep.subr.bf16.mxu1 %v2057_v45  ;;  %v2063_v43 = vpack.c.bf16 %v1418_v42, %v1414_v58  ;;  %v2015_v44 = vpack.c.bf16 %v1424_v0, %v1420_v24  ;;  %v2065_v31 = vpack.c.bf16 %v1427_v63, %v1423_v51  ;;  %v1592_v46 = vld [vmem:[%s4106_s8] sm:$0x3]  ;;  %v2168_v52 = vld [vmem:[%s2286_s30 + $0x8] sm:$0xff]  ;;  %v2169_v22 = vld [vmem:[%s2286_s30 + $0x10] sm:$0xff] }
 0x388   : > { %v2067_v4 = vpack.c.bf16 %v1426_v27, %v1422_v9  ;;  %v1428_v17 = vmul.f32 %v4395_v1, %v4394_v26  ;;  %v1431_v14 = vmul.f32 %v3793_v35, %v4396_v7  ;;  %v1430_v36 = vmul.f32 %v4398_v29, %v4397_v23  ;;  %v1593_v8 = vld [vmem:[%s4107_s9] sm:$0x3]  ;;  %v2170_v51 = vld [vmem:[%s2286_s30 + $0x18] sm:$0xff] }
 0x389   : > { %v1669_v28 = vld [vmem:[%s4108_s10] sm:$0xff] }
 0x38a   : > { %2012 = vmatpush1.bf16.msra.mxu0 %v2011_v38  ;;  %2060 = vmatpush1.bf16.msra.mxu1 %v2059_v47  ;;  %v1670_v38 = vld [vmem:[%s4109_s11] sm:$0xff] }
 0x38b   : > { %2014 = vmatprep.subr.bf16.mxu0 %v2013_v53  ;;  %2062 = vmatprep.subr.bf16.mxu1 %v2061_v40  ;;  %v2167_v42 = vld [vmem:[%s2286_s30] sm:$0xff] }
 0x38e   : > { %2016 = vmatpush1.bf16.msra.mxu0 %v2015_v44  ;;  %2064 = vmatpush1.bf16.msra.mxu1 %v2063_v43 }
 0x38f   : > { %1495 = vmatprep.subr.mxu0 %v1429_v39  ;;  %2066 = vmatprep.subr.bf16.mxu1 %v2065_v31 }
 0x392   : > { %1496 = vmatpush1.msra.mxu0 %v1428_v17  ;;  %2068 = vmatpush1.bf16.msra.mxu1 %v2067_v4 }
 0x393   : > { %1508 = vmatmul.mubr.f32.vlgmr.msra.gmra.mrb[2].mxu0 %v1432_v37  ;;  %1566 = vmatprep.subr.mxu1 %v1431_v14 }
 0x394   : > { %1851 = vmatprep.subr.mxu0 %v2197_v54  ;;  %1853 = vmatprep.mubr.msk.f32.mxu0 %vm2198_vm0, %v2197_v54 }
 0x396   : > { %1567 = vmatpush1.msra.mxu1 %v1430_v36 }
 0x397   : > { %1579 = vmatmul.mubr.f32.vlgmr.msra.gmra.mrb[2].mxu1 %v1432_v37  ;;  %1856 = vmatprep.subr.mxu1 %v2197_v54 }
 0x398   : > { %1858 = vmatprep.mubr.msk.f32.mxu1 %vm2198_vm0, %v2197_v54 }
 0x466   : > { %v1509_v6 = vpop.f32.mrb[2].mxu0 }
 0x467   : > { %v1510_v61 = vadd.f32 %v1509_v6, %v1438_v55  ;;  %v1511_v41 = vpop.f32.mrb[3].mxu0 }
 0x468   : > { %v1512_v3 = vadd.f32 %v1511_v41, %v1438_v55 }
 0x46a   : > { %v1585_v62 = vadd.f32 %v1512_v3, %v1510_v61  ;;  %v1580_v48 = vpop.f32.mrb[2].mxu1 }
 0x46b   : > { %v1581_v12 = vadd.f32 %v1580_v48, %v1438_v55  ;;  %v1582_v34 = vpop.f32.mrb[3].mxu1 }
 0x46c   : > { %v1583_v33 = vadd.f32 %v1582_v34, %v1438_v55 }
 0x46d   : > { %v1586_v35 = vadd.f32 %v1585_v62, %v1581_v12 }
 0x46f   : > { %v1587_v45 = vadd.f32 %v1586_v35, %v1583_v33 }
 0x471   : > { %1588 = vadd.xlane.f32.xlu0 %v1587_v45 }
 0x4fe   : > { %v1589_v5 = vpop.xlane.xlu0 %1588 }
 0x4ff   : > { %v1591_v20 = vmul.f32 0.001953125, %v1589_v5 }
 0x501   : > { %1852 = vmatpush3.msra.mxu0 %v1591_v20 }
 0x502   : > { %1854 = vmatmul.mubr.msk.f32.vlgmr.msra.gmra.mrb[4].mxu0 %vm1594_vm1, %v1592_v46 }
 0x5d5   : > { %v1664_v32 = vpop.f32.mrb[4].mxu0 }
 0x5d6   : > { %v1665_v2 = vadd.f32 %v1664_v32, %v1593_v8  ;;  %v1855_v18 = vpop.f32.mrb[5].mxu0 }
 0x5d8   : > { %v1668_v13 = vmax.f32 %v1665_v2, 0.0 }
 0x5da   : > { %1857 = vmatpush3.msk.msra.mxu1 %vm1675_vm2, %v1668_v13 }
 0x5db   : > { %1859 = vmatmul.mubr.msk.f32.vlgmr.msra.gmra.mrb[4].mxu1 %vm1671_vm3, %v1669_v28 }
 0x6ae   : > { %v1745_v47 = vpop.f32.mrb[4].mxu1 }
 0x6af   : > { %v1746_v21 = vadd.f32 %v1745_v47, %v1670_v38  ;;  %v1860_v58 = vpop.f32.mrb[5].mxu1 }
 0x6b1   : > { %v1749_v57 = vsub.f32 0.0, %v1746_v21 }
 0x6b3   : > { %v1750_v16 = vmul.f32 1.442695, %v1749_v57 }
 0x6b5   : > { %2107 = vpow2.f32 %v1750_v16 }
 0x6bf   : > { %v2108_v0 = vpop.eup %2107 }
 0x6c0   : > { %v1752_v50 = vadd.f32 1.0, %v2108_v0 }
 0x6c2   : > { %2109 = vrcp.f32 %v1752_v50 }
 0x6cc   : > { %v2110_v30 = vpop.eup %2109 }
 0x6cd   : > { %1757 = vperm.xlu1 %2098, %v2110_v30  }
 0x74c   : > { %v1758_v63 = vpop.permute.xlu1 %1757 }
 0x74d   : > { %v1760_v53 = vmul.f32 %v1758_v63, %v1510_v61  ;;  %v1761_v40 = vmul.f32 %v1758_v63, %v1512_v3  ;;  %v1762_v15 = vmul.f32 %v1758_v63, %v1581_v12  ;;  %v1763_v49 = vmul.f32 %v1758_v63, %v1583_v33 }
 0x74f   : > { %v1764_v11 = vadd.f32 %v2167_v42, %v1760_v53  ;;  %v1765_v24 = vadd.f32 %v2168_v52, %v1761_v40  ;;  %v1766_v25 = vadd.f32 %v2169_v22, %v1762_v15  ;;  %v1767_v43 = vadd.f32 %v2170_v51, %v1763_v49 }
 0x751   : > { %1768 = vst [vmem:[%s413_s14] sm:$0xff] %v1764_v11  ;;  %1769 = vst [vmem:[%s413_s14 + $0x8] sm:$0xff] %v1765_v24 }
 0x752   : > { %1770 = vst [vmem:[%s413_s14 + $0x10] sm:$0xff] %v1766_v25  ;;  %1771 = vst [vmem:[%s413_s14 + $0x18] sm:$0xff] %v1767_v43 }
 0x753 PF: > { %s22_s21 = sadd.s32 1, %s2177_s21  }
 0x754   : > { %p19_p4 = scmp.ge.s32.totalorder %s22_s21, 4  }
 0x756   :  { %21 = sbr.rel (!%p19_p4) target bundleno = 2 (0x2), region = 98 }

// kernel: swin_mlp_block.11
= control target key start
LH: loop header
LB: loop body
LE: loop exit
PB: predicated region body
PF: predicated region fallthrough
CT: control target
= control target key end

     0   :  { %s2339_s25 = smov 0   ;;  %s4174_s0 = inlined_call_operand.vmem [shape: f32[2,8,512], index: 0, kind: input, shape index: {}]   ;;  %s4175_s1 = inlined_call_operand.vmem [shape: f32[2,8,512], index: 1, kind: input, shape index: {}]   ;;  %s4176_s2 = inlined_call_operand.vmem [shape: f32[216,512], index: 2, kind: input, shape index: {}]   ;;  %s4177_s3 = inlined_call_operand.vmem [shape: f32[8,1], index: 3, kind: input, shape index: {}]   ;;  %s4178_s4 = inlined_call_operand.vmem [shape: f32[8,1], index: 4, kind: input, shape index: {}]   ;;  %s4179_s5 = inlined_call_operand.vmem [shape: f32[8,216], index: 5, kind: input, shape index: {}]   ;;  %s4180_s6 = inlined_call_operand.vmem [shape: f32[8,1], index: 6, kind: input, shape index: {}]   ;;  %s4181_s7 = inlined_call_operand.vmem [shape: f32[8,216], index: 7, kind: input, shape index: {}]   ;;  %s4182_s8 = inlined_call_operand.vmem [shape: f32[8,1], index: 8, kind: input, shape index: {}]   ;;  %s4183_s9 = inlined_call_operand.vmem [shape: f32[2,8], index: 9, kind: input, shape index: {}]   ;;  %s4184_s10 = inlined_call_operand.vmem [shape: f32[2,1], index: 10, kind: input, shape index: {}]   ;;  %s4185_s11 = inlined_call_operand.vmem [shape: f32[8,2], index: 11, kind: input, shape index: {}]   ;;  %s4186_s12 = inlined_call_operand.vmem [shape: f32[8,1], index: 12, kind: input, shape index: {}]   ;;  %s4187_s13 = inlined_call_operand.vmem [shape: f32[2,8,512], index: 13, kind: output, shape index: {}]  }
   0x1   :  { %4293 = sst [smem:[#allocation65_spill]] %s4174_s0 }
   0x2   :  { %4294 = sst [smem:[#allocation66_spill]] %s4177_s3 }
   0x3 LB: > { %s1894_s26 = sadd.s32 4294967295, %s2247_s25   ;;  %p1898_p0 = scmp.ge.s32.totalorder %s2247_s25, 1  ;;  %s2247_s25 = sphi %s2339_s25, %s23_s25  }
   0x4   : > { %p397_p1 = scmp.lt.s32.totalorder %s2247_s25, 3 }
   0x6   : > { %p398_p2 = pnand %p1898_p0, %p397_p1 }
   0x8   : > { %401 = sbr.rel (%p398_p2) target bundleno = 1883 (0x75b), region = 72 }
   0xf   : > { %s4295_s3 = sld [smem:[#allocation66_spill]]  ;;  %v2249_v1 = vmov 0   ;;  %v660_v2 = vld [vmem:[%s4178_s4] sm:$0xff]  ;;  %p446_p3 = scmp.lt.s32.totalorder %s1894_s26, 1  ;;  %vm1009_vm4 = vcmask 719872  }
  0x10   : > { %2167 = vset.pattern.permute.xlu0 %v2249_v1  ;;  %2168 = vset.pattern.permute.xlu1 %v2249_v1  ;;  %s4296_s0 = sld [smem:[#allocation65_spill]]  ;;  %s4254_s18 = smov 72  }
  0x11   : > { %s4482_s26 = smov (!%p446_p3, %s1894_s26), 1  ;;  %s4256_s19 = smov 73  }
  0x12   : > { %s2353_s14 = sshll.u32 %s4482_s26, 5  ;;  %s4208_s20 = smov 71  }
  0x13   : > { %s4212_s21 = smov 65   ;;  %s4200_s22 = smov 64  }
  0x14   : > { %s4206_s23 = smov 63   ;;  %s4192_s24 = smov 57  }
  0x15   : > { %v650_v0 = vld [vmem:[%s4295_s3] sm:$0xff]  ;;  %s4204_s26 = smov 56   ;;  %s4188_s27 = smov 55  }
  0x16   : > { %653 = vperm.xlu0 %2167, %v650_v0   ;;  %s2359_s17 = scalar_lea.vmem %s4296_s0, %s2353_s14  ;;  %s4202_s28 = smov 9  }
  0x17   : > { %v461_v3 = vld [vmem:[%s2359_s17] sm:$0xff]  ;;  %v462_v4 = vld [vmem:[%s2359_s17 + $0x8] sm:$0xff]  ;;  %v463_v6 = vld [vmem:[%s2359_s17 + $0x10] sm:$0xff]  ;;  %s4190_s29 = smov 8   ;;  %s4196_s30 = smov 7  }
  0x18   : > { %v573_v5 = vrot.slane %v461_v3, 4  ;;  %v579_v7 = vrot.slane %v462_v4, 4  ;;  %v585_v9 = vrot.slane %v463_v6, 4  ;;  %v464_v13 = vld [vmem:[%s2359_s17 + $0x18] sm:$0xff]  ;;  %s4194_s15 = smov 1   ;;  %s4198_s16 = smov 127  }
  0x19   : > { %v591_v17 = vrot.slane %v464_v13, 4  ;;  %s4371_s0 = smov 73   ;;  %s4373_s3 = smov 8  }
  0x1a   : > { %663 = vperm.xlu0 %2167, %v660_v2   ;;  %v574_v8 = vadd.f32 %v573_v5, %v461_v3  ;;  %v580_v10 = vadd.f32 %v579_v7, %v462_v4  ;;  %v586_v12 = vadd.f32 %v585_v9, %v463_v6 }
  0x1b   : > { %v592_v21 = vadd.f32 %v591_v17, %v464_v13 }
  0x1c   : > { %v575_v11 = vrot.slane %v574_v8, 2  ;;  %v581_v14 = vrot.slane %v580_v10, 2  ;;  %v587_v16 = vrot.slane %v586_v12, 2 }
  0x1d   : > { %v593_v25 = vrot.slane %v592_v21, 2 }
  0x1e   : > { %v576_v15 = vadd.f32 %v575_v11, %v574_v8  ;;  %v582_v18 = vadd.f32 %v581_v14, %v580_v10  ;;  %v588_v20 = vadd.f32 %v587_v16, %v586_v12 }
  0x1f   : > { %v594_v28 = vadd.f32 %v593_v25, %v592_v21 }
  0x20   : > { %v577_v19 = vrot.slane %v576_v15, 1  ;;  %v583_v22 = vrot.slane %v582_v18, 1  ;;  %v589_v24 = vrot.slane %v588_v20, 1 }
  0x21   : > { %v595_v31 = vrot.slane %v594_v28, 1 }
  0x22   : > { %v578_v23 = vadd.f32 %v577_v19, %v576_v15  ;;  %v584_v26 = vadd.f32 %v583_v22, %v582_v18  ;;  %v590_v27 = vadd.f32 %v589_v24, %v588_v20 }
  0x23   : > { %v596_v35 = vadd.f32 %v595_v31, %v594_v28 }
  0x24   : > { %v598_v29 = vmul.f32 0.125, %v578_v23  ;;  %v599_v30 = vmul.f32 0.125, %v584_v26  ;;  %v600_v32 = vmul.f32 0.125, %v590_v27 }
  0x25   : > { %v601_v39 = vmul.f32 0.125, %v596_v35  ;;  %v538_v35 = vld [vmem:[%s4176_s2 + $0x248] sm:$0xff] }
  0x26   : > { %v602_v33 = vsub.f32 %v461_v3, %v598_v29  ;;  %v603_v34 = vsub.f32 %v462_v4, %v599_v30  ;;  %v604_v36 = vsub.f32 %v463_v6, %v600_v32  ;;  %v678_v29 = vlaneseq }
  0x27   : > { %v605_v43 = vsub.f32 %v464_v13, %v601_v39 }
  0x28   : > { %v606_v37 = vmul.f32 %v602_v33, %v602_v33  ;;  %v607_v38 = vmul.f32 %v603_v34, %v603_v34  ;;  %v608_v40 = vmul.f32 %v604_v36, %v604_v36  ;;  %v2489_v30 = vand.u32 127, %v678_v29 }
  0x29   : > { %v609_v47 = vmul.f32 %v605_v43, %v605_v43 }
  0x2a   : > { %v610_v41 = vrot.slane %v606_v37, 4  ;;  %v616_v42 = vrot.slane %v607_v38, 4  ;;  %v622_v45 = vrot.slane %v608_v40, 4  ;;  %vm680_vm0 = vcmp.lt.s32.totalorder %v2489_v30, 73 }
  0x2b   : > { %v628_v53 = vrot.slane %v609_v47, 4  ;;  %vm693_vm1 = vcmp.lt.s32.totalorder %v2489_v30, 72  ;;  %vm706_vm2 = vcmp.lt.s32.totalorder %v2489_v30, 71  ;;  %vm719_vm3 = vcmp.lt.s32.totalorder %v2489_v30, 65 }
  0x2c   : > { %v611_v44 = vadd.f32 %v610_v41, %v606_v37  ;;  %v617_v46 = vadd.f32 %v616_v42, %v607_v38  ;;  %v623_v49 = vadd.f32 %v622_v45, %v608_v40  ;;  %v466_v37 = vld [vmem:[%s4176_s2 + $0x8] sm:$0xff]  ;;  %v537_v38 = vld [vmem:[%s4176_s2 + $0x240] sm:$0xff]  ;;  %vm732_vm5 = vcmp.lt.s32.totalorder %v2489_v30, 64 }
  0x2d   : > { %v629_v57 = vadd.f32 %v628_v53, %v609_v47  ;;  %v542_v40 = vld [vmem:[%s4176_s2 + $0x268] sm:$0xff]  ;;  %v541_v42 = vld [vmem:[%s4176_s2 + $0x260] sm:$0xff]  ;;  %vm745_vm6 = vcmp.lt.s32.totalorder %v2489_v30, 63  ;;  %vm758_vm7 = vcmp.lt.s32.totalorder %v2489_v30, 57  ;;  %vm771_vm8 = vcmp.lt.s32.totalorder %v2489_v30, 56 }
  0x2e   : > { %v612_v48 = vrot.slane %v611_v44, 2  ;;  %v618_v50 = vrot.slane %v617_v46, 2  ;;  %v624_v52 = vrot.slane %v623_v49, 2  ;;  %v470_v41 = vld [vmem:[%s4176_s2 + $0x28] sm:$0xff]  ;;  %vm784_vm9 = vcmp.lt.s32.totalorder %v2489_v30, 55 }
  0x2f   : > { %v630_v61 = vrot.slane %v629_v57, 2  ;;  %vm797_vm10 = vcmp.lt.s32.totalorder %v2489_v30, 9  ;;  %vm810_vm11 = vcmp.lt.s32.totalorder %v2489_v30, 8  ;;  %vm823_vm12 = vcmp.lt.s32.totalorder %v2489_v30, 7 }
  0x30   : > { %v613_v51 = vadd.f32 %v612_v48, %v611_v44  ;;  %v619_v54 = vadd.f32 %v618_v50, %v617_v46  ;;  %v625_v56 = vadd.f32 %v624_v52, %v623_v49  ;;  %vm836_vm13 = vcmp.lt.s32.totalorder %v2489_v30, 1 }
  0x31   : > { %v631_v0 = vadd.f32 %v630_v61, %v629_v57  ;;  %v471_v61 = vld [vmem:[%s4176_s2 + $0x30] sm:$0xff]  ;;  %vm4243_vm14 = vcmp.lt.s32.totalorder %v2489_v30, 127  ;;  %vm4247_vm15 = vcmp.lt.s32.totalorder %v2489_v30, 121 }
  0x32   : > { %v614_v55 = vrot.slane %v613_v51, 1  ;;  %v620_v58 = vrot.slane %v619_v54, 1  ;;  %v626_v60 = vrot.slane %v625_v56, 1 }
  0x33   : > { %v632_v3 = vrot.slane %v631_v0, 1 }
  0x34   : > { %v615_v59 = vadd.f32 %v614_v55, %v613_v51  ;;  %v621_v62 = vadd.f32 %v620_v58, %v619_v54  ;;  %v627_v63 = vadd.f32 %v626_v60, %v625_v56  ;;  %v540_v58 = vld [vmem:[%s4176_s2 + $0x258] sm:$0xff]  ;;  %v465_v60 = vld [vmem:[%s4176_s2] sm:$0xff] }
  0x35   : > { %v633_v7 = vadd.f32 %v632_v3, %v631_v0  ;;  %v472_v3 = vld [vmem:[%s4176_s2 + $0x38] sm:$0xff] }
  0x36   : > { %v634_v1 = vmul.f32 0.125, %v615_v59  ;;  %v635_v2 = vmul.f32 0.125, %v621_v62  ;;  %v636_v4 = vmul.f32 0.125, %v627_v63  ;;  %v544_v62 = vld [vmem:[%s4176_s2 + $0x278] sm:$0xff] }
  0x37   : > { %v637_v9 = vmul.f32 0.125, %v633_v7  ;;  %v468_v63 = vld [vmem:[%s4176_s2 + $0x18] sm:$0xff]  ;;  %v539_v7 = vld [vmem:[%s4176_s2 + $0x250] sm:$0xff] }
  0x38   : > { %v638_v5 = vadd.f32 1e-05, %v634_v1  ;;  %v639_v6 = vadd.f32 1e-05, %v635_v2  ;;  %v640_v8 = vadd.f32 1e-05, %v636_v4 }
  0x39   : > { %v641_v10 = vadd.f32 1e-05, %v637_v9  ;;  %v1003_v1 = vld [vmem:[%s4180_s6] sm:$0xff] }
  0x3a   : > { %2169 = vrsqrt.f32 %v638_v5  ;;  %v469_v2 = vld [vmem:[%s4176_s2 + $0x20] sm:$0xff] }
  0x3b   : > { %2171 = vrsqrt.f32 %v639_v6 }
  0x3c   : > { %2173 = vrsqrt.f32 %v640_v8  ;;  %v543_v8 = vld [vmem:[%s4176_s2 + $0x270] sm:$0xff] }
  0x3d   : > { %2175 = vrsqrt.f32 %v641_v10 }
  0x44   : > { %v2170_v11 = vpop.eup %2169 }
  0x45   : > { %v2172_v12 = vpop.eup %2171  ;;  %v646_v13 = vmul.f32 %v2170_v11, %v602_v33 }
  0x46   : > { %v2174_v14 = vpop.eup %2173  ;;  %v647_v16 = vmul.f32 %v2172_v12, %v603_v34 }
  0x47   : > { %v648_v17 = vmul.f32 %v2174_v14, %v604_v36  ;;  %v2176_v23 = vpop.eup %2175  ;;  %v467_v14 = vld [vmem:[%s4176_s2 + $0x10] sm:$0xff] }
  0x48   : > { %v649_v26 = vmul.f32 %v2176_v23, %v605_v43 }
  0x95   : > { %v654_v15 = vpop.permute.xlu0 %653 }
  0x96   : > { %v656_v18 = vmul.f32 %v654_v15, %v646_v13  ;;  %v657_v21 = vmul.f32 %v654_v15, %v647_v16  ;;  %v658_v22 = vmul.f32 %v654_v15, %v648_v17  ;;  %v659_v27 = vmul.f32 %v654_v15, %v649_v26 }
  0x99   : > { %v664_v19 = vpop.permute.xlu0 %663 }
  0x9a   : > { %v2365_v20 = vadd.f32 %v664_v19, %v656_v18  ;;  %v2371_v24 = vadd.f32 %v664_v19, %v657_v21  ;;  %v2373_v25 = vadd.f32 %v664_v19, %v658_v22  ;;  %v2383_v28 = vadd.f32 %v664_v19, %v659_v27 }
  0x9c   : > { %685 = vrot.lane.b32.xlu0 %v2365_v20, %s4254_s18  ;;  %670 = vrot.lane.b32.xlu1 %v2365_v20, %s4256_s19 }
  0xa0   : > { %674 = vrot.lane.b32.xlu0 %v2373_v25, %s4256_s19  ;;  %672 = vrot.lane.b32.xlu1 %v2371_v24, %s4256_s19 }
  0xa4   : > { %689 = vrot.lane.b32.xlu0 %v2373_v25, %s4254_s18  ;;  %687 = vrot.lane.b32.xlu1 %v2371_v24, %s4254_s18 }
  0xa8   : > { %698 = vrot.lane.b32.xlu0 %v2365_v20, %s4208_s20  ;;  %676 = vrot.lane.b32.xlu1 %v2383_v28, %s4256_s19 }
  0xac   : > { %711 = vrot.lane.b32.xlu0 %v2365_v20, %s4212_s21  ;;  %691 = vrot.lane.b32.xlu1 %v2383_v28, %s4254_s18 }
  0xb0   : > { %702 = vrot.lane.b32.xlu0 %v2373_v25, %s4208_s20  ;;  %700 = vrot.lane.b32.xlu1 %v2371_v24, %s4208_s20 }
  0xb4   : > { %715 = vrot.lane.b32.xlu0 %v2373_v25, %s4212_s21  ;;  %713 = vrot.lane.b32.xlu1 %v2371_v24, %s4212_s21 }
  0xb8   : > { %724 = vrot.lane.b32.xlu0 %v2365_v20, %s4200_s22  ;;  %704 = vrot.lane.b32.xlu1 %v2383_v28, %s4208_s20  ;;  %s4364_s20 = smov 7  }
  0xbc   : > { %737 = vrot.lane.b32.xlu0 %v2365_v20, %s4206_s23  ;;  %717 = vrot.lane.b32.xlu1 %v2383_v28, %s4212_s21  ;;  %s4365_s21 = smov 1  }
  0xc0   : > { %728 = vrot.lane.b32.xlu0 %v2373_v25, %s4200_s22  ;;  %726 = vrot.lane.b32.xlu1 %v2371_v24, %s4200_s22 }
  0xc4   : > { %741 = vrot.lane.b32.xlu0 %v2373_v25, %s4206_s23  ;;  %739 = vrot.lane.b32.xlu1 %v2371_v24, %s4206_s23 }
  0xc8   : > { %750 = vrot.lane.b32.xlu0 %v2365_v20, %s4192_s24  ;;  %730 = vrot.lane.b32.xlu1 %v2383_v28, %s4200_s22  ;;  %s4366_s22 = smov 127  }
  0xcc   : > { %763 = vrot.lane.b32.xlu0 %v2365_v20, %s4204_s26  ;;  %743 = vrot.lane.b32.xlu1 %v2383_v28, %s4206_s23  ;;  %s4367_s23 = smov 57  }
  0xd0   : > { %754 = vrot.lane.b32.xlu0 %v2373_v25, %s4192_s24  ;;  %752 = vrot.lane.b32.xlu1 %v2371_v24, %s4192_s24 }
  0xd4   : > { %767 = vrot.lane.b32.xlu0 %v2373_v25, %s4204_s26  ;;  %765 = vrot.lane.b32.xlu1 %v2371_v24, %s4204_s26 }
  0xd8   : > { %776 = vrot.lane.b32.xlu0 %v2365_v20, %s4188_s27  ;;  %756 = vrot.lane.b32.xlu1 %v2383_v28, %s4192_s24  ;;  %s4362_s24 = smov 9  }
  0xdc   : > { %789 = vrot.lane.b32.xlu0 %v2365_v20, %s4202_s28  ;;  %769 = vrot.lane.b32.xlu1 %v2383_v28, %s4204_s26  ;;  %s4368_s26 = smov 121  }
  0xe0   : > { %780 = vrot.lane.b32.xlu0 %v2373_v25, %s4188_s27  ;;  %778 = vrot.lane.b32.xlu1 %v2371_v24, %s4188_s27 }
  0xe4   : > { %793 = vrot.lane.b32.xlu0 %v2373_v25, %s4202_s28  ;;  %791 = vrot.lane.b32.xlu1 %v2371_v24, %s4202_s28 }
  0xe8   : > { %802 = vrot.lane.b32.xlu0 %v2365_v20, %s4190_s29  ;;  %782 = vrot.lane.b32.xlu1 %v2383_v28, %s4188_s27  ;;  %s4210_s27 = smov 121  }
  0xec   : > { %815 = vrot.lane.b32.xlu0 %v2365_v20, %s4196_s30  ;;  %795 = vrot.lane.b32.xlu1 %v2383_v28, %s4202_s28  ;;  %s4360_s28 = smov 63  }
  0xf0   : > { %806 = vrot.lane.b32.xlu0 %v2373_v25, %s4190_s29  ;;  %804 = vrot.lane.b32.xlu1 %v2371_v24, %s4190_s29 }
  0xf4   : > { %819 = vrot.lane.b32.xlu0 %v2373_v25, %s4196_s30  ;;  %817 = vrot.lane.b32.xlu1 %v2371_v24, %s4196_s30 }
  0xf8   : > { %828 = vrot.lane.b32.xlu0 %v2365_v20, %s4194_s15  ;;  %808 = vrot.lane.b32.xlu1 %v2383_v28, %s4190_s29  ;;  %s4258_s29 = smov 120  }
  0xfc   : > { %832 = vrot.lane.b32.xlu0 %v2373_v25, %s4194_s15  ;;  %821 = vrot.lane.b32.xlu1 %v2383_v28, %s4196_s30  ;;  %s4214_s30 = smov 119  }
 0x100   : > { %843 = vrot.lane.b32.xlu0 %v2371_v24, %s4198_s16  ;;  %830 = vrot.lane.b32.xlu1 %v2371_v24, %s4194_s15 }
 0x104   : > { %856 = vrot.lane.b32.xlu0 %v2371_v24, %s4210_s27  ;;  %834 = vrot.lane.b32.xlu1 %v2383_v28, %s4194_s15  ;;  %s4363_s15 = smov 64  }
 0x108   : > { %841 = vrot.lane.b32.xlu0 %v2365_v20, %s4198_s16  ;;  %845 = vrot.lane.b32.xlu1 %v2373_v25, %s4198_s16 }
 0x10c   : > { %854 = vrot.lane.b32.xlu0 %v2365_v20, %s4210_s27  ;;  %858 = vrot.lane.b32.xlu1 %v2373_v25, %s4210_s27 }
 0x10e   : > { %v686_v31 = vpop.permute.xlu0 %685  ;;  %v671_v32 = vpop.permute.xlu1 %670 }
 0x110   : > { %869 = vrot.lane.b32.xlu0 %v2371_v24, %s4258_s29  ;;  %847 = vrot.lane.b32.xlu1 %v2383_v28, %s4198_s16  ;;  %s4361_s16 = smov 56  }
 0x112   : > { %v675_v33 = vpop.permute.xlu0 %674  ;;  %v673_v34 = vpop.permute.xlu1 %672 }
 0x113   : > { %v2501_v36 = vsel %vm680_vm0, %v673_v34, %v675_v33  ;;  %v683_v39 = vsel %vm680_vm0, %v671_v32, %v673_v34  ;;  %v546_v34 = vld [vmem:[%s4176_s2 + $0x288] sm:$0xff] }
 0x114   : > { %882 = vrot.lane.b32.xlu0 %v2371_v24, %s4214_s30  ;;  %860 = vrot.lane.b32.xlu1 %v2383_v28, %s4210_s27  ;;  %v2526_v43 = vmul.f32 %v2501_v36, %v538_v35  ;;  %v894_v48 = vmul.f32 %v683_v39, %v466_v37  ;;  %v2532_v49 = vmul.f32 %v683_v39, %v537_v38  ;;  %v478_v38 = vld [vmem:[%s4176_s2 + $0x68] sm:$0xff]  ;;  %v549_v39 = vld [vmem:[%s4176_s2 + $0x2a0] sm:$0xff]  ;;  %s4359_s27 = smov 71  }
 0x115   : > { %v895_v27 = vmul.f32 %v2501_v36, %v467_v14 }
 0x116   : > { %v690_v44 = vpop.permute.xlu0 %689  ;;  %v688_v45 = vpop.permute.xlu1 %687 }
 0x117   : > { %v695_v46 = vsel %vm693_vm1, %v688_v45, %v690_v44  ;;  %v696_v47 = vsel %vm693_vm1, %v686_v31, %v688_v45 }
 0x118   : > { %v2534_v50 = vmul.f32 %v695_v46, %v542_v40  ;;  %867 = vrot.lane.b32.xlu0 %v2365_v20, %s4258_s29  ;;  %871 = vrot.lane.b32.xlu1 %v2373_v25, %s4258_s29  ;;  %v898_v51 = vmul.f32 %v696_v47, %v470_v41  ;;  %v2540_v52 = vmul.f32 %v696_v47, %v541_v42  ;;  %v550_v40 = vld [vmem:[%s4176_s2 + $0x2a8] sm:$0xff] }
 0x119   : > { %v899_v9 = vmul.f32 %v695_v46, %v471_v61 }
 0x11a   : > { %v2542_v53 = vpop.permute.xlu0 %698  ;;  %v677_v54 = vpop.permute.xlu1 %676  ;;  %v1931_v55 = vpack.c.bf16 %v898_v51, %v894_v48 }
 0x11b   : > { %v684_v59 = vsel %vm680_vm0, %v677_v54, %v671_v32  ;;  %v681_v0 = vsel %vm680_vm0, %v675_v33, %v677_v54  ;;  %v474_v32 = vld [vmem:[%s4176_s2 + $0x48] sm:$0xff]  ;;  %v545_v33 = vld [vmem:[%s4176_s2 + $0x280] sm:$0xff]  ;;  %v1985_v36 = vpack.c.bf16 %v899_v9, %v895_v27 }
 0x11c   : > { %880 = vrot.lane.b32.xlu0 %v2365_v20, %s4214_s30  ;;  %884 = vrot.lane.b32.xlu1 %v2373_v25, %s4214_s30  ;;  %v2580_v4 = vmul.f32 %v684_v59, %v540_v58  ;;  %v893_v11 = vmul.f32 %v684_v59, %v465_v60  ;;  %v896_v13 = vmul.f32 %v681_v0, %v468_v63  ;;  %v1002_v58 = vld [vmem:[%s4179_s5 + $0x8] sm:$0xff]  ;;  %v477_v9 = vld [vmem:[%s4176_s2 + $0x60] sm:$0xff] }
 0x11d   : > { %1932 = vmatprep.subr.bf16.mxu0 %v1931_v55  ;;  %v2602_v18 = vmul.f32 %v681_v0, %v539_v7  ;;  %1905 = vmatprep.mubr.msk.f32.mxu0 %vm1009_vm4, %v1002_v58  ;;  %v479_v0 = vld [vmem:[%s4176_s2 + $0x70] sm:$0xff] }
 0x11e   : > { %v2582_v5 = vpop.permute.xlu0 %711  ;;  %v692_v6 = vpop.permute.xlu1 %691  ;;  %1906 = vmatprep.mubr.msk.f32.mxu1 %vm1009_vm4, %v1002_v58  ;;  %v547_v7 = vld [vmem:[%s4176_s2 + $0x290] sm:$0xff] }
 0x11f   : > { %v697_v10 = vsel %vm693_vm1, %v692_v6, %v686_v31  ;;  %v694_v12 = vsel %vm693_vm1, %v690_v44, %v692_v6 }
 0x120   : > { %v2597_v15 = vmul.f32 %v697_v10, %v544_v62  ;;  %1006 = vperm.xlu0 %2167, %v1003_v1   ;;  %873 = vrot.lane.b32.xlu1 %v2383_v28, %s4258_s29  ;;  %v897_v16 = vmul.f32 %v697_v10, %v469_v2  ;;  %v900_v17 = vmul.f32 %v694_v12, %v472_v3  ;;  %v473_v1 = vld [vmem:[%s4176_s2 + $0x40] sm:$0xff]  ;;  %v476_v2 = vld [vmem:[%s4176_s2 + $0x58] sm:$0xff] }
 0x121   : > { %v2604_v19 = vmul.f32 %v694_v12, %v543_v8  ;;  %v548_v8 = vld [vmem:[%s4176_s2 + $0x298] sm:$0xff]  ;;  %v475_v12 = vld [vmem:[%s4176_s2 + $0x50] sm:$0xff] }
 0x122   : > { %v703_v21 = vpop.permute.xlu0 %702  ;;  %v701_v22 = vpop.permute.xlu1 %700  ;;  %v1933_v23 = vpack.c.bf16 %v897_v16, %v893_v11  ;;  %v1983_v26 = vpack.c.bf16 %v900_v17, %v896_v13  ;;  %v480_v10 = vld [vmem:[%s4176_s2 + $0x78] sm:$0xff] }
 0x123   : > { %v709_v35 = vsel %vm706_vm2, %v2542_v53, %v701_v22  ;;  %v708_v37 = vsel %vm706_vm2, %v701_v22, %v703_v21  ;;  %v552_v11 = vld [vmem:[%s4176_s2 + $0x2b8] sm:$0xff] }
 0x124   : > { %886 = vrot.lane.b32.xlu1 %v2383_v28, %s4214_s30  ;;  %1934 = vmatpush1.bf16.msra.mxu0 %v1933_v23  ;;  %v902_v44 = vmul.f32 %v709_v35, %v474_v32  ;;  %v2637_v45 = vmul.f32 %v709_v35, %v545_v33  ;;  %v2644_v48 = vmul.f32 %v708_v37, %v546_v34  ;;  %s4358_s30 = smov 65  }
 0x125   : > { %1984 = vmatprep.subr.bf16.mxu1 %v1983_v26 }
 0x126   : > { %1986 = vmatpush1.bf16.msra.mxu1 %v1985_v36  ;;  %v716_v41 = vpop.permute.xlu0 %715  ;;  %v714_v42 = vpop.permute.xlu1 %713  ;;  %v903_v36 = vmul.f32 %v708_v37, %v475_v12  ;;  %v553_v37 = vld [vmem:[%s4176_s2 + $0x2c0] sm:$0xff] }
 0x127   : > { %v721_v46 = vsel %vm719_vm3, %v714_v42, %v716_v41  ;;  %v722_v47 = vsel %vm719_vm3, %v2582_v5, %v714_v42 }
 0x128   : > { %v906_v51 = vmul.f32 %v722_v47, %v478_v38  ;;  %v2646_v54 = vmul.f32 %v722_v47, %v549_v39  ;;  %v2648_v55 = vmul.f32 %v721_v46, %v550_v40  ;;  %v907_v13 = vmul.f32 %v721_v46, %v479_v0  ;;  %v554_v46 = vld [vmem:[%s4176_s2 + $0x2c8] sm:$0xff] }
 0x129   : > { %v558_v0 = vld [vmem:[%s4176_s2 + $0x2e8] sm:$0xff] }
 0x12a   : > { %v2653_v59 = vpop.permute.xlu0 %724  ;;  %v705_v60 = vpop.permute.xlu1 %704  ;;  %v1935_v61 = vpack.c.bf16 %v906_v51, %v902_v44  ;;  %v1989_v51 = vpack.c.bf16 %v907_v13, %v903_v36 }
 0x12b   : > { %v707_v3 = vsel %vm706_vm2, %v703_v21, %v705_v60  ;;  %v710_v6 = vsel %vm706_vm2, %v705_v60, %v2542_v53  ;;  %v551_v53 = vld [vmem:[%s4176_s2 + $0x2b0] sm:$0xff]  ;;  %v486_v60 = vld [vmem:[%s4176_s2 + $0xa8] sm:$0xff] }
 0x12c   : > { %1936 = vmatprep.subr.bf16.mxu0 %v1935_v61  ;;  %v901_v14 = vmul.f32 %v710_v6, %v473_v1  ;;  %v904_v16 = vmul.f32 %v707_v3, %v476_v2  ;;  %v2698_v22 = vmul.f32 %v707_v3, %v547_v7  ;;  %v2700_v23 = vmul.f32 %v710_v6, %v548_v8  ;;  %v557_v61 = vld [vmem:[%s4176_s2 + $0x2e0] sm:$0xff] }
 0x12e   : > { %v2696_v17 = vpop.permute.xlu0 %737  ;;  %v718_v21 = vpop.permute.xlu1 %717 }
 0x12f   : > { %v720_v26 = vsel %vm719_vm3, %v716_v41, %v718_v21  ;;  %v723_v27 = vsel %vm719_vm3, %v718_v21, %v2582_v5  ;;  %v482_v5 = vld [vmem:[%s4176_s2 + $0x88] sm:$0xff] }
 0x130   : > { %v905_v32 = vmul.f32 %v723_v27, %v477_v9  ;;  %v908_v33 = vmul.f32 %v720_v26, %v480_v10  ;;  %v2707_v34 = vmul.f32 %v720_v26, %v551_v53  ;;  %v2709_v35 = vmul.f32 %v723_v27, %v552_v11  ;;  %v487_v26 = vld [vmem:[%s4176_s2 + $0xb0] sm:$0xff]  ;;  %v481_v27 = vld [vmem:[%s4176_s2 + $0x80] sm:$0xff] }
 0x132   : > { %v729_v38 = vpop.permute.xlu0 %728  ;;  %v727_v39 = vpop.permute.xlu1 %726  ;;  %v1937_v40 = vpack.c.bf16 %v905_v32, %v901_v14  ;;  %v1987_v42 = vpack.c.bf16 %v908_v33, %v904_v16  ;;  %v484_v32 = vld [vmem:[%s4176_s2 + $0x98] sm:$0xff] }
 0x133   : > { %v735_v47 = vsel %vm732_vm5, %v2653_v59, %v727_v39  ;;  %v734_v58 = vsel %vm732_vm5, %v727_v39, %v729_v38  ;;  %v555_v39 = vld [vmem:[%s4176_s2 + $0x2d0] sm:$0xff] }
 0x134   : > { %1938 = vmatpush1.bf16.msra.mxu0 %v1937_v40  ;;  %1988 = vmatprep.subr.bf16.mxu1 %v1987_v42  ;;  %v910_v3 = vmul.f32 %v735_v47, %v482_v5  ;;  %v2740_v6 = vmul.f32 %v735_v47, %v553_v37  ;;  %v2747_v9 = vmul.f32 %v734_v58, %v554_v46  ;;  %v556_v40 = vld [vmem:[%s4176_s2 + $0x2d8] sm:$0xff]  ;;  %v485_v42 = vld [vmem:[%s4176_s2 + $0xa0] sm:$0xff]  ;;  %v483_v37 = vld [vmem:[%s4176_s2 + $0x90] sm:$0xff] }
 0x135   : > { %1990 = vmatpush1.bf16.msra.mxu1 %v1989_v51  ;;  %v560_v5 = vld [vmem:[%s4176_s2 + $0x2f8] sm:$0xff] }
 0x136   : > { %v742_v1 = vpop.permute.xlu0 %741  ;;  %v740_v2 = vpop.permute.xlu1 %739 }
 0x137   : > { %v747_v7 = vsel %vm745_vm6, %v740_v2, %v742_v1  ;;  %v748_v8 = vsel %vm745_vm6, %v2696_v17, %v740_v2 }
 0x138   : > { %v914_v10 = vmul.f32 %v748_v8, %v486_v60  ;;  %v2749_v53 = vmul.f32 %v748_v8, %v557_v61  ;;  %v2751_v11 = vmul.f32 %v747_v7, %v558_v0  ;;  %v915_v46 = vmul.f32 %v747_v7, %v487_v26 }
 0x139   : > { %v911_v26 = vmul.f32 %v734_v58, %v483_v37  ;;  %v561_v58 = vld [vmem:[%s4176_s2 + $0x300] sm:$0xff] }
 0x13a   : > { %v2753_v12 = vpop.permute.xlu0 %750  ;;  %v731_v13 = vpop.permute.xlu1 %730  ;;  %v1939_v14 = vpack.c.bf16 %v914_v10, %v910_v3  ;;  %v565_v37 = vld [vmem:[%s4176_s2 + $0x320] sm:$0xff] }
 0x13b   : > { %v733_v33 = vsel %vm732_vm5, %v729_v38, %v731_v13  ;;  %v736_v36 = vsel %vm732_vm5, %v731_v13, %v2653_v59  ;;  %v488_v38 = vld [vmem:[%s4176_s2 + $0xb8] sm:$0xff]  ;;  %v559_v59 = vld [vmem:[%s4176_s2 + $0x2f0] sm:$0xff] }
 0x13c   : > { %1940 = vmatprep.subr.bf16.mxu0 %v1939_v14  ;;  %v909_v47 = vmul.f32 %v736_v36, %v481_v27  ;;  %v912_v51 = vmul.f32 %v733_v33, %v484_v32  ;;  %v2796_v0 = vmul.f32 %v733_v33, %v555_v39  ;;  %v2798_v2 = vmul.f32 %v736_v36, %v556_v40  ;;  %v562_v40 = vld [vmem:[%s4176_s2 + $0x308] sm:$0xff] }
 0x13e   : > { %v2794_v60 = vpop.permute.xlu0 %763  ;;  %v744_v61 = vpop.permute.xlu1 %743 }
 0x13f   : > { %v746_v3 = vsel %vm745_vm6, %v742_v1, %v744_v61  ;;  %v749_v8 = vsel %vm745_vm6, %v744_v61, %v2696_v17  ;;  %v2817_v17 = vld [vmem:[%s4176_s2 + $0xc8] sm:$0xff]  ;;  %v2890_v1 = vld [vmem:[%s4176_s2 + $0xe0] sm:$0xff] }
 0x140   : > { %v913_v10 = vmul.f32 %v749_v8, %v485_v42  ;;  %v916_v13 = vmul.f32 %v746_v3, %v488_v38  ;;  %v2805_v14 = vmul.f32 %v746_v3, %v559_v59  ;;  %v2807_v7 = vmul.f32 %v749_v8, %v560_v5  ;;  %4297 = vst [vmem:[#allocation2_spill] sm:$0xff] %v2817_v17  ;;  %v2834_v5 = vld [vmem:[%s4176_s2 + $0xe8] sm:$0xff] }
 0x141   : > { %v1993_v38 = vpack.c.bf16 %v915_v46, %v911_v26  ;;  %4298 = vst [vmem:[#allocation3_spill] sm:$0xff] %v2834_v5  ;;  %4302 = vst [vmem:[#allocation7_spill] sm:$0xff] %v2890_v1 }
 0x142   : > { %v755_v27 = vpop.permute.xlu0 %754  ;;  %v753_v32 = vpop.permute.xlu1 %752  ;;  %v1941_v33 = vpack.c.bf16 %v913_v10, %v909_v47  ;;  %v1991_v36 = vpack.c.bf16 %v916_v13, %v912_v51  ;;  %v566_v47 = vld [vmem:[%s4176_s2 + $0x328] sm:$0xff] }
 0x143   : > { %v761_v42 = vsel %vm758_vm7, %v2753_v12, %v753_v32  ;;  %v760_v59 = vsel %vm758_vm7, %v753_v32, %v755_v27 }
 0x144   : > { %1942 = vmatpush1.bf16.msra.mxu0 %v1941_v33  ;;  %1992 = vmatprep.subr.bf16.mxu1 %v1991_v36  ;;  %v918_v61 = vmul.f32 %v761_v42, %v2817_v17  ;;  %v2843_v3 = vmul.f32 %v761_v42, %v561_v58  ;;  %v2850_v13 = vmul.f32 %v760_v59, %v562_v40  ;;  %v2864_v40 = vld [vmem:[%s4176_s2 + $0xf0] sm:$0xff] }
 0x145   : > { %1994 = vmatpush1.bf16.msra.mxu1 %v1993_v38  ;;  %4299 = vst [vmem:[#allocation4_spill] sm:$0xff] %v2864_v40 }
 0x146   : > { %v768_v46 = vpop.permute.xlu0 %767  ;;  %v766_v51 = vpop.permute.xlu1 %765 }
 0x147   : > { %v773_v8 = vsel %vm771_vm8, %v766_v51, %v768_v46  ;;  %v774_v10 = vsel %vm771_vm8, %v2794_v60, %v766_v51 }
 0x148   : > { %v922_v26 = vmul.f32 %v774_v10, %v2834_v5  ;;  %v2853_v32 = vmul.f32 %v774_v10, %v565_v37  ;;  %v2855_v33 = vmul.f32 %v773_v8, %v566_v47  ;;  %v2869_v37 = vld [vmem:[%s4176_s2 + $0xc0] sm:$0xff]  ;;  %v2874_v47 = vld [vmem:[%s4176_s2 + $0xd8] sm:$0xff]  ;;  %v563_v10 = vld [vmem:[%s4176_s2 + $0x310] sm:$0xff]  ;;  %v923_v44 = vmul.f32 %v773_v8, %v2864_v40 }
 0x149   : > { %4300 = vst [vmem:[#allocation5_spill] sm:$0xff] %v2869_v37  ;;  %4301 = vst [vmem:[#allocation6_spill] sm:$0xff] %v2874_v47 }
 0x14a   : > { %v777_v36 = vpop.permute.xlu0 %776  ;;  %v757_v38 = vpop.permute.xlu1 %756  ;;  %v1943_v39 = vpack.c.bf16 %v922_v26, %v918_v61  ;;  %v564_v26 = vld [vmem:[%s4176_s2 + $0x318] sm:$0xff] }
 0x14b   : > { %v759_v51 = vsel %vm758_vm7, %v755_v27, %v757_v38  ;;  %v762_v61 = vsel %vm758_vm7, %v757_v38, %v2753_v12  ;;  %v2895_v27 = vld [vmem:[%s4176_s2 + $0xf8] sm:$0xff]  ;;  %v567_v12 = vld [vmem:[%s4176_s2 + $0x330] sm:$0xff] }
 0x14c   : > { %1944 = vmatprep.subr.bf16.mxu0 %v1943_v39  ;;  %4303 = vst [vmem:[#allocation8_spill] sm:$0xff] %v2895_v27  ;;  %v568_v38 = vld [vmem:[%s4176_s2 + $0x338] sm:$0xff]  ;;  %v2906_v39 = vld [vmem:[%s4176_s2 + $0xd0] sm:$0xff]  ;;  %v917_v42 = vmul.f32 %v762_v61, %v2869_v37  ;;  %v920_v41 = vmul.f32 %v759_v51, %v2874_v47  ;;  %v2911_v21 = vmul.f32 %v759_v51, %v563_v10 }
 0x14d   : > { %4304 = vst [vmem:[#allocation9_spill] sm:$0xff] %v2906_v39  ;;  %v2913_v29 = vmul.f32 %v762_v61, %v564_v26  ;;  %v919_v51 = vmul.f32 %v760_v59, %v2906_v39 }
 0x14e   : > { %v790_v58 = vpop.permute.xlu0 %789  ;;  %v770_v31 = vpop.permute.xlu1 %769 }
 0x14f   : > { %v772_v16 = vsel %vm771_vm8, %v768_v46, %v770_v31  ;;  %v775_v63 = vsel %vm771_vm8, %v770_v31, %v2794_v60  ;;  %v1997_v60 = vpack.c.bf16 %v923_v44, %v919_v51  ;;  %v2990_v31 = vld [vmem:[%s4176_s2 + $0x110] sm:$0xff] }
 0x150   : > { %v921_v62 = vmul.f32 %v775_v63, %v2890_v1  ;;  %v924_v8 = vmul.f32 %v772_v16, %v2895_v27  ;;  %v2922_v57 = vmul.f32 %v772_v16, %v567_v12  ;;  %v2924_v56 = vmul.f32 %v775_v63, %v568_v38  ;;  %v2936_v63 = vld [vmem:[%s4176_s2 + $0x108] sm:$0xff]  ;;  %4312 = vst [vmem:[#allocation17_spill] sm:$0xff] %v2990_v31 }
 0x151   : > { %4305 = vst [vmem:[#allocation10_spill] sm:$0xff] %v2936_v63 }
 0x152   : > { %v781_v61 = vpop.permute.xlu0 %780  ;;  %v779_v10 = vpop.permute.xlu1 %778  ;;  %v1945_v26 = vpack.c.bf16 %v921_v62, %v917_v42  ;;  %v1995_v46 = vpack.c.bf16 %v924_v8, %v920_v41  ;;  %v2945_v41 = vld [vmem:[%s4176_s2 + $0x128] sm:$0xff] }
 0x153   : > { %v2940_v62 = vsel %vm784_vm9, %v777_v36, %v779_v10  ;;  %4306 = vst [vmem:[#allocation11_spill] sm:$0xff] %v2945_v41  ;;  %v2994_v47 = vsel %vm784_vm9, %v779_v10, %v781_v61 }
 0x154   : > { %1946 = vmatpush1.bf16.msra.mxu0 %v1945_v26  ;;  %1996 = vmatprep.subr.bf16.mxu1 %v1995_v46  ;;  %v926_v42 = vmul.f32 %v2940_v62, %v2936_v63  ;;  %v2955_v26 = vld [vmem:[%s4176_s2 + $0x130] sm:$0xff]  ;;  %v927_v10 = vmul.f32 %v2994_v47, %v2990_v31 }
 0x155   : > { %1998 = vmatpush1.bf16.msra.mxu1 %v1997_v60  ;;  %4307 = vst [vmem:[#allocation12_spill] sm:$0xff] %v2955_v26  ;;  %v2962_v60 = vld [vmem:[%s4176_s2 + $0x100] sm:$0xff] }
 0x156   : > { %v794_v44 = vpop.permute.xlu0 %793  ;;  %v792_v16 = vpop.permute.xlu1 %791  ;;  %4308 = vst [vmem:[#allocation13_spill] sm:$0xff] %v2962_v60 }
 0x157   : > { %v800_v59 = vsel %vm797_vm10, %v790_v58, %v792_v16  ;;  %v799_v46 = vsel %vm797_vm10, %v792_v16, %v794_v44  ;;  %v2980_v16 = vld [vmem:[%s4176_s2 + $0x120] sm:$0xff] }
 0x158   : > { %v930_v12 = vmul.f32 %v800_v59, %v2945_v41  ;;  %v2967_v59 = vld [vmem:[%s4176_s2 + $0x118] sm:$0xff]  ;;  %4310 = vst [vmem:[#allocation15_spill] sm:$0xff] %v2980_v16  ;;  %v931_v41 = vmul.f32 %v799_v46, %v2955_v26 }
 0x159   : > { %4309 = vst [vmem:[#allocation14_spill] sm:$0xff] %v2967_v59 }
 0x15a   : > { %v803_v38 = vpop.permute.xlu0 %802  ;;  %v783_v8 = vpop.permute.xlu1 %782  ;;  %v1947_v51 = vpack.c.bf16 %v930_v12, %v926_v42 }
 0x15b   : > { %v2971_v42 = vsel %vm784_vm9, %v781_v61, %v783_v8  ;;  %v2975_v12 = vsel %vm784_vm9, %v783_v8, %v777_v36 }
 0x15c   : > { %1948 = vmatprep.subr.bf16.mxu0 %v1947_v51  ;;  %v2985_v51 = vld [vmem:[%s4176_s2 + $0x138] sm:$0xff]  ;;  %v925_v40 = vmul.f32 %v2975_v12, %v2962_v60  ;;  %v928_v27 = vmul.f32 %v2971_v42, %v2967_v59 }
 0x15d   : > { %4311 = vst [vmem:[#allocation16_spill] sm:$0xff] %v2985_v51 }
 0x15e   : > { %v816_v36 = vpop.permute.xlu0 %815  ;;  %v796_v8 = vpop.permute.xlu1 %795 }
 0x15f   : > { %v798_v63 = vsel %vm797_vm10, %v794_v44, %v796_v8  ;;  %v801_v39 = vsel %vm797_vm10, %v796_v8, %v790_v58  ;;  %v2001_v58 = vpack.c.bf16 %v931_v41, %v927_v10  ;;  %v3021_v8 = vld [vmem:[%s4176_s2 + $0x168] sm:$0xff] }
 0x160   : > { %v929_v1 = vmul.f32 %v801_v39, %v2980_v16  ;;  %v932_v61 = vmul.f32 %v798_v63, %v2985_v51  ;;  %v3014_v39 = vld [vmem:[%s4176_s2 + $0x148] sm:$0xff]  ;;  %4314 = vst [vmem:[#allocation19_spill] sm:$0xff] %v3021_v8  ;;  %v3037_v51 = vld [vmem:[%s4176_s2 + $0x140] sm:$0xff] }
 0x161   : > { %4313 = vst [vmem:[#allocation18_spill] sm:$0xff] %v3014_v39  ;;  %4315 = vst [vmem:[#allocation20_spill] sm:$0xff] %v3037_v51 }
 0x162   : > { %v807_v46 = vpop.permute.xlu0 %806  ;;  %v805_v44 = vpop.permute.xlu1 %804  ;;  %v1949_v26 = vpack.c.bf16 %v929_v1, %v925_v40  ;;  %v1999_v37 = vpack.c.bf16 %v932_v61, %v928_v27 }
 0x163   : > { %v813_v63 = vsel %vm810_vm11, %v803_v38, %v805_v44 }
 0x164   : > { %1950 = vmatpush1.bf16.msra.mxu0 %v1949_v26  ;;  %2000 = vmatprep.subr.bf16.mxu1 %v1999_v37  ;;  %v934_v27 = vmul.f32 %v813_v63, %v3014_v39  ;;  %v3042_v63 = vld [vmem:[%s4176_s2 + $0x158] sm:$0xff] }
 0x165   : > { %2002 = vmatpush1.bf16.msra.mxu1 %v2001_v58  ;;  %v3030_v58 = vld [vmem:[%s4176_s2 + $0x170] sm:$0xff]  ;;  %4316 = vst [vmem:[#allocation21_spill] sm:$0xff] %v3042_v63 }
 0x166   : > { %v820_v1 = vpop.permute.xlu0 %819  ;;  %v818_v40 = vpop.permute.xlu1 %817 }
 0x167   : > { %v826_v37 = vsel %vm823_vm12, %v816_v36, %v818_v40  ;;  %v825_v31 = vsel %vm823_vm12, %v818_v40, %v820_v1  ;;  %v3051_v40 = vld [vmem:[%s4176_s2 + $0x160] sm:$0xff] }
 0x168   : > { %v938_v41 = vmul.f32 %v826_v37, %v3021_v8  ;;  %4317 = vst [vmem:[#allocation22_spill] sm:$0xff] %v3051_v40  ;;  %v812_v8 = vsel %vm810_vm11, %v805_v44, %v807_v46 }
 0x16a   : > { %v829_v26 = vpop.permute.xlu0 %828  ;;  %v809_v61 = vpop.permute.xlu1 %808  ;;  %v1951_v10 = vpack.c.bf16 %v938_v41, %v934_v27  ;;  %v3056_v41 = vld [vmem:[%s4176_s2 + $0x178] sm:$0xff] }
 0x16b   : > { %v811_v37 = vsel %vm810_vm11, %v807_v46, %v809_v61  ;;  %v814_v27 = vsel %vm810_vm11, %v809_v61, %v803_v38  ;;  %4318 = vst [vmem:[#allocation23_spill] sm:$0xff] %v3056_v41  ;;  %v939_v61 = vmul.f32 %v825_v31, %v3030_v58  ;;  %v3079_v31 = vld [vmem:[%s4176_s2 + $0x188] sm:$0xff] }
 0x16c   : > { %1952 = vmatprep.subr.bf16.mxu0 %v1951_v10  ;;  %v3061_v10 = vld [vmem:[%s4176_s2 + $0x150] sm:$0xff]  ;;  %v933_v59 = vmul.f32 %v814_v27, %v3037_v51  ;;  %v936_v17 = vmul.f32 %v811_v37, %v3042_v63  ;;  %4320 = vst [vmem:[#allocation25_spill] sm:$0xff] %v3079_v31 }
 0x16d   : > { %4319 = vst [vmem:[#allocation24_spill] sm:$0xff] %v3061_v10  ;;  %v935_v44 = vmul.f32 %v812_v8, %v3061_v10  ;;  %v3091_v8 = vld [vmem:[%s4176_s2 + $0x190] sm:$0xff] }
 0x16e   : > { %v833_v39 = vpop.permute.xlu0 %832  ;;  %v822_v38 = vpop.permute.xlu1 %821  ;;  %4321 = vst [vmem:[#allocation26_spill] sm:$0xff] %v3091_v8  ;;  %v3173_v51 = vld [vmem:[%s4176_s2 + $0x1d0] sm:$0xff] }
 0x16f   : > { %v824_v16 = vsel %vm823_vm12, %v820_v1, %v822_v38  ;;  %v827_v60 = vsel %vm823_vm12, %v822_v38, %v816_v36  ;;  %v3084_v36 = vld [vmem:[%s4176_s2 + $0x1a8] sm:$0xff]  ;;  %4327 = vst [vmem:[#allocation32_spill] sm:$0xff] %v3173_v51 }
 0x170   : > { %v937_v5 = vmul.f32 %v827_v60, %v3051_v40  ;;  %v940_v46 = vmul.f32 %v824_v16, %v3056_v41  ;;  %v2005_v16 = vpack.c.bf16 %v939_v61, %v935_v44  ;;  %v3111_v61 = vld [vmem:[%s4176_s2 + $0x198] sm:$0xff] }
 0x172   : > { %v844_v1 = vpop.permute.xlu0 %843  ;;  %v831_v27 = vpop.permute.xlu1 %830  ;;  %v1953_v38 = vpack.c.bf16 %v937_v5, %v933_v59  ;;  %v2003_v37 = vpack.c.bf16 %v940_v46, %v936_v17  ;;  %v946_v5 = vmul.f32 %v2371_v24, %v3084_v36  ;;  %v3101_v17 = vld [vmem:[%s4176_s2 + $0x1a0] sm:$0xff]  ;;  %v3116_v24 = vld [vmem:[%s4176_s2 + $0x1b8] sm:$0xff] }
 0x173   : > { %v839_v60 = vsel %vm836_vm13, %v829_v26, %v831_v27  ;;  %v838_v10 = vsel %vm836_vm13, %v831_v27, %v833_v39  ;;  %4322 = vst [vmem:[#allocation27_spill] sm:$0xff] %v3101_v17  ;;  %v3106_v59 = vld [vmem:[%s4176_s2 + $0x180] sm:$0xff] }
 0x174   : > { %v942_v41 = vmul.f32 %v839_v60, %v3079_v31  ;;  %1954 = vmatpush1.bf16.msra.mxu0 %v1953_v38  ;;  %2004 = vmatprep.subr.bf16.mxu1 %v2003_v37  ;;  %4323 = vst [vmem:[#allocation28_spill] sm:$0xff] %v3106_v59  ;;  %v3121_v38 = vld [vmem:[%s4176_s2 + $0x1b0] sm:$0xff]  ;;  %v943_v37 = vmul.f32 %v838_v10, %v3091_v8 }
 0x175   : > { %2006 = vmatpush1.bf16.msra.mxu1 %v2005_v16  ;;  %v947_v10 = vmul.f32 %v2373_v25, %v3121_v38  ;;  %v3148_v25 = vld [vmem:[%s4176_s2 + $0x1c8] sm:$0xff] }
 0x176   : > { %v857_v46 = vpop.permute.xlu0 %856  ;;  %v835_v44 = vpop.permute.xlu1 %834  ;;  %v1955_v27 = vpack.c.bf16 %v946_v5, %v942_v41  ;;  %v945_v41 = vmul.f32 %v2365_v20, %v3101_v17  ;;  %v948_v5 = vmul.f32 %v2383_v28, %v3116_v24  ;;  %4325 = vst [vmem:[#allocation30_spill] sm:$0xff] %v3148_v25 }
 0x177   : > { %v837_v60 = vsel %vm836_vm13, %v833_v39, %v835_v44  ;;  %v840_v16 = vsel %vm836_vm13, %v835_v44, %v829_v26  ;;  %v2009_v44 = vpack.c.bf16 %v947_v10, %v943_v37 }
 0x178   : > { %v941_v31 = vmul.f32 %v840_v16, %v3106_v59  ;;  %v944_v40 = vmul.f32 %v837_v60, %v3111_v61  ;;  %1956 = vmatprep.subr.bf16.mxu0 %v1955_v27  ;;  %v3140_v27 = vld [vmem:[%s4176_s2 + $0x1c0] sm:$0xff] }
 0x179   : > { %4324 = vst [vmem:[#allocation29_spill] sm:$0xff] %v3140_v27 }
 0x17a   : > { %v842_v39 = vpop.permute.xlu0 %841  ;;  %v846_v8 = vpop.permute.xlu1 %845  ;;  %v1957_v63 = vpack.c.bf16 %v945_v41, %v941_v31  ;;  %v2007_v26 = vpack.c.bf16 %v948_v5, %v944_v40  ;;  %v3155_v40 = vld [vmem:[%s4176_s2 + $0x1e0] sm:$0xff] }
 0x17b   : > { %v852_v20 = vsel %vm4243_vm14, %v842_v39, %v844_v1  ;;  %v851_v28 = vsel %vm4243_vm14, %v844_v1, %v846_v8  ;;  %4326 = vst [vmem:[#allocation31_spill] sm:$0xff] %v3155_v40 }
 0x17c   : > { %1958 = vmatpush1.bf16.msra.mxu0 %v1957_v63  ;;  %2008 = vmatprep.subr.bf16.mxu1 %v2007_v26  ;;  %v3160_v63 = vld [vmem:[%s4176_s2 + $0x1e8] sm:$0xff]  ;;  %v949_v1 = vmul.f32 %v852_v20, %v3140_v27  ;;  %v950_v41 = vmul.f32 %v851_v28, %v3148_v25 }
 0x17d   : > { %2010 = vmatpush1.bf16.msra.mxu1 %v2009_v44 }
 0x17e   : > { %v855_v31 = vpop.permute.xlu0 %854  ;;  %v859_v37 = vpop.permute.xlu1 %858 }
 0x17f   : > { %v865_v60 = vsel %vm4247_vm15, %v855_v31, %v857_v46  ;;  %v864_v16 = vsel %vm4247_vm15, %v857_v46, %v859_v37  ;;  %v3178_v46 = vld [vmem:[%s4176_s2 + $0x1d8] sm:$0xff] }
 0x180   : > { %v953_v5 = vmul.f32 %v865_v60, %v3155_v40  ;;  %v954_v10 = vmul.f32 %v864_v16, %v3160_v63  ;;  %4328 = vst [vmem:[#allocation33_spill] sm:$0xff] %v3178_v46  ;;  %v3187_v60 = vld [vmem:[%s4176_s2 + $0x1f0] sm:$0xff] }
 0x181   : > { %4329 = vst [vmem:[#allocation34_spill] sm:$0xff] %v3187_v60 }
 0x182   : > { %v870_v26 = vpop.permute.xlu0 %869  ;;  %v848_v44 = vpop.permute.xlu1 %847  ;;  %v1959_v17 = vpack.c.bf16 %v954_v10, %v950_v41  ;;  %v1961_v59 = vpack.c.bf16 %v953_v5, %v949_v1 }
 0x183   : > { %v850_v20 = vsel %vm4243_vm14, %v846_v8, %v848_v44  ;;  %v853_v28 = vsel %vm4243_vm14, %v848_v44, %v842_v39  ;;  %vm4252_vm14 = vcmp.lt.s32.totalorder %v2489_v30, 120 }
 0x184   : > { %1960 = vmatprep.subr.bf16.mxu0 %v1959_v17  ;;  %v3192_v17 = vld [vmem:[%s4176_s2 + $0x1f8] sm:$0xff]  ;;  %v952_v39 = vmul.f32 %v853_v28, %v3178_v46 }
 0x185   : > { %1962 = vmatpush1.bf16.msra.mxu0 %v1961_v59  ;;  %4330 = vst [vmem:[#allocation35_spill] sm:$0xff] %v3192_v17  ;;  %v951_v59 = vmul.f32 %v850_v20, %v3173_v51  ;;  %v3214_v20 = vld [vmem:[%s4176_s2 + $0x208] sm:$0xff]  ;;  %v3239_v51 = vld [vmem:[%s4176_s2 + $0x210] sm:$0xff] }
 0x186   : > { %v883_v16 = vpop.permute.xlu0 %882  ;;  %v861_v1 = vpop.permute.xlu1 %860  ;;  %4332 = vst [vmem:[#allocation37_spill] sm:$0xff] %v3214_v20  ;;  %4334 = vst [vmem:[#allocation39_spill] sm:$0xff] %v3239_v51 }
 0x187   : > { %v863_v41 = vsel %vm4247_vm15, %v859_v37, %v861_v1  ;;  %v866_v8 = vsel %vm4247_vm15, %v861_v1, %v855_v31  ;;  %v3206_v37 = vld [vmem:[%s4176_s2 + $0x200] sm:$0xff]  ;;  %vm4253_vm15 = vcmp.lt.s32.totalorder %v2489_v30, 119 }
 0x188   : > { %v955_v5 = vmul.f32 %v863_v41, %v3187_v60  ;;  %v956_v10 = vmul.f32 %v866_v8, %v3192_v17  ;;  %4331 = vst [vmem:[#allocation36_spill] sm:$0xff] %v3206_v37  ;;  %v3221_v1 = vld [vmem:[%s4176_s2 + $0x220] sm:$0xff] }
 0x189   : > { %4333 = vst [vmem:[#allocation38_spill] sm:$0xff] %v3221_v1 }
 0x18a   : > { %v868_v44 = vpop.permute.xlu0 %867  ;;  %v872_v27 = vpop.permute.xlu1 %871  ;;  %v2011_v40 = vpack.c.bf16 %v956_v10, %v952_v39  ;;  %v2013_v25 = vpack.c.bf16 %v955_v5, %v951_v59 }
 0x18b   : > { %v878_v31 = vsel %vm4252_vm14, %v868_v44, %v870_v26  ;;  %v877_v28 = vsel %vm4252_vm14, %v870_v26, %v872_v27 }
 0x18c   : > { %2012 = vmatprep.subr.bf16.mxu1 %v2011_v40  ;;  %v3226_v40 = vld [vmem:[%s4176_s2 + $0x228] sm:$0xff]  ;;  %v958_v26 = vmul.f32 %v877_v28, %v3214_v20 }
 0x18d   : > { %2014 = vmatpush1.bf16.msra.mxu1 %v2013_v25  ;;  %v957_v25 = vmul.f32 %v878_v31, %v3206_v37 }
 0x18e   : > { %v881_v41 = vpop.permute.xlu0 %880  ;;  %v885_v8 = vpop.permute.xlu1 %884 }
 0x18f   : > { %v891_v59 = vsel %vm4253_vm15, %v881_v41, %v883_v16  ;;  %v890_v39 = vsel %vm4253_vm15, %v883_v16, %v885_v8  ;;  %v3244_v16 = vld [vmem:[%s4176_s2 + $0x218] sm:$0xff] }
 0x190   : > { %v961_v5 = vmul.f32 %v891_v59, %v3221_v1  ;;  %v962_v10 = vmul.f32 %v890_v39, %v3226_v40  ;;  %4335 = vst [vmem:[#allocation40_spill] sm:$0xff] %v3244_v16  ;;  %v3253_v59 = vld [vmem:[%s4176_s2 + $0x230] sm:$0xff] }
 0x191   : > { %4336 = vst [vmem:[#allocation41_spill] sm:$0xff] %v3253_v59 }
 0x192   : > { %v874_v17 = vpop.permute.xlu1 %873  ;;  %v1963_v60 = vpack.c.bf16 %v962_v10, %v958_v26  ;;  %v1965_v46 = vpack.c.bf16 %v961_v5, %v957_v25  ;;  %v4338_v25 = vpack.c.bf16 %v2534_v50, %v2526_v43  ;;  %v4339_v10 = vpack.c.bf16 %v2540_v52, %v2532_v49 }
 0x193   : > { %v876_v31 = vsel %vm4252_vm14, %v872_v27, %v874_v17  ;;  %v879_v28 = vsel %vm4252_vm14, %v874_v17, %v868_v44  ;;  %v4340_v43 = vpack.c.bf16 %v2648_v55, %v2644_v48  ;;  %v4343_v49 = vpack.c.bf16 %v2597_v15, %v2580_v4 }
 0x194   : > { %1964 = vmatprep.subr.bf16.mxu0 %v1963_v60  ;;  %v3258_v60 = vld [vmem:[%s4176_s2 + $0x238] sm:$0xff]  ;;  %v959_v17 = vmul.f32 %v876_v31, %v3239_v51  ;;  %v960_v44 = vmul.f32 %v879_v28, %v3244_v16  ;;  %v4342_v31 = vpack.c.bf16 %v2751_v11, %v2747_v9  ;;  %v4344_v52 = vpack.c.bf16 %v2749_v53, %v2740_v6  ;;  %v1001_v6 = vld [vmem:[%s4179_s5] sm:$0xff]  ;;  %v3340_v11 = vld [vmem:[%s4176_s2 + $0x350] sm:$0xff] }
 0x195   : > { %1966 = vmatpush1.bf16.msra.mxu0 %v1965_v46  ;;  %4337 = vst [vmem:[#allocation42_spill] sm:$0xff] %v3258_v60  ;;  %v4345_v48 = vpack.c.bf16 %v2604_v19, %v2602_v18  ;;  %v4348_v4 = vpack.c.bf16 %v2709_v35, %v2700_v23  ;;  %v3308_v18 = vld [vmem:[%s4176_s2 + $0x340] sm:$0xff]  ;;  %v4350_v19 = vpack.c.bf16 %v2853_v32, %v2843_v3  ;;  %4356 = vst [vmem:[#allocation46_spill] sm:$0xff] %v3340_v11 }
 0x196   : > { %v887_v39 = vpop.permute.xlu1 %886  ;;  %1968 = vmatprep.subr.bf16.mxu0 %v4338_v25  ;;  %4349 = vst [vmem:[#allocation44_spill] sm:$0xff] %v3308_v18  ;;  %v4351_v55 = vpack.c.bf16 %v2707_v34, %v2698_v22  ;;  %v4352_v23 = vpack.c.bf16 %v2807_v7, %v2798_v2  ;;  %v997_v35 = vmul.f32 %v2940_v62, %v3308_v18  ;;  %v3330_v22 = vld [vmem:[%s4176_s2 + $0x358] sm:$0xff] }
 0x197   : > { %v889_v27 = vsel %vm4253_vm15, %v885_v8, %v887_v39  ;;  %v892_v46 = vsel %vm4253_vm15, %v887_v39, %v881_v41  ;;  %v4341_v41 = vpack.c.bf16 %v2646_v54, %v2637_v45  ;;  %v3295_v45 = vld [vmem:[%s4176_s2 + $0x348] sm:$0xff]  ;;  %v4347_v54 = vpack.c.bf16 %v2855_v33, %v2850_v13  ;;  %4354 = vst [vmem:[#allocation45_spill] sm:$0xff] %v3330_v22 }
 0x198   : > { %v963_v26 = vmul.f32 %v889_v27, %v3253_v59  ;;  %v964_v5 = vmul.f32 %v892_v46, %v3258_v60  ;;  %4346 = vst [vmem:[#allocation43_spill] sm:$0xff] %v3295_v45  ;;  %v998_v15 = vmul.f32 %v2994_v47, %v3295_v45  ;;  %v4353_v9 = vpack.c.bf16 %v2805_v14, %v2796_v0 }
 0x199   : > { %1970 = vmatpush1.bf16.msra.mxu0 %v4339_v10  ;;  %v4355_v34 = vpack.c.bf16 %v2924_v56, %v2913_v29  ;;  %v1000_v53 = vmul.f32 %v2975_v12, %v3330_v22  ;;  %v4357_v0 = vpack.c.bf16 %v2922_v57, %v2911_v21  ;;  %v999_v2 = vmul.f32 %v2971_v42, %v3340_v11 }
 0x19a   : > { %1972 = vmatprep.subr.bf16.mxu0 %v4340_v43  ;;  %v2015_v50 = vpack.c.bf16 %v964_v5, %v960_v44  ;;  %v2017_v8 = vpack.c.bf16 %v963_v26, %v959_v17 }
 0x19c   : > { %2016 = vmatprep.subr.bf16.mxu1 %v2015_v50 }
 0x19d   : > { %1974 = vmatpush1.bf16.msra.mxu0 %v4341_v41  ;;  %2018 = vmatpush1.bf16.msra.mxu1 %v2017_v8 }
 0x19e   : > { %1976 = vmatprep.subr.bf16.mxu0 %v4342_v31  ;;  %2020 = vmatprep.subr.bf16.mxu1 %v4343_v49 }
 0x19f   : > { %v1007_v56 = vpop.permute.xlu0 %1006 }
 0x1a1   : > { %1978 = vmatpush1.bf16.msra.mxu0 %v4344_v52  ;;  %2022 = vmatpush1.bf16.msra.mxu1 %v4345_v48 }
 0x1a2   : > { %1980 = vmatprep.subr.bf16.mxu0 %v4347_v54  ;;  %2024 = vmatprep.subr.bf16.mxu1 %v4348_v4  ;;  %v1480_v4 = vld [vmem:[%s4181_s7 + $0x8] sm:$0xff] }
 0x1a5   : > { %1982 = vmatpush1.bf16.msra.mxu0 %v4350_v19  ;;  %2026 = vmatpush1.bf16.msra.mxu1 %v4351_v55 }
 0x1a6   : > { %1065 = vmatprep.subr.mxu0 %v998_v15  ;;  %2028 = vmatprep.subr.bf16.mxu1 %v4352_v23 }
 0x1a9   : > { %1066 = vmatpush1.msra.mxu0 %v997_v35  ;;  %2030 = vmatpush1.bf16.msra.mxu1 %v4353_v9  ;;  %v1481_v35 = vld [vmem:[%s4182_s8] sm:$0xff] }
 0x1aa   : > { %1078 = vmatmul.mubr.f32.vlgmr.msra.gmra.mrb[0].mxu0 %v1001_v6  ;;  %2032 = vmatprep.subr.bf16.mxu1 %v4355_v34 }
 0x1ab   : > { %1907 = vmatprep.mubr.msk.f32.mxu0 %vm1009_vm4, %v1480_v4 }
 0x1ad   : > { %2034 = vmatpush1.bf16.msra.mxu1 %v4357_v0 }
 0x1ae   : > { %1136 = vmatprep.subr.mxu1 %v1000_v53 }
 0x1b1   : > { %1137 = vmatpush1.msra.mxu1 %v999_v2 }
 0x1b2   : > { %1149 = vmatmul.mubr.f32.vlgmr.msra.gmra.mrb[0].mxu1 %v1001_v6 }
 0x1b3   : > { %1908 = vmatprep.mubr.msk.f32.mxu1 %vm1009_vm4, %v1480_v4  ;;  %vm4428_vm4 = vcmp.lt.s32.totalorder %v2489_v30, 119 }
 0x27d   : > { %v1079_v29 = vpop.f32.mrb[0].mxu0 }
 0x27e   : > { %v1080_v14 = vadd.f32 %v1079_v29, %v1007_v56  ;;  %v1081_v7 = vpop.f32.mrb[1].mxu0 }
 0x27f   : > { %v1082_v62 = vadd.f32 %v1081_v7, %v1007_v56 }
 0x280   : > { %vm1155_vm14 = vcmp.ge.f32.partialorder %v1080_v14, 0.0  ;;  %v1159_v3 = vmul.f32 0.2, %v1080_v14 }
 0x281   : > { %v1160_v42 = vmul.f32 0.2, %v1082_v62 }
 0x282   : > { %v3347_v13 = vsel %vm1155_vm14, %v1080_v14, %v1159_v3  ;;  %vm1156_vm14 = vcmp.ge.f32.partialorder %v1082_v62, 0.0 }
 0x283   : > { %1167 = vrot.lane.b32.xlu1 %v3347_v13, %s4256_s19  ;;  %v3403_v12 = vsel %vm1156_vm14, %v1082_v62, %v1160_v42  ;;  %v2183_v42 = vld [vmem:[%s4176_s2 + $0x28] sm:$0xff]  ;;  %vm4450_vm14 = vmmov %vm4428_vm4 }
 0x285   : > { %v1150_v32 = vpop.f32.mrb[0].mxu1 }
 0x286   : > { %v1151_v57 = vadd.f32 %v1150_v32, %v1007_v56  ;;  %v1152_v21 = vpop.f32.mrb[1].mxu1 }
 0x287   : > { %1179 = vrot.lane.b32.xlu1 %v3347_v13, %s4254_s18  ;;  %v1153_v28 = vadd.f32 %v1152_v21, %v1007_v56 }
 0x288   : > { %vm1157_vm15 = vcmp.ge.f32.partialorder %v1151_v57, 0.0  ;;  %v1161_v33 = vmul.f32 0.2, %v1151_v57 }
 0x289   : > { %v1162_v39 = vmul.f32 0.2, %v1153_v28 }
 0x28a   : > { %v3353_v47 = vsel %vm1157_vm15, %v1151_v57, %v1161_v33  ;;  %vm1158_vm15 = vcmp.ge.f32.partialorder %v1153_v28, 0.0  ;;  %v2181_v57 = vld [vmem:[%s4176_s2 + $0x8] sm:$0xff]  ;;  %v2182_v33 = vld [vmem:[%s4176_s2 + $0x240] sm:$0xff] }
 0x28b   : > { %1183 = vrot.lane.b32.xlu0 %v3353_v47, %s4254_s18  ;;  %1171 = vrot.lane.b32.xlu1 %v3353_v47, %s4256_s19  ;;  %s4369_s18 = smov 55   ;;  %s4370_s19 = smov 119   ;;  %v3413_v25 = vsel %vm1158_vm15, %v1153_v28, %v1162_v39  ;;  %v2184_v39 = vld [vmem:[%s4176_s2 + $0x260] sm:$0xff]  ;;  %vm4451_vm15 = vmmov %vm4428_vm4 }
 0x28f   : > { %1207 = vrot.lane.b32.xlu0 %v3353_v47, %s4358_s30  ;;  %1191 = vrot.lane.b32.xlu1 %v3347_v13, %s4359_s27 }
 0x293   : > { %1231 = vrot.lane.b32.xlu0 %v3353_v47, %s4360_s28  ;;  %1203 = vrot.lane.b32.xlu1 %v3347_v13, %s4358_s30 }
 0x297   : > { %1255 = vrot.lane.b32.xlu0 %v3353_v47, %s4361_s16  ;;  %1195 = vrot.lane.b32.xlu1 %v3353_v47, %s4359_s27 }
 0x29b   : > { %1279 = vrot.lane.b32.xlu0 %v3353_v47, %s4362_s24  ;;  %1215 = vrot.lane.b32.xlu1 %v3347_v13, %s4363_s15 }
 0x29f   : > { %1303 = vrot.lane.b32.xlu0 %v3353_v47, %s4364_s20  ;;  %1227 = vrot.lane.b32.xlu1 %v3347_v13, %s4360_s28 }
 0x2a3   : > { %1315 = vrot.lane.b32.xlu0 %v3353_v47, %s4365_s21  ;;  %1219 = vrot.lane.b32.xlu1 %v3353_v47, %s4363_s15 }
 0x2a7   : > { %1327 = vrot.lane.b32.xlu0 %v3353_v47, %s4366_s22  ;;  %1239 = vrot.lane.b32.xlu1 %v3347_v13, %s4367_s23 }
 0x2ab   : > { %1339 = vrot.lane.b32.xlu0 %v3353_v47, %s4368_s26  ;;  %1251 = vrot.lane.b32.xlu1 %v3347_v13, %s4361_s16 }
 0x2af   : > { %1335 = vrot.lane.b32.xlu0 %v3347_v13, %s4368_s26  ;;  %1243 = vrot.lane.b32.xlu1 %v3353_v47, %s4367_s23 }
 0x2b3   : > { %1351 = vrot.lane.b32.xlu0 %v3353_v47, %s4258_s29  ;;  %1263 = vrot.lane.b32.xlu1 %v3347_v13, %s4369_s18  ;;  %s4372_s29 = smov 72  }
 0x2b7   : > { %1363 = vrot.lane.b32.xlu0 %v3353_v47, %s4370_s19  ;;  %1275 = vrot.lane.b32.xlu1 %v3347_v13, %s4362_s24 }
 0x2bb   : > { %1169 = vrot.lane.b32.xlu0 %v3403_v12, %s4371_s0  ;;  %1267 = vrot.lane.b32.xlu1 %v3353_v47, %s4369_s18 }
 0x2bf   : > { %1181 = vrot.lane.b32.xlu0 %v3403_v12, %s4372_s29  ;;  %1287 = vrot.lane.b32.xlu1 %v3347_v13, %s4373_s3 }
 0x2c3   : > { %1185 = vrot.lane.b32.xlu0 %v3413_v25, %s4372_s29  ;;  %1299 = vrot.lane.b32.xlu1 %v3347_v13, %s4364_s20  ;;  %s4374_s29 = smov 120  }
 0x2c7   : > { %1193 = vrot.lane.b32.xlu0 %v3403_v12, %s4359_s27  ;;  %1291 = vrot.lane.b32.xlu1 %v3353_v47, %s4373_s3 }
 0x2cb   : > { %1205 = vrot.lane.b32.xlu0 %v3403_v12, %s4358_s30  ;;  %1311 = vrot.lane.b32.xlu1 %v3347_v13, %s4365_s21 }
 0x2cf   : > { %1209 = vrot.lane.b32.xlu0 %v3413_v25, %s4358_s30  ;;  %1323 = vrot.lane.b32.xlu1 %v3347_v13, %s4366_s22 }
 0x2d3   : > { %1217 = vrot.lane.b32.xlu0 %v3403_v12, %s4363_s15  ;;  %1347 = vrot.lane.b32.xlu1 %v3347_v13, %s4374_s29 }
 0x2d7   : > { %1229 = vrot.lane.b32.xlu0 %v3403_v12, %s4360_s28  ;;  %1173 = vrot.lane.b32.xlu1 %v3413_v25, %s4371_s0  ;;  %s455_s0 = scalar_lea.vmem %s4175_s1, %s2353_s14 }
 0x2db   : > { %1233 = vrot.lane.b32.xlu0 %v3413_v25, %s4360_s28  ;;  %1197 = vrot.lane.b32.xlu1 %v3413_v25, %s4359_s27 }
 0x2df   : > { %1241 = vrot.lane.b32.xlu0 %v3403_v12, %s4367_s23  ;;  %1221 = vrot.lane.b32.xlu1 %v3413_v25, %s4363_s15 }
 0x2e3   : > { %1253 = vrot.lane.b32.xlu0 %v3403_v12, %s4361_s16  ;;  %1245 = vrot.lane.b32.xlu1 %v3413_v25, %s4367_s23 }
 0x2e7   : > { %1257 = vrot.lane.b32.xlu0 %v3413_v25, %s4361_s16  ;;  %1269 = vrot.lane.b32.xlu1 %v3413_v25, %s4369_s18 }
 0x2eb   : > { %1265 = vrot.lane.b32.xlu0 %v3403_v12, %s4369_s18  ;;  %1293 = vrot.lane.b32.xlu1 %v3413_v25, %s4373_s3 }
 0x2ef   : > { %1277 = vrot.lane.b32.xlu0 %v3403_v12, %s4362_s24  ;;  %1317 = vrot.lane.b32.xlu1 %v3413_v25, %s4365_s21 }
 0x2f3   : > { %1281 = vrot.lane.b32.xlu0 %v3413_v25, %s4362_s24  ;;  %1325 = vrot.lane.b32.xlu1 %v3403_v12, %s4366_s22 }
 0x2f5   : > { %v3467_v27 = vpop.permute.xlu1 %1167 }
 0x2f7   : > { %1289 = vrot.lane.b32.xlu0 %v3403_v12, %s4373_s3  ;;  %1337 = vrot.lane.b32.xlu1 %v3403_v12, %s4368_s26 }
 0x2f9   : > { %v3473_v46 = vpop.permute.xlu1 %1179 }
 0x2fb   : > { %1301 = vrot.lane.b32.xlu0 %v3403_v12, %s4364_s20  ;;  %1329 = vrot.lane.b32.xlu1 %v3413_v25, %s4366_s22 }
 0x2fd   : > { %v3479_v17 = vpop.permute.xlu0 %1183  ;;  %v3481_v44 = vpop.permute.xlu1 %1171 }
 0x2ff   : > { %1305 = vrot.lane.b32.xlu0 %v3413_v25, %s4364_s20  ;;  %1349 = vrot.lane.b32.xlu1 %v3403_v12, %s4374_s29 }
 0x301   : > { %v3487_v26 = vpop.permute.xlu0 %1207  ;;  %v3489_v5 = vpop.permute.xlu1 %1191 }
 0x303   : > { %1313 = vrot.lane.b32.xlu0 %v3403_v12, %s4365_s21  ;;  %1361 = vrot.lane.b32.xlu1 %v3403_v12, %s4370_s19 }
 0x305   : > { %v3495_v10 = vpop.permute.xlu0 %1231  ;;  %v3497_v43 = vpop.permute.xlu1 %1203 }
 0x307   : > { %1359 = vrot.lane.b32.xlu0 %v3347_v13, %s4370_s19  ;;  %1353 = vrot.lane.b32.xlu1 %v3413_v25, %s4374_s29 }
 0x309   : > { %v3503_v50 = vpop.permute.xlu0 %1255  ;;  %v3505_v8 = vpop.permute.xlu1 %1195 }
 0x30b   : > { %1341 = vrot.lane.b32.xlu0 %v3413_v25, %s4368_s26  ;;  %1484 = vperm.xlu1 %2168, %v1481_v35  }
 0x30d   : > { %v3509_v41 = vpop.permute.xlu0 %1279  ;;  %v3511_v31 = vpop.permute.xlu1 %1215 }
 0x30f   : > { %1365 = vrot.lane.b32.xlu0 %v3413_v25, %s4370_s19  ;;  %s460_s19 = scalar_lea.vmem %s4187_s13, %s2353_s14 }
 0x311   : > { %v3515_v49 = vpop.permute.xlu0 %1303  ;;  %v3517_v52 = vpop.permute.xlu1 %1227 }
 0x315   : > { %v3519_v48 = vpop.permute.xlu0 %1315  ;;  %v3521_v54 = vpop.permute.xlu1 %1219 }
 0x319   : > { %v3526_v15 = vpop.permute.xlu0 %1327  ;;  %v3528_v19 = vpop.permute.xlu1 %1239 }
 0x31d   : > { %v3532_v55 = vpop.permute.xlu0 %1339  ;;  %v3534_v23 = vpop.permute.xlu1 %1251 }
 0x321   : > { %v3539_v6 = vpop.permute.xlu0 %1335  ;;  %v3541_v9 = vpop.permute.xlu1 %1243 }
 0x325   : > { %v3543_v34 = vpop.permute.xlu0 %1351  ;;  %v3545_v53 = vpop.permute.xlu1 %1263 }
 0x329   : > { %v3547_v0 = vpop.permute.xlu0 %1363  ;;  %v3549_v2 = vpop.permute.xlu1 %1275 }
 0x32d   : > { %v1170_v56 = vpop.permute.xlu0 %1169  ;;  %v3551_v29 = vpop.permute.xlu1 %1267 }
 0x32e   : > { %v1177_v14 = vsel %vm680_vm0, %v3467_v27, %v1170_v56 }
 0x32f   : > { %v1372_v21 = vmul.f32 %v2181_v57, %v1177_v14  ;;  %v3567_v62 = vmul.f32 %v2182_v33, %v1177_v14 }
 0x331   : > { %v1182_v7 = vpop.permute.xlu0 %1181  ;;  %v3556_v3 = vpop.permute.xlu1 %1287  ;;  %4375 = vst [vmem:[#allocation47_spill] sm:$0xff] %v3567_v62 }
 0x332   : > { %v1189_v32 = vsel %vm693_vm1, %v3473_v46, %v1182_v7 }
 0x333   : > { %v1376_v28 = vmul.f32 %v2183_v42, %v1189_v32  ;;  %v3575_v4 = vmul.f32 %v2184_v39, %v1189_v32  ;;  %v3594_v39 = vsel %vm693_vm1, %v1182_v7, %v3479_v17 }
 0x335   : > { %4376 = vst [vmem:[#allocation48_spill] sm:$0xff] %v3575_v4  ;;  %v1186_v57 = vpop.permute.xlu0 %1185  ;;  %v3579_v11 = vpop.permute.xlu1 %1299  ;;  %v2035_v22 = vpack.c.bf16 %v1376_v28, %v1372_v21  ;;  %v2185_v28 = vld [vmem:[%s4176_s2 + $0x30] sm:$0xff] }
 0x336   : > { %v1377_v35 = vmul.f32 %v2185_v28, %v3594_v39  ;;  %v3613_v7 = vsel %vm693_vm1, %v1186_v57, %v3473_v46  ;;  %v2186_v46 = vld [vmem:[%s4176_s2 + $0x10] sm:$0xff]  ;;  %v3637_v37 = vsel %vm693_vm1, %v3479_v17, %v1186_v57  ;;  %v2189_v17 = vld [vmem:[%s4176_s2] sm:$0xff]  ;;  %vm4422_vm1 = vcmp.lt.s32.totalorder %v2489_v30, 127 }
 0x337   : > { %2036 = vmatprep.subr.bf16.mxu0 %v2035_v22  ;;  %v3599_v22 = vsel %vm680_vm0, %v1170_v56, %v3481_v44  ;;  %4379 = vst [vmem:[#allocation51_spill] sm:$0xff] %v3613_v7 }
 0x338   : > { %v1373_v51 = vmul.f32 %v2186_v46, %v3599_v22 }
 0x339   : > { %v1194_v14 = vpop.permute.xlu0 %1193  ;;  %v3581_v33 = vpop.permute.xlu1 %1291 }
 0x33a   : > { %v3618_v56 = vsel %vm706_vm2, %v3489_v5, %v1194_v14  ;;  %v2089_v20 = vpack.c.bf16 %v1377_v35, %v1373_v51  ;;  %v3676_v51 = vsel %vm706_vm2, %v1194_v14, %v3505_v8 }
 0x33b   : > { %4380 = vst [vmem:[#allocation52_spill] sm:$0xff] %v3618_v56 }
 0x33d   : > { %v1206_v18 = vpop.permute.xlu0 %1205  ;;  %v3583_v45 = vpop.permute.xlu1 %1311 }
 0x33e   : > { %v3604_v21 = vsel %vm719_vm3, %v3497_v43, %v1206_v18  ;;  %v3650_v46 = vsel %vm719_vm3, %v1206_v18, %v3487_v26 }
 0x33f   : > { %4378 = vst [vmem:[#allocation50_spill] sm:$0xff] %v3604_v21 }
 0x341   : > { %v1210_v42 = vpop.permute.xlu0 %1209  ;;  %v3585_v60 = vpop.permute.xlu1 %1323 }
 0x342   : > { %v3681_v35 = vsel %vm719_vm3, %v1210_v42, %v3497_v43 }
 0x343   : > { %4384 = vst [vmem:[#allocation56_spill] sm:$0xff] %v3681_v35 }
 0x345   : > { %v3587_v59 = vpop.permute.xlu0 %1217  ;;  %v3589_v32 = vpop.permute.xlu1 %1347 }
 0x346   : > { %4377 = vst [vmem:[#allocation49_spill] sm:$0xff] %v3589_v32  ;;  %v3696_v14 = vsel %vm732_vm5, %v3511_v31, %v3587_v59 }
 0x347   : > { %4385 = vst [vmem:[#allocation57_spill] sm:$0xff] %v3696_v14 }
 0x349   : > { %v1230_v62 = vpop.permute.xlu0 %1229  ;;  %v1174_v4 = vpop.permute.xlu1 %1173 }
 0x34a   : > { %v3623_v16 = vsel %vm680_vm0, %v3481_v44, %v1174_v4  ;;  %v3628_v28 = vsel %vm680_vm0, %v1174_v4, %v3467_v27  ;;  %v2187_v44 = vld [vmem:[%s4176_s2 + $0x68] sm:$0xff]  ;;  %v2188_v27 = vld [vmem:[%s4176_s2 + $0x20] sm:$0xff]  ;;  %vm4421_vm0 = vcmp.lt.s32.totalorder %v2489_v30, 121 }
 0x34b   : > { %4381 = vst [vmem:[#allocation53_spill] sm:$0xff] %v3623_v16  ;;  %4382 = vst [vmem:[#allocation54_spill] sm:$0xff] %v3628_v28  ;;  %v1384_v1 = vmul.f32 %v2187_v44, %v3604_v21  ;;  %v1375_v4 = vmul.f32 %v2188_v27, %v3613_v7  ;;  %v1371_v57 = vmul.f32 %v2189_v17, %v3628_v28  ;;  %v2190_v44 = vld [vmem:[%s4176_s2 + $0x18] sm:$0xff]  ;;  %v2191_v27 = vld [vmem:[%s4176_s2 + $0x48] sm:$0xff] }
 0x34c   : > { %v1374_v21 = vmul.f32 %v2190_v44, %v3623_v16  ;;  %v1380_v18 = vmul.f32 %v2191_v27, %v3618_v56  ;;  %v3667_v7 = vsel %vm745_vm6, %v3517_v52, %v1230_v62  ;;  %v2192_v28 = vld [vmem:[%s4176_s2 + $0x38] sm:$0xff]  ;;  %v2193_v56 = vld [vmem:[%s4176_s2 + $0x70] sm:$0xff] }
 0x34d   : > { %4383 = vst [vmem:[#allocation55_spill] sm:$0xff] %v3667_v7  ;;  %v1234_v32 = vpop.permute.xlu0 %1233  ;;  %v1198_v17 = vpop.permute.xlu1 %1197  ;;  %v1378_v44 = vmul.f32 %v2192_v28, %v3637_v37  ;;  %v2037_v27 = vpack.c.bf16 %v1375_v4, %v1371_v57  ;;  %v1385_v16 = vmul.f32 %v2193_v56, %v3650_v46  ;;  %v3690_v28 = vsel %vm719_vm3, %v3487_v26, %v1210_v42  ;;  %v2194_v4 = vld [vmem:[%s4176_s2 + $0xa8] sm:$0xff]  ;;  %vm4424_vm3 = vmmov %vm4421_vm0 }
 0x34e   : > { %v2039_v43 = vpack.c.bf16 %v1384_v1, %v1380_v18  ;;  %v1392_v57 = vmul.f32 %v2194_v4, %v3667_v7  ;;  %v3705_v56 = vsel %vm706_vm2, %v3505_v8, %v1198_v17  ;;  %v3710_v26 = vsel %vm706_vm2, %v1198_v17, %v3489_v5  ;;  %v2195_v1 = vld [vmem:[%s4176_s2 + $0x60] sm:$0xff]  ;;  %v2199_v7 = vld [vmem:[%s4176_s2 + $0x50] sm:$0xff]  ;;  %vm4423_vm2 = vmmov %vm4422_vm1 }
 0x34f   : > { %4386 = vst [vmem:[#allocation58_spill] sm:$0xff] %v3705_v56  ;;  %2038 = vmatpush1.bf16.msra.mxu0 %v2037_v27  ;;  %v2087_v42 = vpack.c.bf16 %v1378_v44, %v1374_v21  ;;  %v1383_v18 = vmul.f32 %v2195_v1, %v3681_v35  ;;  %v3719_v4 = vsel %vm745_vm6, %v1234_v32, %v3517_v52  ;;  %v2196_v8 = vld [vmem:[%s4176_s2 + $0x40] sm:$0xff]  ;;  %v2197_v21 = vld [vmem:[%s4176_s2 + $0x58] sm:$0xff]  ;;  %v2198_v52 = vld [vmem:[%s4176_s2 + $0x88] sm:$0xff] }
 0x350   : > { %4387 = vst [vmem:[#allocation59_spill] sm:$0xff] %v3719_v4  ;;  %v1379_v5 = vmul.f32 %v2196_v8, %v3710_v26  ;;  %v1382_v17 = vmul.f32 %v2197_v21, %v3705_v56  ;;  %2040 = vmatprep.subr.bf16.mxu0 %v2039_v43  ;;  %v1388_v1 = vmul.f32 %v2198_v52, %v3696_v14  ;;  %v2200_v21 = vld [vmem:[%s4176_s2 + $0x78] sm:$0xff] }
 0x351   : > { %v1242_v44 = vpop.permute.xlu0 %1241  ;;  %v1222_v27 = vpop.permute.xlu1 %1221  ;;  %2088 = vmatprep.subr.bf16.mxu1 %v2087_v42  ;;  %v1381_v43 = vmul.f32 %v2199_v7, %v3676_v51  ;;  %v1386_v56 = vmul.f32 %v2200_v21, %v3690_v28  ;;  %v2201_v7 = vld [vmem:[%s4176_s2 + $0xa0] sm:$0xff]  ;;  %v3773_v21 = vsel %vm745_vm6, %v3495_v10, %v1234_v32  ;;  %v2204_v32 = vld [vmem:[%s4176_s2 + $0xb0] sm:$0xff] }
 0x352   : > { %v3736_v8 = vsel %vm732_vm5, %v1222_v27, %v3511_v31  ;;  %v2041_v35 = vpack.c.bf16 %v1383_v18, %v1379_v5  ;;  %2090 = vmatpush1.bf16.msra.mxu1 %v2089_v20  ;;  %v3749_v42 = vsel %vm732_vm5, %v3521_v54, %v1222_v27  ;;  %v3754_v31 = vsel %vm745_vm6, %v1230_v62, %v3495_v10  ;;  %v2202_v20 = vld [vmem:[%s4176_s2 + $0x80] sm:$0xff]  ;;  %vm4433_vm6 = vmmov %vm4422_vm1 }
 0x353   : > { %v1391_v52 = vmul.f32 %v2201_v7, %v3719_v4  ;;  %v1387_v18 = vmul.f32 %v2202_v20, %v3736_v8  ;;  %v2043_v5 = vpack.c.bf16 %v1392_v57, %v1388_v1  ;;  %v2093_v27 = vpack.c.bf16 %v1385_v16, %v1381_v43  ;;  %4388 = vst [vmem:[#allocation60_spill] sm:$0xff] %v3773_v21  ;;  %v2203_v16 = vld [vmem:[%s4176_s2 + $0x98] sm:$0xff]  ;;  %v4391_v1 = vld [vmem:[#allocation3_spill] sm:$0xff]  ;;  %v2206_v20 = vld [vmem:[%s4176_s2 + $0x90] sm:$0xff] }
 0x354   : > { %v3768_v62 = vsel %vm732_vm5, %v3587_v59, %v3521_v54  ;;  %2042 = vmatpush1.bf16.msra.mxu0 %v2041_v35  ;;  %v2091_v7 = vpack.c.bf16 %v1386_v56, %v1382_v17  ;;  %v3778_v57 = vsel %vm758_vm7, %v3528_v19, %v1242_v44  ;;  %v1390_v59 = vmul.f32 %v2203_v16, %v3749_v42  ;;  %v2205_v56 = vld [vmem:[%s4176_s2 + $0xb8] sm:$0xff] }
 0x355   : > { %v1254_v4 = vpop.permute.xlu0 %1253  ;;  %v1246_v14 = vpop.permute.xlu1 %1245  ;;  %4389 = vst [vmem:[#allocation61_spill] sm:$0xff] %v3778_v57  ;;  %v2045_v54 = vpack.c.bf16 %v1391_v52, %v1387_v18  ;;  %2044 = vmatprep.subr.bf16.mxu0 %v2043_v5  ;;  %v1393_v35 = vmul.f32 %v2204_v32, %v3754_v31  ;;  %v1394_v17 = vmul.f32 %v2205_v56, %v3773_v21  ;;  %v4393_v5 = vld [vmem:[#allocation2_spill] sm:$0xff]  ;;  %vm4432_vm5 = vcmp.lt.s32.totalorder %v2489_v30, 120  ;;  %v2212_v30 = vld [vmem:[%s4176_s2 + $0x288] sm:$0xff] }
 0x356   : > { %v3787_v10 = vsel %vm771_vm8, %v3534_v23, %v1254_v4  ;;  %2092 = vmatprep.subr.bf16.mxu1 %v2091_v7  ;;  %v3802_v52 = vsel %vm758_vm7, %v1246_v14, %v3528_v19  ;;  %v1389_v18 = vmul.f32 %v2206_v20, %v3768_v62  ;;  %v1396_v7 = vmul.f32 %v3778_v57, %v4393_v5  ;;  %v4397_v5 = vld [vmem:[#allocation5_spill] sm:$0xff] }
 0x357   : > { %4390 = vst [vmem:[#allocation62_spill] sm:$0xff] %v3787_v10  ;;  %2094 = vmatpush1.bf16.msra.mxu1 %v2093_v27  ;;  %v1400_v43 = vmul.f32 %v3787_v10, %v4391_v1  ;;  %4392 = vst [vmem:[#allocation3_spill] sm:$0xff] %v3802_v52  ;;  %v3813_v32 = vsel %vm771_vm8, %v1254_v4, %v3503_v50  ;;  %v2095_v56 = vpack.c.bf16 %v1394_v17, %v1390_v59  ;;  %v4398_v59 = vld [vmem:[#allocation7_spill] sm:$0xff] }
 0x358   : > { %2046 = vmatpush1.bf16.msra.mxu0 %v2045_v54  ;;  %v2097_v20 = vpack.c.bf16 %v1393_v35, %v1389_v18  ;;  %v3828_v54 = vsel %vm758_vm7, %v3541_v9, %v1246_v14  ;;  %v1395_v4 = vmul.f32 %v3802_v52, %v4397_v5  ;;  %v4401_v52 = vld [vmem:[#allocation6_spill] sm:$0xff] }
 0x359   : > { %v1258_v16 = vpop.permute.xlu0 %1257  ;;  %v1270_v27 = vpop.permute.xlu1 %1269  ;;  %4396 = vst [vmem:[#allocation64_spill] sm:$0xff] %v3828_v54  ;;  %2096 = vmatprep.subr.bf16.mxu1 %v2095_v56  ;;  %v2047_v18 = vpack.c.bf16 %v1400_v43, %v1396_v7 }
 0x35a   : > { %v3818_v19 = vsel %vm771_vm8, %v3503_v50, %v1258_v16  ;;  %v3823_v1 = vsel %vm771_vm8, %v1258_v16, %v3534_v23  ;;  %v3837_v50 = vsel %vm758_vm7, %v1242_v44, %v3541_v9  ;;  %v4399_v23 = vld [vmem:[#allocation8_spill] sm:$0xff]  ;;  %vm4434_vm7 = vmmov %vm4428_vm4 }
 0x35b   : > { %4394 = vst [vmem:[#allocation2_spill] sm:$0xff] %v3818_v19  ;;  %4395 = vst [vmem:[#allocation63_spill] sm:$0xff] %v3823_v1  ;;  %v1399_v17 = vmul.f32 %v3823_v1, %v4398_v59  ;;  %v1402_v35 = vmul.f32 %v3818_v19, %v4399_v23  ;;  %v4400_v16 = vld [vmem:[#allocation4_spill] sm:$0xff]  ;;  %2098 = vmatpush1.bf16.msra.mxu1 %v2097_v20  ;;  %v1398_v59 = vmul.f32 %v3828_v54, %v4401_v52  ;;  %v4402_v1 = vld [vmem:[#allocation9_spill] sm:$0xff] }
 0x35c   : > { %v1401_v14 = vmul.f32 %v3813_v32, %v4400_v16  ;;  %2048 = vmatprep.subr.bf16.mxu0 %v2047_v18  ;;  %v1397_v9 = vmul.f32 %v3837_v50, %v4402_v1  ;;  %v3858_v52 = vsel %vm784_vm9, %v3551_v29, %v1270_v27  ;;  %vm4435_vm8 = vmmov %vm4422_vm1 }
 0x35d   : > { %v2049_v57 = vpack.c.bf16 %v1399_v17, %v1395_v4  ;;  %v1266_v21 = vpop.permute.xlu0 %1265  ;;  %v1294_v5 = vpop.permute.xlu1 %1293  ;;  %v2099_v43 = vpack.c.bf16 %v1402_v35, %v1398_v59  ;;  %4404 = vst [vmem:[#allocation7_spill] sm:$0xff] %v3858_v52  ;;  %v4406_v17 = vld [vmem:[#allocation11_spill] sm:$0xff]  ;;  %v3866_v35 = vsel %vm784_vm9, %v1270_v27, %v3545_v53 }
 0x35e   : > { %v3850_v44 = vsel %vm784_vm9, %v3545_v53, %v1266_v21  ;;  %v2101_v7 = vpack.c.bf16 %v1401_v14, %v1397_v9  ;;  %v4407_v9 = vld [vmem:[#allocation14_spill] sm:$0xff] }
 0x35f   : > { %2050 = vmatpush1.bf16.msra.mxu0 %v2049_v57  ;;  %4403 = vst [vmem:[#allocation5_spill] sm:$0xff] %v3850_v44  ;;  %2100 = vmatprep.subr.bf16.mxu1 %v2099_v43  ;;  %v4405_v57 = vld [vmem:[#allocation10_spill] sm:$0xff]  ;;  %v1406_v43 = vmul.f32 %v3858_v52, %v4407_v9  ;;  %v4411_v9 = vld [vmem:[#allocation16_spill] sm:$0xff] }
 0x360   : > { %v1404_v1 = vmul.f32 %v3850_v44, %v4405_v57  ;;  %2102 = vmatpush1.bf16.msra.mxu1 %v2101_v7  ;;  %v3876_v7 = vsel %vm784_vm9, %v1266_v21, %v3551_v29  ;;  %v4409_v57 = vld [vmem:[#allocation12_spill] sm:$0xff]  ;;  %v4412_v29 = vld [vmem:[#allocation17_spill] sm:$0xff]  ;;  %vm4437_vm9 = vmmov %vm4432_vm5 }
 0x361   : > { %v1278_v56 = vpop.permute.xlu0 %1277  ;;  %v1318_v20 = vpop.permute.xlu1 %1317  ;;  %v1405_v21 = vmul.f32 %v3876_v7, %v4412_v29 }
 0x362   : > { %v1285_v4 = vsel %vm797_vm10, %v3549_v2, %v1278_v56  ;;  %v1284_v18 = vsel %vm797_vm10, %v1278_v56, %v3509_v41  ;;  %v4408_v56 = vld [vmem:[#allocation13_spill] sm:$0xff] }
 0x363   : > { %v1408_v23 = vmul.f32 %v1285_v4, %v4406_v17  ;;  %v1403_v4 = vmul.f32 %v3866_v35, %v4408_v56  ;;  %v4410_v17 = vld [vmem:[#allocation15_spill] sm:$0xff]  ;;  %v1295_v56 = vsel %vm810_vm11, %v3581_v33, %v1294_v5 }
 0x365   : > { %v1282_v16 = vpop.permute.xlu0 %1281  ;;  %v1326_v14 = vpop.permute.xlu1 %1325  ;;  %v2051_v59 = vpack.c.bf16 %v1408_v23, %v1404_v1  ;;  %v1409_v1 = vmul.f32 %v1284_v18, %v4409_v57  ;;  %v1319_v18 = vsel %vm836_vm13, %v3519_v48, %v1318_v20  ;;  %v1424_v57 = vmul.f32 %v3403_v12, %v3084_v36 }
 0x366   : > { %v1283_v53 = vsel %vm797_vm10, %v3509_v41, %v1282_v16  ;;  %v1286_v27 = vsel %vm797_vm10, %v1282_v16, %v3549_v2  ;;  %v1426_v12 = vmul.f32 %v3413_v25, %v3116_v24  ;;  %v1332_v24 = vsel %vm4422_vm1, %v1326_v14, %v3526_v15  ;;  %vm4441_vm10 = vmmov %vm4421_vm0 }
 0x367   : > { %v1407_v23 = vmul.f32 %v1286_v27, %v4410_v17  ;;  %v1410_v52 = vmul.f32 %v1283_v53, %v4411_v9  ;;  %2052 = vmatprep.subr.bf16.mxu0 %v2051_v59  ;;  %v2105_v10 = vpack.c.bf16 %v1409_v1, %v1405_v21  ;;  %v4414_v27 = vld [vmem:[#allocation19_spill] sm:$0xff]  ;;  %v1322_v1 = vsel %vm836_vm13, %v1318_v20, %v3583_v45 }
 0x368   : > { %v1425_v21 = vmul.f32 %v3353_v47, %v3121_v38  ;;  %v4418_v38 = vld [vmem:[#allocation23_spill] sm:$0xff]  ;;  %v1333_v25 = vsel %vm4423_vm2, %v3585_v60, %v1326_v14  ;;  %v4425_v14 = vld [vmem:[#allocation25_spill] sm:$0xff]  ;;  %vm1641_vm1 = vcmask 64512   ;;  %vm1722_vm2 = vcmask 1041408  }
 0x369   : > { %v2053_v44 = vpack.c.bf16 %v1407_v23, %v1403_v4  ;;  %v1290_v54 = vpop.permute.xlu0 %1289  ;;  %v1338_v41 = vpop.permute.xlu1 %1337  ;;  %v2103_v19 = vpack.c.bf16 %v1410_v52, %v1406_v43  ;;  %v4413_v52 = vld [vmem:[#allocation18_spill] sm:$0xff]  ;;  %v1422_v4 = vmul.f32 %v1319_v18, %v3111_v61 }
 0x36a   : > { %v1297_v2 = vsel %vm810_vm11, %v3556_v3, %v1290_v54  ;;  %v1296_v17 = vsel %vm810_vm11, %v1290_v54, %v3581_v33  ;;  %v4415_v33 = vld [vmem:[#allocation20_spill] sm:$0xff] }
 0x36b   : > { %2054 = vmatpush1.bf16.msra.mxu0 %v2053_v44  ;;  %2104 = vmatprep.subr.bf16.mxu1 %v2103_v19  ;;  %v1412_v43 = vmul.f32 %v1297_v2, %v4413_v52  ;;  %v4417_v2 = vld [vmem:[#allocation22_spill] sm:$0xff]  ;;  %v2111_v52 = vpack.c.bf16 %v1426_v12, %v1422_v4 }
 0x36c   : > { %2106 = vmatpush1.bf16.msra.mxu1 %v2105_v10  ;;  %v1298_v10 = vsel %vm810_vm11, %v1294_v5, %v3556_v3  ;;  %v4416_v5 = vld [vmem:[#allocation21_spill] sm:$0xff]  ;;  %vm4442_vm11 = vmmov %vm4421_vm0 }
 0x36d   : > { %v1302_v16 = vpop.permute.xlu0 %1301  ;;  %v3897_v59 = vpop.permute.xlu1 %1329  ;;  %v1411_v54 = vmul.f32 %v1298_v10, %v4415_v33  ;;  %v1414_v20 = vmul.f32 %v1295_v56, %v4416_v5  ;;  %v1345_v56 = vsel %vm4424_vm3, %v3539_v6, %v1338_v41  ;;  %v4430_v33 = vld [vmem:[#allocation31_spill] sm:$0xff]  ;;  %vm1718_vm3 = vcmask 15360  }
 0x36e   : > { %v1309_v53 = vsel %vm823_vm12, %v3579_v11, %v1302_v16  ;;  %v1308_v44 = vsel %vm823_vm12, %v1302_v16, %v3515_v49 }
 0x36f   : > { %v1416_v19 = vmul.f32 %v1309_v53, %v4414_v27  ;;  %v1417_v3 = vmul.f32 %v1308_v44, %v3030_v58  ;;  %v4419_v58 = vld [vmem:[#allocation28_spill] sm:$0xff] }
 0x370   : > { %v1419_v16 = vmul.f32 %v1322_v1, %v4419_v58  ;;  %v4420_v53 = vld [vmem:[#allocation24_spill] sm:$0xff] }
 0x371   : > { %v1306_v23 = vpop.permute.xlu0 %1305  ;;  %v1350_v9 = vpop.permute.xlu1 %1349  ;;  %v2055_v29 = vpack.c.bf16 %v1416_v19, %v1412_v43 }
 0x372   : > { %v1307_v36 = vsel %vm823_vm12, %v3515_v49, %v1306_v23  ;;  %v1310_v61 = vsel %vm823_vm12, %v1306_v23, %v3579_v11  ;;  %v1413_v49 = vmul.f32 %v1296_v17, %v4420_v53  ;;  %v1344_v11 = vsel %vm4421_vm0, %v1338_v41, %v3532_v55  ;;  %vm4447_vm12 = vmmov %vm4432_vm5 }
 0x373   : > { %v1415_v18 = vmul.f32 %v1310_v61, %v4417_v2  ;;  %v1418_v47 = vmul.f32 %v1307_v36, %v4418_v38  ;;  %2056 = vmatprep.subr.bf16.mxu0 %v2055_v29  ;;  %v1432_v17 = vmul.f32 %v1344_v11, %v3160_v63  ;;  %v4426_v29 = vld [vmem:[#allocation26_spill] sm:$0xff]  ;;  %v4427_v61 = vld [vmem:[#allocation27_spill] sm:$0xff]  ;;  %v4431_v2 = vld [vmem:[#allocation29_spill] sm:$0xff]  ;;  %v1331_v38 = vsel %vm4433_vm6, %v3526_v15, %v3897_v59 }
 0x374   : > { %v2109_v10 = vpack.c.bf16 %v1417_v3, %v1413_v49  ;;  %v1423_v41 = vmul.f32 %v3347_v13, %v4427_v61  ;;  %v1356_v13 = vsel %vm4432_vm5, %v1350_v9, %v3543_v34  ;;  %v1334_v53 = vsel %vm4435_vm8, %v3897_v59, %v3585_v60  ;;  %v4436_v11 = vld [vmem:[#allocation49_spill] sm:$0xff]  ;;  %v4440_v59 = vld [vmem:[#allocation38_spill] sm:$0xff] }
 0x375   : > { %v2057_v43 = vpack.c.bf16 %v1415_v18, %v1411_v54  ;;  %v1314_v44 = vpop.permute.xlu0 %1313  ;;  %v1362_v27 = vpop.permute.xlu1 %1361  ;;  %v2107_v19 = vpack.c.bf16 %v1418_v47, %v1414_v20  ;;  %v1427_v18 = vmul.f32 %v1333_v25, %v4431_v2  ;;  %vm2268_vm0 = vmmov 0  }
 0x376   : > { %v1320_v4 = vsel %vm836_vm13, %v1314_v44, %v3519_v48  ;;  %v1321_v1 = vsel %vm836_vm13, %v3583_v45, %v1314_v44  ;;  %v1368_v3 = vsel %vm4428_vm4, %v1362_v27, %v3547_v0  ;;  %v4429_v48 = vld [vmem:[#allocation30_spill] sm:$0xff]  ;;  %v1431_v45 = vmul.f32 %v1345_v56, %v4430_v33  ;;  %v4439_v44 = vld [vmem:[#allocation32_spill] sm:$0xff]  ;;  %v4443_v56 = vld [vmem:[#allocation33_spill] sm:$0xff] }
 0x377   : > { %v1420_v23 = vmul.f32 %v1321_v1, %v4425_v14  ;;  %v1421_v36 = vmul.f32 %v1320_v4, %v4426_v29  ;;  %2058 = vmatpush1.bf16.msra.mxu0 %v2057_v43  ;;  %2108 = vmatprep.subr.bf16.mxu1 %v2107_v19  ;;  %v1428_v12 = vmul.f32 %v1332_v24, %v4429_v48  ;;  %v4438_v24 = vld [vmem:[#allocation37_spill] sm:$0xff]  ;;  %v4445_v1 = vld [vmem:[#allocation35_spill] sm:$0xff]  ;;  %vm4448_vm13 = vmmov %vm4432_vm5 }
 0x378   : > { %2110 = vmatpush1.bf16.msra.mxu1 %v2109_v10  ;;  %v2061_v20 = vpack.c.bf16 %v1423_v41, %v1419_v16  ;;  %v1440_v47 = vmul.f32 %v1368_v3, %v3226_v40  ;;  %v2208_v40 = vld [vmem:[%s4176_s2 + $0x268] sm:$0xff]  ;;  %v2065_v49 = vpack.c.bf16 %v1431_v45, %v1427_v18  ;;  %v1429_v60 = vmul.f32 %v1331_v38, %v4439_v44  ;;  %v4449_v33 = vld [vmem:[#allocation54_spill] sm:$0xff]  ;;  %v4453_v18 = vld [vmem:[#allocation40_spill] sm:$0xff] }
 0x379   : > { %v2113_v54 = vpack.c.bf16 %v1425_v21, %v1421_v36  ;;  %v1360_v63 = vpop.permute.xlu0 %1359  ;;  %2112 = vmatprep.subr.bf16.mxu1 %v2111_v52  ;;  %v2059_v5 = vpack.c.bf16 %v1424_v57, %v1420_v23  ;;  %v2063_v58 = vpack.c.bf16 %v1432_v17, %v1428_v12  ;;  %v2207_v57 = vld [vmem:[%s4176_s2 + $0x248] sm:$0xff]  ;;  %v1448_v15 = vmul.f32 %v2208_v40, %v3594_v39  ;;  %v1354_v25 = vpop.permute.xlu1 %1353  ;;  %v4446_v23 = vld [vmem:[#allocation36_spill] sm:$0xff]  ;;  %v4454_v38 = vld [vmem:[#allocation41_spill] sm:$0xff] }
 0x37a   : > { %v1369_v21 = vsel %vm4434_vm7, %v1360_v63, %v1362_v27  ;;  %v1444_v16 = vmul.f32 %v2207_v57, %v3599_v22  ;;  %v1357_v52 = vsel %vm4437_vm9, %v4436_v11, %v1350_v9  ;;  %v1436_v22 = vmul.f32 %v1356_v13, %v4438_v24  ;;  %v4444_v9 = vld [vmem:[#allocation34_spill] sm:$0xff]  ;;  %v2211_v57 = vld [vmem:[%s4176_s2 + $0x278] sm:$0xff] }
 0x37b   : > { %2060 = vmatprep.subr.bf16.mxu0 %v2059_v5  ;;  %v1439_v27 = vmul.f32 %v1369_v21, %v4440_v59  ;;  %v1430_v10 = vmul.f32 %v1334_v53, %v4443_v56  ;;  %v1435_v29 = vmul.f32 %v1357_v52, %v4446_v23  ;;  %v1355_v36 = vsel %vm4447_vm12, %v3543_v34, %v1354_v25  ;;  %v2210_v34 = vld [vmem:[%s4176_s2 + $0x258] sm:$0xff]  ;;  %v4455_v21 = vld [vmem:[#allocation42_spill] sm:$0xff]  ;;  %v2214_v52 = vld [vmem:[%s4176_s2 + $0x250] sm:$0xff] }
 0x37c   : > { %2062 = vmatpush1.bf16.msra.mxu0 %v2061_v20  ;;  %2114 = vmatpush1.bf16.msra.mxu1 %v2113_v54  ;;  %v2067_v14 = vpack.c.bf16 %v1440_v47, %v1436_v22  ;;  %v2071_v12 = vpack.c.bf16 %v1448_v15, %v1444_v16  ;;  %v1446_v45 = vmul.f32 %v2210_v34, %v4449_v33  ;;  %v4456_v16 = vld [vmem:[#allocation51_spill] sm:$0xff]  ;;  %v2213_v15 = vld [vmem:[%s4176_s2 + $0x2a0] sm:$0xff]  ;;  %v4458_v24 = vld [vmem:[#allocation53_spill] sm:$0xff] }
 0x37d   : > { %v1342_v43 = vpop.permute.xlu0 %1341  ;;  %2064 = vmatprep.subr.bf16.mxu0 %v2063_v58  ;;  %v2069_v54 = vpack.c.bf16 %v1439_v27, %v1435_v29  ;;  %v1445_v22 = vmul.f32 %v2214_v52, %v4458_v24  ;;  %v2217_v27 = vld [vmem:[%s4176_s2 + $0x270] sm:$0xff]  ;;  %v2221_v29 = vld [vmem:[%s4176_s2 + $0x2e0] sm:$0xff]  ;;  %v4471_v52 = vld [vmem:[#allocation61_spill] sm:$0xff] }
 0x37e   : > { %v1343_v19 = vsel %vm4441_vm10, %v3532_v55, %v1342_v43  ;;  %v1346_v39 = vsel %vm4442_vm11, %v1342_v43, %v3539_v6  ;;  %v1358_v55 = vsel %vm4448_vm13, %v1354_v25, %v4436_v11  ;;  %v2209_v6 = vld [vmem:[%s4176_s2 + $0x2a8] sm:$0xff]  ;;  %v2216_v43 = vld [vmem:[%s4176_s2 + $0x298] sm:$0xff] }
 0x37f   : > { %v1433_v4 = vmul.f32 %v1343_v19, %v4444_v9  ;;  %v1434_v17 = vmul.f32 %v1346_v39, %v4445_v1  ;;  %v1456_v61 = vmul.f32 %v2209_v6, %v3650_v46  ;;  %v4452_v46 = vld [vmem:[#allocation39_spill] sm:$0xff]  ;;  %v1438_v13 = vmul.f32 %v1358_v55, %v4453_v18  ;;  %v2218_v39 = vld [vmem:[%s4176_s2 + $0x280] sm:$0xff]  ;;  %v4463_v1 = vld [vmem:[#allocation56_spill] sm:$0xff] }
 0x380   : > { %2066 = vmatpush1.bf16.msra.mxu0 %v2065_v49  ;;  %v1437_v2 = vmul.f32 %v1355_v36, %v4452_v46  ;;  %v4457_v49 = vld [vmem:[#allocation50_spill] sm:$0xff]  ;;  %v2215_v25 = vld [vmem:[%s4176_s2 + $0x2e8] sm:$0xff]  ;;  %v1454_v44 = vmul.f32 %v2216_v43, %v3710_v26  ;;  %v1449_v19 = vmul.f32 %v2217_v27, %v3637_v37  ;;  %v2219_v26 = vld [vmem:[%s4176_s2 + $0x2b8] sm:$0xff] }
 0x381   : > { %v2117_v41 = vpack.c.bf16 %v1433_v4, %v1429_v60  ;;  %v1366_v3 = vpop.permute.xlu0 %1365  ;;  %2068 = vmatprep.subr.bf16.mxu0 %v2067_v14  ;;  %v2115_v48 = vpack.c.bf16 %v1434_v17, %v1430_v10  ;;  %v1455_v11 = vmul.f32 %v2213_v15, %v4457_v49  ;;  %v4460_v10 = vld [vmem:[#allocation48_spill] sm:$0xff]  ;;  %v4461_v9 = vld [vmem:[#allocation47_spill] sm:$0xff]  ;;  %v1458_v17 = vmul.f32 %v2219_v26, %v4463_v1  ;;  %v4466_v46 = vld [vmem:[#allocation57_spill] sm:$0xff] }
 0x382   : > { %v1367_v5 = vsel %vm4450_vm14, %v3547_v0, %v1366_v3  ;;  %v1370_v20 = vsel %vm4451_vm15, %v1366_v3, %v1360_v63  ;;  %v1450_v0 = vmul.f32 %v2211_v57, %v4456_v16  ;;  %v1452_v63 = vmul.f32 %v2212_v30, %v3676_v51  ;;  %v2220_v37 = vld [vmem:[%s4176_s2 + $0x2c8] sm:$0xff]  ;;  %v2230_v57 = vld [vmem:[%s4176_s2 + $0x320] sm:$0xff]  ;;  %v2232_v15 = vld [vmem:[%s4176_s2 + $0x2f0] sm:$0xff] }
 0x383   : > { %v1441_v47 = vmul.f32 %v1367_v5, %v4454_v38  ;;  %v1442_v58 = vmul.f32 %v1370_v20, %v4455_v21  ;;  %2116 = vmatprep.subr.bf16.mxu1 %v2115_v48  ;;  %v1464_v51 = vmul.f32 %v2215_v25, %v3754_v31  ;;  %v4459_v31 = vld [vmem:[#allocation52_spill] sm:$0xff]  ;;  %v4462_v4 = vpack.c.bf16 %v4460_v10, %v4461_v9  ;;  %v4464_v36 = vld [vmem:[#allocation55_spill] sm:$0xff]  ;;  %v2226_v20 = vld [vmem:[%s4176_s2 + $0x2c0] sm:$0xff] }
 0x384   : > { %2070 = vmatpush1.bf16.msra.mxu0 %v2069_v54  ;;  %2118 = vmatpush1.bf16.msra.mxu1 %v2117_v41  ;;  %v2075_v60 = vpack.c.bf16 %v1456_v61, %v1452_v63  ;;  %v2123_v59 = vpack.c.bf16 %v1450_v0, %v1446_v45  ;;  %v1451_v56 = vmul.f32 %v2218_v39, %v4459_v31  ;;  %v2222_v61 = vld [vmem:[%s4176_s2 + $0x290] sm:$0xff]  ;;  %v4465_v41 = vld [vmem:[#allocation58_spill] sm:$0xff]  ;;  %v4469_v30 = vld [vmem:[#allocation63_spill] sm:$0xff] }
 0x385   : > { %v2121_v53 = vpack.c.bf16 %v1441_v47, %v1437_v2  ;;  %2072 = vmatprep.subr.bf16.mxu0 %v2071_v12  ;;  %v2119_v40 = vpack.c.bf16 %v1442_v58, %v1438_v13  ;;  %v1460_v14 = vmul.f32 %v2220_v37, %v3768_v62  ;;  %v1463_v55 = vmul.f32 %v2221_v29, %v4464_v36  ;;  %v2223_v62 = vld [vmem:[%s4176_s2 + $0x2d8] sm:$0xff]  ;;  %v2224_v12 = vld [vmem:[%s4176_s2 + $0x328] sm:$0xff]  ;;  %v2225_v54 = vld [vmem:[%s4176_s2 + $0x2b0] sm:$0xff] }
 0x386   : > { %v2077_v23 = vpack.c.bf16 %v1455_v11, %v1451_v56  ;;  %v2125_v6 = vpack.c.bf16 %v1449_v19, %v1445_v22  ;;  %v1453_v3 = vmul.f32 %v2222_v61, %v4465_v41  ;;  %v1462_v48 = vmul.f32 %v2223_v62, %v3736_v8  ;;  %v4467_v2 = vld [vmem:[#allocation59_spill] sm:$0xff]  ;;  %v2229_v21 = vld [vmem:[%s4176_s2 + $0x2d0] sm:$0xff]  ;;  %v4468_v16 = vld [vmem:[#allocation62_spill] sm:$0xff] }
 0x387   : > { %2120 = vmatprep.subr.bf16.mxu1 %v2119_v40  ;;  %v1472_v34 = vmul.f32 %v2224_v12, %v3813_v32  ;;  %v2079_v33 = vpack.c.bf16 %v1464_v51, %v1460_v14  ;;  %v2127_v45 = vpack.c.bf16 %v1458_v17, %v1454_v44  ;;  %v1457_v5 = vmul.f32 %v2225_v54, %v3690_v28  ;;  %v2227_v32 = vld [vmem:[%s4176_s2 + $0x2f8] sm:$0xff]  ;;  %v2228_v13 = vld [vmem:[%s4176_s2 + $0x308] sm:$0xff]  ;;  %v4470_v49 = vld [vmem:[#allocation60_spill] sm:$0xff] }
 0x388   : > { %2074 = vmatpush1.bf16.msra.mxu0 %v4462_v4  ;;  %2122 = vmatpush1.bf16.msra.mxu1 %v2121_v53  ;;  %v1459_v8 = vmul.f32 %v2226_v20, %v4466_v46  ;;  %v1466_v18 = vmul.f32 %v2227_v32, %v4467_v2  ;;  %v1468_v28 = vmul.f32 %v2228_v13, %v3837_v50  ;;  %v2231_v50 = vld [vmem:[%s4176_s2 + $0x338] sm:$0xff]  ;;  %v2233_v11 = vld [vmem:[%s4176_s2 + $0x300] sm:$0xff]  ;;  %v4472_v25 = vld [vmem:[#allocation3_spill] sm:$0xff]  ;;  %v2267_v54 = vmov 0.0  }
 0x389   : > { %2076 = vmatprep.subr.bf16.mxu0 %v2075_v60  ;;  %2124 = vmatprep.subr.bf16.mxu1 %v2123_v59  ;;  %v2129_v47 = vpack.c.bf16 %v1457_v5, %v1453_v3  ;;  %v1461_v58 = vmul.f32 %v2229_v21, %v3749_v42  ;;  %v1471_v0 = vmul.f32 %v2230_v57, %v4468_v16  ;;  %v2234_v22 = vld [vmem:[%s4176_s2 + $0x318] sm:$0xff]  ;;  %v2235_v60 = vld [vmem:[%s4176_s2 + $0x330] sm:$0xff]  ;;  %v4473_v59 = vld [vmem:[#allocation2_spill] sm:$0xff] }
 0x38a   : > { %v2081_v38 = vpack.c.bf16 %v1463_v55, %v1459_v8  ;;  %v1474_v63 = vmul.f32 %v2231_v50, %v4469_v30  ;;  %v2083_v53 = vpack.c.bf16 %v1472_v34, %v1468_v28  ;;  %v2131_v40 = vpack.c.bf16 %v1466_v18, %v1462_v48  ;;  %v4474_v19 = vld [vmem:[#allocation43_spill] sm:$0xff]  ;;  %v2236_v56 = vld [vmem:[%s4176_s2 + $0x310] sm:$0xff]  ;;  %v4477_v1 = vld [vmem:[#allocation5_spill] sm:$0xff]  ;;  %v1485_v55 = vpop.permute.xlu1 %1484 }
 0x38b   : > { %v1465_v42 = vmul.f32 %v2232_v15, %v4470_v49  ;;  %v1467_v24 = vmul.f32 %v2233_v11, %v4471_v52  ;;  %v1470_v51 = vmul.f32 %v2234_v22, %v4472_v25  ;;  %v1473_v27 = vmul.f32 %v2235_v60, %v4473_v59  ;;  %v4475_v10 = vld [vmem:[#allocation64_spill] sm:$0xff]  ;;  %v1479_v37 = vld [vmem:[%s4181_s7] sm:$0xff]  ;;  %v4480_v29 = vld [vmem:[#allocation7_spill] sm:$0xff] }
 0x38c   : > { %2078 = vmatpush1.bf16.msra.mxu0 %v2077_v23  ;;  %2126 = vmatpush1.bf16.msra.mxu1 %v2125_v6  ;;  %v1476_v39 = vmul.f32 %v3876_v7, %v4474_v19  ;;  %v1469_v9 = vmul.f32 %v2236_v56, %v4475_v10  ;;  %v4476_v26 = vld [vmem:[#allocation44_spill] sm:$0xff]  ;;  %v4478_v7 = vld [vmem:[#allocation45_spill] sm:$0xff]  ;;  %v4479_v23 = vld [vmem:[#allocation46_spill] sm:$0xff] }
 0x38d   : > { %2080 = vmatprep.subr.bf16.mxu0 %v2079_v33  ;;  %2128 = vmatprep.subr.bf16.mxu1 %v2127_v45  ;;  %v2133_v43 = vpack.c.bf16 %v1465_v42, %v1461_v58  ;;  %v2085_v44 = vpack.c.bf16 %v1471_v0, %v1467_v24  ;;  %v2135_v31 = vpack.c.bf16 %v1474_v63, %v1470_v51  ;;  %v1639_v46 = vld [vmem:[%s4183_s9] sm:$0x3]  ;;  %v1816_v11 = vld [vmem:[%s455_s0 + $0x8] sm:$0xff]  ;;  %v1817_v52 = vld [vmem:[%s455_s0 + $0x10] sm:$0xff] }
 0x38e   : > { %v2137_v4 = vpack.c.bf16 %v1473_v27, %v1469_v9  ;;  %v1475_v17 = vmul.f32 %v4477_v1, %v4476_v26  ;;  %v1478_v14 = vmul.f32 %v3866_v35, %v4478_v7  ;;  %v1477_v36 = vmul.f32 %v4480_v29, %v4479_v23  ;;  %v1640_v8 = vld [vmem:[%s4184_s10] sm:$0x3]  ;;  %v1818_v24 = vld [vmem:[%s455_s0 + $0x18] sm:$0xff]  ;;  %v2238_v51 = vld [vmem:[%s2359_s17 + $0x8] sm:$0xff] }
 0x38f   : > { %v1716_v28 = vld [vmem:[%s4185_s11] sm:$0xff]  ;;  %v2240_v59 = vld [vmem:[%s2359_s17 + $0x18] sm:$0xff] }
 0x390   : > { %2082 = vmatpush1.bf16.msra.mxu0 %v2081_v38  ;;  %2130 = vmatpush1.bf16.msra.mxu1 %v2129_v47  ;;  %v1717_v38 = vld [vmem:[%s4186_s12] sm:$0xff] }
 0x391   : > { %2084 = vmatprep.subr.bf16.mxu0 %v2083_v53  ;;  %2132 = vmatprep.subr.bf16.mxu1 %v2131_v40  ;;  %v1815_v53 = vld [vmem:[%s455_s0] sm:$0xff] }
 0x392   : > { %v2237_v22 = vld [vmem:[%s2359_s17] sm:$0xff] }
 0x394   : > { %2086 = vmatpush1.bf16.msra.mxu0 %v2085_v44  ;;  %2134 = vmatpush1.bf16.msra.mxu1 %v2133_v43  ;;  %v2239_v44 = vld [vmem:[%s2359_s17 + $0x10] sm:$0xff] }
 0x395   : > { %1542 = vmatprep.subr.mxu0 %v1476_v39  ;;  %2136 = vmatprep.subr.bf16.mxu1 %v2135_v31 }
 0x398   : > { %1543 = vmatpush1.msra.mxu0 %v1475_v17  ;;  %2138 = vmatpush1.bf16.msra.mxu1 %v2137_v4 }
 0x399   : > { %1555 = vmatmul.mubr.f32.vlgmr.msra.gmra.mrb[2].mxu0 %v1479_v37  ;;  %1613 = vmatprep.subr.mxu1 %v1478_v14 }
 0x39a   : > { %1921 = vmatprep.subr.mxu0 %v2267_v54  ;;  %1923 = vmatprep.mubr.msk.f32.mxu0 %vm2268_vm0, %v2267_v54 }
 0x39c   : > { %1614 = vmatpush1.msra.mxu1 %v1477_v36 }
 0x39d   : > { %1626 = vmatmul.mubr.f32.vlgmr.msra.gmra.mrb[2].mxu1 %v1479_v37  ;;  %1926 = vmatprep.subr.mxu1 %v2267_v54 }
 0x39e   : > { %1928 = vmatprep.mubr.msk.f32.mxu1 %vm2268_vm0, %v2267_v54 }
 0x46c   : > { %v1556_v6 = vpop.f32.mrb[2].mxu0 }
 0x46d   : > { %v1557_v61 = vadd.f32 %v1556_v6, %v1485_v55  ;;  %v1558_v41 = vpop.f32.mrb[3].mxu0 }
 0x46e   : > { %v1559_v3 = vadd.f32 %v1558_v41, %v1485_v55 }
 0x470   : > { %v1632_v62 = vadd.f32 %v1559_v3, %v1557_v61  ;;  %v1627_v48 = vpop.f32.mrb[2].mxu1 }
 0x471   : > { %v1628_v12 = vadd.f32 %v1627_v48, %v1485_v55  ;;  %v1629_v34 = vpop.f32.mrb[3].mxu1 }
 0x472   : > { %v1630_v33 = vadd.f32 %v1629_v34, %v1485_v55 }
 0x473   : > { %v1633_v35 = vadd.f32 %v1632_v62, %v1628_v12 }
 0x475   : > { %v1634_v45 = vadd.f32 %v1633_v35, %v1630_v33 }
 0x477   : > { %1635 = vadd.xlane.f32.xlu0 %v1634_v45 }
 0x504   : > { %v1636_v5 = vpop.xlane.xlu0 %1635 }
 0x505   : > { %v1638_v20 = vmul.f32 0.001953125, %v1636_v5 }
 0x507   : > { %1922 = vmatpush3.msra.mxu0 %v1638_v20 }
 0x508   : > { %1924 = vmatmul.mubr.msk.f32.vlgmr.msra.gmra.mrb[4].mxu0 %vm1641_vm1, %v1639_v46 }
 0x5db   : > { %v1711_v32 = vpop.f32.mrb[4].mxu0 }
 0x5dc   : > { %v1712_v2 = vadd.f32 %v1711_v32, %v1640_v8  ;;  %v1925_v18 = vpop.f32.mrb[5].mxu0 }
 0x5de   : > { %v1715_v13 = vmax.f32 %v1712_v2, 0.0 }
 0x5e0   : > { %1927 = vmatpush3.msk.msra.mxu1 %vm1722_vm2, %v1715_v13 }
 0x5e1   : > { %1929 = vmatmul.mubr.msk.f32.vlgmr.msra.gmra.mrb[4].mxu1 %vm1718_vm3, %v1716_v28 }
 0x6b4   : > { %v1792_v47 = vpop.f32.mrb[4].mxu1 }
 0x6b5   : > { %v1793_v21 = vadd.f32 %v1792_v47, %v1717_v38  ;;  %v1930_v58 = vpop.f32.mrb[5].mxu1 }
 0x6b7   : > { %v1796_v57 = vsub.f32 0.0, %v1793_v21 }
 0x6b9   : > { %v1797_v16 = vmul.f32 1.442695, %v1796_v57 }
 0x6bb   : > { %2177 = vpow2.f32 %v1797_v16 }
 0x6c5   : > { %v2178_v0 = vpop.eup %2177 }
 0x6c6   : > { %v1799_v50 = vadd.f32 1.0, %v2178_v0 }
 0x6c8   : > { %2179 = vrcp.f32 %v1799_v50 }
 0x6d2   : > { %v2180_v30 = vpop.eup %2179 }
 0x6d3   : > { %1804 = vperm.xlu1 %2168, %v2180_v30  }
 0x752   : > { %v1805_v63 = vpop.permute.xlu1 %1804 }
 0x753   : > { %v1807_v40 = vmul.f32 %v1805_v63, %v1557_v61  ;;  %v1808_v15 = vmul.f32 %v1805_v63, %v1559_v3  ;;  %v1809_v49 = vmul.f32 %v1805_v63, %v1628_v12  ;;  %v1810_v42 = vmul.f32 %v1805_v63, %v1630_v33 }
 0x755   : > { %v1811_v25 = vadd.f32 %v2237_v22, %v1807_v40  ;;  %v1812_v43 = vadd.f32 %v2238_v51, %v1808_v15  ;;  %v1813_v60 = vadd.f32 %v2239_v44, %v1809_v49  ;;  %v1814_v27 = vadd.f32 %v2240_v59, %v1810_v42 }
 0x757   : > { %v1819_v19 = vadd.f32 %v1815_v53, %v1811_v25  ;;  %v1820_v39 = vadd.f32 %v1816_v11, %v1812_v43  ;;  %v1821_v31 = vadd.f32 %v1817_v52, %v1813_v60  ;;  %v1822_v56 = vadd.f32 %v1818_v24, %v1814_v27 }
 0x759   : > { %1823 = vst [vmem:[%s460_s19] sm:$0xff] %v1819_v19  ;;  %1824 = vst [vmem:[%s460_s19 + $0x8] sm:$0xff] %v1820_v39 }
 0x75a   : > { %1825 = vst [vmem:[%s460_s19 + $0x10] sm:$0xff] %v1821_v31  ;;  %1826 = vst [vmem:[%s460_s19 + $0x18] sm:$0xff] %v1822_v56 }
 0x75b PF: > { %s23_s25 = sadd.s32 1, %s2247_s25  }
 0x75c   : > { %p20_p4 = scmp.ge.s32.totalorder %s23_s25, 4  }
 0x75e   :  { %22 = sbr.rel (!%p20_p4) target bundleno = 3 (0x3), region = 105 }

</bundles_post_ra>
